<compile_context>
chip_gen: v7x
topology: tpu7x:2x2x1
jax: 0.10.0
libtpu: 0.0.40
codegen_flags: <defaults>
</compile_context>

<pallas_src>
import jax
import jax.numpy as jnp
from jax.experimental import pallas as pl
from jax.experimental.pallas import tpu as pltpu

NEG_SLOPE = 0.01   # nn.LeakyReLU() default negative_slope
BN_EPS = 1e-5      # nn.BatchNorm2d default eps


def _leaky(y):
    return jnp.where(y > 0, y, NEG_SLOPE * y)


# ------------------------- Pallas kernels -------------------------

def conv_bn_lrelu_kernel(p_ref, w_ref, b_ref, g_ref, beta_ref, o_ref):
    """conv (flipped im2col matmul) + bias + training-mode BatchNorm + LeakyReLU.

    p_ref: (K, R) bf16   w_ref: (Cout, K) bf16   b/g/beta: (Cout, 1) f32
    o_ref: (Cout, R) f32, R = B*Ho*Wo on the lane axis (lane-dense store).
    """
    y = jnp.dot(w_ref[...], p_ref[...], preferred_element_type=jnp.float32)
    y = y + b_ref[...]
    mean = jnp.mean(y, axis=1, keepdims=True)                   # stats over N*H*W
    var = jnp.mean(jnp.square(y - mean), axis=1, keepdims=True)  # biased variance
    yhat = (y - mean) * jax.lax.rsqrt(var + BN_EPS)
    o_ref[...] = _leaky(yhat * g_ref[...] + beta_ref[...])


def conv1out_lrelu_kernel(p_ref, w_ref, b_ref, o_ref):
    """Cout == 1 transposed conv + LeakyReLU on the VPU (no 1-row MXU matmul).

    p_ref: (K, R) bf16   w_ref: (K, 1) f32   b_ref: (1, 1) f32   o_ref: (1, R) f32
    """
    x = p_ref[...].astype(jnp.float32)
    y = jnp.sum(x * w_ref[...], axis=0, keepdims=True) + b_ref[...]
    o_ref[...] = _leaky(y)


def head_kernel(z_ref, wmv_ref, bmv_ref, eps_ref, wimu_ref, bimu_ref,
                mv_ref, d_ref):
    """fc_mu|fc_var (packed weight) + reparameterization + imu_test, fused.

    z_ref: (B,1600) f32, wmv_ref: (1600,64) bf16, bmv_ref: (1,64) f32,
    eps_ref: (B,32) f32, wimu_ref: (32,1600) bf16, bimu_ref: (1,1600) f32.
    Outputs: mv_ref (B,64) packed [mu | logvar], d_ref (B,1600).
    """
    z = z_ref[...].astype(jnp.bfloat16)
    mv = jnp.dot(z, wmv_ref[...], preferred_element_type=jnp.float32)
    mv = mv + bmv_ref[...]
    mv_ref[...] = mv
    mu = mv[:, :32]
    logvar = mv[:, 32:]
    z2 = eps_ref[...] * jnp.exp(0.5 * logvar) + mu               # repara, f32
    d = jnp.dot(z2.astype(jnp.bfloat16), wimu_ref[...],
                preferred_element_type=jnp.float32)
    d_ref[...] = d + bimu_ref[...]


def _call(kernel, out_shapes, *args):
    """Whole-array VMEM-resident call (tiny working set at B=2).

    Note: for large batches on v7x (64 MiB VMEM, 2 TCs) the non-BN kernels
    should get a parallel row grid; the BN kernels must keep the full row
    dimension in one block for exact batch statistics.
    """
    vmem = pl.BlockSpec(memory_space=pltpu.MemorySpace.VMEM)
    return pl.pallas_call(
        kernel,
        out_shape=tuple(jax.ShapeDtypeStruct(s, jnp.float32) for s in out_shapes),
        in_specs=[vmem] * len(args),
        out_specs=tuple(vmem for _ in out_shapes),
        compiler_params=pltpu.CompilerParams(vmem_limit_bytes=64 * 1024 * 1024),
    )(*args)


# ------------------------- plain-JAX glue -------------------------

def im2col_T(x, kh, kw):
    """x: (B,H,W,C) NHWC -> transposed patches (kh*kw*C, B*Ho*Wo) in bf16.

    Row order over K is (i, j, c); column order is (b, ho, wo) so the matmul
    output lands directly in the lane-dense (Cout, B*Ho*Wo) layout.
    """
    B, H, W, C = x.shape
    Ho, Wo = H - kh + 1, W - kw + 1
    taps = [x[:, i:i + Ho, j:j + Wo, :] for i in range(kh) for j in range(kw)]
    p = jnp.stack(taps, axis=0)                      # (kh*kw, B, Ho, Wo, C)
    p = jnp.transpose(p, (0, 4, 1, 2, 3))            # (kh*kw, C, B, Ho, Wo)
    return p.reshape(kh * kw * C, B * Ho * Wo).astype(jnp.bfloat16)


def conv_w_flip(w):
    # PyTorch Conv2d weight (Cout, Cin, kh, kw) -> (Cout, kh*kw*Cin) bf16
    Cout, Cin, kh, kw = w.shape
    return jnp.transpose(w, (0, 2, 3, 1)).reshape(Cout, kh * kw * Cin).astype(jnp.bfloat16)


def convT_w_flip(w):
    # ConvTranspose2d weight (Cin, Cout, kh, kw):
    # conv_transpose(x, w) == conv(pad(x, k-1), flip_hw(w).swap(Cin, Cout))
    w2 = jnp.transpose(jnp.flip(w, axis=(2, 3)), (1, 0, 2, 3))   # (Cout,Cin,kh,kw)
    return conv_w_flip(w2)


def convT_w_col(w):
    # ConvTranspose2d (Cin, 1, kh, kw) -> (kh*kw*Cin, 1) f32 column (VPU path)
    w2 = jnp.transpose(jnp.flip(w, axis=(2, 3)), (1, 0, 2, 3))   # (1,Cin,kh,kw)
    Cout, Cin, kh, kw = w2.shape
    wm = jnp.transpose(w2, (0, 2, 3, 1)).reshape(Cout, kh * kw * Cin)
    return wm.T.astype(jnp.float32)


def init_params(key):
    ks = jax.random.split(key, 12)

    def n(k, shape, s=0.05):
        return (s * jax.random.normal(k, shape)).astype(jnp.float32)

    return {
        "w_cnn1": n(ks[0], (16, 1, 5, 5)),  "b_cnn1": n(ks[1], (16,), 0.01),
        "w_cnn2": n(ks[2], (4, 16, 5, 5)),  "b_cnn2": n(ks[3], (4,), 0.01),
        "g_bn1": jnp.ones((16,), jnp.float32), "be_bn1": jnp.zeros((16,), jnp.float32),
        "g_bn2": jnp.ones((4,), jnp.float32),  "be_bn2": jnp.zeros((4,), jnp.float32),
        "w_fc_mu": n(ks[4], (32, 1600)),    "b_fc_mu": n(ks[5], (32,), 0.01),
        "w_fc_var": n(ks[6], (32, 1600)),   "b_fc_var": n(ks[7], (32,), 0.01),
        "w_imu": n(ks[8], (1600, 32)),      "b_imu": n(ks[9], (1600,), 0.01),
        "w_icnn2": n(ks[10], (4, 16, 5, 5)),   # ConvTranspose2d: (Cin, Cout, kh, kw)
        "b_icnn2": jnp.zeros((16,), jnp.float32),
        "w_icnn1": n(ks[11], (16, 1, 5, 5)),   # (Cin, Cout, kh, kw)
        "b_icnn1": jnp.zeros((1,), jnp.float32),
    }


def prepare(p):
    # pre-reshape / pre-cast weights into the layouts the kernels expect
    return {
        "w1": conv_w_flip(p["w_cnn1"]),      "b1": p["b_cnn1"].reshape(16, 1),
        "g1": p["g_bn1"].reshape(16, 1),     "be1": p["be_bn1"].reshape(16, 1),
        "w2": conv_w_flip(p["w_cnn2"]),      "b2": p["b_cnn2"].reshape(4, 1),
        "g2": p["g_bn2"].reshape(4, 1),      "be2": p["be_bn2"].reshape(4, 1),
        "wmv": jnp.concatenate([p["w_fc_mu"].T, p["w_fc_var"].T],
                               axis=1).astype(jnp.bfloat16),         # (1600, 64)
        "bmv": jnp.concatenate([p["b_fc_mu"], p["b_fc_var"]]).reshape(1, 64),
        "wimu": p["w_imu"].T.astype(jnp.bfloat16),                   # (32, 1600)
        "bimu": p["b_imu"].reshape(1, 1600),
        "wic2": convT_w_flip(p["w_icnn2"]),  "bic2": p["b_icnn2"].reshape(16, 1),
        "wic1": convT_w_col(p["w_icnn1"]),   "bic1": p["b_icnn1"].reshape(1, 1),
    }


def vae_forward(w, x_nchw, eps):
    """x_nchw: (B,1,28,28) f32.  Returns (pred_x (B,1,28,28), mu (B,32), var (B,32))."""
    B = x_nchw.shape[0]
    x = jnp.transpose(x_nchw, (0, 2, 3, 1))                      # NHWC (B,28,28,1)

    # ---- encoder ----
    p1 = im2col_T(x, 5, 5)                                       # (25, B*576)
    (h1,) = _call(conv_bn_lrelu_kernel, [(16, B * 576)],
                  p1, w["w1"], w["b1"], w["g1"], w["be1"])
    h1_nhwc = jnp.transpose(h1.reshape(16, B, 24, 24), (1, 2, 3, 0))

    p2 = im2col_T(h1_nhwc, 5, 5)                                 # (400, B*400)
    (h2,) = _call(conv_bn_lrelu_kernel, [(4, B * 400)],
                  p2, w["w2"], w["b2"], w["g2"], w["be2"])

    # torch.flatten(x, start_dim=1) flattens NCHW channel-major
    z_flat = jnp.transpose(h2.reshape(4, B, 20, 20), (1, 0, 2, 3)).reshape(B, 1600)

    # ---- fused head: fc_mu|fc_var + reparameterize + imu_test ----
    mv, d = _call(head_kernel, [(B, 64), (B, 1600)],
                  z_flat, w["wmv"], w["bmv"], eps, w["wimu"], w["bimu"])
    mu, var = mv[:, :32], mv[:, 32:]                             # free wrapper split

    # ---- decoder ----
    dec = jnp.transpose(d.reshape(B, 4, 20, 20), (0, 2, 3, 1))   # NHWC (B,20,20,4)
    dec = jnp.pad(dec, ((0, 0), (4, 4), (4, 4), (0, 0)))         # full pad for convT
    p3 = im2col_T(dec, 5, 5)                                     # (100, B*576)
    (h3,) = _call(conv_bn_lrelu_kernel, [(16, B * 576)],
                  p3, w["wic2"], w["bic2"], w["g1"], w["be1"])   # reuses bn1 (per spec)
    h3_nhwc = jnp.transpose(h3.reshape(16, B, 24, 24), (1, 2, 3, 0))

    h3_nhwc = jnp.pad(h3_nhwc, ((0, 0), (4, 4), (4, 4), (0, 0)))
    p4 = im2col_T(h3_nhwc, 5, 5)                                 # (400, B*784)
    (h4,) = _call(conv1out_lrelu_kernel, [(1, B * 784)], p4, w["wic1"], w["bic1"])
    pred_x = jnp.transpose(h4.reshape(1, B, 28, 28), (1, 0, 2, 3))  # NCHW

    return pred_x, mu, var


if __name__ == "__main__":
    kld_weight = 0.00025  # stored by __init__; only used by loss()
    # TODO(synk): loss() is not part of forward(); not implemented here.

    key = jax.random.PRNGKey(0)
    kp, kx, ke = jax.random.split(key, 3)

    params = init_params(kp)
    prep = prepare(params)

    B = 2
    x = jax.random.normal(kx, (B, 1, 28, 28), dtype=jnp.float32)
    # torch.randn_like(std) -> deterministic host-provided standard normal noise
    eps = jax.random.normal(ke, (B, 32), dtype=jnp.float32)

    fwd = jax.jit(vae_forward)
    pred_x, mu, var = fwd(prep, x, eps)
    jax.block_until_ready((pred_x, mu, var))

    assert pred_x.shape == (B, 1, 28, 28) and pred_x.dtype == jnp.float32
    assert mu.shape == (B, 32) and var.shape == (B, 32)
    assert bool(jnp.all(jnp.isfinite(pred_x)))
    assert bool(jnp.all(jnp.isfinite(mu))) and bool(jnp.all(jnp.isfinite(var)))
    print("KERNEL_OK")
</pallas_src>

<mosaic_0001>
module attributes {stable_mosaic.version = 11 : i64} {
  func.func @conv_bn_lrelu_kernel(%arg0: memref<25x1152xbf16, #tpu.memory_space<vmem>>, %arg1: memref<16x25xbf16, #tpu.memory_space<vmem>>, %arg2: memref<16x1xf32, #tpu.memory_space<vmem>>, %arg3: memref<16x1xf32, #tpu.memory_space<vmem>>, %arg4: memref<16x1xf32, #tpu.memory_space<vmem>>, %arg5: memref<16x1152xf32, #tpu.memory_space<vmem>>) attributes {dimension_semantics = [], scalar_prefetch = 0 : i64, scratch_operands = 0 : i64, tpu.core_type = #tpu.core_type<tc>} {
    %c0 = arith.constant 0 : index
    %c0_0 = arith.constant 0 : index
    %0 = vector.load %arg1[%c0, %c0_0] : memref<16x25xbf16, #tpu.memory_space<vmem>>, vector<16x25xbf16>
    %c0_1 = arith.constant 0 : index
    %c0_2 = arith.constant 0 : index
    %1 = vector.load %arg0[%c0_1, %c0_2] : memref<25x1152xbf16, #tpu.memory_space<vmem>>, vector<25x1152xbf16>
    %cst = arith.constant dense<0.000000e+00> : vector<16x1152xf32>
    %2 = tpu.matmul %0, %1, %cst {dimension_numbers = #tpu.dot_dimension_numbers<[1], [0], [0], [1], [0, 0, 1, 1], [], []>} : vector<16x25xbf16>, vector<25x1152xbf16>, vector<16x1152xf32> -> vector<16x1152xf32>
    %c0_3 = arith.constant 0 : index
    %c0_4 = arith.constant 0 : index
    %3 = vector.load %arg2[%c0_3, %c0_4] : memref<16x1xf32, #tpu.memory_space<vmem>>, vector<16x1xf32>
    %4 = vector.broadcast %3 : vector<16x1xf32> to vector<16x1152xf32>
    %5 = arith.addf %2, %4 : vector<16x1152xf32>
    %cst_5 = arith.constant dense<0.000000e+00> : vector<16xf32>
    %6 = vector.multi_reduction <add>, %5, %cst_5 [1] : vector<16x1152xf32> to vector<16xf32>
    %7 = vector.shape_cast %6 : vector<16xf32> to vector<16x1xf32>
    %cst_6 = arith.constant 1.152000e+03 : f32
    %8 = vector.broadcast %cst_6 : f32 to vector<16x1xf32>
    %9 = arith.divf %7, %8 : vector<16x1xf32>
    %10 = vector.broadcast %9 : vector<16x1xf32> to vector<16x1152xf32>
    %11 = arith.subf %5, %10 : vector<16x1152xf32>
    %12 = arith.mulf %11, %11 : vector<16x1152xf32>
    %cst_7 = arith.constant dense<0.000000e+00> : vector<16xf32>
    %13 = vector.multi_reduction <add>, %12, %cst_7 [1] : vector<16x1152xf32> to vector<16xf32>
    %14 = vector.shape_cast %13 : vector<16xf32> to vector<16x1xf32>
    %cst_8 = arith.constant 1.152000e+03 : f32
    %15 = vector.broadcast %cst_8 : f32 to vector<16x1xf32>
    %16 = arith.divf %14, %15 : vector<16x1xf32>
    %17 = vector.broadcast %9 : vector<16x1xf32> to vector<16x1152xf32>
    %18 = arith.subf %5, %17 : vector<16x1152xf32>
    %cst_9 = arith.constant 9.99999974E-6 : f32
    %19 = vector.broadcast %cst_9 : f32 to vector<16x1xf32>
    %20 = arith.addf %16, %19 : vector<16x1xf32>
    %21 = math.rsqrt %20 : vector<16x1xf32>
    %22 = vector.broadcast %21 : vector<16x1xf32> to vector<16x1152xf32>
    %23 = arith.mulf %18, %22 : vector<16x1152xf32>
    %c0_10 = arith.constant 0 : index
    %c0_11 = arith.constant 0 : index
    %24 = vector.load %arg3[%c0_10, %c0_11] : memref<16x1xf32, #tpu.memory_space<vmem>>, vector<16x1xf32>
    %25 = vector.broadcast %24 : vector<16x1xf32> to vector<16x1152xf32>
    %26 = arith.mulf %23, %25 : vector<16x1152xf32>
    %c0_12 = arith.constant 0 : index
    %c0_13 = arith.constant 0 : index
    %27 = vector.load %arg4[%c0_12, %c0_13] : memref<16x1xf32, #tpu.memory_space<vmem>>, vector<16x1xf32>
    %28 = vector.broadcast %27 : vector<16x1xf32> to vector<16x1152xf32>
    %29 = arith.addf %26, %28 : vector<16x1152xf32>
    %cst_14 = arith.constant 0.000000e+00 : f32
    %30 = vector.broadcast %cst_14 : f32 to vector<16x1152xf32>
    %31 = arith.cmpf ogt, %29, %30 : vector<16x1152xf32>
    %cst_15 = arith.constant 0.00999999977 : f32
    %32 = vector.broadcast %cst_15 : f32 to vector<16x1152xf32>
    %33 = arith.mulf %32, %29 : vector<16x1152xf32>
    %34 = arith.select %31, %29, %33 : vector<16x1152xi1>, vector<16x1152xf32>
    %c0_16 = arith.constant 0 : index
    %c0_17 = arith.constant 0 : index
    %35 = vector.load %arg5[%c0_16, %c0_17] : memref<16x1152xf32, #tpu.memory_space<vmem>>, vector<16x1152xf32>
    tpu.vector_store %arg5[%c0_16, %c0_17], %34 {strides = array<i32>} : memref<16x1152xf32, #tpu.memory_space<vmem>>, vector<16x1152xf32>,
    return
  }
}

module attributes {stable_mosaic.version = 11 : i64} {
  func.func @conv_bn_lrelu_kernel(%arg0: memref<400x800xbf16, #tpu.memory_space<vmem>>, %arg1: memref<4x400xbf16, #tpu.memory_space<vmem>>, %arg2: memref<4x1xf32, #tpu.memory_space<vmem>>, %arg3: memref<4x1xf32, #tpu.memory_space<vmem>>, %arg4: memref<4x1xf32, #tpu.memory_space<vmem>>, %arg5: memref<4x800xf32, #tpu.memory_space<vmem>>) attributes {dimension_semantics = [], scalar_prefetch = 0 : i64, scratch_operands = 0 : i64, tpu.core_type = #tpu.core_type<tc>} {
    %c0 = arith.constant 0 : index
    %c0_0 = arith.constant 0 : index
    %0 = vector.load %arg1[%c0, %c0_0] : memref<4x400xbf16, #tpu.memory_space<vmem>>, vector<4x400xbf16>
    %c0_1 = arith.constant 0 : index
    %c0_2 = arith.constant 0 : index
    %1 = vector.load %arg0[%c0_1, %c0_2] : memref<400x800xbf16, #tpu.memory_space<vmem>>, vector<400x800xbf16>
    %cst = arith.constant dense<0.000000e+00> : vector<4x800xf32>
    %2 = tpu.matmul %0, %1, %cst {dimension_numbers = #tpu.dot_dimension_numbers<[1], [0], [0], [1], [0, 0, 1, 1], [], []>} : vector<4x400xbf16>, vector<400x800xbf16>, vector<4x800xf32> -> vector<4x800xf32>
    %c0_3 = arith.constant 0 : index
    %c0_4 = arith.constant 0 : index
    %3 = vector.load %arg2[%c0_3, %c0_4] : memref<4x1xf32, #tpu.memory_space<vmem>>, vector<4x1xf32>
    %4 = vector.broadcast %3 : vector<4x1xf32> to vector<4x800xf32>
    %5 = arith.addf %2, %4 : vector<4x800xf32>
    %cst_5 = arith.constant dense<0.000000e+00> : vector<4xf32>
    %6 = vector.multi_reduction <add>, %5, %cst_5 [1] : vector<4x800xf32> to vector<4xf32>
    %7 = vector.shape_cast %6 : vector<4xf32> to vector<4x1xf32>
    %cst_6 = arith.constant 8.000000e+02 : f32
    %8 = vector.broadcast %cst_6 : f32 to vector<4x1xf32>
    %9 = arith.divf %7, %8 : vector<4x1xf32>
    %10 = vector.broadcast %9 : vector<4x1xf32> to vector<4x800xf32>
    %11 = arith.subf %5, %10 : vector<4x800xf32>
    %12 = arith.mulf %11, %11 : vector<4x800xf32>
    %cst_7 = arith.constant dense<0.000000e+00> : vector<4xf32>
    %13 = vector.multi_reduction <add>, %12, %cst_7 [1] : vector<4x800xf32> to vector<4xf32>
    %14 = vector.shape_cast %13 : vector<4xf32> to vector<4x1xf32>
    %cst_8 = arith.constant 8.000000e+02 : f32
    %15 = vector.broadcast %cst_8 : f32 to vector<4x1xf32>
    %16 = arith.divf %14, %15 : vector<4x1xf32>
    %17 = vector.broadcast %9 : vector<4x1xf32> to vector<4x800xf32>
    %18 = arith.subf %5, %17 : vector<4x800xf32>
    %cst_9 = arith.constant 9.99999974E-6 : f32
    %19 = vector.broadcast %cst_9 : f32 to vector<4x1xf32>
    %20 = arith.addf %16, %19 : vector<4x1xf32>
    %21 = math.rsqrt %20 : vector<4x1xf32>
    %22 = vector.broadcast %21 : vector<4x1xf32> to vector<4x800xf32>
    %23 = arith.mulf %18, %22 : vector<4x800xf32>
    %c0_10 = arith.constant 0 : index
    %c0_11 = arith.constant 0 : index
    %24 = vector.load %arg3[%c0_10, %c0_11] : memref<4x1xf32, #tpu.memory_space<vmem>>, vector<4x1xf32>
    %25 = vector.broadcast %24 : vector<4x1xf32> to vector<4x800xf32>
    %26 = arith.mulf %23, %25 : vector<4x800xf32>
    %c0_12 = arith.constant 0 : index
    %c0_13 = arith.constant 0 : index
    %27 = vector.load %arg4[%c0_12, %c0_13] : memref<4x1xf32, #tpu.memory_space<vmem>>, vector<4x1xf32>
    %28 = vector.broadcast %27 : vector<4x1xf32> to vector<4x800xf32>
    %29 = arith.addf %26, %28 : vector<4x800xf32>
    %cst_14 = arith.constant 0.000000e+00 : f32
    %30 = vector.broadcast %cst_14 : f32 to vector<4x800xf32>
    %31 = arith.cmpf ogt, %29, %30 : vector<4x800xf32>
    %cst_15 = arith.constant 0.00999999977 : f32
    %32 = vector.broadcast %cst_15 : f32 to vector<4x800xf32>
    %33 = arith.mulf %32, %29 : vector<4x800xf32>
    %34 = arith.select %31, %29, %33 : vector<4x800xi1>, vector<4x800xf32>
    %c0_16 = arith.constant 0 : index
    %c0_17 = arith.constant 0 : index
    %35 = vector.load %arg5[%c0_16, %c0_17] : memref<4x800xf32, #tpu.memory_space<vmem>>, vector<4x800xf32>
    tpu.vector_store %arg5[%c0_16, %c0_17], %34 {strides = array<i32>} : memref<4x800xf32, #tpu.memory_space<vmem>>, vector<4x800xf32>,
    return
  }
}

module attributes {stable_mosaic.version = 11 : i64} {
  func.func @head_kernel(%arg0: memref<2x1600xf32, #tpu.memory_space<vmem>>, %arg1: memref<1600x64xbf16, #tpu.memory_space<vmem>>, %arg2: memref<1x64xf32, #tpu.memory_space<vmem>>, %arg3: memref<2x32xf32, #tpu.memory_space<vmem>>, %arg4: memref<32x1600xbf16, #tpu.memory_space<vmem>>, %arg5: memref<1x1600xf32, #tpu.memory_space<vmem>>, %arg6: memref<2x64xf32, #tpu.memory_space<vmem>>, %arg7: memref<2x1600xf32, #tpu.memory_space<vmem>>) attributes {dimension_semantics = [], scalar_prefetch = 0 : i64, scratch_operands = 0 : i64, tpu.core_type = #tpu.core_type<tc>} {
    %c0 = arith.constant 0 : index
    %c0_0 = arith.constant 0 : index
    %0 = vector.load %arg0[%c0, %c0_0] : memref<2x1600xf32, #tpu.memory_space<vmem>>, vector<2x1600xf32>
    %1 = arith.truncf %0 : vector<2x1600xf32> to vector<2x1600xbf16>
    %c0_1 = arith.constant 0 : index
    %c0_2 = arith.constant 0 : index
    %2 = vector.load %arg1[%c0_1, %c0_2] : memref<1600x64xbf16, #tpu.memory_space<vmem>>, vector<1600x64xbf16>
    %cst = arith.constant dense<0.000000e+00> : vector<2x64xf32>
    %3 = tpu.matmul %1, %2, %cst {dimension_numbers = #tpu.dot_dimension_numbers<[1], [0], [0], [1], [0, 0, 1, 1], [], []>} : vector<2x1600xbf16>, vector<1600x64xbf16>, vector<2x64xf32> -> vector<2x64xf32>
    %c0_3 = arith.constant 0 : index
    %c0_4 = arith.constant 0 : index
    %4 = vector.load %arg2[%c0_3, %c0_4] : memref<1x64xf32, #tpu.memory_space<vmem>>, vector<1x64xf32>
    %5 = vector.broadcast %4 : vector<1x64xf32> to vector<2x64xf32>
    %6 = arith.addf %3, %5 : vector<2x64xf32>
    %c0_5 = arith.constant 0 : index
    %c0_6 = arith.constant 0 : index
    %7 = vector.load %arg6[%c0_5, %c0_6] : memref<2x64xf32, #tpu.memory_space<vmem>>, vector<2x64xf32>
    tpu.vector_store %arg6[%c0_5, %c0_6], %6 {strides = array<i32>} : memref<2x64xf32, #tpu.memory_space<vmem>>, vector<2x64xf32>,
    %8 = vector.extract_strided_slice %6 {offsets = [0, 0], sizes = [2, 32], strides = [1, 1]} : vector<2x64xf32> to vector<2x32xf32>
    %9 = vector.extract_strided_slice %6 {offsets = [0, 32], sizes = [2, 32], strides = [1, 1]} : vector<2x64xf32> to vector<2x32xf32>
    %c0_7 = arith.constant 0 : index
    %c0_8 = arith.constant 0 : index
    %10 = vector.load %arg3[%c0_7, %c0_8] : memref<2x32xf32, #tpu.memory_space<vmem>>, vector<2x32xf32>
    %cst_9 = arith.constant 5.000000e-01 : f32
    %11 = vector.broadcast %cst_9 : f32 to vector<2x32xf32>
    %12 = arith.mulf %11, %9 : vector<2x32xf32>
    %13 = math.exp %12 : vector<2x32xf32>
    %14 = arith.mulf %10, %13 : vector<2x32xf32>
    %15 = arith.addf %14, %8 : vector<2x32xf32>
    %16 = arith.truncf %15 : vector<2x32xf32> to vector<2x32xbf16>
    %c0_10 = arith.constant 0 : index
    %c0_11 = arith.constant 0 : index
    %17 = vector.load %arg4[%c0_10, %c0_11] : memref<32x1600xbf16, #tpu.memory_space<vmem>>, vector<32x1600xbf16>
    %cst_12 = arith.constant dense<0.000000e+00> : vector<2x1600xf32>
    %18 = tpu.matmul %16, %17, %cst_12 {dimension_numbers = #tpu.dot_dimension_numbers<[1], [0], [0], [1], [0, 0, 1, 1], [], []>} : vector<2x32xbf16>, vector<32x1600xbf16>, vector<2x1600xf32> -> vector<2x1600xf32>
    %c0_13 = arith.constant 0 : index
    %c0_14 = arith.constant 0 : index
    %19 = vector.load %arg5[%c0_13, %c0_14] : memref<1x1600xf32, #tpu.memory_space<vmem>>, vector<1x1600xf32>
    %20 = vector.broadcast %19 : vector<1x1600xf32> to vector<2x1600xf32>
    %21 = arith.addf %18, %20 : vector<2x1600xf32>
    %c0_15 = arith.constant 0 : index
    %c0_16 = arith.constant 0 : index
    %22 = vector.load %arg7[%c0_15, %c0_16] : memref<2x1600xf32, #tpu.memory_space<vmem>>, vector<2x1600xf32>
    tpu.vector_store %arg7[%c0_15, %c0_16], %21 {strides = array<i32>} : memref<2x1600xf32, #tpu.memory_space<vmem>>, vector<2x1600xf32>,
    return
  }
}

module attributes {stable_mosaic.version = 11 : i64} {
  func.func @conv_bn_lrelu_kernel(%arg0: memref<100x1152xbf16, #tpu.memory_space<vmem>>, %arg1: memref<16x100xbf16, #tpu.memory_space<vmem>>, %arg2: memref<16x1xf32, #tpu.memory_space<vmem>>, %arg3: memref<16x1xf32, #tpu.memory_space<vmem>>, %arg4: memref<16x1xf32, #tpu.memory_space<vmem>>, %arg5: memref<16x1152xf32, #tpu.memory_space<vmem>>) attributes {dimension_semantics = [], scalar_prefetch = 0 : i64, scratch_operands = 0 : i64, tpu.core_type = #tpu.core_type<tc>} {
    %c0 = arith.constant 0 : index
    %c0_0 = arith.constant 0 : index
    %0 = vector.load %arg1[%c0, %c0_0] : memref<16x100xbf16, #tpu.memory_space<vmem>>, vector<16x100xbf16>
    %c0_1 = arith.constant 0 : index
    %c0_2 = arith.constant 0 : index
    %1 = vector.load %arg0[%c0_1, %c0_2] : memref<100x1152xbf16, #tpu.memory_space<vmem>>, vector<100x1152xbf16>
    %cst = arith.constant dense<0.000000e+00> : vector<16x1152xf32>
    %2 = tpu.matmul %0, %1, %cst {dimension_numbers = #tpu.dot_dimension_numbers<[1], [0], [0], [1], [0, 0, 1, 1], [], []>} : vector<16x100xbf16>, vector<100x1152xbf16>, vector<16x1152xf32> -> vector<16x1152xf32>
    %c0_3 = arith.constant 0 : index
    %c0_4 = arith.constant 0 : index
    %3 = vector.load %arg2[%c0_3, %c0_4] : memref<16x1xf32, #tpu.memory_space<vmem>>, vector<16x1xf32>
    %4 = vector.broadcast %3 : vector<16x1xf32> to vector<16x1152xf32>
    %5 = arith.addf %2, %4 : vector<16x1152xf32>
    %cst_5 = arith.constant dense<0.000000e+00> : vector<16xf32>
    %6 = vector.multi_reduction <add>, %5, %cst_5 [1] : vector<16x1152xf32> to vector<16xf32>
    %7 = vector.shape_cast %6 : vector<16xf32> to vector<16x1xf32>
    %cst_6 = arith.constant 1.152000e+03 : f32
    %8 = vector.broadcast %cst_6 : f32 to vector<16x1xf32>
    %9 = arith.divf %7, %8 : vector<16x1xf32>
    %10 = vector.broadcast %9 : vector<16x1xf32> to vector<16x1152xf32>
    %11 = arith.subf %5, %10 : vector<16x1152xf32>
    %12 = arith.mulf %11, %11 : vector<16x1152xf32>
    %cst_7 = arith.constant dense<0.000000e+00> : vector<16xf32>
    %13 = vector.multi_reduction <add>, %12, %cst_7 [1] : vector<16x1152xf32> to vector<16xf32>
    %14 = vector.shape_cast %13 : vector<16xf32> to vector<16x1xf32>
    %cst_8 = arith.constant 1.152000e+03 : f32
    %15 = vector.broadcast %cst_8 : f32 to vector<16x1xf32>
    %16 = arith.divf %14, %15 : vector<16x1xf32>
    %17 = vector.broadcast %9 : vector<16x1xf32> to vector<16x1152xf32>
    %18 = arith.subf %5, %17 : vector<16x1152xf32>
    %cst_9 = arith.constant 9.99999974E-6 : f32
    %19 = vector.broadcast %cst_9 : f32 to vector<16x1xf32>
    %20 = arith.addf %16, %19 : vector<16x1xf32>
    %21 = math.rsqrt %20 : vector<16x1xf32>
    %22 = vector.broadcast %21 : vector<16x1xf32> to vector<16x1152xf32>
    %23 = arith.mulf %18, %22 : vector<16x1152xf32>
    %c0_10 = arith.constant 0 : index
    %c0_11 = arith.constant 0 : index
    %24 = vector.load %arg3[%c0_10, %c0_11] : memref<16x1xf32, #tpu.memory_space<vmem>>, vector<16x1xf32>
    %25 = vector.broadcast %24 : vector<16x1xf32> to vector<16x1152xf32>
    %26 = arith.mulf %23, %25 : vector<16x1152xf32>
    %c0_12 = arith.constant 0 : index
    %c0_13 = arith.constant 0 : index
    %27 = vector.load %arg4[%c0_12, %c0_13] : memref<16x1xf32, #tpu.memory_space<vmem>>, vector<16x1xf32>
    %28 = vector.broadcast %27 : vector<16x1xf32> to vector<16x1152xf32>
    %29 = arith.addf %26, %28 : vector<16x1152xf32>
    %cst_14 = arith.constant 0.000000e+00 : f32
    %30 = vector.broadcast %cst_14 : f32 to vector<16x1152xf32>
    %31 = arith.cmpf ogt, %29, %30 : vector<16x1152xf32>
    %cst_15 = arith.constant 0.00999999977 : f32
    %32 = vector.broadcast %cst_15 : f32 to vector<16x1152xf32>
    %33 = arith.mulf %32, %29 : vector<16x1152xf32>
    %34 = arith.select %31, %29, %33 : vector<16x1152xi1>, vector<16x1152xf32>
    %c0_16 = arith.constant 0 : index
    %c0_17 = arith.constant 0 : index
    %35 = vector.load %arg5[%c0_16, %c0_17] : memref<16x1152xf32, #tpu.memory_space<vmem>>, vector<16x1152xf32>
    tpu.vector_store %arg5[%c0_16, %c0_17], %34 {strides = array<i32>} : memref<16x1152xf32, #tpu.memory_space<vmem>>, vector<16x1152xf32>,
    return
  }
}

module attributes {stable_mosaic.version = 11 : i64} {
  func.func @conv1out_lrelu_kernel(%arg0: memref<400x1568xbf16, #tpu.memory_space<vmem>>, %arg1: memref<400x1xf32, #tpu.memory_space<vmem>>, %arg2: memref<1x1xf32, #tpu.memory_space<vmem>>, %arg3: memref<1x1568xf32, #tpu.memory_space<vmem>>) attributes {dimension_semantics = [], scalar_prefetch = 0 : i64, scratch_operands = 0 : i64, tpu.core_type = #tpu.core_type<tc>} {
    %c0 = arith.constant 0 : index
    %c0_0 = arith.constant 0 : index
    %0 = vector.load %arg0[%c0, %c0_0] : memref<400x1568xbf16, #tpu.memory_space<vmem>>, vector<400x1568xbf16>
    %1 = arith.extf %0 : vector<400x1568xbf16> to vector<400x1568xf32>
    %c0_1 = arith.constant 0 : index
    %c0_2 = arith.constant 0 : index
    %2 = vector.load %arg1[%c0_1, %c0_2] : memref<400x1xf32, #tpu.memory_space<vmem>>, vector<400x1xf32>
    %3 = vector.broadcast %2 : vector<400x1xf32> to vector<400x1568xf32>
    %4 = arith.mulf %1, %3 : vector<400x1568xf32>
    %cst = arith.constant dense<0.000000e+00> : vector<1568xf32>
    %5 = vector.multi_reduction <add>, %4, %cst [0] : vector<400x1568xf32> to vector<1568xf32>
    %6 = vector.shape_cast %5 : vector<1568xf32> to vector<1x1568xf32>
    %c0_3 = arith.constant 0 : index
    %c0_4 = arith.constant 0 : index
    %7 = vector.load %arg2[%c0_3, %c0_4] : memref<1x1xf32, #tpu.memory_space<vmem>>, vector<1x1xf32>
    %8 = vector.broadcast %7 : vector<1x1xf32> to vector<1x1568xf32>
    %9 = arith.addf %6, %8 : vector<1x1568xf32>
    %cst_5 = arith.constant 0.000000e+00 : f32
    %10 = vector.broadcast %cst_5 : f32 to vector<1x1568xf32>
    %11 = arith.cmpf ogt, %9, %10 : vector<1x1568xf32>
    %cst_6 = arith.constant 0.00999999977 : f32
    %12 = vector.broadcast %cst_6 : f32 to vector<1x1568xf32>
    %13 = arith.mulf %12, %9 : vector<1x1568xf32>
    %14 = arith.select %11, %9, %13 : vector<1x1568xi1>, vector<1x1568xf32>
    %c0_7 = arith.constant 0 : index
    %c0_8 = arith.constant 0 : index
    %15 = vector.load %arg3[%c0_7, %c0_8] : memref<1x1568xf32, #tpu.memory_space<vmem>>, vector<1x1568xf32>
    tpu.vector_store %arg3[%c0_7, %c0_8], %14 {strides = array<i32>} : memref<1x1568xf32, #tpu.memory_space<vmem>>, vector<1x1568xf32>,
    return
  }
}

</mosaic_0001>

<bundles_post_ra>
// kernel: vae_forward.5
= control target key start
LH: loop header
LB: loop body
LE: loop exit
PB: predicated region body
PF: predicated region fallthrough
CT: control target
= control target key end

     0   :  { %10 = vsyncpa [#allocation3], 0  ;;  %s1227_s0 = inlined_call_operand.hbm [shape: bf16[25,1152], index: 0, kind: input, shape index: {}]   ;;  %s1228_s1 = inlined_call_operand.hbm [shape: bf16[16,25], index: 1, kind: input, shape index: {}]   ;;  %s1229_s2 = inlined_call_operand.hbm [shape: f32[16,1], index: 2, kind: input, shape index: {}]   ;;  %s1230_s3 = inlined_call_operand.hbm [shape: f32[16,1], index: 3, kind: input, shape index: {}]   ;;  %s1231_s4 = inlined_call_operand.hbm [shape: f32[16,1], index: 4, kind: input, shape index: {}]   ;;  %s1232_s5 = inlined_call_operand.hbm [shape: f32[16,1152], index: 5, kind: output, shape index: {}]  }
   0x1   :  { %11 = vsyncpa [#allocation6], 0 }
   0x2   :  { %12 = vsyncpa [#allocation9], 0 }
   0x3   :  { %13 = vsyncpa [#allocation4], 0  ;;  %s940_s18 = smov [#allocation5]   ;;  %s800_s22 = scalar_lea.hbm %s1228_s1, 128 }
   0x4   :  { %s31_s19 = sshll.u32 %s940_s18, 4  ;;  %p801_p0 = scmp.ne.s32.totalorder %s1228_s1, %s800_s22  ;;  %s32_s19 = int_to_ptr.vmem [resolvable:$true] %s31_s19 }
   0x5   :  { %p804_p1 = scmp.lt.u32.totalorder %s800_s22, %s1228_s1 }
   0x7   :  { %p806_p2 = pnand %p804_p1, %p801_p0 }
   0x9   :  { %809 = shalt.err (!%p806_p2)
}
   0xa   :  { %s810_s27 = scalar_lea.vmem %s32_s19, 128  ;;  %p815_p4 = scmp.lt.s32.totalorder %s32_s19, %s32_s19 }
   0xb   :  { %p811_p3 = scmp.ne.s32.totalorder %s32_s19, %s810_s27  ;;  %p816_p5 = scmp.lt.s32.totalorder %s810_s27, %s810_s27 }
   0xd   :  { %p817_p6 = por %p816_p5, %p815_p4 }
   0xf   :  { %p818_p7 = pnand %p817_p6, %p811_p3 }
  0x11   :  { %821 = shalt.err (!%p818_p7)
}
  0x12   :  { %s941_s28 = smov 64   ;;  %s942_s29 = smov 4  }
  0x13   :  { %37 = dma.hbm_to_vmem [thread:$0]  %s1228_s1, 128, %s32_s19, [#allocation6], %s941_s28, %s941_s28, %s942_s29  }
  0x14   :  { %s943_s7 = smov [#allocation8]   ;;  %s944_s9 = smov [#allocation2]  }
  0x15   :  { %s55_s8 = sshll.u32 %s943_s7, 4  ;;  %s19_s10 = sshll.u32 %s944_s9, 4  ;;  %s56_s8 = int_to_ptr.vmem [resolvable:$true] %s55_s8  ;;  %s20_s10 = int_to_ptr.vmem [resolvable:$true] %s19_s10 }
  0x16   :  { %s822_s13 = scalar_lea.hbm %s1230_s3, 256 }
  0x17   :  { %p823_p8 = scmp.ne.s32.totalorder %s1230_s3, %s822_s13  ;;  %p826_p9 = scmp.lt.u32.totalorder %s822_s13, %s1230_s3 }
  0x19   :  { %p828_p10 = pnand %p826_p9, %p823_p8 }
  0x1b   :  { %831 = shalt.err (!%p828_p10)
}
  0x1c   :  { %s832_s1 = scalar_lea.vmem %s56_s8, 256  ;;  %p837_p12 = scmp.lt.s32.totalorder %s56_s8, %s56_s8 }
  0x1d   :  { %p833_p11 = scmp.ne.s32.totalorder %s56_s8, %s832_s1  ;;  %p838_p13 = scmp.lt.s32.totalorder %s832_s1, %s832_s1 }
  0x1f   :  { %p839_p0 = por %p838_p13, %p837_p12 }
  0x21   :  { %p840_p1 = pnand %p839_p0, %p833_p11 }
  0x23   :  { %843 = shalt.err (!%p840_p1)
}
  0x24   :  { %s945_s18 = smov 128   ;;  %s946_s19 = smov 8  }
  0x25   :  { %61 = dma.hbm_to_vmem [thread:$0]  %s1230_s3, 256, %s56_s8, [#allocation9], %s945_s18, %s945_s18, %s946_s19  }
  0x26   :  { %s844_s24 = scalar_lea.hbm %s1227_s0, 2304 }
  0x27   :  { %p845_p2 = scmp.ne.s32.totalorder %s1227_s0, %s844_s24  ;;  %p848_p3 = scmp.lt.u32.totalorder %s844_s24, %s1227_s0 }
  0x29   :  { %p850_p4 = pnand %p848_p3, %p845_p2 }
  0x2b   :  { %853 = shalt.err (!%p850_p4)
}
  0x2c   :  { %s854_s29 = scalar_lea.vmem %s20_s10, 2304  ;;  %p859_p6 = scmp.lt.s32.totalorder %s20_s10, %s20_s10 }
  0x2d   :  { %p855_p5 = scmp.ne.s32.totalorder %s20_s10, %s854_s29  ;;  %p860_p7 = scmp.lt.s32.totalorder %s854_s29, %s854_s29 }
  0x2f   :  { %p861_p8 = por %p860_p7, %p859_p6 }
  0x31   :  { %p862_p9 = pnand %p861_p8, %p855_p5 }
  0x33   :  { %865 = shalt.err (!%p862_p9)
}
  0x34   :  { %s947_s3 = smov 576   ;;  %s948_s30 = smov 36  }
  0x35   :  { %25 = dma.hbm_to_vmem [thread:$0]  %s1227_s0, 2304, %s20_s10, [#allocation3], %s947_s3, %s947_s3, %s948_s30  }
  0x36   :  { %s949_s8 = smov [#allocation7]   ;;  %s950_s11 = smov [#allocation10]  }
  0x37   :  { %s43_s9 = sshll.u32 %s949_s8, 4  ;;  %s67_s12 = sshll.u32 %s950_s11, 4  ;;  %s44_s9 = int_to_ptr.vmem [resolvable:$true] %s43_s9  ;;  %s68_s12 = int_to_ptr.vmem [resolvable:$true] %s67_s12 }
  0x38   :  { %s866_s15 = scalar_lea.hbm %s1229_s2, 256 }
  0x39   :  { %p867_p10 = scmp.ne.s32.totalorder %s1229_s2, %s866_s15  ;;  %p870_p11 = scmp.lt.u32.totalorder %s866_s15, %s1229_s2 }
  0x3b   :  { %p872_p12 = pnand %p870_p11, %p867_p10 }
  0x3d   :  { %875 = shalt.err (!%p872_p12)
}
  0x3e   :  { %s876_s0 = scalar_lea.vmem %s44_s9, 256  ;;  %p881_p0 = scmp.lt.s32.totalorder %s44_s9, %s44_s9 }
  0x3f   :  { %p877_p13 = scmp.ne.s32.totalorder %s44_s9, %s876_s0  ;;  %p882_p1 = scmp.lt.s32.totalorder %s876_s0, %s876_s0 }
  0x41   :  { %p883_p2 = por %p882_p1, %p881_p0 }
  0x43   :  { %p884_p3 = pnand %p883_p2, %p877_p13 }
  0x45   :  { %887 = shalt.err (!%p884_p3)
}
  0x46   :  { %49 = dma.hbm_to_vmem [thread:$0]  %s1229_s2, 256, %s44_s9, [#allocation6], %s945_s18, %s945_s18, %s946_s19  }
  0x47   :  { %s888_s24 = scalar_lea.hbm %s1231_s4, 256 }
  0x48   :  { %p889_p4 = scmp.ne.s32.totalorder %s1231_s4, %s888_s24  ;;  %p892_p5 = scmp.lt.u32.totalorder %s888_s24, %s1231_s4 }
  0x4a   :  { %p894_p6 = pnand %p892_p5, %p889_p4 }
  0x4c   :  { %897 = shalt.err (!%p894_p6)
}
  0x4d   :  { %s898_s29 = scalar_lea.vmem %s68_s12, 256  ;;  %p903_p8 = scmp.lt.s32.totalorder %s68_s12, %s68_s12 }
  0x4e   :  { %p899_p7 = scmp.ne.s32.totalorder %s68_s12, %s898_s29  ;;  %p904_p9 = scmp.lt.s32.totalorder %s898_s29, %s898_s29 }
  0x50   :  { %p905_p10 = por %p904_p9, %p903_p8 }
  0x52   :  { %p906_p11 = pnand %p905_p10, %p899_p7 }
  0x54   :  { %909 = shalt.err (!%p906_p11)
}
  0x55   :  { %73 = dma.hbm_to_vmem [thread:$0]  %s1231_s4, 256, %s68_s12, [#allocation9], %s945_s18, %s945_s18, %s946_s19  }
  0x56   :  { %932 = dma.done.wait [#allocation3], 2304  }
  0x57   :  { %933 = vsyncadd [#allocation3], 4294964992 }
  0x58   :  { %934 = dma.done.wait [#allocation6], 384  }
  0x59   :  { %935 = vsyncadd [#allocation6], 4294966912 }
  0x5a   :  { %936 = dma.done.wait [#allocation9], 512  }
  0x5b   :  { %937 = vsyncadd [#allocation9], 4294966784  ;;  %v951_v0 = vmov 0   ;;  %vm216_vm0 = vcmask 1043456   ;;  %vm217_vm1 = vcmask 1044480   ;;  %v952_v1 = vmov 65535  }
  0x5c   :  { %279 = vmatprep.mubr.bf16.mxu0 %v951_v0  ;;  %322 = vmatprep.mubr.bf16.mxu1 %v951_v0  ;;  %v218_v2 = vsel %vm216_vm0, 4294967295, %v952_v1  ;;  %v769_v3 = vld [vmem:[#allocation2 + $0x4] ss:$36 sps:$4 sm:$0xff]   ;;  %v771_v4 = vld [vmem:[#allocation2 + $0xc] ss:$36 sps:$4 sm:$0xff]   ;;  %vm212_vm2 = vcmask 203776  }
  0x5d   :  { %767 = vset.pattern.permute.xlu0 %v951_v0  ;;  %768 = vset.pattern.permute.xlu1 %v951_v0  ;;  %v773_v5 = vld [vmem:[#allocation2] ss:$36 sps:$4 sm:$0xff]   ;;  %v774_v6 = vld [vmem:[#allocation2 + $0x8] ss:$36 sps:$4 sm:$0xff]   ;;  %v219_v7 = vsel %vm217_vm1, %v218_v2, 0  ;;  %v781_v14 = vld [vmem:[#allocation5] sm:$0xff]  }
  0x5e   :  { %247 = vmatprep.subr.bf16.mxu0 %v769_v3  ;;  %290 = vmatprep.subr.bf16.mxu1 %v771_v4  ;;  %v775_v8 = vld [vmem:[#allocation2 + $0x4c] ss:$36 sps:$4 sm:$0x1f]   ;;  %v777_v9 = vld [vmem:[#allocation2 + $0x54] ss:$36 sps:$4 sm:$0x1f]  }
  0x5f   :  { %248 = vmatpush1.bf16.msra.mxu0 %v773_v5  ;;  %291 = vmatpush1.bf16.msra.mxu1 %v774_v6  ;;  %v224_v10 = vand.u32 %v775_v8, %v219_v7  ;;  %v779_v11 = vld [vmem:[#allocation2 + $0x48] ss:$36 sps:$4 sm:$0x1f]   ;;  %v780_v12 = vld [vmem:[#allocation2 + $0x50] ss:$36 sps:$4 sm:$0x1f]   ;;  %v230_v13 = vand.u32 %v777_v9, %v219_v7 }
  0x60   :  { %v221_v15 = vand.u32 %v779_v11, %v219_v7  ;;  %v227_v16 = vand.u32 %v780_v12, %v219_v7  ;;  %v782_v17 = vld [vmem:[#allocation2 + $0x10] ss:$36 sps:$4 sm:$0xff]   ;;  %v785_v19 = vld [vmem:[#allocation2 + $0x18] ss:$36 sps:$4 sm:$0xff]   ;;  %v113_v30 = vld [vmem:[#allocation7 + $0x8] sm:$0xff]  ;;  %v953_v33 = vmov 0.0  }
  0x61   :  { %249 = vmatprep.subr.bf16.mxu0 %v224_v10  ;;  %v784_v18 = vld [vmem:[#allocation2 + $0x14] ss:$36 sps:$4 sm:$0xff]   ;;  %292 = vmatprep.subr.bf16.mxu1 %v230_v13  ;;  %v787_v20 = vld [vmem:[#allocation2 + $0x1c] ss:$36 sps:$4 sm:$0xff]   ;;  %vm954_vm3 = vmmov 0   ;;  %s955_s4 = smov [#allocation11]  }
  0x62   :  { %v788_v21 = vld [vmem:[#allocation2 + $0x58] ss:$36 sps:$4 sm:$0x1f]   ;;  %v791_v23 = vld [vmem:[#allocation2 + $0x60] ss:$36 sps:$4 sm:$0x1f]  }
  0x63   :  { %250 = vmatpush1.bf16.msra.mxu0 %v221_v15  ;;  %293 = vmatpush1.bf16.msra.mxu1 %v227_v16  ;;  %v790_v22 = vld [vmem:[#allocation2 + $0x5c] ss:$36 sps:$4 sm:$0x1f]   ;;  %v793_v25 = vld [vmem:[#allocation2 + $0x64] ss:$36 sps:$4 sm:$0x1f]   ;;  %v233_v27 = vand.u32 %v788_v21, %v219_v7  ;;  %v239_v28 = vand.u32 %v791_v23, %v219_v7 }
  0x64   :  { %333 = vmatprep.subr.bf16.mxu0 %v784_v18  ;;  %376 = vmatprep.subr.bf16.mxu1 %v787_v20  ;;  %v236_v24 = vand.u32 %v790_v22, %v219_v7  ;;  %v112_v26 = vld [vmem:[#allocation7] sm:$0xff]  ;;  %v242_v29 = vand.u32 %v793_v25, %v219_v7  ;;  %v794_v31 = vld [vmem:[#allocation2 + $0x20] ss:$36 sps:$4 sm:$0xff]   ;;  %v795_v32 = vld [vmem:[#allocation2 + $0x68] ss:$36 sps:$4 sm:$0x1f]  }
  0x65   :  { %116 = vperm.xlu0 %767, %v112_v26   ;;  %v245_v34 = vand.u32 %v795_v32, %v219_v7  ;;  %s700_s18 = sshll.u32 %s955_s4, 4  ;;  %s701_s18 = int_to_ptr.vmem [resolvable:$true] %s700_s18 }
  0x66   :  { %733 = vmatmul.mubr.msk.bf16.vlgmr.msra.gmra.mrb[0].mxu0 %vm212_vm2, %v781_v14  ;;  %734 = vmatmul.mubr.msk.bf16.vlgmr.msra.gmra.mrb[0].mxu1 %vm212_vm2, %v781_v14  ;;  %s910_s19 = scalar_lea.vmem %s701_s18, 2304  ;;  %p915_p13 = scmp.lt.s32.totalorder %s701_s18, %s701_s18 }
  0x67   :  { %334 = vmatpush1.bf16.msra.mxu0 %v782_v17  ;;  %377 = vmatpush1.bf16.msra.mxu1 %v785_v19  ;;  %p911_p12 = scmp.ne.s32.totalorder %s701_s18, %s910_s19  ;;  %p916_p0 = scmp.lt.s32.totalorder %s910_s19, %s910_s19 }
  0x68   :  { %335 = vmatprep.subr.bf16.mxu0 %v236_v24  ;;  %365 = vmatprep.mubr.bf16.mxu0 %v951_v0 }
  0x69   :  { %408 = vmatprep.mubr.bf16.mxu1 %v951_v0  ;;  %378 = vmatprep.subr.bf16.mxu1 %v242_v29  ;;  %v593_v29 = vld [vmem:[#allocation10] sm:$0xff]  ;;  %p917_p1 = por %p916_p0, %p915_p13 }
  0x6a   :  { %121 = vperm.xlu0 %767, %v113_v30  }
  0x6b   :  { %336 = vmatpush1.bf16.msra.mxu0 %v233_v27  ;;  %379 = vmatpush1.bf16.msra.mxu1 %v239_v28  ;;  %v563_v27 = vld [vmem:[#allocation8] sm:$0xff]  ;;  %v564_v28 = vld [vmem:[#allocation8 + $0x8] sm:$0xff]  ;;  %p918_p2 = pnand %p917_p1, %p911_p12 }
  0x6c   :  { %741 = vmatprep.subr.bf16.mxu0 %v953_v33 }
  0x6e   :  { %735 = vmatmul.mubr.msk.bf16.vlgmr.msra.gmra.mrb[4].mxu0 %vm212_vm2, %v781_v14  ;;  %736 = vmatmul.mubr.msk.bf16.vlgmr.msra.gmra.mrb[4].mxu1 %vm212_vm2, %v781_v14 }
  0x6f   :  { %742 = vmatpush3.bf16.msra.mxu0 %v794_v31  ;;  %745 = vmatprep.mubr.msk.bf16.mxu0 %vm954_vm3, %v953_v33 }
  0x70   :  { %743 = vmatprep.subr.bf16.mxu0 %v953_v33 }
  0x73   :  { %744 = vmatpush3.bf16.msra.mxu0 %v245_v34 }
  0x76   :  { %746 = vmatmul.mubr.msk.bf16.vlgmr.msra.gmra.mrb[8].mxu0 %vm212_vm2, %v781_v14 }
  0xe4   :  { %v117_v35 = vpop.permute.xlu0 %116 }
  0xe9   :  { %v122_v36 = vpop.permute.xlu0 %121 }
 0x139   :  { %v281_v37 = vpop.f32.mrb[0].mxu0  ;;  %v324_v38 = vpop.f32.mrb[0].mxu1 }
 0x13a   :  { %v282_v39 = vadd.f32 %v281_v37, %v117_v35  ;;  %v283_v40 = vpop.f32.mrb[1].mxu0  ;;  %v326_v41 = vpop.f32.mrb[1].mxu1  ;;  %v325_v42 = vadd.f32 %v324_v38, %v117_v35 }
 0x13b   :  { %v284_v43 = vadd.f32 %v283_v40, %v117_v35  ;;  %v285_v44 = vpop.f32.mrb[2].mxu0  ;;  %v328_v45 = vpop.f32.mrb[2].mxu1  ;;  %v327_v51 = vadd.f32 %v326_v41, %v117_v35 }
 0x13c   :  { %v1062_v46 = vadd.f32 %v285_v44, %v122_v36  ;;  %v287_v47 = vpop.f32.mrb[3].mxu0  ;;  %v330_v48 = vpop.f32.mrb[3].mxu1  ;;  %v1066_v53 = vadd.f32 %v328_v45, %v122_v36 }
 0x13d   :  { %v460_v49 = vadd.f32 %v284_v43, %v282_v39  ;;  %v1064_v50 = vadd.f32 %v287_v47, %v122_v36  ;;  %v1070_v56 = vadd.f32 %v330_v48, %v122_v36 }
 0x13f   :  { %v461_v52 = vadd.f32 %v460_v49, %v325_v42  ;;  %v470_v54 = vadd.f32 %v1064_v50, %v1062_v46 }
 0x141   :  { %v462_v55 = vadd.f32 %v461_v52, %v327_v51  ;;  %v471_v57 = vadd.f32 %v470_v54, %v1066_v53  ;;  %v367_v58 = vpop.f32.mrb[4].mxu0  ;;  %v410_v59 = vpop.f32.mrb[4].mxu1 }
 0x142   :  { %v368_v60 = vadd.f32 %v367_v58, %v117_v35  ;;  %v369_v61 = vpop.f32.mrb[5].mxu0  ;;  %v412_v62 = vpop.f32.mrb[5].mxu1  ;;  %v411_v8 = vadd.f32 %v410_v59, %v117_v35 }
 0x143   :  { %v472_v63 = vadd.f32 %v471_v57, %v1070_v56  ;;  %v370_v0 = vadd.f32 %v369_v61, %v117_v35  ;;  %v371_v1 = vpop.f32.mrb[6].mxu0  ;;  %v414_v2 = vpop.f32.mrb[6].mxu1  ;;  %v413_v11 = vadd.f32 %v412_v62, %v117_v35 }
 0x144   :  { %v463_v3 = vadd.f32 %v462_v55, %v368_v60  ;;  %v372_v4 = vadd.f32 %v371_v1, %v122_v36  ;;  %v373_v5 = vpop.f32.mrb[7].mxu0  ;;  %v416_v6 = vpop.f32.mrb[7].mxu1  ;;  %v415_v12 = vadd.f32 %v414_v2, %v122_v36 }
 0x145   :  { %v374_v7 = vadd.f32 %v373_v5, %v122_v36  ;;  %v1074_v16 = vadd.f32 %v416_v6, %v122_v36 }
 0x146   :  { %v464_v9 = vadd.f32 %v463_v3, %v370_v0  ;;  %v473_v10 = vadd.f32 %v472_v63, %v372_v4 }
 0x148   :  { %v474_v13 = vadd.f32 %v473_v10, %v374_v7  ;;  %v465_v14 = vadd.f32 %v464_v9, %v411_v8 }
 0x149   :  { %v453_v15 = vpop.f32.mrb[8].mxu0 }
 0x14a   :  { %v475_v17 = vadd.f32 %v474_v13, %v415_v12  ;;  %v454_v18 = vadd.f32 %v453_v15, %v117_v35  ;;  %v747_v19 = vpop.f32.mrb[9].mxu0  ;;  %v466_v20 = vadd.f32 %v465_v14, %v413_v11 }
 0x14b   :  { %v456_v21 = vpop.f32.mrb[10].mxu0 }
 0x14c   :  { %v476_v22 = vadd.f32 %v475_v17, %v1074_v16  ;;  %v457_v23 = vadd.f32 %v456_v21, %v122_v36  ;;  %v748_v24 = vpop.f32.mrb[11].mxu0  ;;  %v467_v25 = vadd.f32 %v466_v20, %v454_v18 }
 0x14d   :  { %v594_v24 = vld [vmem:[#allocation10 + $0x8] sm:$0xff] }
 0x14e   :  { %468 = vadd.xlane.f32.xlu1 %v467_v25  ;;  %v477_v26 = vadd.f32 %v476_v22, %v457_v23 }
 0x152   :  { %478 = vadd.xlane.f32.xlu1 %v477_v26 }
 0x163   :  { %567 = vperm.xlu1 %768, %v563_v27  }
 0x167   :  { %572 = vperm.xlu1 %768, %v564_v28  }
 0x16b   :  { %597 = vperm.xlu1 %768, %v593_v29  }
 0x1db   :  { %v469_v30 = vpop.xlane.xlu1 %468 }
 0x1dc   :  { %v481_v31 = vmul.f32 0.00086805556, %v469_v30 }
 0x1de   :  { %v1077_v32 = vsub.f32 %v282_v39, %v481_v31  ;;  %v1079_v33 = vsub.f32 %v284_v43, %v481_v31  ;;  %v1081_v34 = vsub.f32 %v325_v42, %v481_v31  ;;  %v1083_v37 = vsub.f32 %v327_v51, %v481_v31 }
 0x1df   :  { %v479_v35 = vpop.xlane.xlu1 %478  ;;  %v1089_v41 = vsub.f32 %v368_v60, %v481_v31  ;;  %v1093_v43 = vsub.f32 %v370_v0, %v481_v31  ;;  %v489_v51 = vsub.f32 %v411_v8, %v481_v31  ;;  %v490_v57 = vsub.f32 %v413_v11, %v481_v31 }
 0x1e0   :  { %v482_v36 = vmul.f32 0.00086805556, %v479_v35  ;;  %v501_v38 = vmul.f32 %v1077_v32, %v1077_v32  ;;  %v502_v40 = vmul.f32 %v1079_v33, %v1079_v33  ;;  %v503_v39 = vmul.f32 %v1081_v34, %v1081_v34 }
 0x1e1   :  { %v504_v47 = vmul.f32 %v1083_v37, %v1083_v37  ;;  %v506_v58 = vmul.f32 %v1093_v43, %v1093_v43  ;;  %v491_v62 = vsub.f32 %v454_v18, %v481_v31  ;;  %v507_v63 = vmul.f32 %v489_v51, %v489_v51 }
 0x1e2   :  { %v519_v44 = vadd.f32 %v502_v40, %v501_v38  ;;  %v1096_v42 = vsub.f32 %v1062_v46, %v482_v36  ;;  %v1099_v45 = vsub.f32 %v1064_v50, %v482_v36  ;;  %v1104_v49 = vsub.f32 %v1066_v53, %v482_v36 }
 0x1e3   :  { %v505_v46 = vmul.f32 %v1089_v41, %v1089_v41  ;;  %v1113_v50 = vsub.f32 %v1070_v56, %v482_v36  ;;  %v1117_v59 = vsub.f32 %v372_v4, %v482_v36  ;;  %v1121_v1 = vsub.f32 %v374_v7, %v482_v36 }
 0x1e4   :  { %v520_v48 = vadd.f32 %v519_v44, %v503_v39  ;;  %v510_v52 = vmul.f32 %v1096_v42, %v1096_v42  ;;  %v511_v54 = vmul.f32 %v1099_v45, %v1099_v45  ;;  %v512_v60 = vmul.f32 %v1104_v49, %v1104_v49 }
 0x1e5   :  { %v513_v56 = vmul.f32 %v1113_v50, %v1113_v50  ;;  %v508_v3 = vmul.f32 %v490_v57, %v490_v57  ;;  %v1125_v6 = vsub.f32 %v415_v12, %v482_v36  ;;  %v514_v4 = vmul.f32 %v1117_v59, %v1117_v59 }
 0x1e6   :  { %v521_v55 = vadd.f32 %v520_v48, %v504_v47  ;;  %v529_v61 = vadd.f32 %v511_v54, %v510_v52  ;;  %v509_v9 = vmul.f32 %v491_v62, %v491_v62  ;;  %v499_v11 = vsub.f32 %v1074_v16, %v482_v36  ;;  %v568_v16 = vpop.permute.xlu1 %567 }
 0x1e7   :  { %v515_v7 = vmul.f32 %v1121_v1, %v1121_v1  ;;  %v500_v15 = vsub.f32 %v457_v23, %v482_v36  ;;  %v516_v17 = vmul.f32 %v1125_v6, %v1125_v6 }
 0x1e8   :  { %v522_v53 = vadd.f32 %v521_v55, %v505_v46  ;;  %v530_v2 = vadd.f32 %v529_v61, %v512_v60  ;;  %v517_v12 = vmul.f32 %v499_v11, %v499_v11 }
 0x1e9   :  { %v518_v20 = vmul.f32 %v500_v15, %v500_v15 }
 0x1ea   :  { %v523_v0 = vadd.f32 %v522_v53, %v506_v58  ;;  %v531_v8 = vadd.f32 %v530_v2, %v513_v56  ;;  %v573_v25 = vpop.permute.xlu1 %572 }
 0x1ec   :  { %v524_v5 = vadd.f32 %v523_v0, %v507_v63  ;;  %v532_v13 = vadd.f32 %v531_v8, %v514_v4 }
 0x1ee   :  { %v525_v10 = vadd.f32 %v524_v5, %v508_v3  ;;  %v533_v18 = vadd.f32 %v532_v13, %v515_v7  ;;  %v1134_v28 = vpop.permute.xlu1 %597 }
 0x1f0   :  { %v526_v14 = vadd.f32 %v525_v10, %v509_v9  ;;  %v534_v19 = vadd.f32 %v533_v18, %v516_v17 }
 0x1f2   :  { %527 = vadd.xlane.f32.xlu0 %v526_v14  ;;  %v535_v21 = vadd.f32 %v534_v19, %v517_v12 }
 0x1f4   :  { %v536_v22 = vadd.f32 %v535_v21, %v518_v20 }
 0x1f6   :  { %537 = vadd.xlane.f32.xlu1 %v536_v22 }
 0x207   :  { %602 = vperm.xlu1 %768, %v594_v24  }
 0x27f   :  { %v528_v26 = vpop.xlane.xlu0 %527 }
 0x280   :  { %v539_v27 = vmul.f32 0.00086805556, %v528_v26 }
 0x282   :  { %v541_v23 = vadd.f32 1e-05, %v539_v27 }
 0x283   :  { %v538_v29 = vpop.xlane.xlu1 %537 }
 0x284   :  { %796 = vrsqrt.f32 %v541_v23  ;;  %v540_v30 = vmul.f32 0.00086805556, %v538_v29 }
 0x286   :  { %v542_v31 = vadd.f32 1e-05, %v540_v30 }
 0x288   :  { %798 = vrsqrt.f32 %v542_v31 }
 0x28e   :  { %v797_v35 = vpop.eup %796 }
 0x28f   :  { %v545_v36 = vmul.f32 %v797_v35, %v1077_v32  ;;  %v546_v38 = vmul.f32 %v797_v35, %v1079_v33  ;;  %v547_v40 = vmul.f32 %v797_v35, %v1081_v34  ;;  %v548_v39 = vmul.f32 %v797_v35, %v1083_v37 }
 0x290   :  { %v549_v44 = vmul.f32 %v797_v35, %v1089_v41  ;;  %v550_v47 = vmul.f32 %v797_v35, %v1093_v43  ;;  %v551_v48 = vmul.f32 %v797_v35, %v489_v51  ;;  %v552_v52 = vmul.f32 %v797_v35, %v490_v57 }
 0x291   :  { %v553_v54 = vmul.f32 %v797_v35, %v491_v62  ;;  %v575_v46 = vmul.f32 %v568_v16, %v545_v36  ;;  %v576_v55 = vmul.f32 %v568_v16, %v546_v38  ;;  %v577_v58 = vmul.f32 %v568_v16, %v547_v40 }
 0x292   :  { %v578_v53 = vmul.f32 %v568_v16, %v548_v39  ;;  %v579_v60 = vmul.f32 %v568_v16, %v549_v44  ;;  %v580_v61 = vmul.f32 %v568_v16, %v550_v47  ;;  %v581_v32 = vmul.f32 %v568_v16, %v551_v48  ;;  %v799_v41 = vpop.eup %798 }
 0x293   :  { %v582_v63 = vmul.f32 %v568_v16, %v552_v52  ;;  %v1142_v33 = vmul.f32 %v568_v16, %v553_v54  ;;  %v1145_v34 = vadd.f32 %v1134_v28, %v575_v46  ;;  %v1148_v37 = vadd.f32 %v1134_v28, %v576_v55 }
 0x294   :  { %v1151_v43 = vadd.f32 %v1134_v28, %v577_v58  ;;  %v1154_v51 = vadd.f32 %v1134_v28, %v578_v53  ;;  %v1157_v57 = vadd.f32 %v1134_v28, %v579_v60  ;;  %v1160_v62 = vadd.f32 %v1134_v28, %v580_v61 }
 0x295   :  { %v554_v0 = vmul.f32 %v799_v41, %v1096_v42  ;;  %v555_v56 = vmul.f32 %v799_v41, %v1099_v45  ;;  %v556_v2 = vmul.f32 %v799_v41, %v1104_v49  ;;  %v557_v3 = vmul.f32 %v799_v41, %v1113_v50  ;;  %v603_v45 = vpop.permute.xlu1 %602 }
 0x296   :  { %v558_v5 = vmul.f32 %v799_v41, %v1117_v59  ;;  %v559_v4 = vmul.f32 %v799_v41, %v1121_v1  ;;  %v560_v8 = vmul.f32 %v799_v41, %v1125_v6  ;;  %v561_v9 = vmul.f32 %v799_v41, %v499_v11 }
 0x297   :  { %v562_v10 = vmul.f32 %v799_v41, %v500_v15  ;;  %v584_v7 = vmul.f32 %v573_v25, %v554_v0  ;;  %v585_v13 = vmul.f32 %v573_v25, %v555_v56  ;;  %v586_v14 = vmul.f32 %v573_v25, %v556_v2 }
 0x298   :  { %v587_v17 = vmul.f32 %v573_v25, %v557_v3  ;;  %v588_v18 = vmul.f32 %v573_v25, %v558_v5  ;;  %v589_v42 = vmul.f32 %v573_v25, %v559_v4  ;;  %v590_v12 = vmul.f32 %v573_v25, %v560_v8 }
 0x299   :  { %v591_v19 = vmul.f32 %v573_v25, %v561_v9  ;;  %v592_v49 = vmul.f32 %v573_v25, %v562_v10  ;;  %v614_v20 = vadd.f32 %v603_v45, %v584_v7  ;;  %v615_v50 = vadd.f32 %v603_v45, %v585_v13 }
 0x29a   :  { %v616_v21 = vadd.f32 %v603_v45, %v586_v14  ;;  %v617_v59 = vadd.f32 %v603_v45, %v587_v17  ;;  %v618_v22 = vadd.f32 %v603_v45, %v588_v18  ;;  %v619_v1 = vadd.f32 %v603_v45, %v589_v42 }
 0x29b   :  { %v620_v24 = vadd.f32 %v603_v45, %v590_v12  ;;  %v621_v6 = vadd.f32 %v603_v45, %v591_v19  ;;  %v622_v11 = vadd.f32 %v603_v45, %v592_v49  ;;  %vm632_vm4 = vcmp.gt.f32.partialorder %v614_v20, 0.0 }
 0x29c   :  { %vm633_vm5 = vcmp.gt.f32.partialorder %v615_v50, 0.0  ;;  %vm634_vm6 = vcmp.gt.f32.partialorder %v616_v21, 0.0  ;;  %vm635_vm7 = vcmp.gt.f32.partialorder %v617_v59, 0.0  ;;  %vm636_vm8 = vcmp.gt.f32.partialorder %v618_v22, 0.0 }
 0x29d   :  { %vm637_vm9 = vcmp.gt.f32.partialorder %v619_v1, 0.0  ;;  %vm638_vm10 = vcmp.gt.f32.partialorder %v620_v24, 0.0  ;;  %vm639_vm11 = vcmp.gt.f32.partialorder %v621_v6, 0.0  ;;  %vm640_vm12 = vcmp.gt.f32.partialorder %v622_v11, 0.0 }
 0x29e   :  { %v650_v15 = vmul.f32 0.01, %v614_v20  ;;  %v651_v16 = vmul.f32 0.01, %v615_v50  ;;  %v652_v25 = vmul.f32 0.01, %v616_v21  ;;  %v611_v26 = vadd.f32 %v1134_v28, %v581_v32 }
 0x29f   :  { %v653_v27 = vmul.f32 0.01, %v617_v59  ;;  %v654_v23 = vmul.f32 0.01, %v618_v22  ;;  %v655_v29 = vmul.f32 0.01, %v619_v1  ;;  %v612_v30 = vadd.f32 %v1134_v28, %v582_v63 }
 0x2a0   :  { %v656_v31 = vmul.f32 0.01, %v620_v24  ;;  %v657_v35 = vmul.f32 0.01, %v621_v6  ;;  %v658_v36 = vmul.f32 0.01, %v622_v11  ;;  %v668_v38 = vsel %vm632_vm4, %v614_v20, %v650_v15 }
 0x2a1   :  { %v669_v40 = vsel %vm633_vm5, %v615_v50, %v651_v16  ;;  %v670_v39 = vsel %vm634_vm6, %v616_v21, %v652_v25  ;;  %v671_v44 = vsel %vm635_vm7, %v617_v59, %v653_v27  ;;  %v672_v47 = vsel %vm636_vm8, %v618_v22, %v654_v23  ;;  %686 = vst [vmem:[#allocation11 + $0x48] sm:$0xff] %v668_v38 }
 0x2a2   :  { %v673_v48 = vsel %vm637_vm9, %v619_v1, %v655_v29  ;;  %v674_v52 = vsel %vm638_vm10, %v620_v24, %v656_v31  ;;  %v675_v54 = vsel %vm639_vm11, %v621_v6, %v657_v35  ;;  %v676_v46 = vsel %vm640_vm12, %v622_v11, %v658_v36  ;;  %687 = vst [vmem:[#allocation11 + $0x50] sm:$0xff] %v669_v40 }
 0x2a3   :  { %688 = vst [vmem:[#allocation11 + $0x58] sm:$0xff] %v670_v39  ;;  %689 = vst [vmem:[#allocation11 + $0x60] sm:$0xff] %v671_v44  ;;  %v613_v55 = vadd.f32 %v1134_v28, %v1142_v33  ;;  %vm623_vm13 = vcmp.gt.f32.partialorder %v1145_v34, 0.0  ;;  %vm624_vm14 = vcmp.gt.f32.partialorder %v1148_v37, 0.0  ;;  %vm625_vm15 = vcmp.gt.f32.partialorder %v1151_v43, 0.0 }
 0x2a4   :  { %690 = vst [vmem:[#allocation11 + $0x68] sm:$0xff] %v672_v47  ;;  %691 = vst [vmem:[#allocation11 + $0x70] sm:$0xff] %v673_v48  ;;  %vm626_vm0 = vcmp.gt.f32.partialorder %v1154_v51, 0.0  ;;  %vm627_vm1 = vcmp.gt.f32.partialorder %v1157_v57, 0.0  ;;  %vm628_vm2 = vcmp.gt.f32.partialorder %v1160_v62, 0.0  ;;  %vm629_vm3 = vcmp.gt.f32.partialorder %v611_v26, 0.0 }
 0x2a5   :  { %692 = vst [vmem:[#allocation11 + $0x78] sm:$0xff] %v674_v52  ;;  %693 = vst [vmem:[#allocation11 + $0x80] sm:$0xff] %v675_v54  ;;  %vm630_vm4 = vcmp.gt.f32.partialorder %v612_v30, 0.0  ;;  %vm631_vm5 = vcmp.gt.f32.partialorder %v613_v55, 0.0  ;;  %v641_v58 = vmul.f32 0.01, %v1145_v34 }
 0x2a6   :  { %694 = vst [vmem:[#allocation11 + $0x88] sm:$0xff] %v676_v46  ;;  %v642_v28 = vmul.f32 0.01, %v1148_v37  ;;  %v643_v53 = vmul.f32 0.01, %v1151_v43 }
 0x2a7   :  { %v644_v60 = vmul.f32 0.01, %v1154_v51  ;;  %v645_v61 = vmul.f32 0.01, %v1157_v57  ;;  %v646_v32 = vmul.f32 0.01, %v1160_v62  ;;  %v659_v41 = vsel %vm623_vm13, %v1145_v34, %v641_v58 }
 0x2a8   :  { %v647_v63 = vmul.f32 0.01, %v611_v26  ;;  %v648_v33 = vmul.f32 0.01, %v612_v30  ;;  %v649_v0 = vmul.f32 0.01, %v613_v55  ;;  %v660_v56 = vsel %vm624_vm14, %v1148_v37, %v642_v28 }
 0x2a9   :  { %v661_v2 = vsel %vm625_vm15, %v1151_v43, %v643_v53  ;;  %v662_v3 = vsel %vm626_vm0, %v1154_v51, %v644_v60  ;;  %677 = vst [vmem:[#allocation11] sm:$0xff] %v659_v41  ;;  %v663_v5 = vsel %vm627_vm1, %v1157_v57, %v645_v61  ;;  %v664_v34 = vsel %vm628_vm2, %v1160_v62, %v646_v32 }
 0x2aa   :  { %v665_v4 = vsel %vm629_vm3, %v611_v26, %v647_v63  ;;  %v666_v37 = vsel %vm630_vm4, %v612_v30, %v648_v33  ;;  %678 = vst [vmem:[#allocation11 + $0x8] sm:$0xff] %v660_v56  ;;  %679 = vst [vmem:[#allocation11 + $0x10] sm:$0xff] %v661_v2  ;;  %v667_v43 = vsel %vm631_vm5, %v613_v55, %v649_v0 }
 0x2ab   :  { %680 = vst [vmem:[#allocation11 + $0x18] sm:$0xff] %v662_v3  ;;  %681 = vst [vmem:[#allocation11 + $0x20] sm:$0xff] %v663_v5 }
 0x2ac   :  { %682 = vst [vmem:[#allocation11 + $0x28] sm:$0xff] %v664_v34  ;;  %683 = vst [vmem:[#allocation11 + $0x30] sm:$0xff] %v665_v4 }
 0x2ad   :  { %684 = vst [vmem:[#allocation11 + $0x38] sm:$0xff] %v666_v37  ;;  %685 = vst [vmem:[#allocation11 + $0x40] sm:$0xff] %v667_v43 }
 0x2ae   :  { %921 = shalt.err (!%p918_p2)
}
 0x2af   :  { %s922_s7 = scalar_lea.hbm %s1232_s5, 2304 }
 0x2b0   :  { %p923_p3 = scmp.ne.s32.totalorder %s1232_s5, %s922_s7  ;;  %p926_p4 = scmp.lt.u32.totalorder %s922_s7, %s1232_s5 }
 0x2b2   :  { %p928_p5 = pnand %p926_p4, %p923_p3 }
 0x2b4   :  { %931 = shalt.err (!%p928_p5)
}
 0x2b5   :  { %s956_s13 = smov 1152   ;;  %s957_s14 = smov 72  }
 0x2b6   :  { %706 = dma.vmem_to_hbm [thread:$0]  %s701_s18, 2304, %s1232_s5, [#allocation4], %s956_s13, %s956_s13, %s957_s14  }
 0x2b7   :  { %938 = dma.done.wait [#allocation4], 2304  }
 0x2b8   :  { %939 = vsyncadd [#allocation4], 4294964992 }
 0x2b9   :  { %710 = vsyncpa [#allocation3], 1 }
 0x2ba   :  { %711 = vsyncpa [#allocation6], 1 }
 0x2bb   :  { %712 = vsyncpa [#allocation9], 1 }
 0x2bc   :  { %713 = vsyncpa [#allocation4], 1 }

// kernel: vae_forward.6
= control target key start
LH: loop header
LB: loop body
LE: loop exit
PB: predicated region body
PF: predicated region fallthrough
CT: control target
= control target key end

     0   :  { %10 = vsyncpa [#allocation3], 0  ;;  %s2479_s0 = inlined_call_operand.hbm [shape: bf16[400,800], index: 0, kind: input, shape index: {}]   ;;  %s2480_s1 = inlined_call_operand.hbm [shape: bf16[4,400], index: 1, kind: input, shape index: {}]   ;;  %s2481_s2 = inlined_call_operand.hbm [shape: f32[4,1], index: 2, kind: input, shape index: {}]   ;;  %s2482_s3 = inlined_call_operand.hbm [shape: f32[4,1], index: 3, kind: input, shape index: {}]   ;;  %s2483_s4 = inlined_call_operand.hbm [shape: f32[4,1], index: 4, kind: input, shape index: {}]   ;;  %s2484_s5 = inlined_call_operand.hbm [shape: f32[4,800], index: 5, kind: output, shape index: {}]  }
   0x1   :  { %11 = vsyncpa [#allocation6], 0 }
   0x2   :  { %12 = vsyncpa [#allocation9], 0 }
   0x3   :  { %13 = vsyncpa [#allocation4], 0  ;;  %s2302_s18 = smov [#allocation5]   ;;  %s2303_s20 = smov [#allocation8]  }
   0x4   :  { %s32_s19 = sshll.u32 %s2302_s18, 4  ;;  %s52_s21 = sshll.u32 %s2303_s20, 4  ;;  %s33_s19 = int_to_ptr.vmem [resolvable:$true] %s32_s19  ;;  %s53_s21 = int_to_ptr.vmem [resolvable:$true] %s52_s21 }
   0x5   :  { %s2162_s24 = scalar_lea.hbm %s2480_s1, 128 }
   0x6   :  { %p2163_p0 = scmp.ne.s32.totalorder %s2480_s1, %s2162_s24  ;;  %p2166_p1 = scmp.lt.u32.totalorder %s2162_s24, %s2480_s1 }
   0x8   :  { %p2168_p2 = pnand %p2166_p1, %p2163_p0 }
   0xa   :  { %2171 = shalt.err (!%p2168_p2)
}
   0xb   :  { %s2172_s29 = scalar_lea.vmem %s33_s19, 128  ;;  %p2177_p4 = scmp.lt.s32.totalorder %s33_s19, %s33_s19 }
   0xc   :  { %p2173_p3 = scmp.ne.s32.totalorder %s33_s19, %s2172_s29  ;;  %p2178_p5 = scmp.lt.s32.totalorder %s2172_s29, %s2172_s29 }
   0xe   :  { %p2179_p6 = por %p2178_p5, %p2177_p4 }
  0x10   :  { %p2180_p7 = pnand %p2179_p6, %p2173_p3 }
  0x12   :  { %2183 = shalt.err (!%p2180_p7)
}
  0x13   :  { %35 = dma.hbm_to_vmem [thread:$0]  %s2480_s1, 128, %s33_s19, [#allocation6]  }
  0x14   :  { %s2184_s9 = scalar_lea.hbm %s2482_s3, 64 }
  0x15   :  { %p2185_p8 = scmp.ne.s32.totalorder %s2482_s3, %s2184_s9  ;;  %p2188_p9 = scmp.lt.u32.totalorder %s2184_s9, %s2482_s3 }
  0x17   :  { %p2190_p10 = pnand %p2188_p9, %p2185_p8 }
  0x19   :  { %2193 = shalt.err (!%p2190_p10)
}
  0x1a   :  { %s2194_s14 = scalar_lea.vmem %s53_s21, 64  ;;  %p2199_p12 = scmp.lt.s32.totalorder %s53_s21, %s53_s21 }
  0x1b   :  { %p2195_p11 = scmp.ne.s32.totalorder %s53_s21, %s2194_s14  ;;  %p2200_p13 = scmp.lt.s32.totalorder %s2194_s14, %s2194_s14 }
  0x1d   :  { %p2201_p0 = por %p2200_p13, %p2199_p12 }
  0x1f   :  { %p2202_p1 = pnand %p2201_p0, %p2195_p11 }
  0x21   :  { %2205 = shalt.err (!%p2202_p1)
}
  0x22   :  { %55 = dma.hbm_to_vmem [thread:$0]  %s2482_s3, 64, %s53_s21, [#allocation9]  }
  0x23   :  { %s2304_s16 = smov [#allocation2]   ;;  %s2206_s20 = scalar_lea.hbm %s2479_s0, 22400 }
  0x24   :  { %s19_s17 = sshll.u32 %s2304_s16, 4  ;;  %p2207_p2 = scmp.ne.s32.totalorder %s2479_s0, %s2206_s20  ;;  %s20_s17 = int_to_ptr.vmem [resolvable:$true] %s19_s17 }
  0x25   :  { %p2210_p3 = scmp.lt.u32.totalorder %s2206_s20, %s2479_s0 }
  0x27   :  { %p2212_p4 = pnand %p2210_p3, %p2207_p2 }
  0x29   :  { %2215 = shalt.err (!%p2212_p4)
}
  0x2a   :  { %s2216_s26 = scalar_lea.vmem %s20_s17, 22400  ;;  %p2221_p6 = scmp.lt.s32.totalorder %s20_s17, %s20_s17 }
  0x2b   :  { %p2217_p5 = scmp.ne.s32.totalorder %s20_s17, %s2216_s26  ;;  %p2222_p7 = scmp.lt.s32.totalorder %s2216_s26, %s2216_s26 }
  0x2d   :  { %p2223_p8 = por %p2222_p7, %p2221_p6 }
  0x2f   :  { %p2224_p9 = pnand %p2223_p8, %p2217_p5 }
  0x31   :  { %2227 = shalt.err (!%p2224_p9)
}
  0x32   :  { %s2305_s3 = smov 448   ;;  %s2306_s21 = smov 28  }
  0x33   :  { %25 = dma.hbm_to_vmem [thread:$0]  %s2479_s0, 22400, %s20_s17, [#allocation3], %s2305_s3, %s2305_s3, %s2306_s21  }
  0x34   :  { %s2307_s29 = smov [#allocation7]   ;;  %s2308_s6 = smov [#allocation10]  }
  0x35   :  { %s42_s30 = sshll.u32 %s2307_s29, 4  ;;  %s62_s7 = sshll.u32 %s2308_s6, 4  ;;  %s43_s30 = int_to_ptr.vmem [resolvable:$true] %s42_s30  ;;  %s63_s7 = int_to_ptr.vmem [resolvable:$true] %s62_s7 }
  0x36   :  { %s2228_s10 = scalar_lea.hbm %s2481_s2, 64 }
  0x37   :  { %p2229_p10 = scmp.ne.s32.totalorder %s2481_s2, %s2228_s10  ;;  %p2232_p11 = scmp.lt.u32.totalorder %s2228_s10, %s2481_s2 }
  0x39   :  { %p2234_p12 = pnand %p2232_p11, %p2229_p10 }
  0x3b   :  { %2237 = shalt.err (!%p2234_p12)
}
  0x3c   :  { %s2238_s0 = scalar_lea.vmem %s43_s30, 64  ;;  %p2243_p0 = scmp.lt.s32.totalorder %s43_s30, %s43_s30 }
  0x3d   :  { %p2239_p13 = scmp.ne.s32.totalorder %s43_s30, %s2238_s0  ;;  %p2244_p1 = scmp.lt.s32.totalorder %s2238_s0, %s2238_s0 }
  0x3f   :  { %p2245_p2 = por %p2244_p1, %p2243_p0 }
  0x41   :  { %p2246_p3 = pnand %p2245_p2, %p2239_p13 }
  0x43   :  { %2249 = shalt.err (!%p2246_p3)
}
  0x44   :  { %45 = dma.hbm_to_vmem [thread:$0]  %s2481_s2, 64, %s43_s30, [#allocation6]  }
  0x45   :  { %s2250_s18 = scalar_lea.hbm %s2483_s4, 64 }
  0x46   :  { %p2251_p4 = scmp.ne.s32.totalorder %s2483_s4, %s2250_s18  ;;  %p2254_p5 = scmp.lt.u32.totalorder %s2250_s18, %s2483_s4 }
  0x48   :  { %p2256_p6 = pnand %p2254_p5, %p2251_p4 }
  0x4a   :  { %2259 = shalt.err (!%p2256_p6)
}
  0x4b   :  { %s2260_s24 = scalar_lea.vmem %s63_s7, 64  ;;  %p2265_p8 = scmp.lt.s32.totalorder %s63_s7, %s63_s7 }
  0x4c   :  { %p2261_p7 = scmp.ne.s32.totalorder %s63_s7, %s2260_s24  ;;  %p2266_p9 = scmp.lt.s32.totalorder %s2260_s24, %s2260_s24 }
  0x4e   :  { %p2267_p10 = por %p2266_p9, %p2265_p8 }
  0x50   :  { %p2268_p11 = pnand %p2267_p10, %p2261_p7 }
  0x52   :  { %2271 = shalt.err (!%p2268_p11)
}
  0x53   :  { %65 = dma.hbm_to_vmem [thread:$0]  %s2483_s4, 64, %s63_s7, [#allocation9]  }
  0x54   :  { %2294 = dma.done.wait [#allocation3], 22400  }
  0x55   :  { %2295 = vsyncadd [#allocation3], 4294944896 }
  0x56   :  { %2296 = dma.done.wait [#allocation6], 192  }
  0x57   :  { %2297 = vsyncadd [#allocation6], 4294967104 }
  0x58   :  { %2298 = dma.done.wait [#allocation9], 128  }
  0x59   :  { %2299 = vsyncadd [#allocation9], 4294967168  ;;  %v1909_v0 = vld [vmem:[#allocation2 + $0x4] ss:$28 sps:$4 sm:$0xff]   ;;  %v1911_v1 = vld [vmem:[#allocation2 + $0xc] ss:$28 sps:$4 sm:$0xff]   ;;  %v294_v39 = vlaneseq }
  0x5a   :  { %1214 = vmatprep.subr.bf16.mxu0 %v1909_v0  ;;  %v1913_v2 = vld [vmem:[#allocation2] ss:$28 sps:$4 sm:$0xff]   ;;  %v1914_v3 = vld [vmem:[#allocation2 + $0x8] ss:$28 sps:$4 sm:$0xff]   ;;  %1296 = vmatprep.subr.bf16.mxu1 %v1911_v1  ;;  %v1919_v6 = vld [vmem:[#allocation2 + $0x38] ss:$28 sps:$4 sm:$0xff]  }
  0x5b   :  { %v1915_v4 = vld [vmem:[#allocation2 + $0x3c] ss:$28 sps:$4 sm:$0xff]   ;;  %1215 = vmatpush1.bf16.msra.mxu0 %v1913_v2  ;;  %1297 = vmatpush1.bf16.msra.mxu1 %v1914_v3  ;;  %v1917_v5 = vld [vmem:[#allocation2 + $0x44] ss:$28 sps:$4 sm:$0xff]   ;;  %v1921_v8 = vld [vmem:[#allocation2 + $0x74] ss:$28 sps:$4 sm:$0xff]  }
  0x5c   :  { %1216 = vmatprep.subr.bf16.mxu0 %v1915_v4  ;;  %v1920_v7 = vld [vmem:[#allocation2 + $0x40] ss:$28 sps:$4 sm:$0xff]   ;;  %1298 = vmatprep.subr.bf16.mxu1 %v1917_v5  ;;  %v1925_v10 = vld [vmem:[#allocation2 + $0x70] ss:$28 sps:$4 sm:$0xff]   ;;  %v1926_v11 = vld [vmem:[#allocation2 + $0x78] ss:$28 sps:$4 sm:$0xff]  }
  0x5d   :  { %v1923_v9 = vld [vmem:[#allocation2 + $0x7c] ss:$28 sps:$4 sm:$0xff]   ;;  %v1927_v12 = vld [vmem:[#allocation2 + $0xac] ss:$28 sps:$4 sm:$0xff]   ;;  %v1929_v13 = vld [vmem:[#allocation2 + $0xb4] ss:$28 sps:$4 sm:$0xff]  }
  0x5e   :  { %v1931_v14 = vld [vmem:[#allocation2 + $0xa8] ss:$28 sps:$4 sm:$0xff]   ;;  %v1932_v15 = vld [vmem:[#allocation2 + $0xb0] ss:$28 sps:$4 sm:$0xff]   ;;  %v2309_v18 = vmov 0   ;;  %v295_v44 = vshrl.u32 %v294_v39, 7 }
  0x5f   :  { %1217 = vmatpush1.bf16.msra.mxu0 %v1919_v6  ;;  %1299 = vmatpush1.bf16.msra.mxu1 %v1920_v7  ;;  %v1933_v16 = vld [vmem:[#allocation2 + $0xe4] ss:$28 sps:$4 sm:$0xff]   ;;  %v1935_v17 = vld [vmem:[#allocation2 + $0xec] ss:$28 sps:$4 sm:$0xff]   ;;  %v1939_v21 = vld [vmem:[#allocation2 + $0x11c] ss:$28 sps:$4 sm:$0xff]  }
  0x60   :  { %1218 = vmatprep.subr.bf16.mxu0 %v1921_v8  ;;  %1300 = vmatprep.subr.bf16.mxu1 %v1923_v9  ;;  %v1937_v19 = vld [vmem:[#allocation2 + $0xe0] ss:$28 sps:$4 sm:$0xff]   ;;  %v1938_v20 = vld [vmem:[#allocation2 + $0xe8] ss:$28 sps:$4 sm:$0xff]   ;;  %v1943_v23 = vld [vmem:[#allocation2 + $0x118] ss:$28 sps:$4 sm:$0xff]  }
  0x61   :  { %1907 = vset.pattern.permute.xlu0 %v2309_v18  ;;  %1908 = vset.pattern.permute.xlu1 %v2309_v18  ;;  %v1941_v22 = vld [vmem:[#allocation2 + $0x124] ss:$28 sps:$4 sm:$0xff]   ;;  %v1945_v25 = vld [vmem:[#allocation2 + $0x154] ss:$28 sps:$4 sm:$0xff]   ;;  %v1947_v26 = vld [vmem:[#allocation2 + $0x15c] ss:$28 sps:$4 sm:$0xff]  }
  0x62   :  { %v1944_v24 = vld [vmem:[#allocation2 + $0x120] ss:$28 sps:$4 sm:$0xff]   ;;  %v1949_v27 = vld [vmem:[#allocation2 + $0x150] ss:$28 sps:$4 sm:$0xff]   ;;  %v1950_v28 = vld [vmem:[#allocation2 + $0x158] ss:$28 sps:$4 sm:$0xff]  }
  0x63   :  { %1219 = vmatpush1.bf16.msra.mxu0 %v1925_v10  ;;  %1301 = vmatpush1.bf16.msra.mxu1 %v1926_v11  ;;  %v1951_v29 = vld [vmem:[#allocation2 + $0x18c] ss:$28 sps:$4 sm:$0xff]   ;;  %v1953_v30 = vld [vmem:[#allocation2 + $0x194] ss:$28 sps:$4 sm:$0xff]   ;;  %v1957_v33 = vld [vmem:[#allocation2 + $0x1c4] ss:$28 sps:$4 sm:$0xff]  }
  0x64   :  { %1220 = vmatprep.subr.bf16.mxu0 %v1927_v12  ;;  %1302 = vmatprep.subr.bf16.mxu1 %v1929_v13  ;;  %v1955_v31 = vld [vmem:[#allocation2 + $0x188] ss:$28 sps:$4 sm:$0xff]   ;;  %v1956_v32 = vld [vmem:[#allocation2 + $0x190] ss:$28 sps:$4 sm:$0xff]   ;;  %v1961_v35 = vld [vmem:[#allocation2 + $0x1c0] ss:$28 sps:$4 sm:$0xff]  }
  0x65   :  { %v1959_v34 = vld [vmem:[#allocation2 + $0x1cc] ss:$28 sps:$4 sm:$0xff]   ;;  %v2310_v37 = vmov 1983009808   ;;  %v1963_v40 = vld [vmem:[#allocation2 + $0x1fc] ss:$28 sps:$4 sm:$0xff]  }
  0x66   :  { %v1962_v36 = vld [vmem:[#allocation2 + $0x1c8] ss:$28 sps:$4 sm:$0xff]   ;;  %v292_v38 = vunpack.c.l.s4 %v2310_v37  ;;  %v1967_v42 = vld [vmem:[#allocation2 + $0x1f8] ss:$28 sps:$4 sm:$0xff]   ;;  %v1968_v45 = vld [vmem:[#allocation2 + $0x200] ss:$28 sps:$4 sm:$0xff]  }
  0x67   :  { %1221 = vmatpush1.bf16.msra.mxu0 %v1931_v14  ;;  %1303 = vmatpush1.bf16.msra.mxu1 %v1932_v15  ;;  %v1965_v41 = vld [vmem:[#allocation2 + $0x204] ss:$28 sps:$4 sm:$0xff]   ;;  %v1969_v46 = vld [vmem:[#allocation2 + $0x234] ss:$28 sps:$4 sm:$0xff]   ;;  %v1971_v47 = vld [vmem:[#allocation2 + $0x23c] ss:$28 sps:$4 sm:$0xff]  }
  0x68   :  { %1222 = vmatprep.subr.bf16.mxu0 %v1933_v16  ;;  %1304 = vmatprep.subr.bf16.mxu1 %v1935_v17  ;;  %v293_v43 = vunpack.c.0.s8 %v292_v38  ;;  %v1973_v48 = vld [vmem:[#allocation2 + $0x230] ss:$28 sps:$4 sm:$0xff]   ;;  %v1974_v49 = vld [vmem:[#allocation2 + $0x238] ss:$28 sps:$4 sm:$0xff]   ;;  %v1979_v54 = vld [vmem:[#allocation2 + $0x268] ss:$28 sps:$4 sm:$0xff]  }
  0x69   :  { %v1975_v51 = vld [vmem:[#allocation2 + $0x26c] ss:$28 sps:$4 sm:$0xff]   ;;  %v1977_v52 = vld [vmem:[#allocation2 + $0x274] ss:$28 sps:$4 sm:$0xff]   ;;  %v82_v53 = vld [vmem:[#allocation5] sm:$0xff]  ;;  %vm1210_vm0 = vcmask 130048  }
  0x6a   :  { %v296_v50 = vsub.s32 %v293_v43, %v295_v44  ;;  %v1980_v56 = vld [vmem:[#allocation2 + $0x270] ss:$28 sps:$4 sm:$0xff]   ;;  %v1981_v57 = vld [vmem:[#allocation2 + $0x2a4] ss:$28 sps:$4 sm:$0xff]   ;;  %v1987_v62 = vld [vmem:[#allocation2 + $0x2dc] ss:$28 sps:$4 sm:$0xff]   ;;  %v290_v8 = vcombine.high %v82_v53, %v82_v53 }
  0x6b   :  { %1223 = vmatpush1.bf16.msra.mxu0 %v1937_v19  ;;  %1305 = vmatpush1.bf16.msra.mxu1 %v1938_v20  ;;  %v1983_v58 = vld [vmem:[#allocation2 + $0x2ac] ss:$28 sps:$4 sm:$0xff]   ;;  %v1985_v60 = vld [vmem:[#allocation2 + $0x2a0] ss:$28 sps:$4 sm:$0xff]   ;;  %v1991_v0 = vld [vmem:[#allocation2 + $0x2d8] ss:$28 sps:$4 sm:$0xff]  }
  0x6c   :  { %1224 = vmatprep.subr.bf16.mxu0 %v1939_v21  ;;  %1306 = vmatprep.subr.bf16.mxu1 %v1941_v22  ;;  %v2404_v55 = vrot.slane %v82_v53, %v296_v50  ;;  %v1986_v61 = vld [vmem:[#allocation2 + $0x2a8] ss:$28 sps:$4 sm:$0xff]   ;;  %v1992_v1 = vld [vmem:[#allocation2 + $0x2e0] ss:$28 sps:$4 sm:$0xff]   ;;  %v1993_v2 = vld [vmem:[#allocation2 + $0x314] ss:$28 sps:$4 sm:$0xff]   ;;  %v2412_v13 = vrot.slane %v290_v8, %v296_v50 }
  0x6d   :  { %v1989_v63 = vld [vmem:[#allocation2 + $0x2e4] ss:$28 sps:$4 sm:$0xff]   ;;  %v1995_v3 = vld [vmem:[#allocation2 + $0x31c] ss:$28 sps:$4 sm:$0xff]   ;;  %v1997_v4 = vld [vmem:[#allocation2 + $0x310] ss:$28 sps:$4 sm:$0xff]  }
  0x6e   :  { %v2408_v59 = vcombine.high %v2404_v55, %v2404_v55  ;;  %v1998_v5 = vld [vmem:[#allocation2 + $0x318] ss:$28 sps:$4 sm:$0xff]   ;;  %v1999_v6 = vld [vmem:[#allocation2 + $0x34c] ss:$28 sps:$4 sm:$0xff]   ;;  %v2007_v11 = vld [vmem:[#allocation2 + $0x384] ss:$28 sps:$4 sm:$0xff]   ;;  %v2416_v19 = vcombine.high %v2412_v13, %v2412_v13 }
  0x6f   :  { %1225 = vmatpush1.bf16.msra.mxu0 %v1943_v23  ;;  %1307 = vmatpush1.bf16.msra.mxu1 %v1944_v24  ;;  %v2001_v7 = vld [vmem:[#allocation2 + $0x354] ss:$28 sps:$4 sm:$0xff]   ;;  %v2003_v9 = vld [vmem:[#allocation2 + $0x348] ss:$28 sps:$4 sm:$0xff]   ;;  %v2005_v14 = vld [vmem:[#allocation2 + $0x380] ss:$28 sps:$4 sm:$0xff]  }
  0x70   :  { %1226 = vmatprep.subr.bf16.mxu0 %v1945_v25  ;;  %1308 = vmatprep.subr.bf16.mxu1 %v1947_v26  ;;  %v2004_v10 = vld [vmem:[#allocation2 + $0x350] ss:$28 sps:$4 sm:$0xff]   ;;  %v2008_v15 = vld [vmem:[#allocation2 + $0x388] ss:$28 sps:$4 sm:$0xff]   ;;  %v2013_v16 = vld [vmem:[#allocation2 + $0x3bc] ss:$28 sps:$4 sm:$0xff]  }
  0x71   :  { %1246 = vmatprep.mubr.bf16.mxu0 %v2408_v59  ;;  %1328 = vmatprep.mubr.bf16.mxu1 %v2408_v59  ;;  %v2010_v12 = vld [vmem:[#allocation2 + $0x38c] ss:$28 sps:$4 sm:$0xff]   ;;  %v2016_v17 = vld [vmem:[#allocation2 + $0x3c4] ss:$28 sps:$4 sm:$0xff]   ;;  %v2011_v20 = vld [vmem:[#allocation2 + $0x3b8] ss:$28 sps:$4 sm:$0xff]  }
  0x72   :  { %v2014_v21 = vld [vmem:[#allocation2 + $0x3c0] ss:$28 sps:$4 sm:$0xff]   ;;  %v2019_v22 = vld [vmem:[#allocation2 + $0x3f4] ss:$28 sps:$4 sm:$0xff]   ;;  %v2025_v26 = vld [vmem:[#allocation2 + $0x42c] ss:$28 sps:$4 sm:$0xff]  }
  0x73   :  { %1227 = vmatpush1.bf16.msra.mxu0 %v1949_v27  ;;  %1309 = vmatpush1.bf16.msra.mxu1 %v1950_v28  ;;  %v2022_v23 = vld [vmem:[#allocation2 + $0x3fc] ss:$28 sps:$4 sm:$0xff]   ;;  %v2017_v24 = vld [vmem:[#allocation2 + $0x3f0] ss:$28 sps:$4 sm:$0xff]   ;;  %v2023_v28 = vld [vmem:[#allocation2 + $0x428] ss:$28 sps:$4 sm:$0xff]  }
  0x74   :  { %1228 = vmatprep.subr.bf16.mxu0 %v1951_v29  ;;  %1310 = vmatprep.subr.bf16.mxu1 %v1953_v30  ;;  %v2020_v25 = vld [vmem:[#allocation2 + $0x3f8] ss:$28 sps:$4 sm:$0xff]   ;;  %v2026_v29 = vld [vmem:[#allocation2 + $0x430] ss:$28 sps:$4 sm:$0xff]   ;;  %v2031_v30 = vld [vmem:[#allocation2 + $0x464] ss:$28 sps:$4 sm:$0xff]  }
  0x75   :  { %v2028_v27 = vld [vmem:[#allocation2 + $0x434] ss:$28 sps:$4 sm:$0xff]   ;;  %v2038_v37 = vld [vmem:[#allocation2 + $0x4a0] ss:$28 sps:$4 sm:$0xff]   ;;  %v2047_v44 = vld [vmem:[#allocation2 + $0x508] ss:$28 sps:$4 sm:$0xff]  }
  0x76   :  { %v2043_v38 = vld [vmem:[#allocation2 + $0x4d4] ss:$28 sps:$4 sm:$0xff]   ;;  %v2046_v39 = vld [vmem:[#allocation2 + $0x4dc] ss:$28 sps:$4 sm:$0xff]   ;;  %v2065_v53 = vld [vmem:[#allocation2 + $0x4c] ss:$28 sps:$4 sm:$0xff]  }
  0x77   :  { %1229 = vmatpush1.bf16.msra.mxu0 %v1955_v31  ;;  %1311 = vmatpush1.bf16.msra.mxu1 %v1956_v32  ;;  %v2034_v31 = vld [vmem:[#allocation2 + $0x46c] ss:$28 sps:$4 sm:$0xff]   ;;  %v2029_v32 = vld [vmem:[#allocation2 + $0x460] ss:$28 sps:$4 sm:$0xff]   ;;  %v2052_v43 = vld [vmem:[#allocation2 + $0x514] ss:$28 sps:$4 sm:$0xff]  }
  0x78   :  { %1230 = vmatprep.subr.bf16.mxu0 %v1957_v33  ;;  %1312 = vmatprep.subr.bf16.mxu1 %v1959_v34  ;;  %v2032_v33 = vld [vmem:[#allocation2 + $0x468] ss:$28 sps:$4 sm:$0xff]   ;;  %v2037_v34 = vld [vmem:[#allocation2 + $0x49c] ss:$28 sps:$4 sm:$0xff]   ;;  %v2062_v50 = vld [vmem:[#allocation2 + $0x14] ss:$28 sps:$4 sm:$0xff]  }
  0x79   :  { %v2091_v8 = vld [vmem:[#allocation2 + $0x2f0] ss:$28 sps:$4 sm:$0xff]   ;;  %vm1540_vm1 = vcmask 1043456   ;;  %vm1552_vm2 = vcmask 257024   ;;  %s2311_s4 = smov [#allocation11]  }
  0x7a   :  { %s1667_s26 = sshll.u32 %s2311_s4, 4  ;;  %s1668_s26 = int_to_ptr.vmem [resolvable:$true] %s1667_s26 }
  0x7b   :  { %1231 = vmatpush1.bf16.msra.mxu0 %v1961_v35  ;;  %1313 = vmatpush1.bf16.msra.mxu1 %v1962_v36  ;;  %v2040_v35 = vld [vmem:[#allocation2 + $0x4a4] ss:$28 sps:$4 sm:$0xff]   ;;  %v2035_v36 = vld [vmem:[#allocation2 + $0x498] ss:$28 sps:$4 sm:$0xff]   ;;  %s2272_s3 = scalar_lea.vmem %s1668_s26, 448  ;;  %p2277_p13 = scmp.lt.s32.totalorder %s1668_s26, %s1668_s26 }
  0x7c   :  { %1232 = vmatprep.subr.bf16.mxu0 %v1963_v40  ;;  %1314 = vmatprep.subr.bf16.mxu1 %v1965_v41  ;;  %v2041_v40 = vld [vmem:[#allocation2 + $0x4d0] ss:$28 sps:$4 sm:$0xff]   ;;  %v2044_v41 = vld [vmem:[#allocation2 + $0x4d8] ss:$28 sps:$4 sm:$0xff]   ;;  %p2273_p12 = scmp.ne.s32.totalorder %s1668_s26, %s2272_s3  ;;  %p2278_p0 = scmp.lt.s32.totalorder %s2272_s3, %s2272_s3 }
  0x7e   :  { %p2279_p1 = por %p2278_p0, %p2277_p13 }
  0x7f   :  { %1233 = vmatpush1.bf16.msra.mxu0 %v1967_v42  ;;  %1315 = vmatpush1.bf16.msra.mxu1 %v1968_v45  ;;  %v2049_v42 = vld [vmem:[#allocation2 + $0x50c] ss:$28 sps:$4 sm:$0xff]  }
  0x80   :  { %1234 = vmatprep.subr.bf16.mxu0 %v1969_v46  ;;  %1316 = vmatprep.subr.bf16.mxu1 %v1971_v47  ;;  %v2050_v45 = vld [vmem:[#allocation2 + $0x510] ss:$28 sps:$4 sm:$0xff]   ;;  %v2055_v46 = vld [vmem:[#allocation2 + $0x544] ss:$28 sps:$4 sm:$0xff]   ;;  %p2280_p2 = pnand %p2279_p1, %p2273_p12 }
  0x81   :  { %v2058_v47 = vld [vmem:[#allocation2 + $0x54c] ss:$28 sps:$4 sm:$0xff]  }
  0x83   :  { %1235 = vmatpush1.bf16.msra.mxu0 %v1973_v48  ;;  %1317 = vmatpush1.bf16.msra.mxu1 %v1974_v49  ;;  %v2053_v48 = vld [vmem:[#allocation2 + $0x540] ss:$28 sps:$4 sm:$0xff]   ;;  %v2056_v49 = vld [vmem:[#allocation2 + $0x548] ss:$28 sps:$4 sm:$0xff]  }
  0x84   :  { %1236 = vmatprep.subr.bf16.mxu0 %v1975_v51  ;;  %1318 = vmatprep.subr.bf16.mxu1 %v1977_v52  ;;  %v2066_v51 = vld [vmem:[#allocation2 + $0x1d8] ss:$28 sps:$4 sm:$0xff]   ;;  %v2060_v52 = vld [vmem:[#allocation2 + $0x10] ss:$28 sps:$4 sm:$0xff]  }
  0x87   :  { %1237 = vmatpush1.bf16.msra.mxu0 %v1979_v54  ;;  %1319 = vmatpush1.bf16.msra.mxu1 %v1980_v56  ;;  %v2067_v54 = vld [vmem:[#allocation2 + $0x18] ss:$28 sps:$4 sm:$0xff]   ;;  %v2071_v56 = vld [vmem:[#allocation2 + $0x210] ss:$28 sps:$4 sm:$0xff]  }
  0x88   :  { %1238 = vmatprep.subr.bf16.mxu0 %v1981_v57  ;;  %1320 = vmatprep.subr.bf16.mxu1 %v1983_v58  ;;  %v2063_v57 = vld [vmem:[#allocation2 + $0x48] ss:$28 sps:$4 sm:$0xff]   ;;  %v2072_v58 = vld [vmem:[#allocation2 + $0x50] ss:$28 sps:$4 sm:$0xff]  }
  0x8b   :  { %1239 = vmatpush1.bf16.msra.mxu0 %v1985_v60  ;;  %1321 = vmatpush1.bf16.msra.mxu1 %v1986_v61  ;;  %v2070_v60 = vld [vmem:[#allocation2 + $0x84] ss:$28 sps:$4 sm:$0xff]  }
  0x8c   :  { %1240 = vmatprep.subr.bf16.mxu0 %v1987_v62  ;;  %1322 = vmatprep.subr.bf16.mxu1 %v1989_v63  ;;  %v2076_v61 = vld [vmem:[#allocation2 + $0x248] ss:$28 sps:$4 sm:$0xff]   ;;  %v2068_v62 = vld [vmem:[#allocation2 + $0x80] ss:$28 sps:$4 sm:$0xff]  }
  0x8d   :  { %v2075_v63 = vld [vmem:[#allocation2 + $0xbc] ss:$28 sps:$4 sm:$0xff]  }
  0x8f   :  { %1241 = vmatpush1.bf16.msra.mxu0 %v1991_v0  ;;  %1323 = vmatpush1.bf16.msra.mxu1 %v1992_v1  ;;  %v2077_v0 = vld [vmem:[#allocation2 + $0x88] ss:$28 sps:$4 sm:$0xff]   ;;  %v2081_v1 = vld [vmem:[#allocation2 + $0x280] ss:$28 sps:$4 sm:$0xff]  }
  0x90   :  { %1242 = vmatprep.subr.bf16.mxu0 %v1993_v2  ;;  %1324 = vmatprep.subr.bf16.mxu1 %v1995_v3  ;;  %v2073_v2 = vld [vmem:[#allocation2 + $0xb8] ss:$28 sps:$4 sm:$0xff]  }
  0x91   :  { %v2080_v3 = vld [vmem:[#allocation2 + $0xf4] ss:$28 sps:$4 sm:$0xff]  }
  0x93   :  { %1243 = vmatpush1.bf16.msra.mxu0 %v1997_v4  ;;  %1325 = vmatpush1.bf16.msra.mxu1 %v1998_v5  ;;  %v2082_v4 = vld [vmem:[#allocation2 + $0xc0] ss:$28 sps:$4 sm:$0xff]   ;;  %v2086_v5 = vld [vmem:[#allocation2 + $0x2b8] ss:$28 sps:$4 sm:$0xff]  }
  0x94   :  { %1244 = vmatprep.subr.bf16.mxu0 %v1999_v6  ;;  %1326 = vmatprep.subr.bf16.mxu1 %v2001_v7  ;;  %v2078_v6 = vld [vmem:[#allocation2 + $0xf0] ss:$28 sps:$4 sm:$0xff]  }
  0x95   :  { %v2085_v7 = vld [vmem:[#allocation2 + $0x12c] ss:$28 sps:$4 sm:$0xff]  }
  0x97   :  { %1245 = vmatpush1.bf16.msra.mxu0 %v2003_v9  ;;  %1327 = vmatpush1.bf16.msra.mxu1 %v2004_v10  ;;  %v2083_v9 = vld [vmem:[#allocation2 + $0x128] ss:$28 sps:$4 sm:$0xff]   ;;  %v2092_v10 = vld [vmem:[#allocation2 + $0x130] ss:$28 sps:$4 sm:$0xff]  }
  0x98   :  { %1255 = vmatprep.subr.bf16.mxu0 %v2007_v11  ;;  %1337 = vmatprep.subr.bf16.mxu1 %v2010_v12  ;;  %v283_v11 = vld [vmem:[#allocation7] sm:$0xf] }
  0x99   :  { %v2090_v12 = vld [vmem:[#allocation2 + $0x164] ss:$28 sps:$4 sm:$0xff]   ;;  %286 = vperm.xlu0 %1907, %v283_v11  }
  0x9a   :  { %1247 = vmatmul.mubr.bf16.vlgmr.msra.gmra.mrb[0].mxu0 %v2404_v55  ;;  %1329 = vmatmul.mubr.bf16.vlgmr.msra.gmra.mrb[0].mxu1 %v2404_v55 }
  0x9b   :  { %1256 = vmatpush1.bf16.msra.mxu0 %v2005_v14  ;;  %1338 = vmatpush1.bf16.msra.mxu1 %v2008_v15  ;;  %v2096_v14 = vld [vmem:[#allocation2 + $0x328] ss:$28 sps:$4 sm:$0xff]   ;;  %v2088_v15 = vld [vmem:[#allocation2 + $0x160] ss:$28 sps:$4 sm:$0xff]  }
  0x9c   :  { %1257 = vmatprep.subr.bf16.mxu0 %v2013_v16  ;;  %1339 = vmatprep.subr.bf16.mxu1 %v2016_v17  ;;  %v2097_v16 = vld [vmem:[#allocation2 + $0x168] ss:$28 sps:$4 sm:$0xff]   ;;  %v2095_v17 = vld [vmem:[#allocation2 + $0x19c] ss:$28 sps:$4 sm:$0xff]  }
  0x9d   :  { %1853 = vmatprep.mubr.msk.bf16.mxu0 %vm1210_vm0, %v2416_v19  ;;  %1854 = vmatprep.mubr.msk.bf16.mxu1 %vm1210_vm0, %v2416_v19 }
  0x9f   :  { %1258 = vmatpush1.bf16.msra.mxu0 %v2011_v20  ;;  %1340 = vmatpush1.bf16.msra.mxu1 %v2014_v21  ;;  %v2101_v20 = vld [vmem:[#allocation2 + $0x360] ss:$28 sps:$4 sm:$0xff]   ;;  %v2093_v21 = vld [vmem:[#allocation2 + $0x198] ss:$28 sps:$4 sm:$0xff]  }
  0xa0   :  { %1259 = vmatprep.subr.bf16.mxu0 %v2019_v22  ;;  %1341 = vmatprep.subr.bf16.mxu1 %v2022_v23  ;;  %v2102_v22 = vld [vmem:[#allocation2 + $0x1a0] ss:$28 sps:$4 sm:$0xff]   ;;  %v2100_v23 = vld [vmem:[#allocation2 + $0x1d4] ss:$28 sps:$4 sm:$0xff]  }
  0xa3   :  { %1260 = vmatpush1.bf16.msra.mxu0 %v2017_v24  ;;  %1342 = vmatpush1.bf16.msra.mxu1 %v2020_v25  ;;  %v2098_v24 = vld [vmem:[#allocation2 + $0x1d0] ss:$28 sps:$4 sm:$0xff]   ;;  %v2106_v25 = vld [vmem:[#allocation2 + $0x398] ss:$28 sps:$4 sm:$0xff]  }
  0xa4   :  { %1261 = vmatprep.subr.bf16.mxu0 %v2025_v26  ;;  %1343 = vmatprep.subr.bf16.mxu1 %v2028_v27  ;;  %v2105_v26 = vld [vmem:[#allocation2 + $0x20c] ss:$28 sps:$4 sm:$0xff]  }
  0xa5   :  { %v2103_v27 = vld [vmem:[#allocation2 + $0x208] ss:$28 sps:$4 sm:$0xff]  }
  0xa7   :  { %1262 = vmatpush1.bf16.msra.mxu0 %v2023_v28  ;;  %1344 = vmatpush1.bf16.msra.mxu1 %v2026_v29  ;;  %v2110_v28 = vld [vmem:[#allocation2 + $0x3d0] ss:$28 sps:$4 sm:$0xff]   ;;  %v2109_v29 = vld [vmem:[#allocation2 + $0x244] ss:$28 sps:$4 sm:$0xff]  }
  0xa8   :  { %1263 = vmatprep.subr.bf16.mxu0 %v2031_v30  ;;  %1345 = vmatprep.subr.bf16.mxu1 %v2034_v31  ;;  %v2107_v30 = vld [vmem:[#allocation2 + $0x240] ss:$28 sps:$4 sm:$0xff]   ;;  %v2114_v31 = vld [vmem:[#allocation2 + $0x408] ss:$28 sps:$4 sm:$0xff]  }
  0xab   :  { %1264 = vmatpush1.bf16.msra.mxu0 %v2029_v32  ;;  %1346 = vmatpush1.bf16.msra.mxu1 %v2032_v33  ;;  %v2113_v32 = vld [vmem:[#allocation2 + $0x27c] ss:$28 sps:$4 sm:$0xff]  }
  0xac   :  { %1265 = vmatprep.subr.bf16.mxu0 %v2037_v34  ;;  %1347 = vmatprep.subr.bf16.mxu1 %v2040_v35  ;;  %v2111_v33 = vld [vmem:[#allocation2 + $0x278] ss:$28 sps:$4 sm:$0xff]   ;;  %v2118_v34 = vld [vmem:[#allocation2 + $0x440] ss:$28 sps:$4 sm:$0xff]  }
  0xad   :  { %v2117_v35 = vld [vmem:[#allocation2 + $0x2b4] ss:$28 sps:$4 sm:$0xff]  }
  0xaf   :  { %1266 = vmatpush1.bf16.msra.mxu0 %v2035_v36  ;;  %1348 = vmatpush1.bf16.msra.mxu1 %v2038_v37  ;;  %v2115_v36 = vld [vmem:[#allocation2 + $0x2b0] ss:$28 sps:$4 sm:$0xff]   ;;  %v2122_v37 = vld [vmem:[#allocation2 + $0x478] ss:$28 sps:$4 sm:$0xff]  }
  0xb0   :  { %1267 = vmatprep.subr.bf16.mxu0 %v2043_v38  ;;  %1349 = vmatprep.subr.bf16.mxu1 %v2046_v39  ;;  %v2121_v38 = vld [vmem:[#allocation2 + $0x2ec] ss:$28 sps:$4 sm:$0xff]  }
  0xb1   :  { %v2119_v39 = vld [vmem:[#allocation2 + $0x2e8] ss:$28 sps:$4 sm:$0xff]  }
  0xb3   :  { %1268 = vmatpush1.bf16.msra.mxu0 %v2041_v40  ;;  %1350 = vmatpush1.bf16.msra.mxu1 %v2044_v41  ;;  %v2126_v40 = vld [vmem:[#allocation2 + $0x4b0] ss:$28 sps:$4 sm:$0xff]   ;;  %v2125_v41 = vld [vmem:[#allocation2 + $0x324] ss:$28 sps:$4 sm:$0xff]  }
  0xb4   :  { %1269 = vmatprep.subr.bf16.mxu0 %v2049_v42  ;;  %1351 = vmatprep.subr.bf16.mxu1 %v2052_v43  ;;  %v2123_v42 = vld [vmem:[#allocation2 + $0x320] ss:$28 sps:$4 sm:$0xff]   ;;  %v2130_v43 = vld [vmem:[#allocation2 + $0x4e8] ss:$28 sps:$4 sm:$0xff]  }
  0xb7   :  { %1270 = vmatpush1.bf16.msra.mxu0 %v2047_v44  ;;  %1352 = vmatpush1.bf16.msra.mxu1 %v2050_v45  ;;  %v2129_v44 = vld [vmem:[#allocation2 + $0x35c] ss:$28 sps:$4 sm:$0xff]  }
  0xb8   :  { %1271 = vmatprep.subr.bf16.mxu0 %v2055_v46  ;;  %1353 = vmatprep.subr.bf16.mxu1 %v2058_v47  ;;  %v2127_v45 = vld [vmem:[#allocation2 + $0x358] ss:$28 sps:$4 sm:$0xff]   ;;  %v2134_v46 = vld [vmem:[#allocation2 + $0x520] ss:$28 sps:$4 sm:$0xff]  }
  0xb9   :  { %v2133_v47 = vld [vmem:[#allocation2 + $0x394] ss:$28 sps:$4 sm:$0xff]  }
  0xbb   :  { %1272 = vmatpush1.bf16.msra.mxu0 %v2053_v48  ;;  %1354 = vmatpush1.bf16.msra.mxu1 %v2056_v49  ;;  %v2131_v48 = vld [vmem:[#allocation2 + $0x390] ss:$28 sps:$4 sm:$0xff]   ;;  %v2138_v49 = vld [vmem:[#allocation2 + $0x558] ss:$28 sps:$4 sm:$0xff]  }
  0xbc   :  { %1378 = vmatprep.subr.bf16.mxu0 %v2062_v50  ;;  %1857 = vmatprep.subr.bf16.mxu1 %v2066_v51  ;;  %v2137_v50 = vld [vmem:[#allocation2 + $0x3cc] ss:$28 sps:$4 sm:$0xff]  }
  0xbd   :  { %v2135_v51 = vld [vmem:[#allocation2 + $0x3c8] ss:$28 sps:$4 sm:$0xff]  }
  0xbe   :  { %1288 = vmatmul.mubr.bf16.vlgmr.msra.gmra.mrb[0].mxu0 %v2412_v13  ;;  %1370 = vmatmul.mubr.bf16.vlgmr.msra.gmra.mrb[0].mxu1 %v2412_v13 }
  0xbf   :  { %1379 = vmatpush1.bf16.msra.mxu0 %v2060_v52  ;;  %1858 = vmatpush3.bf16.msra.mxu1 %v2067_v54  ;;  %v2141_v52 = vld [vmem:[#allocation2 + $0x404] ss:$28 sps:$4 sm:$0xff]   ;;  %v2144_v54 = vld [vmem:[#allocation2 + $0x43c] ss:$28 sps:$4 sm:$0xff]  }
  0xc0   :  { %1380 = vmatprep.subr.bf16.mxu0 %v2065_v53  ;;  %1859 = vmatprep.subr.bf16.mxu1 %v2071_v56  ;;  %v2139_v53 = vld [vmem:[#allocation2 + $0x400] ss:$28 sps:$4 sm:$0xff]   ;;  %v2142_v56 = vld [vmem:[#allocation2 + $0x438] ss:$28 sps:$4 sm:$0xff]  }
  0xc1   :  { %1492 = vmatprep.mubr.bf16.mxu1 %v2408_v59  ;;  %1410 = vmatprep.mubr.bf16.mxu0 %v2408_v59  ;;  %v2087_v59 = vld [vmem:[#allocation2 + $0xf8] ss:$28 sps:$4 sm:$0xff]  }
  0xc3   :  { %1381 = vmatpush1.bf16.msra.mxu0 %v2063_v57  ;;  %1860 = vmatpush3.bf16.msra.mxu1 %v2072_v58  ;;  %v2150_v57 = vld [vmem:[#allocation2 + $0x4ac] ss:$28 sps:$4 sm:$0xff]  }
  0xc4   :  { %1382 = vmatprep.subr.bf16.mxu0 %v2070_v60  ;;  %1861 = vmatprep.subr.bf16.mxu1 %v2076_v61  ;;  %v2148_v58 = vld [vmem:[#allocation2 + $0x4a8] ss:$28 sps:$4 sm:$0xff]   ;;  %v2156_v61 = vld [vmem:[#allocation2 + $0x51c] ss:$28 sps:$4 sm:$0xff]  }
  0xc5   :  { %v2153_v60 = vld [vmem:[#allocation2 + $0x4e4] ss:$28 sps:$4 sm:$0xff]  }
  0xc7   :  { %1383 = vmatpush1.bf16.msra.mxu0 %v2068_v62  ;;  %1862 = vmatpush3.bf16.msra.mxu1 %v2077_v0  ;;  %v2154_v62 = vld [vmem:[#allocation2 + $0x518] ss:$28 sps:$4 sm:$0xff]   ;;  %v2157_v0 = vld [vmem:[#allocation2 + $0x550] ss:$28 sps:$4 sm:$0xff]  }
  0xc8   :  { %1384 = vmatprep.subr.bf16.mxu0 %v2075_v63  ;;  %1863 = vmatprep.subr.bf16.mxu1 %v2081_v1  ;;  %v2159_v63 = vld [vmem:[#allocation2 + $0x554] ss:$28 sps:$4 sm:$0xff]   ;;  %v1598_v1 = vld [vmem:[#allocation8] sm:$0xf] }
  0xc9   :  { %1601 = vperm.xlu1 %1908, %v1598_v1  }
  0xcb   :  { %1385 = vmatpush1.bf16.msra.mxu0 %v2073_v2  ;;  %1864 = vmatpush3.bf16.msra.mxu1 %v2082_v4 }
  0xcc   :  { %1386 = vmatprep.subr.bf16.mxu0 %v2080_v3  ;;  %1865 = vmatprep.subr.bf16.mxu1 %v2086_v5 }
  0xcf   :  { %1387 = vmatpush1.bf16.msra.mxu0 %v2078_v6  ;;  %1866 = vmatpush3.bf16.msra.mxu1 %v2087_v59 }
  0xd0   :  { %1388 = vmatprep.subr.bf16.mxu0 %v2085_v7  ;;  %1867 = vmatprep.subr.bf16.mxu1 %v2091_v8 }
  0xd3   :  { %1389 = vmatpush1.bf16.msra.mxu0 %v2083_v9  ;;  %1868 = vmatpush3.bf16.msra.mxu1 %v2092_v10 }
  0xd4   :  { %1390 = vmatprep.subr.bf16.mxu0 %v2090_v12  ;;  %1869 = vmatprep.subr.bf16.mxu1 %v2096_v14 }
  0xd7   :  { %1391 = vmatpush1.bf16.msra.mxu0 %v2088_v15  ;;  %1870 = vmatpush3.bf16.msra.mxu1 %v2097_v16 }
  0xd8   :  { %1392 = vmatprep.subr.bf16.mxu0 %v2095_v17  ;;  %1871 = vmatprep.subr.bf16.mxu1 %v2101_v20 }
  0xdb   :  { %1393 = vmatpush1.bf16.msra.mxu0 %v2093_v21  ;;  %1872 = vmatpush3.bf16.msra.mxu1 %v2102_v22 }
  0xdc   :  { %1394 = vmatprep.subr.bf16.mxu0 %v2100_v23  ;;  %1500 = vmatprep.subr.bf16.mxu1 %v2309_v18 }
  0xde   :  { %1493 = vmatmul.mubr.bf16.vlgmr.msra.gmra.mrb[4].mxu1 %v2404_v55 }
  0xdf   :  { %1395 = vmatpush1.bf16.msra.mxu0 %v2098_v24  ;;  %1501 = vmatpush1.bf16.msra.mxu1 %v2106_v25 }
  0xe0   :  { %1396 = vmatprep.subr.bf16.mxu0 %v2105_v26  ;;  %1502 = vmatprep.subr.bf16.mxu1 %v2309_v18 }
  0xe1   :  { %1856 = vmatprep.mubr.msk.bf16.mxu1 %vm1210_vm0, %v2416_v19 }
  0xe3   :  { %1397 = vmatpush1.bf16.msra.mxu0 %v2103_v27  ;;  %1503 = vmatpush1.bf16.msra.mxu1 %v2110_v28 }
  0xe4   :  { %1398 = vmatprep.subr.bf16.mxu0 %v2109_v29  ;;  %1504 = vmatprep.subr.bf16.mxu1 %v2309_v18 }
  0xe7   :  { %1399 = vmatpush1.bf16.msra.mxu0 %v2107_v30  ;;  %1505 = vmatpush1.bf16.msra.mxu1 %v2114_v31 }
  0xe8   :  { %1400 = vmatprep.subr.bf16.mxu0 %v2113_v32  ;;  %1506 = vmatprep.subr.bf16.mxu1 %v2309_v18 }
  0xeb   :  { %1401 = vmatpush1.bf16.msra.mxu0 %v2111_v33  ;;  %1507 = vmatpush1.bf16.msra.mxu1 %v2118_v34 }
  0xec   :  { %1402 = vmatprep.subr.bf16.mxu0 %v2117_v35  ;;  %1508 = vmatprep.subr.bf16.mxu1 %v2309_v18 }
  0xef   :  { %1403 = vmatpush1.bf16.msra.mxu0 %v2115_v36  ;;  %1509 = vmatpush1.bf16.msra.mxu1 %v2122_v37 }
  0xf0   :  { %1404 = vmatprep.subr.bf16.mxu0 %v2121_v38  ;;  %1510 = vmatprep.subr.bf16.mxu1 %v2309_v18 }
  0xf3   :  { %1405 = vmatpush1.bf16.msra.mxu0 %v2119_v39  ;;  %1511 = vmatpush1.bf16.msra.mxu1 %v2126_v40 }
  0xf4   :  { %1406 = vmatprep.subr.bf16.mxu0 %v2125_v41  ;;  %1512 = vmatprep.subr.bf16.mxu1 %v2309_v18 }
  0xf7   :  { %1407 = vmatpush1.bf16.msra.mxu0 %v2123_v42  ;;  %1513 = vmatpush1.bf16.msra.mxu1 %v2130_v43 }
  0xf8   :  { %1408 = vmatprep.subr.bf16.mxu0 %v2129_v44  ;;  %1514 = vmatprep.subr.bf16.mxu1 %v2309_v18 }
  0xfb   :  { %1409 = vmatpush1.bf16.msra.mxu0 %v2127_v45  ;;  %1515 = vmatpush1.bf16.msra.mxu1 %v2134_v46 }
  0xfc   :  { %1419 = vmatprep.subr.bf16.mxu0 %v2133_v47  ;;  %1516 = vmatprep.subr.bf16.mxu1 %v2309_v18  ;;  %v2147_v18 = vld [vmem:[#allocation2 + $0x474] ss:$28 sps:$4 sm:$0xff]  }
  0xfe   :  { %1411 = vmatmul.mubr.bf16.vlgmr.msra.gmra.mrb[4].mxu0 %v2404_v55  ;;  %v2145_v55 = vld [vmem:[#allocation2 + $0x470] ss:$28 sps:$4 sm:$0xff]  }
  0xff   :  { %1420 = vmatpush1.bf16.msra.mxu0 %v2131_v48  ;;  %1517 = vmatpush1.bf16.msra.mxu1 %v2138_v49 }
 0x100   :  { %1421 = vmatprep.subr.bf16.mxu0 %v2137_v50  ;;  %1855 = vmatprep.mubr.msk.bf16.mxu0 %vm1210_vm0, %v2416_v19  ;;  %v2151_v19 = vld [vmem:[#allocation2 + $0x4e0] ss:$28 sps:$4 sm:$0xff]  }
 0x102   :  { %1533 = vmatmul.mubr.bf16.vlgmr.msra.gmra.mrb[8].mxu1 %v2412_v13 }
 0x103   :  { %1422 = vmatpush1.bf16.msra.mxu0 %v2135_v51 }
 0x104   :  { %1423 = vmatprep.subr.bf16.mxu0 %v2141_v52 }
 0x107   :  { %1424 = vmatpush1.bf16.msra.mxu0 %v2139_v53 }
 0x108   :  { %1425 = vmatprep.subr.bf16.mxu0 %v2144_v54 }
 0x10b   :  { %1426 = vmatpush1.bf16.msra.mxu0 %v2142_v56 }
 0x10c   :  { %1427 = vmatprep.subr.bf16.mxu0 %v2147_v18 }
 0x10f   :  { %1428 = vmatpush1.bf16.msra.mxu0 %v2145_v55 }
 0x110   :  { %1429 = vmatprep.subr.bf16.mxu0 %v2150_v57 }
 0x113   :  { %1430 = vmatpush1.bf16.msra.mxu0 %v2148_v58 }
 0x114   :  { %1431 = vmatprep.subr.bf16.mxu0 %v2153_v60 }
 0x117   :  { %1432 = vmatpush1.bf16.msra.mxu0 %v2151_v19 }
 0x118   :  { %1433 = vmatprep.subr.bf16.mxu0 %v2156_v61  ;;  %v287_v15 = vpop.permute.xlu0 %286 }
 0x11b   :  { %1434 = vmatpush1.bf16.msra.mxu0 %v2154_v62 }
 0x11c   :  { %1435 = vmatprep.subr.bf16.mxu0 %v2159_v63 }
 0x11f   :  { %1436 = vmatpush1.bf16.msra.mxu0 %v2157_v0 }
 0x122   :  { %1452 = vmatmul.mubr.bf16.vlgmr.msra.gmra.mrb[4].mxu0 %v2412_v13 }
 0x191   :  { %v1289_v2 = vpop.f32.mrb[0].mxu0  ;;  %v1371_v3 = vpop.f32.mrb[0].mxu1 }
 0x192   :  { %v1291_v4 = vpop.f32.mrb[1].mxu0  ;;  %v1373_v5 = vpop.f32.mrb[1].mxu1  ;;  %v1879_v23 = vadd.f32 %v1289_v2, %v287_v15  ;;  %v1881_v27 = vadd.f32 %v1371_v3, %v287_v15 }
 0x193   :  { %v1293_v6 = vpop.f32.mrb[2].mxu0  ;;  %v1375_v7 = vpop.f32.mrb[2].mxu1  ;;  %v1880_v24 = vadd.f32 %v1291_v4, %v287_v15  ;;  %v1882_v30 = vadd.f32 %v1373_v5, %v287_v15 }
 0x194   :  { %v1294_v59 = vpop.f32.mrb[3].mxu0  ;;  %v1376_v8 = vpop.f32.mrb[3].mxu1  ;;  %v1541_v25 = vsel %vm1540_vm1, %v1879_v23, 0.0  ;;  %v1544_v29 = vsel %vm1540_vm1, %v1881_v27, 0.0 }
 0x195   :  { %v1542_v26 = vsel %vm1540_vm1, %v1880_v24, 0.0  ;;  %v1546_v33 = vsel %vm1540_vm1, %v1882_v30, 0.0 }
 0x196   :  { %v1543_v28 = vadd.f32 %v1542_v26, %v1541_v25 }
 0x198   :  { %v1545_v31 = vadd.f32 %v1544_v29, %v1543_v28 }
 0x19a   :  { %v1547_v36 = vadd.f32 %v1546_v33, %v1545_v31 }
 0x1b1   :  { %v1873_v9 = vpop.f32.mrb[4].mxu1 }
 0x1b2   :  { %v1874_v10 = vpop.f32.mrb[5].mxu1 }
 0x1b3   :  { %v1875_v11 = vadd.f32 %v1874_v10, %v1873_v9  ;;  %v1876_v12 = vpop.f32.mrb[6].mxu1  ;;  %v1611_v9 = vld [vmem:[#allocation10] sm:$0xf]  ;;  %v1602_v10 = vpop.permute.xlu1 %1601 }
 0x1b4   :  { %v1877_v14 = vpop.f32.mrb[7].mxu1 }
 0x1b5   :  { %v1495_v16 = vadd.f32 %v1875_v11, %v287_v15 }
 0x1d5   :  { %v1534_v17 = vpop.f32.mrb[8].mxu1 }
 0x1d6   :  { %v1535_v20 = vadd.f32 %v1534_v17, %v1495_v16  ;;  %v1536_v13 = vpop.f32.mrb[9].mxu1 }
 0x1d7   :  { %v1537_v21 = vpop.f32.mrb[10].mxu1 }
 0x1d8   :  { %v1538_v22 = vpop.f32.mrb[11].mxu1  ;;  %v1553_v44 = vsel %vm1552_vm2, %v1535_v20, 0.0 }
 0x1f5   :  { %v1453_v32 = vpop.f32.mrb[4].mxu0 }
 0x1f6   :  { %v1883_v34 = vadd.f32 %v1453_v32, %v287_v15  ;;  %v1455_v35 = vpop.f32.mrb[5].mxu0 }
 0x1f7   :  { %v1884_v37 = vadd.f32 %v1455_v35, %v287_v15  ;;  %v1457_v38 = vpop.f32.mrb[6].mxu0 }
 0x1f8   :  { %v1548_v39 = vsel %vm1540_vm1, %v1883_v34, 0.0  ;;  %v1458_v40 = vpop.f32.mrb[7].mxu0 }
 0x1f9   :  { %v1549_v41 = vadd.f32 %v1548_v39, %v1547_v36  ;;  %v1550_v42 = vsel %vm1540_vm1, %v1884_v37, 0.0 }
 0x1fb   :  { %v1551_v43 = vadd.f32 %v1550_v42, %v1549_v41 }
 0x1fd   :  { %v1554_v45 = vadd.f32 %v1553_v44, %v1551_v43 }
 0x1ff   :  { %1555 = vadd.xlane.f32.xlu0 %v1554_v45 }
 0x28c   :  { %v1556_v46 = vpop.xlane.xlu0 %1555 }
 0x28d   :  { %v1558_v47 = vmul.f32 0.00125, %v1556_v46 }
 0x28f   :  { %v1559_v48 = vsub.f32 %v1879_v23, %v1558_v47  ;;  %v1560_v49 = vsub.f32 %v1880_v24, %v1558_v47  ;;  %v1561_v50 = vsub.f32 %v1881_v27, %v1558_v47  ;;  %v1562_v51 = vsub.f32 %v1882_v30, %v1558_v47 }
 0x290   :  { %v1563_v52 = vsub.f32 %v1883_v34, %v1558_v47  ;;  %v1564_v18 = vsub.f32 %v1884_v37, %v1558_v47  ;;  %v1565_v19 = vsub.f32 %v1535_v20, %v1558_v47 }
 0x291   :  { %v1566_v53 = vmul.f32 %v1559_v48, %v1559_v48  ;;  %v1567_v54 = vmul.f32 %v1560_v49, %v1560_v49  ;;  %v1568_v56 = vmul.f32 %v1561_v50, %v1561_v50  ;;  %v1569_v55 = vmul.f32 %v1562_v51, %v1562_v51 }
 0x292   :  { %v1570_v61 = vmul.f32 %v1563_v52, %v1563_v52  ;;  %v1571_v0 = vmul.f32 %v1564_v18, %v1564_v18  ;;  %v1572_v3 = vmul.f32 %v1565_v19, %v1565_v19 }
 0x293   :  { %v1573_v57 = vsel %vm1540_vm1, %v1566_v53, 0.0  ;;  %v1574_v58 = vsel %vm1540_vm1, %v1567_v54, 0.0  ;;  %v1576_v62 = vsel %vm1540_vm1, %v1568_v56, 0.0  ;;  %v1578_v1 = vsel %vm1540_vm1, %v1569_v55, 0.0 }
 0x294   :  { %v1575_v60 = vadd.f32 %v1574_v58, %v1573_v57  ;;  %v1580_v4 = vsel %vm1540_vm1, %v1570_v61, 0.0  ;;  %v1582_v6 = vsel %vm1540_vm1, %v1571_v0, 0.0  ;;  %v1584_v59 = vsel %vm1552_vm2, %v1572_v3, 0.0 }
 0x296   :  { %v1577_v63 = vadd.f32 %v1576_v62, %v1575_v60 }
 0x298   :  { %v1579_v2 = vadd.f32 %v1578_v1, %v1577_v63 }
 0x29a   :  { %v1581_v5 = vadd.f32 %v1580_v4, %v1579_v2 }
 0x29c   :  { %v1583_v7 = vadd.f32 %v1582_v6, %v1581_v5 }
 0x29e   :  { %v1585_v8 = vadd.f32 %v1584_v59, %v1583_v7 }
 0x2a0   :  { %1586 = vadd.xlane.f32.xlu1 %v1585_v8 }
 0x2b1   :  { %1614 = vperm.xlu1 %1908, %v1611_v9  }
 0x32d   :  { %v1587_v11 = vpop.xlane.xlu1 %1586 }
 0x32e   :  { %v1588_v12 = vmul.f32 0.00125, %v1587_v11 }
 0x330   :  { %v1589_v14 = vadd.f32 1e-05, %v1588_v12 }
 0x331   :  { %v1615_v31 = vpop.permute.xlu1 %1614 }
 0x332   :  { %2160 = vrsqrt.f32 %v1589_v14 }
 0x33c   :  { %v2161_v15 = vpop.eup %2160 }
 0x33d   :  { %v1591_v16 = vmul.f32 %v2161_v15, %v1559_v48  ;;  %v1592_v17 = vmul.f32 %v2161_v15, %v1560_v49  ;;  %v1593_v20 = vmul.f32 %v2161_v15, %v1561_v50  ;;  %v1594_v13 = vmul.f32 %v2161_v15, %v1562_v51 }
 0x33e   :  { %v1595_v21 = vmul.f32 %v2161_v15, %v1563_v52  ;;  %v1596_v22 = vmul.f32 %v2161_v15, %v1564_v18  ;;  %v1597_v23 = vmul.f32 %v2161_v15, %v1565_v19 }
 0x33f   :  { %v1604_v24 = vmul.f32 %v1602_v10, %v1591_v16  ;;  %v1605_v25 = vmul.f32 %v1602_v10, %v1592_v17  ;;  %v1606_v26 = vmul.f32 %v1602_v10, %v1593_v20  ;;  %v1607_v27 = vmul.f32 %v1602_v10, %v1594_v13 }
 0x340   :  { %v1608_v28 = vmul.f32 %v1602_v10, %v1595_v21  ;;  %v1609_v29 = vmul.f32 %v1602_v10, %v1596_v22  ;;  %v1610_v30 = vmul.f32 %v1602_v10, %v1597_v23 }
 0x341   :  { %v1617_v32 = vadd.f32 %v1615_v31, %v1604_v24  ;;  %v1618_v33 = vadd.f32 %v1615_v31, %v1605_v25  ;;  %v1619_v34 = vadd.f32 %v1615_v31, %v1606_v26  ;;  %v1620_v35 = vadd.f32 %v1615_v31, %v1607_v27 }
 0x342   :  { %v1621_v36 = vadd.f32 %v1615_v31, %v1608_v28  ;;  %v1622_v37 = vadd.f32 %v1615_v31, %v1609_v29  ;;  %v1623_v38 = vadd.f32 %v1615_v31, %v1610_v30 }
 0x343   :  { %vm1624_vm3 = vcmp.gt.f32.partialorder %v1617_v32, 0.0  ;;  %vm1625_vm4 = vcmp.gt.f32.partialorder %v1618_v33, 0.0  ;;  %vm1626_vm5 = vcmp.gt.f32.partialorder %v1619_v34, 0.0  ;;  %vm1627_vm6 = vcmp.gt.f32.partialorder %v1620_v35, 0.0 }
 0x344   :  { %vm1628_vm7 = vcmp.gt.f32.partialorder %v1621_v36, 0.0  ;;  %vm1629_vm8 = vcmp.gt.f32.partialorder %v1622_v37, 0.0  ;;  %vm1630_vm9 = vcmp.gt.f32.partialorder %v1623_v38, 0.0  ;;  %v1631_v39 = vmul.f32 0.01, %v1617_v32 }
 0x345   :  { %v1632_v40 = vmul.f32 0.01, %v1618_v33  ;;  %v1633_v41 = vmul.f32 0.01, %v1619_v34  ;;  %v1634_v42 = vmul.f32 0.01, %v1620_v35 }
 0x346   :  { %v1635_v43 = vmul.f32 0.01, %v1621_v36  ;;  %v1636_v44 = vmul.f32 0.01, %v1622_v37  ;;  %v1637_v45 = vmul.f32 0.01, %v1623_v38  ;;  %v1638_v46 = vsel %vm1624_vm3, %v1617_v32, %v1631_v39 }
 0x347   :  { %v1639_v47 = vsel %vm1625_vm4, %v1618_v33, %v1632_v40  ;;  %v1640_v48 = vsel %vm1626_vm5, %v1619_v34, %v1633_v41  ;;  %v1641_v49 = vsel %vm1627_vm6, %v1620_v35, %v1634_v42 }
 0x348   :  { %v1642_v50 = vsel %vm1628_vm7, %v1621_v36, %v1635_v43  ;;  %v1643_v51 = vsel %vm1629_vm8, %v1622_v37, %v1636_v44  ;;  %v1644_v52 = vsel %vm1630_vm9, %v1623_v38, %v1637_v45  ;;  %v1651_v53 = vcombine.low %v1638_v46, %v1639_v47 }
 0x349   :  { %v1652_v54 = vcombine.low %v1640_v48, %v1641_v49  ;;  %v1653_v56 = vcombine.low %v1642_v50, %v1643_v51  ;;  %1660 = vst.msk [vmem:[#allocation11 + $0x18] sm:$0xf] %vm1552_vm2, %v1644_v52 }
 0x34a   :  { %1657 = vst [vmem:[#allocation11] sm:$0xff] %v1651_v53 }
 0x34b   :  { %1658 = vst [vmem:[#allocation11 + $0x8] sm:$0xff] %v1652_v54  ;;  %1659 = vst [vmem:[#allocation11 + $0x10] sm:$0xff] %v1653_v56 }
 0x34c   :  { %2283 = shalt.err (!%p2280_p2)
}
 0x34d   :  { %s2284_s28 = scalar_lea.hbm %s2484_s5, 448 }
 0x34e   :  { %p2285_p3 = scmp.ne.s32.totalorder %s2484_s5, %s2284_s28  ;;  %p2288_p4 = scmp.lt.u32.totalorder %s2284_s28, %s2484_s5 }
 0x350   :  { %p2290_p5 = pnand %p2288_p4, %p2285_p3 }
 0x352   :  { %2293 = shalt.err (!%p2290_p5)
}
 0x353   :  { %1670 = dma.vmem_to_hbm [thread:$0]  %s1668_s26, 448, %s2484_s5, [#allocation4]  }
 0x354   :  { %2300 = dma.done.wait [#allocation4], 448  }
 0x355   :  { %2301 = vsyncadd [#allocation4], 4294966848 }
 0x356   :  { %1674 = vsyncpa [#allocation3], 1 }
 0x357   :  { %1675 = vsyncpa [#allocation6], 1 }
 0x358   :  { %1676 = vsyncpa [#allocation9], 1 }
 0x359   :  { %1677 = vsyncpa [#allocation4], 1 }

// kernel: vae_forward.7
= control target key start
LH: loop header
LB: loop body
LE: loop exit
PB: predicated region body
PF: predicated region fallthrough
CT: control target
= control target key end

     0   :  { %13 = vsyncpa [#allocation3], 0  ;;  %s2770_s0 = inlined_call_operand.hbm [shape: f32[2,1600], index: 0, kind: input, shape index: {}]   ;;  %s2771_s1 = inlined_call_operand.hbm [shape: bf16[1600,64], index: 1, kind: input, shape index: {}]   ;;  %s2772_s2 = inlined_call_operand.hbm [shape: f32[1,64], index: 2, kind: input, shape index: {}]   ;;  %s2773_s3 = inlined_call_operand.hbm [shape: f32[2,32], index: 3, kind: input, shape index: {}]   ;;  %s2774_s4 = inlined_call_operand.hbm [shape: bf16[32,1600], index: 4, kind: input, shape index: {}]   ;;  %s2775_s5 = inlined_call_operand.hbm [shape: f32[1,1600], index: 5, kind: input, shape index: {}]   ;;  %s2776_s6 = inlined_call_operand.hbm [shape: f32[2,64], index: 6, kind: output, shape index: {0}]   ;;  %s2777_s7 = inlined_call_operand.hbm [shape: f32[2,1600], index: 7, kind: output, shape index: {1}]  }
   0x1   :  { %14 = vsyncpa [#allocation6], 0 }
   0x2   :  { %15 = vsyncpa [#allocation9], 0 }
   0x3   :  { %16 = vsyncpa [#allocation12], 0 }
   0x4   :  { %17 = vsyncpa [#allocation4], 0 }
   0x5   :  { %18 = vsyncpa [#allocation15], 0  ;;  %s2572_s24 = smov [#allocation5]   ;;  %s2384_s28 = scalar_lea.hbm %s2771_s1, 12800 }
   0x6   :  { %s34_s25 = sshll.u32 %s2572_s24, 4  ;;  %p2385_p0 = scmp.ne.s32.totalorder %s2771_s1, %s2384_s28  ;;  %s35_s25 = int_to_ptr.vmem [resolvable:$true] %s34_s25 }
   0x7   :  { %p2388_p1 = scmp.lt.u32.totalorder %s2384_s28, %s2771_s1 }
   0x9   :  { %p2390_p2 = pnand %p2388_p1, %p2385_p0 }
   0xb   :  { %2393 = shalt.err (!%p2390_p2)
}
   0xc   :  { %s2394_s10 = scalar_lea.vmem %s35_s25, 12800  ;;  %p2399_p4 = scmp.lt.s32.totalorder %s35_s25, %s35_s25 }
   0xd   :  { %p2395_p3 = scmp.ne.s32.totalorder %s35_s25, %s2394_s10  ;;  %p2400_p5 = scmp.lt.s32.totalorder %s2394_s10, %s2394_s10 }
   0xf   :  { %p2401_p6 = por %p2400_p5, %p2399_p4 }
  0x11   :  { %p2402_p7 = pnand %p2401_p6, %p2395_p3 }
  0x13   :  { %2405 = shalt.err (!%p2402_p7)
}
  0x14   :  { %s2573_s11 = smov 64   ;;  %s2574_s12 = smov 4  }
  0x15   :  { %40 = dma.hbm_to_vmem [thread:$0]  %s2771_s1, 12800, %s35_s25, [#allocation6], %s2573_s11, %s2573_s11, %s2574_s12  }
  0x16   :  { %s2575_s15 = smov [#allocation8]   ;;  %s2576_s17 = smov [#allocation2]  }
  0x17   :  { %s57_s16 = sshll.u32 %s2575_s15, 4  ;;  %s25_s18 = sshll.u32 %s2576_s17, 4  ;;  %s58_s16 = int_to_ptr.vmem [resolvable:$true] %s57_s16  ;;  %s26_s18 = int_to_ptr.vmem [resolvable:$true] %s25_s18 }
  0x18   :  { %s2406_s21 = scalar_lea.hbm %s2773_s3, 32 }
  0x19   :  { %p2407_p8 = scmp.ne.s32.totalorder %s2773_s3, %s2406_s21  ;;  %p2410_p9 = scmp.lt.u32.totalorder %s2406_s21, %s2773_s3 }
  0x1b   :  { %p2412_p10 = pnand %p2410_p9, %p2407_p8 }
  0x1d   :  { %2415 = shalt.err (!%p2412_p10)
}
  0x1e   :  { %s2416_s1 = scalar_lea.vmem %s58_s16, 32  ;;  %p2421_p12 = scmp.lt.s32.totalorder %s58_s16, %s58_s16 }
  0x1f   :  { %p2417_p11 = scmp.ne.s32.totalorder %s58_s16, %s2416_s1  ;;  %p2422_p13 = scmp.lt.s32.totalorder %s2416_s1, %s2416_s1 }
  0x21   :  { %p2423_p0 = por %p2422_p13, %p2421_p12 }
  0x23   :  { %p2424_p1 = pnand %p2423_p0, %p2417_p11 }
  0x25   :  { %2427 = shalt.err (!%p2424_p1)
}
  0x26   :  { %60 = dma.hbm_to_vmem [thread:$0]  %s2773_s3, 32, %s58_s16, [#allocation9]  }
  0x27   :  { %s2428_s30 = scalar_lea.hbm %s2770_s0, 416 }
  0x28   :  { %p2429_p2 = scmp.ne.s32.totalorder %s2770_s0, %s2428_s30  ;;  %p2432_p3 = scmp.lt.u32.totalorder %s2428_s30, %s2770_s0 }
  0x2a   :  { %p2434_p4 = pnand %p2432_p3, %p2429_p2 }
  0x2c   :  { %2437 = shalt.err (!%p2434_p4)
}
  0x2d   :  { %s2438_s12 = scalar_lea.vmem %s26_s18, 416  ;;  %p2443_p6 = scmp.lt.s32.totalorder %s26_s18, %s26_s18 }
  0x2e   :  { %p2439_p5 = scmp.ne.s32.totalorder %s26_s18, %s2438_s12  ;;  %p2444_p7 = scmp.lt.s32.totalorder %s2438_s12, %s2438_s12 }
  0x30   :  { %p2445_p8 = por %p2444_p7, %p2443_p6 }
  0x32   :  { %p2446_p9 = pnand %p2445_p8, %p2439_p5 }
  0x34   :  { %2449 = shalt.err (!%p2446_p9)
}
  0x35   :  { %28 = dma.hbm_to_vmem [thread:$0]  %s2770_s0, 416, %s26_s18, [#allocation3]  }
  0x36   :  { %s2577_s14 = smov [#allocation7]   ;;  %s2578_s16 = smov [#allocation10]  }
  0x37   :  { %s47_s15 = sshll.u32 %s2577_s14, 4  ;;  %s66_s17 = sshll.u32 %s2578_s16, 4  ;;  %s48_s15 = int_to_ptr.vmem [resolvable:$true] %s47_s15  ;;  %s67_s17 = int_to_ptr.vmem [resolvable:$true] %s66_s17 }
  0x38   :  { %s2450_s21 = scalar_lea.hbm %s2772_s2, 16 }
  0x39   :  { %p2451_p10 = scmp.ne.s32.totalorder %s2772_s2, %s2450_s21  ;;  %p2454_p11 = scmp.lt.u32.totalorder %s2450_s21, %s2772_s2 }
  0x3b   :  { %p2456_p12 = pnand %p2454_p11, %p2451_p10 }
  0x3d   :  { %2459 = shalt.err (!%p2456_p12)
}
  0x3e   :  { %s2460_s0 = scalar_lea.vmem %s48_s15, 16  ;;  %s2464_s18 = scalar_lea.vmem %s48_s15, 32 }
  0x3f   :  { %p2461_p13 = scmp.ne.s32.totalorder %s48_s15, %s2460_s0  ;;  %p2465_p0 = scmp.lt.s32.totalorder %s48_s15, %s48_s15 }
  0x40   :  { %p2466_p1 = scmp.lt.s32.totalorder %s2464_s18, %s2460_s0 }
  0x42   :  { %p2467_p2 = por %p2466_p1, %p2465_p0 }
  0x44   :  { %p2468_p3 = pnand %p2467_p2, %p2461_p13 }
  0x46   :  { %2471 = shalt.err (!%p2468_p3)
}
  0x47   :  { %50 = dma.hbm_to_vmem [thread:$0]  %s2772_s2, 16, %s48_s15, [#allocation6]  }
  0x48   :  { %s2472_s29 = scalar_lea.hbm %s2774_s4, 3328 }
  0x49   :  { %p2473_p4 = scmp.ne.s32.totalorder %s2774_s4, %s2472_s29  ;;  %p2476_p5 = scmp.lt.u32.totalorder %s2472_s29, %s2774_s4 }
  0x4b   :  { %p2478_p6 = pnand %p2476_p5, %p2473_p4 }
  0x4d   :  { %2481 = shalt.err (!%p2478_p6)
}
  0x4e   :  { %s2482_s11 = scalar_lea.vmem %s67_s17, 3328  ;;  %p2487_p8 = scmp.lt.s32.totalorder %s67_s17, %s67_s17 }
  0x4f   :  { %p2483_p7 = scmp.ne.s32.totalorder %s67_s17, %s2482_s11  ;;  %p2488_p9 = scmp.lt.s32.totalorder %s2482_s11, %s2482_s11 }
  0x51   :  { %p2489_p10 = por %p2488_p9, %p2487_p8 }
  0x53   :  { %p2490_p11 = pnand %p2489_p10, %p2483_p7 }
  0x55   :  { %2493 = shalt.err (!%p2490_p11)
}
  0x56   :  { %s2579_s2 = smov 832   ;;  %s2580_s12 = smov 52  }
  0x57   :  { %72 = dma.hbm_to_vmem [thread:$0]  %s2774_s4, 3328, %s67_s17, [#allocation9], %s2579_s2, %s2579_s2, %s2580_s12  }
  0x58   :  { %s2581_s14 = smov [#allocation11]   ;;  %s2494_s20 = scalar_lea.hbm %s2775_s5, 208 }
  0x59   :  { %s79_s15 = sshll.u32 %s2581_s14, 4  ;;  %p2495_p12 = scmp.ne.s32.totalorder %s2775_s5, %s2494_s20  ;;  %s80_s15 = int_to_ptr.vmem [resolvable:$true] %s79_s15 }
  0x5a   :  { %p2498_p13 = scmp.lt.u32.totalorder %s2494_s20, %s2775_s5 }
  0x5c   :  { %p2500_p0 = pnand %p2498_p13, %p2495_p12 }
  0x5e   :  { %2503 = shalt.err (!%p2500_p0)
}
  0x5f   :  { %s2504_s26 = scalar_lea.vmem %s80_s15, 208  ;;  %s2508_s4 = scalar_lea.vmem %s80_s15, 224 }
  0x60   :  { %p2505_p1 = scmp.ne.s32.totalorder %s80_s15, %s2504_s26  ;;  %p2509_p2 = scmp.lt.s32.totalorder %s80_s15, %s80_s15 }
  0x61   :  { %p2510_p3 = scmp.lt.s32.totalorder %s2508_s4, %s2504_s26 }
  0x63   :  { %p2511_p4 = por %p2510_p3, %p2509_p2 }
  0x65   :  { %p2512_p5 = pnand %p2511_p4, %p2505_p1 }
  0x67   :  { %2515 = shalt.err (!%p2512_p5)
}
  0x68   :  { %82 = dma.hbm_to_vmem [thread:$0]  %s2775_s5, 208, %s80_s15, [#allocation12]  }
  0x69   :  { %2560 = dma.done.wait [#allocation3], 416  }
  0x6a   :  { %2561 = vsyncadd [#allocation3], 4294966880 }
  0x6b   :  { %2562 = dma.done.wait [#allocation6], 12816  }
  0x6c   :  { %2563 = vsyncadd [#allocation6], 4294954480 }
  0x6d   :  { %2564 = dma.done.wait [#allocation9], 3360  }
  0x6e   :  { %2565 = vsyncadd [#allocation9], 4294963936 }
  0x6f   :  { %2566 = dma.done.wait [#allocation12], 208  }
  0x70   :  { %2567 = vsyncadd [#allocation12], 4294967088  ;;  %v2241_v0 = vld [vmem:[#allocation5 + $0x40] sm:$0xff]   ;;  %v2245_v4 = vld [vmem:[#allocation5 + $0x48] sm:$0xff]   ;;  %v2582_v21 = vmov 1983009808   ;;  %v114_v23 = vlaneseq }
  0x71   :  { %v2242_v1 = vld [vmem:[#allocation5] sm:$0xff]   ;;  %2064 = vmatprep.subr.bf16.mxu0 %v2241_v0  ;;  %v2246_v5 = vld [vmem:[#allocation5 + $0x8] sm:$0xff]   ;;  %v2249_v8 = vld [vmem:[#allocation5 + $0x50] sm:$0xff]   ;;  %v112_v22 = vunpack.c.l.s4 %v2582_v21  ;;  %vm2584_vm0 = vmmov 0   ;;  %vm1001_vm1 = vcmask 523264   ;;  %vm1285_vm2 = vcmask 517120  }
  0x72   :  { %v2243_v2 = vld [vmem:[#allocation5 + $0xc0] sm:$0xff]   ;;  %2065 = vmatpush3.bf16.msra.mxu0 %v2242_v1  ;;  %v2247_v6 = vld [vmem:[#allocation5 + $0xc8] sm:$0xff]   ;;  %v2250_v9 = vld [vmem:[#allocation5 + $0x10] sm:$0xff]   ;;  %v2701_v29 = vshrl.u32 %v114_v23, 7  ;;  %s2586_s5 = smov 96   ;;  %vm1527_vm3 = vcmask 261120  }
  0x73   :  { %v2244_v3 = vld [vmem:[#allocation5 + $0x80] sm:$0xff]   ;;  %2086 = vmatprep.subr.bf16.mxu1 %v2243_v2  ;;  %2066 = vmatprep.subr.bf16.mxu0 %v2245_v4  ;;  %v2248_v7 = vld [vmem:[#allocation5 + $0x88] sm:$0xff]   ;;  %v2251_v10 = vld [vmem:[#allocation5 + $0xd0] sm:$0xff]   ;;  %v113_v28 = vunpack.c.0.s8 %v112_v22  ;;  %s2587_s18 = smov [#allocation13]  }
  0x74   :  { %2087 = vmatpush3.bf16.msra.mxu1 %v2244_v3  ;;  %v2252_v11 = vld [vmem:[#allocation5 + $0x90] sm:$0xff]   ;;  %v2253_v12 = vld [vmem:[#allocation5 + $0x58] sm:$0xff]   ;;  %v2257_v16 = vld [vmem:[#allocation5 + $0x60] sm:$0xff]   ;;  %s1902_s1 = sshll.u32 %s2587_s18, 4  ;;  %s1903_s1 = int_to_ptr.vmem [resolvable:$true] %s1902_s1 }
  0x75   :  { %2088 = vmatprep.subr.bf16.mxu1 %v2247_v6  ;;  %v2254_v13 = vld [vmem:[#allocation5 + $0x18] sm:$0xff]   ;;  %v2258_v17 = vld [vmem:[#allocation5 + $0x20] sm:$0xff]   ;;  %v2261_v20 = vld [vmem:[#allocation5 + $0x68] sm:$0xff]   ;;  %v2704_v34 = vsub.s32 %v113_v28, %v2701_v29  ;;  %s2516_s25 = scalar_lea.vmem %s1903_s1, 32  ;;  %p2521_p7 = scmp.lt.s32.totalorder %s1903_s1, %s1903_s1 }
  0x76   :  { %2067 = vmatpush3.bf16.msra.mxu0 %v2246_v5  ;;  %v2255_v14 = vld [vmem:[#allocation5 + $0xd8] sm:$0xff]   ;;  %v2259_v18 = vld [vmem:[#allocation5 + $0xe0] sm:$0xff]   ;;  %v2262_v24 = vld [vmem:[#allocation5 + $0x28] sm:$0xff]   ;;  %p2517_p6 = scmp.ne.s32.totalorder %s1903_s1, %s2516_s25  ;;  %p2522_p8 = scmp.lt.s32.totalorder %s2516_s25, %s2516_s25 }
  0x77   :  { %2068 = vmatprep.subr.bf16.mxu0 %v2249_v8  ;;  %v2256_v15 = vld [vmem:[#allocation5 + $0x98] sm:$0xff]   ;;  %v2260_v19 = vld [vmem:[#allocation5 + $0xa0] sm:$0xff]   ;;  %v2263_v25 = vld [vmem:[#allocation5 + $0xe8] sm:$0xff]  }
  0x78   :  { %2089 = vmatpush3.bf16.msra.mxu1 %v2248_v7  ;;  %v2264_v26 = vld [vmem:[#allocation5 + $0xa8] sm:$0xff]   ;;  %v2265_v27 = vld [vmem:[#allocation5 + $0x70] sm:$0xff]   ;;  %v2269_v33 = vld [vmem:[#allocation5 + $0x78] sm:$0xff]   ;;  %p2523_p9 = por %p2522_p8, %p2521_p7 }
  0x79   :  { %2090 = vmatprep.subr.bf16.mxu1 %v2251_v10  ;;  %v2266_v30 = vld [vmem:[#allocation5 + $0x30] sm:$0xff]   ;;  %v2270_v35 = vld [vmem:[#allocation5 + $0x38] sm:$0xff]   ;;  %v102_v37 = vld [vmem:[#allocation2] sm:$0xff] }
  0x7a   :  { %2069 = vmatpush3.bf16.msra.mxu0 %v2250_v9  ;;  %v2267_v31 = vld [vmem:[#allocation5 + $0xf0] sm:$0xff]   ;;  %v2271_v36 = vld [vmem:[#allocation5 + $0xf8] sm:$0xff]   ;;  %v117_v38 = vrot.slane %v102_v37, %v2704_v34  ;;  %v110_v40 = vcombine.high %v102_v37, %v102_v37  ;;  %v2273_v41 = vld [vmem:[#allocation5 + $0x140] sm:$0xff]   ;;  %p2524_p10 = pnand %p2523_p9, %p2517_p6 }
  0x7b   :  { %2070 = vmatprep.subr.bf16.mxu0 %v2253_v12  ;;  %v2268_v32 = vld [vmem:[#allocation5 + $0xb0] sm:$0xff]   ;;  %v2272_v39 = vld [vmem:[#allocation5 + $0xb8] sm:$0xff]   ;;  %v2276_v45 = vld [vmem:[#allocation5 + $0x1c0] sm:$0xff]  }
  0x7c   :  { %2091 = vmatpush3.bf16.msra.mxu1 %v2252_v11  ;;  %v125_v42 = vcombine.high %v117_v38, %v117_v38  ;;  %v124_v43 = vrot.slane %v110_v40, %v2704_v34  ;;  %v181_v44 = vpack.c.bf16 %v117_v38, %v117_v38  ;;  %v2275_v48 = vld [vmem:[#allocation5 + $0x100] sm:$0xff]   ;;  %v2278_v50 = vld [vmem:[#allocation5 + $0x148] sm:$0xff]   ;;  %v2282_v55 = vld [vmem:[#allocation5 + $0x150] sm:$0xff]  }
  0x7d   :  { %2092 = vmatprep.subr.bf16.mxu1 %v2255_v14  ;;  %v2277_v52 = vld [vmem:[#allocation5 + $0x180] sm:$0xff]   ;;  %v2280_v53 = vld [vmem:[#allocation5 + $0x1c8] sm:$0xff]   ;;  %v2284_v57 = vld [vmem:[#allocation5 + $0x1d0] sm:$0xff]  }
  0x7e   :  { %2071 = vmatpush3.bf16.msra.mxu0 %v2254_v13  ;;  %v182_v46 = vpack.c.bf16 %v125_v42, %v125_v42  ;;  %v126_v47 = vcombine.high %v124_v43, %v124_v43  ;;  %v183_v49 = vpack.c.bf16 %v124_v43, %v124_v43  ;;  %v2279_v54 = vld [vmem:[#allocation5 + $0x108] sm:$0xff]   ;;  %v2283_v58 = vld [vmem:[#allocation5 + $0x110] sm:$0xff]   ;;  %v2286_v59 = vld [vmem:[#allocation5 + $0x158] sm:$0xff]  }
  0x7f   :  { %2072 = vmatprep.subr.bf16.mxu0 %v2257_v16  ;;  %v2281_v56 = vld [vmem:[#allocation5 + $0x188] sm:$0xff]   ;;  %v2285_v60 = vld [vmem:[#allocation5 + $0x190] sm:$0xff]   ;;  %v2288_v61 = vld [vmem:[#allocation5 + $0x1d8] sm:$0xff]  }
  0x80   :  { %2093 = vmatpush3.bf16.msra.mxu1 %v2256_v15  ;;  %1037 = vmatprep.mubr.bf16.mxu0 %v182_v46  ;;  %v184_v51 = vpack.c.bf16 %v126_v47, %v126_v47  ;;  %v2287_v62 = vld [vmem:[#allocation5 + $0x118] sm:$0xff]   ;;  %v2290_v63 = vld [vmem:[#allocation5 + $0x160] sm:$0xff]   ;;  %v2294_v3 = vld [vmem:[#allocation5 + $0x168] sm:$0xff]  }
  0x81   :  { %2094 = vmatprep.subr.bf16.mxu1 %v2259_v18  ;;  %v2289_v0 = vld [vmem:[#allocation5 + $0x198] sm:$0xff]   ;;  %v2292_v1 = vld [vmem:[#allocation5 + $0x1e0] sm:$0xff]   ;;  %v2296_v5 = vld [vmem:[#allocation5 + $0x1e8] sm:$0xff]  }
  0x82   :  { %2073 = vmatpush3.bf16.msra.mxu0 %v2258_v17  ;;  %1077 = vmatprep.mubr.bf16.mxu1 %v184_v51  ;;  %v2291_v2 = vld [vmem:[#allocation5 + $0x120] sm:$0xff]   ;;  %v2295_v6 = vld [vmem:[#allocation5 + $0x128] sm:$0xff]   ;;  %v2298_v7 = vld [vmem:[#allocation5 + $0x170] sm:$0xff]  }
  0x83   :  { %2074 = vmatprep.subr.bf16.mxu0 %v2261_v20  ;;  %v2293_v4 = vld [vmem:[#allocation5 + $0x1a0] sm:$0xff]   ;;  %v2297_v8 = vld [vmem:[#allocation5 + $0x1a8] sm:$0xff]   ;;  %v2300_v9 = vld [vmem:[#allocation5 + $0x1f0] sm:$0xff]  }
  0x84   :  { %2095 = vmatpush3.bf16.msra.mxu1 %v2260_v19  ;;  %v2299_v10 = vld [vmem:[#allocation5 + $0x130] sm:$0xff]   ;;  %v2302_v11 = vld [vmem:[#allocation5 + $0x178] sm:$0xff]   ;;  %v2306_v18 = vld [vmem:[#allocation5 + $0x240] sm:$0xff]  }
  0x85   :  { %2096 = vmatprep.subr.bf16.mxu1 %v2263_v25  ;;  %v2301_v12 = vld [vmem:[#allocation5 + $0x1b0] sm:$0xff]   ;;  %v2304_v13 = vld [vmem:[#allocation5 + $0x1f8] sm:$0xff]   ;;  %v2309_v23 = vld [vmem:[#allocation5 + $0x2c0] sm:$0xff]  }
  0x86   :  { %2075 = vmatpush3.bf16.msra.mxu0 %v2262_v24  ;;  %v103_v14 = vld [vmem:[#allocation2 + $0x8] sm:$0xff]  ;;  %v2303_v15 = vld [vmem:[#allocation5 + $0x138] sm:$0xff]   ;;  %v2323_v43 = vld [vmem:[#allocation5 + $0x260] sm:$0xff]  }
  0x87   :  { %2076 = vmatprep.subr.bf16.mxu0 %v2265_v27  ;;  %v134_v16 = vrot.slane %v103_v14, %v2704_v34  ;;  %v127_v17 = vcombine.high %v103_v14, %v103_v14  ;;  %v2305_v20 = vld [vmem:[#allocation5 + $0x1b8] sm:$0xff]   ;;  %v2311_v28 = vld [vmem:[#allocation5 + $0x248] sm:$0xff]   ;;  %v2317_v37 = vld [vmem:[#allocation5 + $0x2d0] sm:$0xff]  }
  0x88   :  { %2097 = vmatpush3.bf16.msra.mxu1 %v2264_v26  ;;  %v2308_v26 = vld [vmem:[#allocation5 + $0x200] sm:$0xff]   ;;  %v2316_v38 = vld [vmem:[#allocation5 + $0x210] sm:$0xff]   ;;  %v2320_v42 = vld [vmem:[#allocation5 + $0x218] sm:$0xff]  }
  0x89   :  { %2098 = vmatprep.subr.bf16.mxu1 %v2267_v31  ;;  %v142_v19 = vcombine.high %v134_v16, %v134_v16  ;;  %v141_v21 = vrot.slane %v127_v17, %v2704_v34  ;;  %v185_v22 = vpack.c.bf16 %v134_v16, %v134_v16  ;;  %v2310_v31 = vld [vmem:[#allocation5 + $0x280] sm:$0xff]   ;;  %v2318_v40 = vld [vmem:[#allocation5 + $0x290] sm:$0xff]   ;;  %v2327_v47 = vld [vmem:[#allocation5 + $0x268] sm:$0xff]  }
  0x8a   :  { %2077 = vmatpush3.bf16.msra.mxu0 %v2266_v30  ;;  %v2324_v46 = vld [vmem:[#allocation5 + $0x220] sm:$0xff]   ;;  %v2331_v51 = vld [vmem:[#allocation5 + $0x270] sm:$0xff]   ;;  %v2346_v14 = vld [vmem:[#allocation10 + $0x4] ss:$52 sps:$4 sm:$0xff]  }
  0x8b   :  { %2078 = vmatprep.subr.bf16.mxu0 %v2269_v33  ;;  %v186_v24 = vpack.c.bf16 %v142_v19, %v142_v19  ;;  %v143_v25 = vcombine.high %v141_v21, %v141_v21  ;;  %v187_v27 = vpack.c.bf16 %v141_v21, %v141_v21  ;;  %v2312_v33 = vld [vmem:[#allocation5 + $0x208] sm:$0xff]  }
  0x8c   :  { %2099 = vmatpush3.bf16.msra.mxu1 %v2268_v32  ;;  %v2313_v32 = vld [vmem:[#allocation5 + $0x2c8] sm:$0xff]  }
  0x8d   :  { %2100 = vmatprep.subr.bf16.mxu1 %v2271_v36  ;;  %v188_v30 = vpack.c.bf16 %v143_v25, %v143_v25  ;;  %v2314_v36 = vld [vmem:[#allocation5 + $0x288] sm:$0xff]  }
  0x8e   :  { %2079 = vmatpush3.bf16.msra.mxu0 %v2270_v35  ;;  %v2315_v35 = vld [vmem:[#allocation5 + $0x250] sm:$0xff]   ;;  %v2349_v16 = vld [vmem:[#allocation10 + $0x14] ss:$52 sps:$4 sm:$0xff]  }
  0x8f   :  { %2108 = vmatprep.subr.bf16.mxu0 %v2273_v41  ;;  %v2321_v41 = vld [vmem:[#allocation5 + $0x2d8] sm:$0xff]  }
  0x90   :  { %2101 = vmatpush3.bf16.msra.mxu1 %v2272_v39  ;;  %v2319_v39 = vld [vmem:[#allocation5 + $0x258] sm:$0xff]  }
  0x91   :  { %2130 = vmatprep.subr.bf16.mxu1 %v2276_v45  ;;  %1038 = vmatmul.mubr.bf16.vlgmr.msra.gmra.mrb[0].mxu0 %v181_v44  ;;  %v2322_v44 = vld [vmem:[#allocation5 + $0x298] sm:$0xff]   ;;  %v2325_v45 = vld [vmem:[#allocation5 + $0x2e0] sm:$0xff]  }
  0x92   :  { %2109 = vmatpush3.bf16.msra.mxu0 %v2275_v48  ;;  %1117 = vmatprep.mubr.bf16.mxu0 %v186_v24  ;;  %v2326_v48 = vld [vmem:[#allocation5 + $0x2a0] sm:$0xff]  }
  0x93   :  { %1078 = vmatmul.mubr.bf16.vlgmr.msra.gmra.mrb[0].mxu1 %v183_v49  ;;  %2110 = vmatprep.subr.bf16.mxu0 %v2278_v50  ;;  %v2329_v49 = vld [vmem:[#allocation5 + $0x2e8] sm:$0xff]  }
  0x94   :  { %2131 = vmatpush3.bf16.msra.mxu1 %v2277_v52  ;;  %1157 = vmatprep.mubr.bf16.mxu1 %v188_v30  ;;  %v2328_v50 = vld [vmem:[#allocation5 + $0x228] sm:$0xff]  }
  0x95   :  { %2132 = vmatprep.subr.bf16.mxu1 %v2280_v53  ;;  %v2330_v52 = vld [vmem:[#allocation5 + $0x2a8] sm:$0xff]   ;;  %v2333_v53 = vld [vmem:[#allocation5 + $0x2f0] sm:$0xff]  }
  0x96   :  { %2111 = vmatpush3.bf16.msra.mxu0 %v2279_v54  ;;  %v2332_v54 = vld [vmem:[#allocation5 + $0x230] sm:$0xff]  }
  0x97   :  { %2112 = vmatprep.subr.bf16.mxu0 %v2282_v55  ;;  %v2335_v55 = vld [vmem:[#allocation5 + $0x278] sm:$0xff]  }
  0x98   :  { %2133 = vmatpush3.bf16.msra.mxu1 %v2281_v56  ;;  %v2334_v56 = vld [vmem:[#allocation5 + $0x2b0] sm:$0xff]  }
  0x99   :  { %2134 = vmatprep.subr.bf16.mxu1 %v2284_v57  ;;  %v2337_v57 = vld [vmem:[#allocation5 + $0x2f8] sm:$0xff]  }
  0x9a   :  { %2113 = vmatpush3.bf16.msra.mxu0 %v2283_v58  ;;  %v104_v58 = vld [vmem:[#allocation2 + $0x10] sm:$0xff] }
  0x9b   :  { %2114 = vmatprep.subr.bf16.mxu0 %v2286_v59  ;;  %v2336_v59 = vld [vmem:[#allocation5 + $0x238] sm:$0xff]  }
  0x9c   :  { %2135 = vmatpush3.bf16.msra.mxu1 %v2285_v60  ;;  %v151_v60 = vrot.slane %v104_v58, %v2704_v34 }
  0x9d   :  { %2136 = vmatprep.subr.bf16.mxu1 %v2288_v61  ;;  %v144_v61 = vcombine.high %v104_v58, %v104_v58 }
  0x9e   :  { %2115 = vmatpush3.bf16.msra.mxu0 %v2287_v62  ;;  %v159_v62 = vcombine.high %v151_v60, %v151_v60 }
  0x9f   :  { %2116 = vmatprep.subr.bf16.mxu0 %v2290_v63  ;;  %v2338_v63 = vld [vmem:[#allocation5 + $0x2b8] sm:$0xff]  }
  0xa0   :  { %2137 = vmatpush3.bf16.msra.mxu1 %v2289_v0  ;;  %v158_v0 = vrot.slane %v144_v61, %v2704_v34 }
  0xa1   :  { %2138 = vmatprep.subr.bf16.mxu1 %v2292_v1  ;;  %v189_v1 = vpack.c.bf16 %v151_v60, %v151_v60 }
  0xa2   :  { %2117 = vmatpush3.bf16.msra.mxu0 %v2291_v2  ;;  %v190_v2 = vpack.c.bf16 %v159_v62, %v159_v62 }
  0xa3   :  { %2118 = vmatprep.subr.bf16.mxu0 %v2294_v3  ;;  %v160_v3 = vcombine.high %v158_v0, %v158_v0 }
  0xa4   :  { %2139 = vmatpush3.bf16.msra.mxu1 %v2293_v4  ;;  %v2340_v4 = vld [vmem:[#allocation5 + $0x300] sm:$0xff]  }
  0xa5   :  { %2140 = vmatprep.subr.bf16.mxu1 %v2296_v5  ;;  %v2583_v5 = vmov 0.0  }
  0xa6   :  { %2119 = vmatpush3.bf16.msra.mxu0 %v2295_v6  ;;  %v191_v6 = vpack.c.bf16 %v158_v0, %v158_v0  ;;  %v2355_v0 = vld [vmem:[#allocation10 + $0x7c] ss:$52 sps:$4 sm:$0xff]  }
  0xa7   :  { %2120 = vmatprep.subr.bf16.mxu0 %v2298_v7  ;;  %v192_v7 = vpack.c.bf16 %v160_v3, %v160_v3  ;;  %v2358_v3 = vld [vmem:[#allocation10 + $0xc] ss:$52 sps:$4 sm:$0xff]  }
  0xa8   :  { %2141 = vmatpush3.bf16.msra.mxu1 %v2297_v8  ;;  %v2341_v8 = vld [vmem:[#allocation5 + $0x308] sm:$0xff]  }
  0xa9   :  { %2142 = vmatprep.subr.bf16.mxu1 %v2300_v9  ;;  %v2342_v9 = vld [vmem:[#allocation5 + $0x310] sm:$0xff]  }
  0xaa   :  { %2121 = vmatpush3.bf16.msra.mxu0 %v2299_v10  ;;  %v2343_v10 = vld [vmem:[#allocation5 + $0x318] sm:$0xff]  }
  0xab   :  { %2122 = vmatprep.subr.bf16.mxu0 %v2302_v11  ;;  %v1928_v11 = vld.sshfl [vmem:[#allocation2 + $0x18] sm:$0x3 pattern:$0x76325410] }
  0xac   :  { %2143 = vmatpush3.bf16.msra.mxu1 %v2301_v12  ;;  %v193_v12 = vpack.c.bf16 %v1928_v11, %v1928_v11 }
  0xad   :  { %2144 = vmatprep.subr.bf16.mxu1 %v2304_v13  ;;  %v2344_v13 = vld [vmem:[#allocation10] ss:$52 sps:$4 sm:$0xff]  }
  0xae   :  { %2123 = vmatpush3.bf16.msra.mxu0 %v2303_v15  ;;  %v2347_v15 = vld [vmem:[#allocation10 + $0x10] ss:$52 sps:$4 sm:$0xff]  }
  0xaf   :  { %2152 = vmatprep.subr.bf16.mxu0 %v2306_v18  ;;  %v1929_v18 = vld [vmem:[#allocation7] ss:$0 sm:$0xff] }
  0xb0   :  { %2145 = vmatpush3.bf16.msra.mxu1 %v2305_v20 }
  0xb1   :  { %1118 = vmatmul.mubr.bf16.vlgmr.msra.gmra.mrb[4].mxu0 %v185_v22  ;;  %2174 = vmatprep.subr.bf16.mxu1 %v2309_v23 }
  0xb2   :  { %2153 = vmatpush3.bf16.msra.mxu0 %v2308_v26  ;;  %1197 = vmatprep.mubr.bf16.mxu0 %v190_v2  ;;  %v2353_v2 = vld [vmem:[#allocation10 + $0x78] ss:$52 sps:$4 sm:$0xff]  }
  0xb3   :  { %1158 = vmatmul.mubr.bf16.vlgmr.msra.gmra.mrb[4].mxu1 %v187_v27  ;;  %2154 = vmatprep.subr.bf16.mxu0 %v2311_v28 }
  0xb4   :  { %2175 = vmatpush3.bf16.msra.mxu1 %v2310_v31  ;;  %1237 = vmatprep.mubr.bf16.mxu1 %v192_v7 }
  0xb5   :  { %2176 = vmatprep.subr.bf16.mxu1 %v2313_v32 }
  0xb6   :  { %2155 = vmatpush3.bf16.msra.mxu0 %v2312_v33 }
  0xb7   :  { %2156 = vmatprep.subr.bf16.mxu0 %v2315_v35 }
  0xb8   :  { %2177 = vmatpush3.bf16.msra.mxu1 %v2314_v36 }
  0xb9   :  { %2178 = vmatprep.subr.bf16.mxu1 %v2317_v37 }
  0xba   :  { %2157 = vmatpush3.bf16.msra.mxu0 %v2316_v38 }
  0xbb   :  { %2158 = vmatprep.subr.bf16.mxu0 %v2319_v39 }
  0xbc   :  { %2179 = vmatpush3.bf16.msra.mxu1 %v2318_v40 }
  0xbd   :  { %2180 = vmatprep.subr.bf16.mxu1 %v2321_v41 }
  0xbe   :  { %2159 = vmatpush3.bf16.msra.mxu0 %v2320_v42 }
  0xbf   :  { %2160 = vmatprep.subr.bf16.mxu0 %v2323_v43 }
  0xc0   :  { %2181 = vmatpush3.bf16.msra.mxu1 %v2322_v44 }
  0xc1   :  { %2182 = vmatprep.subr.bf16.mxu1 %v2325_v45 }
  0xc2   :  { %2161 = vmatpush3.bf16.msra.mxu0 %v2324_v46 }
  0xc3   :  { %2162 = vmatprep.subr.bf16.mxu0 %v2327_v47 }
  0xc4   :  { %2183 = vmatpush3.bf16.msra.mxu1 %v2326_v48 }
  0xc5   :  { %2184 = vmatprep.subr.bf16.mxu1 %v2329_v49 }
  0xc6   :  { %2163 = vmatpush3.bf16.msra.mxu0 %v2328_v50 }
  0xc7   :  { %2164 = vmatprep.subr.bf16.mxu0 %v2331_v51 }
  0xc8   :  { %2185 = vmatpush3.bf16.msra.mxu1 %v2330_v52 }
  0xc9   :  { %2186 = vmatprep.subr.bf16.mxu1 %v2333_v53 }
  0xca   :  { %2165 = vmatpush3.bf16.msra.mxu0 %v2332_v54 }
  0xcb   :  { %2166 = vmatprep.subr.bf16.mxu0 %v2335_v55 }
  0xcc   :  { %2187 = vmatpush3.bf16.msra.mxu1 %v2334_v56 }
  0xcd   :  { %2188 = vmatprep.subr.bf16.mxu1 %v2337_v57 }
  0xce   :  { %2167 = vmatpush3.bf16.msra.mxu0 %v2336_v59 }
  0xcf   :  { %2204 = vmatprep.subr.bf16.mxu0 %v2583_v5 }
  0xd0   :  { %2189 = vmatpush3.bf16.msra.mxu1 %v2338_v63  ;;  %v2352_v63 = vld [vmem:[#allocation10 + $0x6c] ss:$52 sps:$4 sm:$0xff]  }
  0xd1   :  { %1198 = vmatmul.mubr.bf16.vlgmr.msra.gmra.mrb[8].mxu0 %v189_v1  ;;  %1531 = vmatprep.subr.bf16.mxu1 %v2346_v14  ;;  %v2350_v1 = vld [vmem:[#allocation10 + $0x68] ss:$52 sps:$4 sm:$0xff]  }
  0xd2   :  { %2205 = vmatpush3.bf16.msra.mxu0 %v2340_v4  ;;  %2212 = vmatprep.mubr.msk.bf16.mxu0 %vm2584_vm0, %v2583_v5  ;;  %v2585_v4 = vmov 0  }
  0xd3   :  { %1238 = vmatmul.mubr.bf16.vlgmr.msra.gmra.mrb[8].mxu1 %v191_v6  ;;  %2206 = vmatprep.subr.bf16.mxu0 %v2583_v5  ;;  %v2361_v6 = vld [vmem:[#allocation10 + $0x24] ss:$52 sps:$4 sm:$0xff]  }
  0xd4   :  { %1532 = vmatpush1.bf16.msra.mxu1 %v2344_v13  ;;  %1563 = vmatprep.mubr.bf16.mxu1 %v2585_v4  ;;  %v2359_v13 = vld [vmem:[#allocation10 + $0x20] ss:$52 sps:$4 sm:$0xff]  }
  0xd5   :  { %1533 = vmatprep.subr.bf16.mxu1 %v2352_v63 }
  0xd6   :  { %2207 = vmatpush3.bf16.msra.mxu0 %v2341_v8  ;;  %v1287_v8 = vld [vmem:[#allocation8] sm:$0x3] }
  0xd7   :  { %2208 = vmatprep.subr.bf16.mxu0 %v2583_v5 }
  0xd8   :  { %1534 = vmatpush1.bf16.msra.mxu1 %v2350_v1 }
  0xd9   :  { %1572 = vmatprep.subr.bf16.mxu1 %v2358_v3 }
  0xda   :  { %2209 = vmatpush3.bf16.msra.mxu0 %v2342_v9 }
  0xdb   :  { %2210 = vmatprep.subr.bf16.mxu0 %v2583_v5 }
  0xde   :  { %2211 = vmatpush3.bf16.msra.mxu0 %v2343_v10 }
  0xdf   :  { %1613 = vmatprep.subr.bf16.mxu0 %v2349_v16  ;;  %v2367_v16 = vld [vmem:[#allocation10 + $0x8c] ss:$52 sps:$4 sm:$0xff]  }
  0xe1   :  { %2213 = vmatmul.mubr.msk.bf16.vlgmr.msra.gmra.mrb[12].mxu0 %vm1001_vm1, %v193_v12  ;;  %v2356_v12 = vld [vmem:[#allocation10 + $0x8] ss:$52 sps:$4 sm:$0xff]  }
  0xe2   :  { %1614 = vmatpush1.bf16.msra.mxu0 %v2347_v15  ;;  %1645 = vmatprep.mubr.bf16.mxu0 %v2585_v4  ;;  %v2364_v15 = vld [vmem:[#allocation10 + $0x74] ss:$52 sps:$4 sm:$0xff]  }
  0xe3   :  { %1615 = vmatprep.subr.bf16.mxu0 %v2355_v0 }
  0xe6   :  { %1616 = vmatpush1.bf16.msra.mxu0 %v2353_v2 }
  0xe7   :  { %1695 = vmatprep.subr.bf16.mxu0 %v2361_v6 }
 0x164   :  { %v2080_v17 = vpop.f32.mrb[0].mxu0 }
 0x165   :  { %v2081_v19 = vpop.f32.mrb[1].mxu0 }
 0x166   :  { %v2082_v20 = vadd.f32 %v2081_v19, %v2080_v17  ;;  %v2083_v21 = vpop.f32.mrb[2].mxu0  ;;  %v2102_v22 = vpop.f32.mrb[0].mxu1  ;;  %v2362_v17 = vld [vmem:[#allocation10 + $0x70] ss:$52 sps:$4 sm:$0xff]  }
 0x167   :  { %v2084_v23 = vpop.f32.mrb[3].mxu0  ;;  %v2103_v24 = vpop.f32.mrb[1].mxu1  ;;  %v2370_v19 = vld [vmem:[#allocation10 + $0x1c] ss:$52 sps:$4 sm:$0xff]  }
 0x168   :  { %v1040_v25 = vadd.f32 %v2082_v20, %v1929_v18  ;;  %v2104_v26 = vadd.f32 %v2103_v24, %v2102_v22  ;;  %v2105_v27 = vpop.f32.mrb[2].mxu1  ;;  %v2365_v18 = vld [vmem:[#allocation10 + $0x88] ss:$52 sps:$4 sm:$0xff]   ;;  %v2368_v20 = vld [vmem:[#allocation10 + $0x18] ss:$52 sps:$4 sm:$0xff]  }
 0x169   :  { %v2106_v28 = vpop.f32.mrb[3].mxu1  ;;  %v2371_v21 = vld [vmem:[#allocation10 + $0x30] ss:$52 sps:$4 sm:$0xff]   ;;  %v2372_v23 = vld [vmem:[#allocation10 + $0x80] ss:$52 sps:$4 sm:$0xff]  }
 0x16a   :  { %v1080_v30 = vadd.f32 %v2104_v26, %v1040_v25  ;;  %v2374_v22 = vld [vmem:[#allocation10 + $0x84] ss:$52 sps:$4 sm:$0xff]   ;;  %v2378_v25 = vld [vmem:[#allocation10 + $0x2c] ss:$52 sps:$4 sm:$0xff]   ;;  %v2376_v26 = vld [vmem:[#allocation10 + $0x28] ss:$52 sps:$4 sm:$0xff]  }
 0x16b   :  { %v2375_v24 = vld [vmem:[#allocation10 + $0x98] ss:$52 sps:$4 sm:$0xff]   ;;  %v2381_v27 = vld [vmem:[#allocation10 + $0x94] ss:$52 sps:$4 sm:$0xff]   ;;  %v2379_v28 = vld [vmem:[#allocation10 + $0x90] ss:$52 sps:$4 sm:$0xff]  }
 0x184   :  { %v2124_v31 = vpop.f32.mrb[4].mxu0 }
 0x185   :  { %v2125_v32 = vpop.f32.mrb[5].mxu0 }
 0x186   :  { %v2126_v33 = vadd.f32 %v2125_v32, %v2124_v31  ;;  %v2127_v35 = vpop.f32.mrb[6].mxu0  ;;  %v2146_v36 = vpop.f32.mrb[4].mxu1 }
 0x187   :  { %v2128_v37 = vpop.f32.mrb[7].mxu0  ;;  %v2147_v38 = vpop.f32.mrb[5].mxu1 }
 0x188   :  { %v1120_v39 = vadd.f32 %v2126_v33, %v1080_v30  ;;  %v2148_v40 = vadd.f32 %v2147_v38, %v2146_v36  ;;  %v2149_v41 = vpop.f32.mrb[6].mxu1 }
 0x189   :  { %v2150_v42 = vpop.f32.mrb[7].mxu1 }
 0x18a   :  { %v1160_v43 = vadd.f32 %v2148_v40, %v1120_v39 }
 0x1a4   :  { %v2168_v44 = vpop.f32.mrb[8].mxu0 }
 0x1a5   :  { %v2169_v45 = vpop.f32.mrb[9].mxu0 }
 0x1a6   :  { %v2170_v46 = vadd.f32 %v2169_v45, %v2168_v44  ;;  %v2171_v47 = vpop.f32.mrb[10].mxu0  ;;  %v2190_v48 = vpop.f32.mrb[8].mxu1 }
 0x1a7   :  { %v2172_v49 = vpop.f32.mrb[11].mxu0  ;;  %v2191_v50 = vpop.f32.mrb[9].mxu1 }
 0x1a8   :  { %v1200_v51 = vadd.f32 %v2170_v46, %v1160_v43  ;;  %v2192_v52 = vadd.f32 %v2191_v50, %v2190_v48  ;;  %v2193_v53 = vpop.f32.mrb[10].mxu1 }
 0x1a9   :  { %v2194_v54 = vpop.f32.mrb[11].mxu1 }
 0x1aa   :  { %v1240_v55 = vadd.f32 %v2192_v52, %v1200_v51 }
 0x1b4   :  { %v1279_v56 = vpop.f32.mrb[12].mxu0 }
 0x1b5   :  { %v1280_v57 = vadd.f32 %v1279_v56, %v1240_v55  ;;  %v2214_v58 = vpop.f32.mrb[13].mxu0 }
 0x1b6   :  { %v1282_v59 = vpop.f32.mrb[14].mxu0 }
 0x1b7   :  { %v1288_v60 = vmul.f32 0.5, %v1280_v57  ;;  %v2215_v61 = vpop.f32.mrb[15].mxu0  ;;  %1286 = vst.msk [vmem:[#allocation13] sm:$0x3] %vm1285_vm2, %v1280_v57 }
 0x1b9   :  { %v1289_v62 = vmul.f32 1.442695, %v1288_v60 }
 0x1bb   :  { %2382 = vpow2.f32 %v1289_v62 }
 0x1c5   :  { %v2383_v7 = vpop.eup %2382 }
 0x1c6   :  { %1292 = vrot.lane.b32.xlu0 %v2383_v7, %s2586_s5 }
 0x238   :  { %v1293_v9 = vpop.permute.xlu0 %1292 }
 0x239   :  { %v1295_v10 = vmul.f32 %v1293_v9, %v1287_v8 }
 0x23b   :  { %v1296_v11 = vadd.f32 %v1295_v10, %v1280_v57 }
 0x23d   :  { %v1297_v14 = vpack.c.bf16 %v1296_v11, %v1296_v11 }
 0x23f   :  { %2057 = vmatmul.mubr.msk.bf16.vlgmr.msra.gmra.mrb[12].mxu1 %vm1527_vm3, %v1297_v14  ;;  %2059 = vmatmul.mubr.msk.bf16.vlgmr.msra.gmra.mrb[16].mxu0 %vm1527_vm3, %v1297_v14 }
 0x240   :  { %1573 = vmatpush1.bf16.msra.mxu1 %v2356_v12  ;;  %1696 = vmatpush1.bf16.msra.mxu0 %v2359_v13 }
 0x241   :  { %1574 = vmatprep.subr.bf16.mxu1 %v2364_v15  ;;  %1697 = vmatprep.subr.bf16.mxu0 %v2367_v16 }
 0x242   :  { %1604 = vmatprep.mubr.bf16.mxu1 %v2585_v4  ;;  %1727 = vmatprep.mubr.bf16.mxu0 %v2585_v4 }
 0x244   :  { %1575 = vmatpush1.bf16.msra.mxu1 %v2362_v17  ;;  %1698 = vmatpush1.bf16.msra.mxu0 %v2365_v18 }
 0x245   :  { %1654 = vmatprep.subr.bf16.mxu1 %v2370_v19  ;;  %2216 = vmatprep.subr.bf16.mxu0 %v2583_v5 }
 0x247   :  { %2058 = vmatmul.mubr.msk.bf16.vlgmr.msra.gmra.mrb[16].mxu1 %vm1527_vm3, %v1297_v14  ;;  %2061 = vmatmul.mubr.msk.bf16.vlgmr.msra.gmra.mrb[20].mxu0 %vm1527_vm3, %v1297_v14 }
 0x248   :  { %1655 = vmatpush1.bf16.msra.mxu1 %v2368_v20  ;;  %2217 = vmatpush3.bf16.msra.mxu0 %v2371_v21 }
 0x249   :  { %1656 = vmatprep.subr.bf16.mxu1 %v2374_v22  ;;  %2218 = vmatprep.subr.bf16.mxu0 %v2583_v5 }
 0x24a   :  { %1686 = vmatprep.mubr.bf16.mxu1 %v2585_v4  ;;  %2220 = vmatprep.mubr.msk.bf16.mxu0 %vm2584_vm0, %v2583_v5 }
 0x24c   :  { %1657 = vmatpush1.bf16.msra.mxu1 %v2372_v23  ;;  %2219 = vmatpush3.bf16.msra.mxu0 %v2375_v24 }
 0x24d   :  { %1736 = vmatprep.subr.bf16.mxu1 %v2378_v25 }
 0x24f   :  { %2060 = vmatmul.mubr.msk.bf16.vlgmr.msra.gmra.mrb[20].mxu1 %vm1527_vm3, %v1297_v14  ;;  %2221 = vmatmul.mubr.msk.bf16.vlgmr.msra.gmra.mrb[24].mxu0 %vm1527_vm3, %v1297_v14 }
 0x250   :  { %1737 = vmatpush1.bf16.msra.mxu1 %v2376_v26  ;;  %1768 = vmatprep.mubr.bf16.mxu1 %v2585_v4 }
 0x251   :  { %1738 = vmatprep.subr.bf16.mxu1 %v2381_v27 }
 0x254   :  { %1739 = vmatpush1.bf16.msra.mxu1 %v2379_v28 }
 0x257   :  { %2062 = vmatmul.mubr.msk.bf16.vlgmr.msra.gmra.mrb[24].mxu1 %vm1527_vm3, %v1297_v14 }
 0x258   :  { %2527 = shalt.err (!%p2524_p10)
}
 0x259   :  { %s2528_s29 = scalar_lea.hbm %s2776_s6, 32 }
 0x25a   :  { %p2529_p11 = scmp.ne.s32.totalorder %s2776_s6, %s2528_s29  ;;  %p2532_p12 = scmp.lt.u32.totalorder %s2528_s29, %s2776_s6 }
 0x25c   :  { %p2534_p13 = pnand %p2532_p12, %p2529_p11 }
 0x25e   :  { %2537 = shalt.err (!%p2534_p13)
}
 0x25f   :  { %1905 = dma.vmem_to_hbm [thread:$0]  %s1903_s1, 32, %s2776_s6, [#allocation4]   ;;  %v1332_v5 = vsub.s32 0, %v2701_v29  ;;  %v1348_v30 = vsub.s32 4, %v2701_v29  ;;  %v1326_v31 = vld [vmem:[#allocation11] sm:$0xff]  ;;  %v1336_v32 = vsub.s32 1, %v2701_v29 }
 0x260   :  { %v1352_v33 = vsub.s32 5, %v2701_v29  ;;  %v1340_v45 = vsub.s32 2, %v2701_v29  ;;  %v1327_v50 = vld [vmem:[#allocation11 + $0x8] sm:$0x1f]  ;;  %v1344_v51 = vsub.s32 3, %v2701_v29  ;;  %v1356_v2 = vsub.s32 6, %v2701_v29 }
 0x261   :  { %v1333_v35 = vrot.slane %v1326_v31, %v1332_v5  ;;  %v1349_v36 = vrot.slane %v1326_v31, %v1348_v30  ;;  %v1337_v37 = vrot.slane %v1326_v31, %v1336_v32  ;;  %v1365_v57 = vrot.slane %v1327_v50, %v1332_v5  ;;  %s2588_s6 = smov [#allocation14]  }
 0x262   :  { %v1353_v38 = vrot.slane %v1326_v31, %v1352_v33  ;;  %v1341_v56 = vrot.slane %v1326_v31, %v1340_v45  ;;  %v1345_v58 = vrot.slane %v1326_v31, %v1344_v51  ;;  %v1369_v59 = vrot.slane %v1327_v50, %v1336_v32  ;;  %s1912_s12 = sshll.u32 %s2588_s6, 4  ;;  %s1913_s12 = int_to_ptr.vmem [resolvable:$true] %s1912_s12 }
 0x263   :  { %v1360_v8 = vsub.s32 7, %v2701_v29  ;;  %v1357_v13 = vrot.slane %v1326_v31, %v1356_v2  ;;  %v1381_v14 = vrot.slane %v1327_v50, %v1348_v30  ;;  %v1373_v32 = vrot.slane %v1327_v50, %v1340_v45  ;;  %s2538_s3 = scalar_lea.vmem %s1913_s12, 416  ;;  %p2543_p1 = scmp.lt.s32.totalorder %s1913_s12, %s1913_s12 }
 0x264   :  { %p2539_p0 = scmp.ne.s32.totalorder %s1913_s12, %s2538_s3  ;;  %p2544_p2 = scmp.lt.s32.totalorder %s2538_s3, %s2538_s3 }
 0x265   :  { %v1361_v17 = vrot.slane %v1326_v31, %v1360_v8 }
 0x266   :  { %p2545_p3 = por %p2544_p2, %p2543_p1 }
 0x268   :  { %p2546_p4 = pnand %p2545_p3, %p2539_p0 }
 0x312   :  { %v1565_v39 = vpop.f32.mrb[12].mxu1  ;;  %v1647_v40 = vpop.f32.mrb[16].mxu0 }
 0x313   :  { %v1566_v41 = vadd.f32 %v1565_v39, %v1333_v35  ;;  %v1648_v42 = vadd.f32 %v1647_v40, %v1349_v36  ;;  %v1567_v43 = vpop.f32.mrb[13].mxu1  ;;  %v1649_v44 = vpop.f32.mrb[17].mxu0  ;;  %v1377_v35 = vrot.slane %v1327_v50, %v1344_v51 }
 0x314   :  { %v1568_v46 = vadd.f32 %v1567_v43, %v1337_v37  ;;  %v1650_v47 = vadd.f32 %v1649_v44, %v1353_v38  ;;  %v1569_v48 = vpop.f32.mrb[14].mxu1  ;;  %v1651_v49 = vpop.f32.mrb[18].mxu0 }
 0x315   :  { %v1570_v52 = vpop.f32.mrb[15].mxu1  ;;  %v1652_v53 = vpop.f32.mrb[19].mxu0 }
 0x316   :  { %v1830_v54 = vcombine.low %v1566_v41, %v1568_v46  ;;  %v1847_v55 = vcombine.low %v1648_v42, %v1650_v47 }
 0x318   :  { %v1838_v15 = vrot.slane %v1830_v54, %v2704_v34  ;;  %v1855_v31 = vrot.slane %v1847_v55, %v2704_v34 }
 0x31a   :  { %v1606_v60 = vpop.f32.mrb[16].mxu1  ;;  %v1729_v61 = vpop.f32.mrb[20].mxu0 }
 0x31b   :  { %v1607_v62 = vadd.f32 %v1606_v60, %v1341_v56  ;;  %v1730_v63 = vadd.f32 %v1729_v61, %v1365_v57  ;;  %v1608_v0 = vpop.f32.mrb[17].mxu1  ;;  %v1731_v1 = vpop.f32.mrb[21].mxu0 }
 0x31c   :  { %v1609_v3 = vadd.f32 %v1608_v0, %v1345_v58  ;;  %v1732_v4 = vadd.f32 %v1731_v1, %v1369_v59  ;;  %v1610_v6 = vpop.f32.mrb[18].mxu1  ;;  %v1733_v7 = vpop.f32.mrb[22].mxu0 }
 0x31d   :  { %v1611_v9 = vpop.f32.mrb[19].mxu1  ;;  %v1734_v10 = vpop.f32.mrb[23].mxu0 }
 0x31e   :  { %v1831_v11 = vcombine.low %v1607_v62, %v1609_v3  ;;  %v1864_v12 = vcombine.low %v1730_v63, %v1732_v4 }
 0x320   :  { %v1845_v16 = vrot.slane %v1831_v11, %v2704_v34  ;;  %v1872_v44 = vrot.slane %v1864_v12, %v2704_v34 }
 0x322   :  { %v1846_v18 = vcombine.low %v1838_v15, %v1845_v16  ;;  %v1688_v19 = vpop.f32.mrb[20].mxu1  ;;  %v1811_v20 = vpop.f32.mrb[24].mxu0 }
 0x323   :  { %v1689_v21 = vadd.f32 %v1688_v19, %v1357_v13  ;;  %v1812_v22 = vadd.f32 %v1811_v20, %v1381_v14  ;;  %v1690_v23 = vpop.f32.mrb[21].mxu1  ;;  %v2222_v24 = vpop.f32.mrb[25].mxu0 }
 0x324   :  { %1892 = vst [vmem:[#allocation14] sm:$0xff] %v1846_v18  ;;  %v1691_v29 = vadd.f32 %v1690_v23, %v1361_v17  ;;  %v1692_v25 = vpop.f32.mrb[22].mxu1  ;;  %v1814_v26 = vpop.f32.mrb[26].mxu0 }
 0x325   :  { %v1887_v27 = vrot.slane %v1812_v22, %v2704_v34  ;;  %v1693_v28 = vpop.f32.mrb[23].mxu1  ;;  %v2223_v5 = vpop.f32.mrb[27].mxu0 }
 0x326   :  { %v1848_v30 = vcombine.low %v1689_v21, %v1691_v29 }
 0x327   :  { %1895 = vst.msk [vmem:[#allocation14 + $0x18] sm:$0x3] %vm1285_vm2, %v1887_v27 }
 0x328   :  { %v1862_v33 = vrot.slane %v1848_v30, %v2704_v34 }
 0x32a   :  { %v1863_v36 = vcombine.low %v1855_v31, %v1862_v33  ;;  %v1770_v37 = vpop.f32.mrb[24].mxu1 }
 0x32b   :  { %v1771_v38 = vadd.f32 %v1770_v37, %v1373_v32  ;;  %v1772_v39 = vpop.f32.mrb[25].mxu1 }
 0x32c   :  { %1893 = vst [vmem:[#allocation14 + $0x8] sm:$0xff] %v1863_v36  ;;  %v1773_v40 = vadd.f32 %v1772_v39, %v1377_v35  ;;  %v1774_v41 = vpop.f32.mrb[26].mxu1 }
 0x32d   :  { %v1775_v42 = vpop.f32.mrb[27].mxu1 }
 0x32e   :  { %v1865_v43 = vcombine.low %v1771_v38, %v1773_v40 }
 0x330   :  { %v1879_v45 = vrot.slane %v1865_v43, %v2704_v34 }
 0x332   :  { %v1880_v46 = vcombine.low %v1872_v44, %v1879_v45 }
 0x334   :  { %1894 = vst [vmem:[#allocation14 + $0x10] sm:$0xff] %v1880_v46 }
 0x335   :  { %2549 = shalt.err (!%p2546_p4)
}
 0x336   :  { %s2550_s15 = scalar_lea.hbm %s2777_s7, 416 }
 0x337   :  { %p2551_p5 = scmp.ne.s32.totalorder %s2777_s7, %s2550_s15  ;;  %p2554_p6 = scmp.lt.u32.totalorder %s2550_s15, %s2777_s7 }
 0x339   :  { %p2556_p7 = pnand %p2554_p6, %p2551_p5 }
 0x33b   :  { %2559 = shalt.err (!%p2556_p7)
}
 0x33c   :  { %1915 = dma.vmem_to_hbm [thread:$0]  %s1913_s12, 416, %s2777_s7, [#allocation15]  }
 0x33d   :  { %2568 = dma.done.wait [#allocation4], 32  }
 0x33e   :  { %2569 = vsyncadd [#allocation4], 4294967264 }
 0x33f   :  { %2570 = dma.done.wait [#allocation15], 416  }
 0x340   :  { %2571 = vsyncadd [#allocation15], 4294966880 }
 0x341   :  { %1922 = vsyncpa [#allocation3], 1 }
 0x342   :  { %1923 = vsyncpa [#allocation6], 1 }
 0x343   :  { %1924 = vsyncpa [#allocation9], 1 }
 0x344   :  { %1925 = vsyncpa [#allocation12], 1 }
 0x345   :  { %1926 = vsyncpa [#allocation4], 1 }
 0x346   :  { %1927 = vsyncpa [#allocation15], 1 }

// kernel: vae_forward.8
= control target key start
LH: loop header
LB: loop body
LE: loop exit
PB: predicated region body
PF: predicated region fallthrough
CT: control target
= control target key end

     0   :  { %10 = vsyncpa [#allocation3], 0  ;;  %s1610_s0 = inlined_call_operand.hbm [shape: bf16[100,1152], index: 0, kind: input, shape index: {}]   ;;  %s1611_s1 = inlined_call_operand.hbm [shape: bf16[16,100], index: 1, kind: input, shape index: {}]   ;;  %s1612_s2 = inlined_call_operand.hbm [shape: f32[16,1], index: 2, kind: input, shape index: {}]   ;;  %s1613_s3 = inlined_call_operand.hbm [shape: f32[16,1], index: 3, kind: input, shape index: {}]   ;;  %s1614_s4 = inlined_call_operand.hbm [shape: f32[16,1], index: 4, kind: input, shape index: {}]   ;;  %s1615_s5 = inlined_call_operand.hbm [shape: f32[16,1152], index: 5, kind: output, shape index: {}]  }
   0x1   :  { %11 = vsyncpa [#allocation6], 0 }
   0x2   :  { %12 = vsyncpa [#allocation9], 0 }
   0x3   :  { %13 = vsyncpa [#allocation4], 0  ;;  %s1322_s18 = smov [#allocation5]   ;;  %s1182_s22 = scalar_lea.hbm %s1611_s1, 128 }
   0x4   :  { %s31_s19 = sshll.u32 %s1322_s18, 4  ;;  %p1183_p0 = scmp.ne.s32.totalorder %s1611_s1, %s1182_s22  ;;  %s32_s19 = int_to_ptr.vmem [resolvable:$true] %s31_s19 }
   0x5   :  { %p1186_p1 = scmp.lt.u32.totalorder %s1182_s22, %s1611_s1 }
   0x7   :  { %p1188_p2 = pnand %p1186_p1, %p1183_p0 }
   0x9   :  { %1191 = shalt.err (!%p1188_p2)
}
   0xa   :  { %s1192_s27 = scalar_lea.vmem %s32_s19, 128  ;;  %p1197_p4 = scmp.lt.s32.totalorder %s32_s19, %s32_s19 }
   0xb   :  { %p1193_p3 = scmp.ne.s32.totalorder %s32_s19, %s1192_s27  ;;  %p1198_p5 = scmp.lt.s32.totalorder %s1192_s27, %s1192_s27 }
   0xd   :  { %p1199_p6 = por %p1198_p5, %p1197_p4 }
   0xf   :  { %p1200_p7 = pnand %p1199_p6, %p1193_p3 }
  0x11   :  { %1203 = shalt.err (!%p1200_p7)
}
  0x12   :  { %s1323_s28 = smov 64   ;;  %s1324_s29 = smov 4  }
  0x13   :  { %37 = dma.hbm_to_vmem [thread:$0]  %s1611_s1, 128, %s32_s19, [#allocation6], %s1323_s28, %s1323_s28, %s1324_s29  }
  0x14   :  { %s1325_s7 = smov [#allocation8]   ;;  %s1326_s9 = smov [#allocation2]  }
  0x15   :  { %s55_s8 = sshll.u32 %s1325_s7, 4  ;;  %s19_s10 = sshll.u32 %s1326_s9, 4  ;;  %s56_s8 = int_to_ptr.vmem [resolvable:$true] %s55_s8  ;;  %s20_s10 = int_to_ptr.vmem [resolvable:$true] %s19_s10 }
  0x16   :  { %s1204_s13 = scalar_lea.hbm %s1613_s3, 256 }
  0x17   :  { %p1205_p8 = scmp.ne.s32.totalorder %s1613_s3, %s1204_s13  ;;  %p1208_p9 = scmp.lt.u32.totalorder %s1204_s13, %s1613_s3 }
  0x19   :  { %p1210_p10 = pnand %p1208_p9, %p1205_p8 }
  0x1b   :  { %1213 = shalt.err (!%p1210_p10)
}
  0x1c   :  { %s1214_s1 = scalar_lea.vmem %s56_s8, 256  ;;  %p1219_p12 = scmp.lt.s32.totalorder %s56_s8, %s56_s8 }
  0x1d   :  { %p1215_p11 = scmp.ne.s32.totalorder %s56_s8, %s1214_s1  ;;  %p1220_p13 = scmp.lt.s32.totalorder %s1214_s1, %s1214_s1 }
  0x1f   :  { %p1221_p0 = por %p1220_p13, %p1219_p12 }
  0x21   :  { %p1222_p1 = pnand %p1221_p0, %p1215_p11 }
  0x23   :  { %1225 = shalt.err (!%p1222_p1)
}
  0x24   :  { %s1327_s18 = smov 128   ;;  %s1328_s19 = smov 8  }
  0x25   :  { %61 = dma.hbm_to_vmem [thread:$0]  %s1613_s3, 256, %s56_s8, [#allocation9], %s1327_s18, %s1327_s18, %s1328_s19  }
  0x26   :  { %s1226_s24 = scalar_lea.hbm %s1610_s0, 7488 }
  0x27   :  { %p1227_p2 = scmp.ne.s32.totalorder %s1610_s0, %s1226_s24  ;;  %p1230_p3 = scmp.lt.u32.totalorder %s1226_s24, %s1610_s0 }
  0x29   :  { %p1232_p4 = pnand %p1230_p3, %p1227_p2 }
  0x2b   :  { %1235 = shalt.err (!%p1232_p4)
}
  0x2c   :  { %s1236_s29 = scalar_lea.vmem %s20_s10, 7488  ;;  %p1241_p6 = scmp.lt.s32.totalorder %s20_s10, %s20_s10 }
  0x2d   :  { %p1237_p5 = scmp.ne.s32.totalorder %s20_s10, %s1236_s29  ;;  %p1242_p7 = scmp.lt.s32.totalorder %s1236_s29, %s1236_s29 }
  0x2f   :  { %p1243_p8 = por %p1242_p7, %p1241_p6 }
  0x31   :  { %p1244_p9 = pnand %p1243_p8, %p1237_p5 }
  0x33   :  { %1247 = shalt.err (!%p1244_p9)
}
  0x34   :  { %s1329_s3 = smov 576   ;;  %s1330_s30 = smov 36  }
  0x35   :  { %25 = dma.hbm_to_vmem [thread:$0]  %s1610_s0, 7488, %s20_s10, [#allocation3], %s1329_s3, %s1329_s3, %s1330_s30  }
  0x36   :  { %s1331_s8 = smov [#allocation7]   ;;  %s1332_s11 = smov [#allocation10]  }
  0x37   :  { %s43_s9 = sshll.u32 %s1331_s8, 4  ;;  %s67_s12 = sshll.u32 %s1332_s11, 4  ;;  %s44_s9 = int_to_ptr.vmem [resolvable:$true] %s43_s9  ;;  %s68_s12 = int_to_ptr.vmem [resolvable:$true] %s67_s12 }
  0x38   :  { %s1248_s15 = scalar_lea.hbm %s1612_s2, 256 }
  0x39   :  { %p1249_p10 = scmp.ne.s32.totalorder %s1612_s2, %s1248_s15  ;;  %p1252_p11 = scmp.lt.u32.totalorder %s1248_s15, %s1612_s2 }
  0x3b   :  { %p1254_p12 = pnand %p1252_p11, %p1249_p10 }
  0x3d   :  { %1257 = shalt.err (!%p1254_p12)
}
  0x3e   :  { %s1258_s0 = scalar_lea.vmem %s44_s9, 256  ;;  %p1263_p0 = scmp.lt.s32.totalorder %s44_s9, %s44_s9 }
  0x3f   :  { %p1259_p13 = scmp.ne.s32.totalorder %s44_s9, %s1258_s0  ;;  %p1264_p1 = scmp.lt.s32.totalorder %s1258_s0, %s1258_s0 }
  0x41   :  { %p1265_p2 = por %p1264_p1, %p1263_p0 }
  0x43   :  { %p1266_p3 = pnand %p1265_p2, %p1259_p13 }
  0x45   :  { %1269 = shalt.err (!%p1266_p3)
}
  0x46   :  { %49 = dma.hbm_to_vmem [thread:$0]  %s1612_s2, 256, %s44_s9, [#allocation6], %s1327_s18, %s1327_s18, %s1328_s19  }
  0x47   :  { %s1270_s24 = scalar_lea.hbm %s1614_s4, 256 }
  0x48   :  { %p1271_p4 = scmp.ne.s32.totalorder %s1614_s4, %s1270_s24  ;;  %p1274_p5 = scmp.lt.u32.totalorder %s1270_s24, %s1614_s4 }
  0x4a   :  { %p1276_p6 = pnand %p1274_p5, %p1271_p4 }
  0x4c   :  { %1279 = shalt.err (!%p1276_p6)
}
  0x4d   :  { %s1280_s29 = scalar_lea.vmem %s68_s12, 256  ;;  %p1285_p8 = scmp.lt.s32.totalorder %s68_s12, %s68_s12 }
  0x4e   :  { %p1281_p7 = scmp.ne.s32.totalorder %s68_s12, %s1280_s29  ;;  %p1286_p9 = scmp.lt.s32.totalorder %s1280_s29, %s1280_s29 }
  0x50   :  { %p1287_p10 = por %p1286_p9, %p1285_p8 }
  0x52   :  { %p1288_p11 = pnand %p1287_p10, %p1281_p7 }
  0x54   :  { %1291 = shalt.err (!%p1288_p11)
}
  0x55   :  { %73 = dma.hbm_to_vmem [thread:$0]  %s1614_s4, 256, %s68_s12, [#allocation9], %s1327_s18, %s1327_s18, %s1328_s19  }
  0x56   :  { %1314 = dma.done.wait [#allocation3], 7488  }
  0x57   :  { %1315 = vsyncadd [#allocation3], 4294959808 }
  0x58   :  { %1316 = dma.done.wait [#allocation6], 384  }
  0x59   :  { %1317 = vsyncadd [#allocation6], 4294966912 }
  0x5a   :  { %1318 = dma.done.wait [#allocation9], 512  }
  0x5b   :  { %1319 = vsyncadd [#allocation9], 4294966784  ;;  %v1333_v0 = vmov 0   ;;  %v1090_v1 = vld [vmem:[#allocation2 + $0x4] ss:$36 sps:$4 sm:$0xff]   ;;  %vm477_vm0 = vcmask 1041408  }
  0x5c   :  { %537 = vmatprep.mubr.bf16.mxu0 %v1333_v0  ;;  %580 = vmatprep.mubr.bf16.mxu1 %v1333_v0  ;;  %v1092_v2 = vld [vmem:[#allocation2] ss:$36 sps:$4 sm:$0xff]   ;;  %v1093_v3 = vld [vmem:[#allocation2 + $0xc] ss:$36 sps:$4 sm:$0xff]   ;;  %v1099_v7 = vld [vmem:[#allocation2 + $0x54] ss:$36 sps:$4 sm:$0xff]  }
  0x5d   :  { %1088 = vset.pattern.permute.xlu0 %v1333_v0  ;;  %1089 = vset.pattern.permute.xlu1 %v1333_v0  ;;  %v1095_v4 = vld [vmem:[#allocation2 + $0x4c] ss:$36 sps:$4 sm:$0xff]   ;;  %v1101_v8 = vld [vmem:[#allocation2 + $0x94] ss:$36 sps:$4 sm:$0xff]   ;;  %v1105_v11 = vld [vmem:[#allocation2 + $0x9c] ss:$36 sps:$4 sm:$0xff]  }
  0x5e   :  { %505 = vmatprep.subr.bf16.mxu0 %v1090_v1  ;;  %v1097_v5 = vld [vmem:[#allocation2 + $0x8] ss:$36 sps:$4 sm:$0xff]   ;;  %548 = vmatprep.subr.bf16.mxu1 %v1093_v3  ;;  %v1103_v9 = vld [vmem:[#allocation2 + $0x50] ss:$36 sps:$4 sm:$0xff]   ;;  %v1107_v12 = vld [vmem:[#allocation2 + $0xdc] ss:$36 sps:$4 sm:$0xff]  }
  0x5f   :  { %506 = vmatpush1.bf16.msra.mxu0 %v1092_v2  ;;  %v1098_v6 = vld [vmem:[#allocation2 + $0x48] ss:$36 sps:$4 sm:$0xff]   ;;  %549 = vmatpush1.bf16.msra.mxu1 %v1097_v5  ;;  %v1104_v10 = vld [vmem:[#allocation2 + $0x90] ss:$36 sps:$4 sm:$0xff]   ;;  %v1109_v13 = vld [vmem:[#allocation2 + $0x98] ss:$36 sps:$4 sm:$0xff]  }
  0x60   :  { %507 = vmatprep.subr.bf16.mxu0 %v1095_v4  ;;  %550 = vmatprep.subr.bf16.mxu1 %v1099_v7  ;;  %v1111_v14 = vld [vmem:[#allocation2 + $0xe4] ss:$36 sps:$4 sm:$0xff]   ;;  %v1110_v15 = vld [vmem:[#allocation2 + $0xd8] ss:$36 sps:$4 sm:$0xff]   ;;  %v1117_v18 = vld [vmem:[#allocation2 + $0x12c] ss:$36 sps:$4 sm:$0xff]  }
  0x61   :  { %v1113_v16 = vld [vmem:[#allocation2 + $0x124] ss:$36 sps:$4 sm:$0xff]   ;;  %v1119_v20 = vld [vmem:[#allocation2 + $0x16c] ss:$36 sps:$4 sm:$0xff]   ;;  %v1123_v24 = vld [vmem:[#allocation2 + $0x174] ss:$36 sps:$4 sm:$0xff]  }
  0x62   :  { %v1115_v17 = vld [vmem:[#allocation2 + $0xe0] ss:$36 sps:$4 sm:$0xff]   ;;  %v1121_v21 = vld [vmem:[#allocation2 + $0x128] ss:$36 sps:$4 sm:$0xff]   ;;  %v152_v22 = vld [vmem:[#allocation2 + $0x1b0] sm:$0x33] }
  0x63   :  { %508 = vmatpush1.bf16.msra.mxu0 %v1098_v6  ;;  %551 = vmatpush1.bf16.msra.mxu1 %v1103_v9  ;;  %v1116_v19 = vld [vmem:[#allocation2 + $0x120] ss:$36 sps:$4 sm:$0xff]   ;;  %v1122_v23 = vld [vmem:[#allocation2 + $0x168] ss:$36 sps:$4 sm:$0xff]   ;;  %v153_v25 = vld [vmem:[#allocation2 + $0x1b8] sm:$0x33]  ;;  %v1028_v26 = vcombine.high %v152_v22, %v152_v22  ;;  %v1027_v27 = vcombine.low %v152_v22, %v152_v22 }
  0x64   :  { %509 = vmatprep.subr.bf16.mxu0 %v1101_v8  ;;  %552 = vmatprep.subr.bf16.mxu1 %v1105_v11  ;;  %v1126_v28 = vld [vmem:[#allocation2 + $0x170] ss:$36 sps:$4 sm:$0xff]   ;;  %v1030_v29 = vcombine.high %v153_v25, %v153_v25  ;;  %v1029_v30 = vcombine.low %v153_v25, %v153_v25  ;;  %v1139_v35 = vld [vmem:[#allocation2 + $0x1c] ss:$36 sps:$4 sm:$0xff]   ;;  %vm473_vm1 = vcmask 818176   ;;  %v158_v48 = vld [vmem:[#allocation7 + $0x8] sm:$0xff] }
  0x65   :  { %v479_v31 = vsel %vm477_vm0, %v1027_v27, 0  ;;  %v1133_v32 = vld [vmem:[#allocation2 + $0x14] ss:$36 sps:$4 sm:$0xff]   ;;  %v1136_v37 = vld [vmem:[#allocation2 + $0x5c] ss:$36 sps:$4 sm:$0xff]   ;;  %v1334_v5 = vmov 0.0  }
  0x66   :  { %v1445_v33 = vld [vmem:[#allocation5] sm:$0xff]   ;;  %v485_v34 = vsel %vm477_vm0, %v1029_v30, 0  ;;  %v1145_v39 = vld [vmem:[#allocation2 + $0x64] ss:$36 sps:$4 sm:$0xff]   ;;  %v1151_v43 = vld [vmem:[#allocation2 + $0xac] ss:$36 sps:$4 sm:$0xff]  }
  0x67   :  { %510 = vmatpush1.bf16.msra.mxu0 %v1104_v10  ;;  %553 = vmatpush1.bf16.msra.mxu1 %v1109_v13  ;;  %v1131_v36 = vld [vmem:[#allocation2 + $0x10] ss:$36 sps:$4 sm:$0xff]   ;;  %v1137_v38 = vld [vmem:[#allocation2 + $0x18] ss:$36 sps:$4 sm:$0xff]   ;;  %v1142_v41 = vld [vmem:[#allocation2 + $0xa4] ss:$36 sps:$4 sm:$0xff]  }
  0x68   :  { %511 = vmatprep.subr.bf16.mxu0 %v1107_v12  ;;  %554 = vmatprep.subr.bf16.mxu1 %v1111_v14  ;;  %v1134_v40 = vld [vmem:[#allocation2 + $0x58] ss:$36 sps:$4 sm:$0xff]   ;;  %v1143_v42 = vld [vmem:[#allocation2 + $0x60] ss:$36 sps:$4 sm:$0xff]   ;;  %v1148_v46 = vld [vmem:[#allocation2 + $0xec] ss:$36 sps:$4 sm:$0xff]  }
  0x69   :  { %v1140_v44 = vld [vmem:[#allocation2 + $0xa0] ss:$36 sps:$4 sm:$0xff]   ;;  %v1149_v47 = vld [vmem:[#allocation2 + $0xa8] ss:$36 sps:$4 sm:$0xff]   ;;  %v1157_v49 = vld [vmem:[#allocation2 + $0xf4] ss:$36 sps:$4 sm:$0xff]  }
  0x6a   :  { %v157_v45 = vld [vmem:[#allocation7] sm:$0xff]  ;;  %v1146_v50 = vld [vmem:[#allocation2 + $0xe8] ss:$36 sps:$4 sm:$0xff]   ;;  %v1154_v51 = vld [vmem:[#allocation2 + $0x134] ss:$36 sps:$4 sm:$0xff]   ;;  %vm1335_vm2 = vmmov 0  }
  0x6b   :  { %512 = vmatpush1.bf16.msra.mxu0 %v1110_v15  ;;  %555 = vmatpush1.bf16.msra.mxu1 %v1115_v17  ;;  %v1155_v52 = vld [vmem:[#allocation2 + $0xf0] ss:$36 sps:$4 sm:$0xff]   ;;  %v1163_v53 = vld [vmem:[#allocation2 + $0x13c] ss:$36 sps:$4 sm:$0xff]   ;;  %v1167_v58 = vld [vmem:[#allocation2 + $0x184] ss:$36 sps:$4 sm:$0xff]  }
  0x6c   :  { %513 = vmatprep.subr.bf16.mxu0 %v1113_v16  ;;  %556 = vmatprep.subr.bf16.mxu1 %v1117_v18  ;;  %v1152_v54 = vld [vmem:[#allocation2 + $0x130] ss:$36 sps:$4 sm:$0xff]   ;;  %v1160_v55 = vld [vmem:[#allocation2 + $0x17c] ss:$36 sps:$4 sm:$0xff]   ;;  %v155_v60 = vld [vmem:[#allocation2 + $0x1c8] sm:$0x33] }
  0x6d   :  { %161 = vperm.xlu0 %1088, %v157_v45   ;;  %v1161_v56 = vld [vmem:[#allocation2 + $0x138] ss:$36 sps:$4 sm:$0xff]   ;;  %v154_v57 = vld [vmem:[#allocation2 + $0x1c0] sm:$0x33]  ;;  %v1033_v1 = vcombine.low %v155_v60, %v155_v60  ;;  %v1172_v6 = vld [vmem:[#allocation2 + $0x68] ss:$36 sps:$4 sm:$0xff]  }
  0x6e   :  { %v1158_v59 = vld [vmem:[#allocation2 + $0x178] ss:$36 sps:$4 sm:$0xff]   ;;  %v1032_v61 = vcombine.high %v154_v57, %v154_v57  ;;  %v1031_v62 = vcombine.low %v154_v57, %v154_v57  ;;  %v1165_v63 = vld [vmem:[#allocation2 + $0x180] ss:$36 sps:$4 sm:$0xff]   ;;  %v1173_v7 = vld [vmem:[#allocation2 + $0xb0] ss:$36 sps:$4 sm:$0xff]  }
  0x6f   :  { %514 = vmatpush1.bf16.msra.mxu0 %v1116_v19  ;;  %557 = vmatpush1.bf16.msra.mxu1 %v1121_v21  ;;  %v497_v3 = vsel %vm477_vm0, %v1033_v1, 0  ;;  %v1171_v4 = vld [vmem:[#allocation2 + $0x20] ss:$36 sps:$4 sm:$0xff]   ;;  %v1174_v8 = vld [vmem:[#allocation2 + $0xf8] ss:$36 sps:$4 sm:$0xff]   ;;  %s1336_s4 = smov [#allocation11]  }
  0x70   :  { %515 = vmatprep.subr.bf16.mxu0 %v1119_v20  ;;  %558 = vmatprep.subr.bf16.mxu1 %v1123_v24  ;;  %v491_v2 = vsel %vm477_vm0, %v1031_v62, 0  ;;  %v1175_v9 = vld [vmem:[#allocation2 + $0x140] ss:$36 sps:$4 sm:$0xff]   ;;  %v1176_v10 = vld [vmem:[#allocation2 + $0x188] ss:$36 sps:$4 sm:$0xff]   ;;  %s958_s18 = sshll.u32 %s1336_s4, 4  ;;  %s959_s18 = int_to_ptr.vmem [resolvable:$true] %s958_s18 }
  0x71   :  { %166 = vperm.xlu0 %1088, %v158_v48   ;;  %v1177_v11 = vld [vmem:[#allocation2 + $0x1d0] ss:$0 sps:$4 sm:$0x33]   ;;  %s1292_s19 = scalar_lea.vmem %s959_s18, 2304  ;;  %p1297_p13 = scmp.lt.s32.totalorder %s959_s18, %s959_s18 }
  0x72   :  { %v503_v12 = vsel %vm477_vm0, %v1177_v11, 0  ;;  %p1293_p12 = scmp.ne.s32.totalorder %s959_s18, %s1292_s19  ;;  %p1298_p0 = scmp.lt.s32.totalorder %s1292_s19, %s1292_s19 }
  0x73   :  { %516 = vmatpush1.bf16.msra.mxu0 %v1122_v23  ;;  %559 = vmatpush1.bf16.msra.mxu1 %v1126_v28 }
  0x74   :  { %1036 = vmatprep.subr.msk.bf16.mxu0 %vm477_vm0, %v1028_v26  ;;  %1038 = vmatprep.subr.msk.bf16.mxu1 %vm477_vm0, %v1030_v29  ;;  %p1299_p1 = por %p1298_p0, %p1297_p13 }
  0x76   :  { %p1300_p2 = pnand %p1299_p1, %p1293_p12 }
  0x77   :  { %518 = vmatpush1.bf16.msra.mxu0 %v479_v31  ;;  %561 = vmatpush1.bf16.msra.mxu1 %v485_v34 }
  0x78   :  { %591 = vmatprep.subr.bf16.mxu0 %v1133_v32  ;;  %634 = vmatprep.subr.bf16.mxu1 %v1139_v35 }
  0x7a   :  { %1037 = vmatmul.mubr.msk.bf16.vlgmr.msra.gmra.mrb[0].mxu0 %vm473_vm1, %v1445_v33  ;;  %1039 = vmatmul.mubr.msk.bf16.vlgmr.msra.gmra.mrb[0].mxu1 %vm473_vm1, %v1445_v33 }
  0x7b   :  { %592 = vmatpush1.bf16.msra.mxu0 %v1131_v36  ;;  %623 = vmatprep.mubr.bf16.mxu0 %v1333_v0 }
  0x7c   :  { %593 = vmatprep.subr.bf16.mxu0 %v1136_v37  ;;  %635 = vmatpush1.bf16.msra.mxu1 %v1137_v38 }
  0x7d   :  { %666 = vmatprep.mubr.bf16.mxu1 %v1333_v0  ;;  %636 = vmatprep.subr.bf16.mxu1 %v1145_v39  ;;  %v1034_v0 = vcombine.high %v155_v60, %v155_v60 }
  0x7f   :  { %594 = vmatpush1.bf16.msra.mxu0 %v1134_v40 }
  0x80   :  { %595 = vmatprep.subr.bf16.mxu0 %v1142_v41  ;;  %637 = vmatpush1.bf16.msra.mxu1 %v1143_v42 }
  0x81   :  { %638 = vmatprep.subr.bf16.mxu1 %v1151_v43 }
  0x83   :  { %596 = vmatpush1.bf16.msra.mxu0 %v1140_v44 }
  0x84   :  { %597 = vmatprep.subr.bf16.mxu0 %v1148_v46  ;;  %639 = vmatpush1.bf16.msra.mxu1 %v1149_v47 }
  0x85   :  { %640 = vmatprep.subr.bf16.mxu1 %v1157_v49 }
  0x87   :  { %598 = vmatpush1.bf16.msra.mxu0 %v1146_v50 }
  0x88   :  { %599 = vmatprep.subr.bf16.mxu0 %v1154_v51  ;;  %641 = vmatpush1.bf16.msra.mxu1 %v1155_v52 }
  0x89   :  { %642 = vmatprep.subr.bf16.mxu1 %v1163_v53 }
  0x8b   :  { %600 = vmatpush1.bf16.msra.mxu0 %v1152_v54 }
  0x8c   :  { %601 = vmatprep.subr.bf16.mxu0 %v1160_v55  ;;  %643 = vmatpush1.bf16.msra.mxu1 %v1161_v56 }
  0x8d   :  { %644 = vmatprep.subr.bf16.mxu1 %v1167_v58 }
  0x8f   :  { %602 = vmatpush1.bf16.msra.mxu0 %v1158_v59 }
  0x90   :  { %1040 = vmatprep.subr.msk.bf16.mxu0 %vm477_vm0, %v1032_v61  ;;  %645 = vmatpush1.bf16.msra.mxu1 %v1165_v63 }
  0x91   :  { %1042 = vmatprep.subr.msk.bf16.mxu1 %vm477_vm0, %v1034_v0 }
  0x93   :  { %604 = vmatpush1.bf16.msra.mxu0 %v491_v2 }
  0x94   :  { %1053 = vmatprep.subr.bf16.mxu0 %v1334_v5  ;;  %647 = vmatpush1.bf16.msra.mxu1 %v497_v3 }
  0x96   :  { %1041 = vmatmul.mubr.msk.bf16.vlgmr.msra.gmra.mrb[4].mxu0 %vm473_vm1, %v1445_v33 }
  0x97   :  { %1054 = vmatpush3.bf16.msra.mxu0 %v1171_v4  ;;  %1067 = vmatprep.mubr.msk.bf16.mxu0 %vm1335_vm2, %v1334_v5 }
  0x98   :  { %1043 = vmatmul.mubr.msk.bf16.vlgmr.msra.gmra.mrb[4].mxu1 %vm473_vm1, %v1445_v33  ;;  %1055 = vmatprep.subr.bf16.mxu0 %v1334_v5 }
  0x9b   :  { %1056 = vmatpush3.bf16.msra.mxu0 %v1172_v6  ;;  %v822_v6 = vld [vmem:[#allocation8 + $0x8] sm:$0xff] }
  0x9c   :  { %1057 = vmatprep.subr.bf16.mxu0 %v1334_v5 }
  0x9f   :  { %1058 = vmatpush3.bf16.msra.mxu0 %v1173_v7  ;;  %v851_v7 = vld [vmem:[#allocation10] sm:$0xff] }
  0xa0   :  { %1059 = vmatprep.subr.bf16.mxu0 %v1334_v5 }
  0xa3   :  { %1060 = vmatpush3.bf16.msra.mxu0 %v1174_v8 }
  0xa4   :  { %1061 = vmatprep.subr.bf16.mxu0 %v1334_v5 }
  0xa7   :  { %1062 = vmatpush3.bf16.msra.mxu0 %v1175_v9 }
  0xa8   :  { %1063 = vmatprep.subr.bf16.mxu0 %v1334_v5 }
  0xab   :  { %1064 = vmatpush3.bf16.msra.mxu0 %v1176_v10 }
  0xac   :  { %1065 = vmatprep.subr.bf16.mxu0 %v1334_v5  ;;  %v821_v5 = vld [vmem:[#allocation8] sm:$0xff] }
  0xaf   :  { %1066 = vmatpush3.bf16.msra.mxu0 %v503_v12 }
  0xb2   :  { %1068 = vmatmul.mubr.msk.bf16.vlgmr.msra.gmra.mrb[8].mxu0 %vm473_vm1, %v1445_v33 }
  0xec   :  { %v162_v21 = vpop.permute.xlu0 %161 }
  0xf0   :  { %v167_v30 = vpop.permute.xlu0 %166 }
 0x14d   :  { %v539_v13 = vpop.f32.mrb[0].mxu0  ;;  %v582_v16 = vpop.f32.mrb[0].mxu1 }
 0x14e   :  { %v541_v14 = vpop.f32.mrb[1].mxu0  ;;  %v584_v18 = vpop.f32.mrb[1].mxu1  ;;  %v540_v26 = vadd.f32 %v539_v13, %v162_v21  ;;  %v583_v36 = vadd.f32 %v582_v16, %v162_v21 }
 0x14f   :  { %v543_v15 = vpop.f32.mrb[2].mxu0  ;;  %v586_v19 = vpop.f32.mrb[2].mxu1  ;;  %v542_v27 = vadd.f32 %v541_v14, %v162_v21  ;;  %v585_v39 = vadd.f32 %v584_v18, %v162_v21 }
 0x150   :  { %v545_v17 = vpop.f32.mrb[3].mxu0  ;;  %v588_v20 = vpop.f32.mrb[3].mxu1  ;;  %v544_v34 = vadd.f32 %v543_v15, %v167_v30  ;;  %v587_v40 = vadd.f32 %v586_v19, %v167_v30 }
 0x151   :  { %v718_v33 = vadd.f32 %v542_v27, %v540_v26  ;;  %v546_v35 = vadd.f32 %v545_v17, %v167_v30  ;;  %v589_v44 = vadd.f32 %v588_v20, %v167_v30 }
 0x153   :  { %v728_v37 = vadd.f32 %v546_v35, %v544_v34  ;;  %v719_v38 = vadd.f32 %v718_v33, %v583_v36 }
 0x155   :  { %v720_v42 = vadd.f32 %v719_v38, %v585_v39  ;;  %v729_v43 = vadd.f32 %v728_v37, %v587_v40 }
 0x157   :  { %v730_v48 = vadd.f32 %v729_v43, %v589_v44 }
 0x169   :  { %v625_v22 = vpop.f32.mrb[4].mxu0 }
 0x16a   :  { %v627_v23 = vpop.f32.mrb[5].mxu0  ;;  %v626_v41 = vadd.f32 %v625_v22, %v162_v21 }
 0x16b   :  { %v629_v24 = vpop.f32.mrb[6].mxu0  ;;  %v668_v25 = vpop.f32.mrb[4].mxu1  ;;  %v628_v46 = vadd.f32 %v627_v23, %v162_v21 }
 0x16c   :  { %v631_v28 = vpop.f32.mrb[7].mxu0  ;;  %v670_v29 = vpop.f32.mrb[5].mxu1  ;;  %v721_v45 = vadd.f32 %v720_v42, %v626_v41  ;;  %v630_v47 = vadd.f32 %v629_v24, %v167_v30  ;;  %v669_v52 = vadd.f32 %v668_v25, %v162_v21 }
 0x16d   :  { %v672_v31 = vpop.f32.mrb[6].mxu1  ;;  %v632_v51 = vadd.f32 %v631_v28, %v167_v30  ;;  %v671_v55 = vadd.f32 %v670_v29, %v162_v21 }
 0x16e   :  { %v674_v32 = vpop.f32.mrb[7].mxu1  ;;  %v722_v49 = vadd.f32 %v721_v45, %v628_v46  ;;  %v731_v50 = vadd.f32 %v730_v48, %v630_v47  ;;  %v673_v56 = vadd.f32 %v672_v31, %v167_v30 }
 0x16f   :  { %v675_v59 = vadd.f32 %v674_v32, %v167_v30 }
 0x170   :  { %v732_v53 = vadd.f32 %v731_v50, %v632_v51  ;;  %v723_v54 = vadd.f32 %v722_v49, %v669_v52 }
 0x172   :  { %v733_v58 = vadd.f32 %v732_v53, %v673_v56  ;;  %v724_v62 = vadd.f32 %v723_v54, %v671_v55 }
 0x174   :  { %v734_v3 = vadd.f32 %v733_v58, %v675_v59 }
 0x185   :  { %v711_v57 = vpop.f32.mrb[8].mxu0 }
 0x186   :  { %v712_v60 = vadd.f32 %v711_v57, %v162_v21  ;;  %v1069_v61 = vpop.f32.mrb[9].mxu0 }
 0x187   :  { %v714_v63 = vpop.f32.mrb[10].mxu0 }
 0x188   :  { %v715_v0 = vadd.f32 %v714_v63, %v167_v30  ;;  %v1070_v1 = vpop.f32.mrb[11].mxu0  ;;  %v725_v2 = vadd.f32 %v724_v62, %v712_v60 }
 0x18a   :  { %726 = vadd.xlane.f32.xlu1 %v725_v2  ;;  %v735_v4 = vadd.f32 %v734_v3, %v715_v0  ;;  %v852_v2 = vld [vmem:[#allocation10 + $0x8] sm:$0xff] }
 0x18e   :  { %736 = vadd.xlane.f32.xlu1 %v735_v4 }
 0x19f   :  { %825 = vperm.xlu1 %1089, %v821_v5  }
 0x1a3   :  { %830 = vperm.xlu1 %1089, %v822_v6  }
 0x1a7   :  { %855 = vperm.xlu1 %1089, %v851_v7  }
 0x217   :  { %v727_v8 = vpop.xlane.xlu1 %726 }
 0x218   :  { %v739_v9 = vmul.f32 0.00086805556, %v727_v8 }
 0x21a   :  { %v1465_v10 = vsub.f32 %v540_v26, %v739_v9  ;;  %v1467_v11 = vsub.f32 %v542_v27, %v739_v9  ;;  %v1469_v12 = vsub.f32 %v583_v36, %v739_v9  ;;  %v1471_v15 = vsub.f32 %v585_v39, %v739_v9 }
 0x21b   :  { %v737_v13 = vpop.xlane.xlu1 %736  ;;  %v1477_v18 = vsub.f32 %v626_v41, %v739_v9  ;;  %v1481_v21 = vsub.f32 %v628_v46, %v739_v9  ;;  %v747_v27 = vsub.f32 %v669_v52, %v739_v9  ;;  %v748_v33 = vsub.f32 %v671_v55, %v739_v9 }
 0x21c   :  { %v740_v14 = vmul.f32 0.00086805556, %v737_v13  ;;  %v759_v16 = vmul.f32 %v1465_v10, %v1465_v10  ;;  %v760_v17 = vmul.f32 %v1467_v11, %v1467_v11  ;;  %v761_v19 = vmul.f32 %v1469_v12, %v1469_v12 }
 0x21d   :  { %v762_v24 = vmul.f32 %v1471_v15, %v1471_v15  ;;  %v763_v30 = vmul.f32 %v1477_v18, %v1477_v18  ;;  %v749_v39 = vsub.f32 %v712_v60, %v739_v9  ;;  %v766_v45 = vmul.f32 %v748_v33, %v748_v33 }
 0x21e   :  { %v777_v20 = vadd.f32 %v760_v17, %v759_v16  ;;  %v1483_v22 = vsub.f32 %v544_v34, %v740_v14  ;;  %v1485_v23 = vsub.f32 %v546_v35, %v740_v14  ;;  %v1489_v26 = vsub.f32 %v587_v40, %v740_v14 }
 0x21f   :  { %v1497_v32 = vsub.f32 %v589_v44, %v740_v14  ;;  %v764_v34 = vmul.f32 %v1481_v21, %v1481_v21  ;;  %v1501_v36 = vsub.f32 %v630_v47, %v740_v14  ;;  %v765_v40 = vmul.f32 %v747_v27, %v747_v27 }
 0x220   :  { %v778_v25 = vadd.f32 %v777_v20, %v761_v19  ;;  %v768_v28 = vmul.f32 %v1483_v22, %v1483_v22  ;;  %v769_v29 = vmul.f32 %v1485_v23, %v1485_v23  ;;  %v770_v37 = vmul.f32 %v1489_v26, %v1489_v26 }
 0x221   :  { %v1505_v42 = vsub.f32 %v632_v51, %v740_v14  ;;  %v771_v43 = vmul.f32 %v1497_v32, %v1497_v32  ;;  %v1509_v48 = vsub.f32 %v673_v56, %v740_v14  ;;  %v772_v47 = vmul.f32 %v1501_v36, %v1501_v36 }
 0x222   :  { %v779_v31 = vadd.f32 %v778_v25, %v762_v24  ;;  %v787_v38 = vadd.f32 %v769_v29, %v768_v28  ;;  %v767_v50 = vmul.f32 %v749_v39, %v749_v39  ;;  %v757_v53 = vsub.f32 %v675_v59, %v740_v14  ;;  %v826_v59 = vpop.permute.xlu1 %825 }
 0x223   :  { %v773_v54 = vmul.f32 %v1505_v42, %v1505_v42  ;;  %v758_v57 = vsub.f32 %v715_v0, %v740_v14  ;;  %v774_v58 = vmul.f32 %v1509_v48, %v1509_v48 }
 0x224   :  { %v780_v35 = vadd.f32 %v779_v31, %v763_v30  ;;  %v788_v44 = vadd.f32 %v787_v38, %v770_v37  ;;  %v775_v56 = vmul.f32 %v757_v53, %v757_v53 }
 0x225   :  { %v776_v62 = vmul.f32 %v758_v57, %v758_v57 }
 0x226   :  { %v781_v41 = vadd.f32 %v780_v35, %v764_v34  ;;  %v789_v49 = vadd.f32 %v788_v44, %v771_v43  ;;  %v831_v3 = vpop.permute.xlu1 %830 }
 0x228   :  { %v782_v46 = vadd.f32 %v781_v41, %v765_v40  ;;  %v790_v51 = vadd.f32 %v789_v49, %v772_v47 }
 0x22a   :  { %v783_v52 = vadd.f32 %v782_v46, %v766_v45  ;;  %v791_v60 = vadd.f32 %v790_v51, %v773_v54  ;;  %v1517_v6 = vpop.permute.xlu1 %855 }
 0x22c   :  { %v784_v55 = vadd.f32 %v783_v52, %v767_v50  ;;  %v792_v61 = vadd.f32 %v791_v60, %v774_v58 }
 0x22e   :  { %785 = vadd.xlane.f32.xlu0 %v784_v55  ;;  %v793_v63 = vadd.f32 %v792_v61, %v775_v56 }
 0x230   :  { %v794_v1 = vadd.f32 %v793_v63, %v776_v62 }
 0x232   :  { %795 = vadd.xlane.f32.xlu1 %v794_v1 }
 0x243   :  { %860 = vperm.xlu1 %1089, %v852_v2  }
 0x2bb   :  { %v786_v4 = vpop.xlane.xlu0 %785 }
 0x2bc   :  { %v797_v5 = vmul.f32 0.00086805556, %v786_v4 }
 0x2be   :  { %v799_v0 = vadd.f32 1e-05, %v797_v5 }
 0x2bf   :  { %v796_v7 = vpop.xlane.xlu1 %795 }
 0x2c0   :  { %1178 = vrsqrt.f32 %v799_v0  ;;  %v798_v8 = vmul.f32 0.00086805556, %v796_v7 }
 0x2c2   :  { %v800_v9 = vadd.f32 1e-05, %v798_v8 }
 0x2c4   :  { %1180 = vrsqrt.f32 %v800_v9 }
 0x2ca   :  { %v1179_v13 = vpop.eup %1178 }
 0x2cb   :  { %v803_v14 = vmul.f32 %v1179_v13, %v1465_v10  ;;  %v804_v16 = vmul.f32 %v1179_v13, %v1467_v11  ;;  %v805_v17 = vmul.f32 %v1179_v13, %v1469_v12  ;;  %v806_v19 = vmul.f32 %v1179_v13, %v1471_v15 }
 0x2cc   :  { %v807_v20 = vmul.f32 %v1179_v13, %v1477_v18  ;;  %v808_v24 = vmul.f32 %v1179_v13, %v1481_v21  ;;  %v809_v25 = vmul.f32 %v1179_v13, %v747_v27  ;;  %v810_v28 = vmul.f32 %v1179_v13, %v748_v33 }
 0x2cd   :  { %v811_v29 = vmul.f32 %v1179_v13, %v749_v39  ;;  %v833_v30 = vmul.f32 %v826_v59, %v803_v14  ;;  %v834_v31 = vmul.f32 %v826_v59, %v804_v16  ;;  %v835_v34 = vmul.f32 %v826_v59, %v805_v17 }
 0x2ce   :  { %v836_v35 = vmul.f32 %v826_v59, %v806_v19  ;;  %v837_v37 = vmul.f32 %v826_v59, %v807_v20  ;;  %v838_v38 = vmul.f32 %v826_v59, %v808_v24  ;;  %v839_v10 = vmul.f32 %v826_v59, %v809_v25  ;;  %v1181_v18 = vpop.eup %1180 }
 0x2cf   :  { %v840_v40 = vmul.f32 %v826_v59, %v810_v28  ;;  %v1525_v11 = vmul.f32 %v826_v59, %v811_v29  ;;  %v1528_v12 = vadd.f32 %v1517_v6, %v833_v30  ;;  %v1531_v15 = vadd.f32 %v1517_v6, %v834_v31 }
 0x2d0   :  { %v1534_v21 = vadd.f32 %v1517_v6, %v835_v34  ;;  %v1537_v27 = vadd.f32 %v1517_v6, %v836_v35  ;;  %v1540_v33 = vadd.f32 %v1517_v6, %v837_v37  ;;  %v1543_v39 = vadd.f32 %v1517_v6, %v838_v38 }
 0x2d1   :  { %v812_v41 = vmul.f32 %v1181_v18, %v1483_v22  ;;  %v813_v43 = vmul.f32 %v1181_v18, %v1485_v23  ;;  %v814_v44 = vmul.f32 %v1181_v18, %v1489_v26  ;;  %v815_v45 = vmul.f32 %v1181_v18, %v1497_v32  ;;  %v861_v23 = vpop.permute.xlu1 %860 }
 0x2d2   :  { %v816_v46 = vmul.f32 %v1181_v18, %v1501_v36  ;;  %v817_v47 = vmul.f32 %v1181_v18, %v1505_v42  ;;  %v818_v49 = vmul.f32 %v1181_v18, %v1509_v48  ;;  %v819_v50 = vmul.f32 %v1181_v18, %v757_v53 }
 0x2d3   :  { %v820_v52 = vmul.f32 %v1181_v18, %v758_v57  ;;  %v842_v54 = vmul.f32 %v831_v3, %v812_v41  ;;  %v843_v51 = vmul.f32 %v831_v3, %v813_v43  ;;  %v844_v55 = vmul.f32 %v831_v3, %v814_v44 }
 0x2d4   :  { %v845_v58 = vmul.f32 %v831_v3, %v815_v45  ;;  %v846_v60 = vmul.f32 %v831_v3, %v816_v46  ;;  %v847_v22 = vmul.f32 %v831_v3, %v817_v47  ;;  %v848_v56 = vmul.f32 %v831_v3, %v818_v49 }
 0x2d5   :  { %v849_v61 = vmul.f32 %v831_v3, %v819_v50  ;;  %v850_v26 = vmul.f32 %v831_v3, %v820_v52  ;;  %v872_v62 = vadd.f32 %v861_v23, %v842_v54  ;;  %v873_v32 = vadd.f32 %v861_v23, %v843_v51 }
 0x2d6   :  { %v874_v63 = vadd.f32 %v861_v23, %v844_v55  ;;  %v875_v36 = vadd.f32 %v861_v23, %v845_v58  ;;  %v876_v1 = vadd.f32 %v861_v23, %v846_v60  ;;  %v877_v42 = vadd.f32 %v861_v23, %v847_v22 }
 0x2d7   :  { %v878_v2 = vadd.f32 %v861_v23, %v848_v56  ;;  %v879_v48 = vadd.f32 %v861_v23, %v849_v61  ;;  %v880_v53 = vadd.f32 %v861_v23, %v850_v26  ;;  %vm890_vm3 = vcmp.gt.f32.partialorder %v872_v62, 0.0 }
 0x2d8   :  { %vm891_vm4 = vcmp.gt.f32.partialorder %v873_v32, 0.0  ;;  %vm892_vm5 = vcmp.gt.f32.partialorder %v874_v63, 0.0  ;;  %vm893_vm6 = vcmp.gt.f32.partialorder %v875_v36, 0.0  ;;  %vm894_vm7 = vcmp.gt.f32.partialorder %v876_v1, 0.0 }
 0x2d9   :  { %vm895_vm8 = vcmp.gt.f32.partialorder %v877_v42, 0.0  ;;  %vm896_vm9 = vcmp.gt.f32.partialorder %v878_v2, 0.0  ;;  %vm897_vm10 = vcmp.gt.f32.partialorder %v879_v48, 0.0  ;;  %vm898_vm11 = vcmp.gt.f32.partialorder %v880_v53, 0.0 }
 0x2da   :  { %v908_v57 = vmul.f32 0.01, %v872_v62  ;;  %v909_v59 = vmul.f32 0.01, %v873_v32  ;;  %v910_v3 = vmul.f32 0.01, %v874_v63  ;;  %v869_v4 = vadd.f32 %v1517_v6, %v839_v10 }
 0x2db   :  { %v911_v5 = vmul.f32 0.01, %v875_v36  ;;  %v912_v0 = vmul.f32 0.01, %v876_v1  ;;  %v913_v7 = vmul.f32 0.01, %v877_v42  ;;  %v870_v8 = vadd.f32 %v1517_v6, %v840_v40 }
 0x2dc   :  { %v914_v9 = vmul.f32 0.01, %v878_v2  ;;  %v915_v13 = vmul.f32 0.01, %v879_v48  ;;  %v916_v14 = vmul.f32 0.01, %v880_v53  ;;  %v926_v16 = vsel %vm890_vm3, %v872_v62, %v908_v57 }
 0x2dd   :  { %v927_v17 = vsel %vm891_vm4, %v873_v32, %v909_v59  ;;  %v928_v19 = vsel %vm892_vm5, %v874_v63, %v910_v3  ;;  %v929_v20 = vsel %vm893_vm6, %v875_v36, %v911_v5  ;;  %v930_v24 = vsel %vm894_vm7, %v876_v1, %v912_v0  ;;  %944 = vst [vmem:[#allocation11 + $0x48] sm:$0xff] %v926_v16 }
 0x2de   :  { %v931_v25 = vsel %vm895_vm8, %v877_v42, %v913_v7  ;;  %v932_v28 = vsel %vm896_vm9, %v878_v2, %v914_v9  ;;  %v933_v29 = vsel %vm897_vm10, %v879_v48, %v915_v13  ;;  %v934_v30 = vsel %vm898_vm11, %v880_v53, %v916_v14  ;;  %945 = vst [vmem:[#allocation11 + $0x50] sm:$0xff] %v927_v17 }
 0x2df   :  { %946 = vst [vmem:[#allocation11 + $0x58] sm:$0xff] %v928_v19  ;;  %947 = vst [vmem:[#allocation11 + $0x60] sm:$0xff] %v929_v20  ;;  %v871_v31 = vadd.f32 %v1517_v6, %v1525_v11  ;;  %vm881_vm12 = vcmp.gt.f32.partialorder %v1528_v12, 0.0  ;;  %vm882_vm13 = vcmp.gt.f32.partialorder %v1531_v15, 0.0  ;;  %vm883_vm14 = vcmp.gt.f32.partialorder %v1534_v21, 0.0 }
 0x2e0   :  { %948 = vst [vmem:[#allocation11 + $0x68] sm:$0xff] %v930_v24  ;;  %949 = vst [vmem:[#allocation11 + $0x70] sm:$0xff] %v931_v25  ;;  %vm884_vm15 = vcmp.gt.f32.partialorder %v1537_v27, 0.0  ;;  %vm885_vm0 = vcmp.gt.f32.partialorder %v1540_v33, 0.0  ;;  %vm886_vm1 = vcmp.gt.f32.partialorder %v1543_v39, 0.0  ;;  %vm887_vm2 = vcmp.gt.f32.partialorder %v869_v4, 0.0 }
 0x2e1   :  { %950 = vst [vmem:[#allocation11 + $0x78] sm:$0xff] %v932_v28  ;;  %951 = vst [vmem:[#allocation11 + $0x80] sm:$0xff] %v933_v29  ;;  %vm888_vm3 = vcmp.gt.f32.partialorder %v870_v8, 0.0  ;;  %vm889_vm4 = vcmp.gt.f32.partialorder %v871_v31, 0.0  ;;  %v899_v34 = vmul.f32 0.01, %v1528_v12 }
 0x2e2   :  { %952 = vst [vmem:[#allocation11 + $0x88] sm:$0xff] %v934_v30  ;;  %v900_v6 = vmul.f32 0.01, %v1531_v15  ;;  %v901_v35 = vmul.f32 0.01, %v1534_v21 }
 0x2e3   :  { %v902_v37 = vmul.f32 0.01, %v1537_v27  ;;  %v903_v38 = vmul.f32 0.01, %v1540_v33  ;;  %v904_v10 = vmul.f32 0.01, %v1543_v39  ;;  %v917_v18 = vsel %vm881_vm12, %v1528_v12, %v899_v34 }
 0x2e4   :  { %v905_v40 = vmul.f32 0.01, %v869_v4  ;;  %v906_v11 = vmul.f32 0.01, %v870_v8  ;;  %v907_v41 = vmul.f32 0.01, %v871_v31  ;;  %v918_v43 = vsel %vm882_vm13, %v1531_v15, %v900_v6 }
 0x2e5   :  { %v919_v44 = vsel %vm883_vm14, %v1534_v21, %v901_v35  ;;  %v920_v45 = vsel %vm884_vm15, %v1537_v27, %v902_v37  ;;  %935 = vst [vmem:[#allocation11] sm:$0xff] %v917_v18  ;;  %v921_v46 = vsel %vm885_vm0, %v1540_v33, %v903_v38  ;;  %v922_v12 = vsel %vm886_vm1, %v1543_v39, %v904_v10 }
 0x2e6   :  { %v923_v47 = vsel %vm887_vm2, %v869_v4, %v905_v40  ;;  %v924_v15 = vsel %vm888_vm3, %v870_v8, %v906_v11  ;;  %936 = vst [vmem:[#allocation11 + $0x8] sm:$0xff] %v918_v43  ;;  %937 = vst [vmem:[#allocation11 + $0x10] sm:$0xff] %v919_v44  ;;  %v925_v21 = vsel %vm889_vm4, %v871_v31, %v907_v41 }
 0x2e7   :  { %938 = vst [vmem:[#allocation11 + $0x18] sm:$0xff] %v920_v45  ;;  %939 = vst [vmem:[#allocation11 + $0x20] sm:$0xff] %v921_v46 }
 0x2e8   :  { %940 = vst [vmem:[#allocation11 + $0x28] sm:$0xff] %v922_v12  ;;  %941 = vst [vmem:[#allocation11 + $0x30] sm:$0xff] %v923_v47 }
 0x2e9   :  { %942 = vst [vmem:[#allocation11 + $0x38] sm:$0xff] %v924_v15  ;;  %943 = vst [vmem:[#allocation11 + $0x40] sm:$0xff] %v925_v21 }
 0x2ea   :  { %1303 = shalt.err (!%p1300_p2)
}
 0x2eb   :  { %s1304_s7 = scalar_lea.hbm %s1615_s5, 2304 }
 0x2ec   :  { %p1305_p3 = scmp.ne.s32.totalorder %s1615_s5, %s1304_s7  ;;  %p1308_p4 = scmp.lt.u32.totalorder %s1304_s7, %s1615_s5 }
 0x2ee   :  { %p1310_p5 = pnand %p1308_p4, %p1305_p3 }
 0x2f0   :  { %1313 = shalt.err (!%p1310_p5)
}
 0x2f1   :  { %s1337_s13 = smov 1152   ;;  %s1338_s14 = smov 72  }
 0x2f2   :  { %964 = dma.vmem_to_hbm [thread:$0]  %s959_s18, 2304, %s1615_s5, [#allocation4], %s1337_s13, %s1337_s13, %s1338_s14  }
 0x2f3   :  { %1320 = dma.done.wait [#allocation4], 2304  }
 0x2f4   :  { %1321 = vsyncadd [#allocation4], 4294964992 }
 0x2f5   :  { %968 = vsyncpa [#allocation3], 1 }
 0x2f6   :  { %969 = vsyncpa [#allocation6], 1 }
 0x2f7   :  { %970 = vsyncpa [#allocation9], 1 }
 0x2f8   :  { %971 = vsyncpa [#allocation4], 1 }

// kernel: vae_forward.9
= control target key start
LH: loop header
LB: loop body
LE: loop exit
PB: predicated region body
PF: predicated region fallthrough
CT: control target
= control target key end

     0   :  { %s6540_s0 = inlined_call_operand.hbm [shape: bf16[400,1568], index: 0, kind: input, shape index: {}]   ;;  %s6541_s1 = inlined_call_operand.hbm [shape: f32[400,1], index: 1, kind: input, shape index: {}]   ;;  %s6542_s2 = inlined_call_operand.<no memory space> [shape: f32[1,1], index: 2, kind: input, shape index: {}]   ;;  %s6543_s3 = inlined_call_operand.hbm [shape: f32[1,1568], index: 3, kind: output, shape index: {}]  }
   0x1   :  { %v8_v0 = vstv %s6542_s2 }
   0x2   :  { %9 = vst [vmem:[#allocation2] sm:$0x1] %v8_v0 }
   0x3   :  { %10 = vsyncpa [#allocation4], 0 }
   0x4   :  { %11 = vsyncpa [#allocation7], 0 }
   0x5   :  { %12 = vsyncpa [#allocation5], 0  ;;  %s3031_s14 = smov [#allocation3]   ;;  %s2959_s18 = scalar_lea.hbm %s6540_s0, 41600 }
   0x6   :  { %s18_s15 = sshll.u32 %s3031_s14, 4  ;;  %p2960_p0 = scmp.ne.s32.totalorder %s6540_s0, %s2959_s18  ;;  %s19_s15 = int_to_ptr.vmem [resolvable:$true] %s18_s15 }
   0x7   :  { %p2963_p1 = scmp.lt.u32.totalorder %s2959_s18, %s6540_s0 }
   0x9   :  { %p2965_p2 = pnand %p2963_p1, %p2960_p0 }
   0xb   :  { %2968 = shalt.err (!%p2965_p2)
}
   0xc   :  { %s2969_s2 = scalar_lea.vmem %s19_s15, 41600  ;;  %p2974_p4 = scmp.lt.s32.totalorder %s19_s15, %s19_s15 }
   0xd   :  { %p2970_p3 = scmp.ne.s32.totalorder %s19_s15, %s2969_s2  ;;  %p2975_p5 = scmp.lt.s32.totalorder %s2969_s2, %s2969_s2 }
   0xf   :  { %p2976_p6 = por %p2975_p5, %p2974_p4 }
  0x11   :  { %p2977_p7 = pnand %p2976_p6, %p2970_p3 }
  0x13   :  { %2980 = shalt.err (!%p2977_p7)
}
  0x14   :  { %s3032_s23 = smov 832   ;;  %s3033_s24 = smov 52  }
  0x15   :  { %24 = dma.hbm_to_vmem [thread:$0]  %s6540_s0, 41600, %s19_s15, [#allocation4], %s3032_s23, %s3032_s23, %s3033_s24  }
  0x16   :  { %s3034_s27 = smov [#allocation6]   ;;  %s2981_s4 = scalar_lea.hbm %s6541_s1, 6400 }
  0x17   :  { %s30_s28 = sshll.u32 %s3034_s27, 4  ;;  %p2982_p8 = scmp.ne.s32.totalorder %s6541_s1, %s2981_s4  ;;  %s31_s28 = int_to_ptr.vmem [resolvable:$true] %s30_s28 }
  0x18   :  { %p2985_p9 = scmp.lt.u32.totalorder %s2981_s4, %s6541_s1 }
  0x1a   :  { %p2987_p10 = pnand %p2985_p9, %p2982_p8 }
  0x1c   :  { %2990 = shalt.err (!%p2987_p10)
}
  0x1d   :  { %s2991_s9 = scalar_lea.vmem %s31_s28, 6400  ;;  %p2996_p12 = scmp.lt.s32.totalorder %s31_s28, %s31_s28 }
  0x1e   :  { %p2992_p11 = scmp.ne.s32.totalorder %s31_s28, %s2991_s9  ;;  %p2997_p13 = scmp.lt.s32.totalorder %s2991_s9, %s2991_s9 }
  0x20   :  { %p2998_p0 = por %p2997_p13, %p2996_p12 }
  0x22   :  { %p2999_p1 = pnand %p2998_p0, %p2992_p11 }
  0x24   :  { %3002 = shalt.err (!%p2999_p1)
}
  0x25   :  { %s3035_s0 = smov 128   ;;  %s3036_s10 = smov 8  }
  0x26   :  { %36 = dma.hbm_to_vmem [thread:$0]  %s6541_s1, 6400, %s31_s28, [#allocation7], %s3035_s0, %s3035_s0, %s3036_s10  }
  0x27   :  { %3025 = dma.done.wait [#allocation4], 41600  }
  0x28   :  { %3026 = vsyncadd [#allocation4], 4294925696 }
  0x29   :  { %3027 = dma.done.wait [#allocation7], 6400  }
  0x2a   :  { %3028 = vsyncadd [#allocation7], 4294960896  ;;  %v3037_v1 = vmov 0   ;;  %v1047_v2 = vld [vmem:[#allocation6 + $0x10] sm:$0xff]  ;;  %v1045_v3 = vld [vmem:[#allocation6] sm:$0xff]  ;;  %vm2655_vm0 = vcmask 261120  }
  0x2b   :  { %2958 = vset.pattern.permute.xlu1 %v3037_v1  ;;  %2957 = vset.pattern.permute.xlu0 %v3037_v1  ;;  %v1048_v4 = vld [vmem:[#allocation6 + $0x18] sm:$0xff]  ;;  %v1046_v5 = vld [vmem:[#allocation6 + $0x8] sm:$0xff]  ;;  %v1049_v7 = vld [vmem:[#allocation6 + $0x20] sm:$0xff]  ;;  %s3039_s1 = smov [#allocation8]  }
  0x2c   :  { %1107 = vperm.xlu1 %2958, %v1047_v2   ;;  %1097 = vperm.xlu0 %2957, %v1045_v3   ;;  %v1050_v6 = vld [vmem:[#allocation6 + $0x28] sm:$0xff]  ;;  %v1052_v8 = vld [vmem:[#allocation6 + $0x38] sm:$0xff]  ;;  %v1051_v9 = vld [vmem:[#allocation6 + $0x30] sm:$0xff]  ;;  %s2938_s13 = sshll.u32 %s3039_s1, 4  ;;  %s2939_s13 = int_to_ptr.vmem [resolvable:$true] %s2938_s13 }
  0x2d   :  { %v1054_v10 = vld [vmem:[#allocation6 + $0x48] sm:$0xff]  ;;  %v1053_v11 = vld [vmem:[#allocation6 + $0x40] sm:$0xff]  ;;  %v1056_v12 = vld [vmem:[#allocation6 + $0x58] sm:$0xff]  ;;  %s3003_s14 = scalar_lea.vmem %s2939_s13, 208  ;;  %s3007_s15 = scalar_lea.vmem %s2939_s13, 224 }
  0x2e   :  { %v1055_v13 = vld [vmem:[#allocation6 + $0x50] sm:$0xff]  ;;  %v1058_v14 = vld [vmem:[#allocation6 + $0x68] sm:$0xff]  ;;  %v1057_v15 = vld [vmem:[#allocation6 + $0x60] sm:$0xff]  ;;  %p3004_p2 = scmp.ne.s32.totalorder %s2939_s13, %s3003_s14  ;;  %p3008_p3 = scmp.lt.s32.totalorder %s2939_s13, %s2939_s13 }
  0x2f   :  { %v1060_v16 = vld [vmem:[#allocation6 + $0x78] sm:$0xff]  ;;  %v1059_v17 = vld [vmem:[#allocation6 + $0x70] sm:$0xff]  ;;  %v1062_v18 = vld [vmem:[#allocation6 + $0x88] sm:$0xff]  ;;  %p3009_p4 = scmp.lt.s32.totalorder %s3007_s15, %s3003_s14 }
  0x30   :  { %1112 = vperm.xlu1 %2958, %v1048_v4   ;;  %1102 = vperm.xlu0 %2957, %v1046_v5   ;;  %v1061_v19 = vld [vmem:[#allocation6 + $0x80] sm:$0xff]  ;;  %v1064_v20 = vld [vmem:[#allocation6 + $0x98] sm:$0xff]  ;;  %v1063_v21 = vld [vmem:[#allocation6 + $0x90] sm:$0xff] }
  0x31   :  { %v1066_v22 = vld [vmem:[#allocation6 + $0xa8] sm:$0xff]  ;;  %v1065_v23 = vld [vmem:[#allocation6 + $0xa0] sm:$0xff]  ;;  %v1068_v24 = vld [vmem:[#allocation6 + $0xb8] sm:$0xff]  ;;  %p3010_p5 = por %p3009_p4, %p3008_p3 }
  0x32   :  { %v1067_v25 = vld [vmem:[#allocation6 + $0xb0] sm:$0xff]  ;;  %v1070_v26 = vld [vmem:[#allocation6 + $0xc8] sm:$0xff]  ;;  %v1069_v27 = vld [vmem:[#allocation6 + $0xc0] sm:$0xff] }
  0x33   :  { %v1072_v28 = vld [vmem:[#allocation6 + $0xd8] sm:$0xff]  ;;  %v1071_v29 = vld [vmem:[#allocation6 + $0xd0] sm:$0xff]  ;;  %v1074_v30 = vld [vmem:[#allocation6 + $0xe8] sm:$0xff]  ;;  %p3011_p6 = pnand %p3010_p5, %p3004_p2 }
  0x34   :  { %1122 = vperm.xlu1 %2958, %v1050_v6   ;;  %1117 = vperm.xlu0 %2957, %v1049_v7   ;;  %v1073_v31 = vld [vmem:[#allocation6 + $0xe0] sm:$0xff]  ;;  %v1076_v32 = vld [vmem:[#allocation6 + $0xf8] sm:$0xff]  ;;  %v1075_v33 = vld [vmem:[#allocation6 + $0xf0] sm:$0xff] }
  0x35   :  { %v3087_v34 = vld [vmem:[#allocation3 + $0x68] sm:$0xff]  ;;  %v3089_v35 = vld [vmem:[#allocation3 + $0x70] sm:$0xff]  ;;  %v3091_v37 = vld [vmem:[#allocation3 + $0x78] sm:$0xff] }
  0x36   :  { %v1078_v36 = vld [vmem:[#allocation6 + $0x108] sm:$0xff]  ;;  %v3093_v38 = vld [vmem:[#allocation3 + $0x80] sm:$0xff]  ;;  %v1077_v39 = vld [vmem:[#allocation6 + $0x100] sm:$0xff] }
  0x37   :  { %v3095_v40 = vld [vmem:[#allocation3 + $0x88] sm:$0xff]  ;;  %v3097_v41 = vld [vmem:[#allocation3 + $0x90] sm:$0xff]  ;;  %v3102_v45 = vld [vmem:[#allocation3] sm:$0xff] }
  0x38   :  { %1132 = vperm.xlu1 %2958, %v1052_v8   ;;  %1127 = vperm.xlu0 %2957, %v1051_v9   ;;  %v1080_v46 = vld [vmem:[#allocation6 + $0x118] sm:$0xff]  ;;  %v3108_v51 = vld [vmem:[#allocation3 + $0x8] sm:$0xff]  ;;  %v3110_v52 = vld [vmem:[#allocation3 + $0x10] sm:$0xff] }
  0x39   :  { %v3112_v53 = vld [vmem:[#allocation3 + $0x30] ss:$104 sps:$4 sm:$0xff]   ;;  %v3120_v59 = vld [vmem:[#allocation3 + $0x20] sm:$0xff]  ;;  %v3124_v63 = vld [vmem:[#allocation3 + $0x28] sm:$0xff] }
  0x3a   :  { %v3118_v58 = vld [vmem:[#allocation3 + $0x18] sm:$0xff]  ;;  %v3134_v7 = vld [vmem:[#allocation3 + $0xa4] sm:$0xff]  ;;  %v3136_v8 = vld [vmem:[#allocation3 + $0xac] sm:$0xff] }
  0x3b   :  { %v1079_v60 = vld [vmem:[#allocation6 + $0x110] sm:$0xff]  ;;  %v3232_v3 = vld [vmem:[#allocation3 + $0x16c] sm:$0xff]  ;;  %v3264_v61 = vld [vmem:[#allocation3 + $0x140] sm:$0xff] }
  0x3c   :  { %1142 = vperm.xlu1 %2958, %v1054_v10   ;;  %1137 = vperm.xlu0 %2957, %v1053_v11   ;;  %v3128_v2 = vld [vmem:[#allocation3 + $0x9c] sm:$0xff]  ;;  %v3208_v11 = vld [vmem:[#allocation3 + $0xd0] sm:$0xff]  ;;  %6783 = vst [vmem:[#allocation17_spill] sm:$0xff] %v3232_v3  ;;  %6791 = vst [vmem:[#allocation25_spill] sm:$0xff] %v3264_v61 }
  0x3d   :  { %v3214_v9 = vld [vmem:[#allocation3 + $0xd8] sm:$0xff]  ;;  %v3248_v6 = vld [vmem:[#allocation3 + $0x18c] sm:$0xff]  ;;  %v3280_v50 = vld [vmem:[#allocation3 + $0x160] sm:$0xff] }
  0x3e   :  { %6778 = vst [vmem:[#allocation12_spill] sm:$0xff] %v3214_v9  ;;  %v3228_v5 = vld [vmem:[#allocation3 + $0xf8] sm:$0xff]  ;;  %6787 = vst [vmem:[#allocation21_spill] sm:$0xff] %v3248_v6  ;;  %v3270_v49 = vld [vmem:[#allocation3 + $0x148] sm:$0xff]  ;;  %v6893_v6 = vunpack.c.l.bf16 %v3110_v52 }
  0x3f   :  { %6782 = vst [vmem:[#allocation16_spill] sm:$0xff] %v3228_v5  ;;  %v3238_v0 = vld [vmem:[#allocation3 + $0x174] sm:$0xff]  ;;  %v3240_v10 = vld [vmem:[#allocation3 + $0x17c] sm:$0xff]  ;;  %6792 = vst [vmem:[#allocation26_spill] sm:$0xff] %v3270_v49 }
  0x40   :  { %1152 = vperm.xlu1 %2958, %v1056_v12   ;;  %1147 = vperm.xlu0 %2957, %v1055_v13   ;;  %v3142_v13 = vld [vmem:[#allocation3 + $0xb4] sm:$0xff]  ;;  %v1085_v12 = vld [vmem:[#allocation6 + $0x140] sm:$0xff]  ;;  %6784 = vst [vmem:[#allocation18_spill] sm:$0xff] %v3238_v0  ;;  %6785 = vst [vmem:[#allocation19_spill] sm:$0xff] %v3240_v10 }
  0x41   :  { %v1087_v1 = vld [vmem:[#allocation6 + $0x150] sm:$0xff]  ;;  %v3272_v62 = vld [vmem:[#allocation3 + $0x150] sm:$0xff]  ;;  %6795 = vst [vmem:[#allocation29_spill] sm:$0xff] %v3280_v50  ;;  %v1092_v43 = vld [vmem:[#allocation6 + $0x178] sm:$0xff] }
  0x42   :  { %v3255_v4 = vld [vmem:[#allocation3 + $0x168] ss:$52 sps:$4 sm:$0xff]   ;;  %6793 = vst [vmem:[#allocation27_spill] sm:$0xff] %v3272_v62  ;;  %v1090_v56 = vld [vmem:[#allocation6 + $0x168] sm:$0xff]  ;;  %v3312_v44 = vld [vmem:[#allocation3 + $0x1a0] sm:$0xff] }
  0x43   :  { %6789 = vst [vmem:[#allocation23_spill] sm:$0xff] %v3255_v4  ;;  %v3262_v54 = vld [vmem:[#allocation3 + $0x138] sm:$0xff]  ;;  %v3296_v47 = vld [vmem:[#allocation3 + $0x1ec] sm:$0xff]  ;;  %6803 = vst [vmem:[#allocation37_spill] sm:$0xff] %v3312_v44 }
  0x44   :  { %1162 = vperm.xlu1 %2958, %v1058_v14   ;;  %1157 = vperm.xlu0 %2957, %v1057_v15   ;;  %v3144_v14 = vld [vmem:[#allocation3 + $0xbc] sm:$0xff]  ;;  %v1082_v15 = vld [vmem:[#allocation6 + $0x128] sm:$0xff]  ;;  %6790 = vst [vmem:[#allocation24_spill] sm:$0xff] %v3262_v54  ;;  %6799 = vst [vmem:[#allocation33_spill] sm:$0xff] %v3296_v47 }
  0x45   :  { %v3286_v55 = vld [vmem:[#allocation3 + $0x1d4] sm:$0xff]  ;;  %v3304_v48 = vld [vmem:[#allocation3 + $0x1fc] sm:$0xff]  ;;  %v3307_v57 = vld [vmem:[#allocation3 + $0x1d0] ss:$52 sps:$4 sm:$0xff]  }
  0x46   :  { %6796 = vst [vmem:[#allocation30_spill] sm:$0xff] %v3286_v55  ;;  %v3302_v54 = vld [vmem:[#allocation3 + $0x1f4] sm:$0xff]  ;;  %6801 = vst [vmem:[#allocation35_spill] sm:$0xff] %v3304_v48  ;;  %v3318_v42 = vld [vmem:[#allocation3 + $0x1a8] sm:$0xff] }
  0x47   :  { %6800 = vst [vmem:[#allocation34_spill] sm:$0xff] %v3302_v54  ;;  %6802 = vst [vmem:[#allocation36_spill] sm:$0xff] %v3307_v57  ;;  %v1091_v61 = vld [vmem:[#allocation6 + $0x170] sm:$0xff]  ;;  %v3320_v49 = vld [vmem:[#allocation3 + $0x1b0] sm:$0xff]  ;;  %v6892_v57 = vunpack.c.h.bf16 %v3108_v51 }
  0x48   :  { %1172 = vperm.xlu1 %2958, %v1060_v16   ;;  %1167 = vperm.xlu0 %2957, %v1059_v17   ;;  %v3198_v16 = vld [vmem:[#allocation3 + $0x124] sm:$0xff]  ;;  %6804 = vst [vmem:[#allocation38_spill] sm:$0xff] %v3318_v42  ;;  %6805 = vst [vmem:[#allocation39_spill] sm:$0xff] %v3320_v49  ;;  %v3326_v4 = vld [vmem:[#allocation3 + $0x1b8] sm:$0xff] }
  0x49   :  { %v3222_v17 = vld [vmem:[#allocation3 + $0xe8] sm:$0xff]  ;;  %6806 = vst [vmem:[#allocation40_spill] sm:$0xff] %v3326_v4  ;;  %v3328_v50 = vld [vmem:[#allocation3 + $0x1c0] sm:$0xff]  ;;  %v3350_v55 = vld [vmem:[#allocation3 + $0x254] sm:$0xff] }
  0x4a   :  { %6780 = vst [vmem:[#allocation14_spill] sm:$0xff] %v3222_v17  ;;  %6807 = vst [vmem:[#allocation41_spill] sm:$0xff] %v3328_v50  ;;  %v3336_v47 = vld [vmem:[#allocation3 + $0x23c] sm:$0xff]  ;;  %v3344_v48 = vld [vmem:[#allocation3 + $0x24c] sm:$0xff] }
  0x4b   :  { %6809 = vst [vmem:[#allocation43_spill] sm:$0xff] %v3336_v47  ;;  %6811 = vst [vmem:[#allocation45_spill] sm:$0xff] %v3344_v48  ;;  %v3357_v42 = vld [vmem:[#allocation3 + $0x264] sm:$0xff]  ;;  %v3368_v54 = vld [vmem:[#allocation3 + $0x210] sm:$0xff] }
  0x4c   :  { %1182 = vperm.xlu1 %2958, %v1062_v18   ;;  %1177 = vperm.xlu0 %2957, %v1061_v19   ;;  %v3149_v19 = vld [vmem:[#allocation3 + $0xc4] sm:$0xff]  ;;  %v1086_v18 = vld [vmem:[#allocation6 + $0x148] sm:$0xff]  ;;  %6812 = vst [vmem:[#allocation46_spill] sm:$0xff] %v3350_v55  ;;  %6814 = vst [vmem:[#allocation48_spill] sm:$0xff] %v3357_v42 }
  0x4d   :  { %v3366_v4 = vld [vmem:[#allocation3 + $0x208] sm:$0xff]  ;;  %6817 = vst [vmem:[#allocation51_spill] sm:$0xff] %v3368_v54  ;;  %v3374_v47 = vld [vmem:[#allocation3 + $0x218] sm:$0xff]  ;;  %v3384_v49 = vld [vmem:[#allocation3 + $0x230] sm:$0xff] }
  0x4e   :  { %6816 = vst [vmem:[#allocation50_spill] sm:$0xff] %v3366_v4  ;;  %6818 = vst [vmem:[#allocation52_spill] sm:$0xff] %v3374_v47  ;;  %v2761_v62 = vld [vmem:[#allocation2] sm:$0x1]  ;;  %v3392_v50 = vld [vmem:[#allocation3 + $0x2ac] sm:$0xff] }
  0x4f   :  { %6821 = vst [vmem:[#allocation55_spill] sm:$0xff] %v3384_v49  ;;  %6823 = vst [vmem:[#allocation57_spill] sm:$0xff] %v3392_v50  ;;  %v3400_v44 = vld [vmem:[#allocation3 + $0x2bc] sm:$0xff]  ;;  %v3416_v47 = vld [vmem:[#allocation3 + $0x270] sm:$0xff] }
  0x50   :  { %1192 = vperm.xlu1 %2958, %v1064_v20   ;;  %1187 = vperm.xlu0 %2957, %v1063_v21   ;;  %v3151_v20 = vld [vmem:[#allocation3 + $0x64] ss:$104 sps:$4 sm:$0xff]   ;;  %v3203_v21 = vld [vmem:[#allocation3 + $0x100] ss:$52 sps:$4 sm:$0xff]   ;;  %6825 = vst [vmem:[#allocation59_spill] sm:$0xff] %v3400_v44  ;;  %6829 = vst [vmem:[#allocation63_spill] sm:$0xff] %v3416_v47 }
  0x51   :  { %v3411_v42 = vld [vmem:[#allocation3 + $0x2a0] ss:$52 sps:$4 sm:$0xff]   ;;  %v3430_v4 = vld [vmem:[#allocation3 + $0x288] sm:$0xff]  ;;  %v3436_v54 = vld [vmem:[#allocation3 + $0x298] sm:$0xff] }
  0x52   :  { %6828 = vst [vmem:[#allocation62_spill] sm:$0xff] %v3411_v42  ;;  %6832 = vst [vmem:[#allocation66_spill] sm:$0xff] %v3430_v4  ;;  %v3440_v44 = vld [vmem:[#allocation3 + $0x30c] sm:$0xff]  ;;  %v3446_v50 = vld [vmem:[#allocation3 + $0x314] sm:$0xff] }
  0x53   :  { %6834 = vst [vmem:[#allocation68_spill] sm:$0xff] %v3436_v54  ;;  %6835 = vst [vmem:[#allocation69_spill] sm:$0xff] %v3440_v44  ;;  %v3448_v48 = vld [vmem:[#allocation3 + $0x31c] sm:$0xff]  ;;  %v3456_v55 = vld [vmem:[#allocation3 + $0x32c] sm:$0xff] }
  0x54   :  { %1202 = vperm.xlu1 %2958, %v1066_v22   ;;  %1197 = vperm.xlu0 %2957, %v1065_v23   ;;  %v1081_v22 = vld [vmem:[#allocation6 + $0x120] sm:$0xff]  ;;  %6836 = vst [vmem:[#allocation70_spill] sm:$0xff] %v3446_v50  ;;  %6837 = vst [vmem:[#allocation71_spill] sm:$0xff] %v3448_v48  ;;  %v3470_v4 = vld [vmem:[#allocation3 + $0x2d8] sm:$0xff] }
  0x55   :  { %v3200_v23 = vld [vmem:[#allocation3 + $0x12c] sm:$0xff]  ;;  %6839 = vst [vmem:[#allocation73_spill] sm:$0xff] %v3456_v55  ;;  %6842 = vst [vmem:[#allocation76_spill] sm:$0xff] %v3470_v4  ;;  %v3486_v44 = vld [vmem:[#allocation3 + $0x2f8] sm:$0xff] }
  0x56   :  { %v3478_v42 = vld [vmem:[#allocation3 + $0x2e8] sm:$0xff]  ;;  %6846 = vst [vmem:[#allocation80_spill] sm:$0xff] %v3486_v44  ;;  %v3494_v48 = vld [vmem:[#allocation3 + $0x374] sm:$0xff]  ;;  %v3496_v49 = vld [vmem:[#allocation3 + $0x37c] sm:$0xff] }
  0x57   :  { %6844 = vst [vmem:[#allocation78_spill] sm:$0xff] %v3478_v42  ;;  %6848 = vst [vmem:[#allocation82_spill] sm:$0xff] %v3494_v48  ;;  %v3502_v55 = vld [vmem:[#allocation3 + $0x384] sm:$0xff]  ;;  %v3504_v54 = vld [vmem:[#allocation3 + $0x38c] sm:$0xff] }
  0x58   :  { %1212 = vperm.xlu1 %2958, %v1068_v24   ;;  %1207 = vperm.xlu0 %2957, %v1067_v25   ;;  %v3174_v25 = vld [vmem:[#allocation3 + $0x54] sm:$0xff]  ;;  %v1089_v24 = vld [vmem:[#allocation6 + $0x160] sm:$0xff]  ;;  %6849 = vst [vmem:[#allocation83_spill] sm:$0xff] %v3496_v49  ;;  %6850 = vst [vmem:[#allocation84_spill] sm:$0xff] %v3502_v55 }
  0x59   :  { %6851 = vst [vmem:[#allocation85_spill] sm:$0xff] %v3504_v54  ;;  %v3510_v4 = vld [vmem:[#allocation3 + $0x394] sm:$0xff]  ;;  %v3512_v47 = vld [vmem:[#allocation3 + $0x39c] sm:$0xff]  ;;  %v3515_v50 = vld [vmem:[#allocation3 + $0x370] ss:$52 sps:$4 sm:$0xff]  }
  0x5a   :  { %6852 = vst [vmem:[#allocation86_spill] sm:$0xff] %v3510_v4  ;;  %6853 = vst [vmem:[#allocation87_spill] sm:$0xff] %v3512_v47  ;;  %v3520_v42 = vld [vmem:[#allocation3 + $0x340] sm:$0xff]  ;;  %v3526_v44 = vld [vmem:[#allocation3 + $0x348] sm:$0xff] }
  0x5b   :  { %6854 = vst [vmem:[#allocation88_spill] sm:$0xff] %v3515_v50  ;;  %6855 = vst [vmem:[#allocation89_spill] sm:$0xff] %v3520_v42  ;;  %v3544_v54 = vld [vmem:[#allocation3 + $0x3dc] sm:$0xff]  ;;  %v3550_v49 = vld [vmem:[#allocation3 + $0x3e4] sm:$0xff] }
  0x5c   :  { %1222 = vperm.xlu1 %2958, %v1070_v26   ;;  %1217 = vperm.xlu0 %2957, %v1069_v27   ;;  %v3158_v27 = vld [vmem:[#allocation3 + $0x34] sm:$0xff]  ;;  %6856 = vst [vmem:[#allocation90_spill] sm:$0xff] %v3526_v44  ;;  %6861 = vst [vmem:[#allocation95_spill] sm:$0xff] %v3544_v54  ;;  %v3590_v54 = vld [vmem:[#allocation3 + $0x3c8] sm:$0xff] }
  0x5d   :  { %v1083_v26 = vld [vmem:[#allocation6 + $0x130] sm:$0xff]  ;;  %6862 = vst [vmem:[#allocation96_spill] sm:$0xff] %v3550_v49  ;;  %6872 = vst [vmem:[#allocation106_spill] sm:$0xff] %v3590_v54  ;;  %v3592_v4 = vld [vmem:[#allocation3 + $0x3d0] sm:$0xff]  ;;  %v6880_v49 = vunpack.c.l.bf16 %v3091_v37 }
  0x5e   :  { %v3558_v47 = vld [vmem:[#allocation3 + $0x3f4] sm:$0xff]  ;;  %6873 = vst [vmem:[#allocation107_spill] sm:$0xff] %v3592_v4  ;;  %v3608_v48 = vld [vmem:[#allocation3 + $0x44c] sm:$0xff]  ;;  %v6878_v4 = vunpack.c.l.bf16 %v3089_v35 }
  0x5f   :  { %6864 = vst [vmem:[#allocation98_spill] sm:$0xff] %v3558_v47  ;;  %v3567_v44 = vld [vmem:[#allocation3 + $0x3d8] ss:$52 sps:$4 sm:$0xff]   ;;  %6875 = vst [vmem:[#allocation109_spill] sm:$0xff] %v3608_v48  ;;  %v6887_v48 = vunpack.c.h.bf16 %v3097_v41 }
  0x60   :  { %1232 = vperm.xlu1 %2958, %v1072_v28   ;;  %1227 = vperm.xlu0 %2957, %v1071_v29   ;;  %v3160_v28 = vld [vmem:[#allocation3 + $0x3c] sm:$0xff]  ;;  %6867 = vst [vmem:[#allocation101_spill] sm:$0xff] %v3567_v44  ;;  %v6889_v44 = vunpack.c.l.bf16 %v3102_v45 }
  0x61   :  { %v3176_v29 = vld [vmem:[#allocation3 + $0x5c] sm:$0xff] }
  0x62   :  { %v3582_v50 = vld [vmem:[#allocation3 + $0x3b8] sm:$0xff] }
  0x63   :  { %6870 = vst [vmem:[#allocation104_spill] sm:$0xff] %v3582_v50 }
  0x64   :  { %1242 = vperm.xlu1 %2958, %v1074_v30   ;;  %1237 = vperm.xlu0 %2957, %v1073_v31   ;;  %v1084_v31 = vld [vmem:[#allocation6 + $0x138] sm:$0xff] }
  0x65   :  { %v3192_v30 = vld [vmem:[#allocation3 + $0x11c] sm:$0xff] }
  0x68   :  { %1252 = vperm.xlu1 %2958, %v1076_v32   ;;  %1247 = vperm.xlu0 %2957, %v1075_v33   ;;  %v3166_v33 = vld [vmem:[#allocation3 + $0x44] sm:$0xff]  ;;  %v3190_v32 = vld [vmem:[#allocation3 + $0x114] sm:$0xff] }
  0x6c   :  { %1262 = vperm.xlu1 %2958, %v1078_v36   ;;  %1257 = vperm.xlu0 %2957, %v1077_v39   ;;  %v3168_v36 = vld [vmem:[#allocation3 + $0x4c] sm:$0xff] }
  0x6d   :  { %v3224_v39 = vld [vmem:[#allocation3 + $0xf0] sm:$0xff] }
  0x6e   :  { %6781 = vst [vmem:[#allocation15_spill] sm:$0xff] %v3224_v39 }
  0x70   :  { %1272 = vperm.xlu1 %2958, %v1080_v46   ;;  %1267 = vperm.xlu0 %2957, %v1079_v60   ;;  %v3182_v46 = vld [vmem:[#allocation3 + $0x104] sm:$0xff]  ;;  %v3184_v60 = vld [vmem:[#allocation3 + $0x10c] sm:$0xff] }
  0x74   :  { %1282 = vperm.xlu1 %2958, %v1082_v15   ;;  %1277 = vperm.xlu0 %2957, %v1081_v22   ;;  %v3216_v22 = vld [vmem:[#allocation3 + $0xe0] sm:$0xff] }
  0x75   :  { %6779 = vst [vmem:[#allocation13_spill] sm:$0xff] %v3216_v22  ;;  %v1088_v15 = vld [vmem:[#allocation6 + $0x158] sm:$0xff] }
  0x78   :  { %1292 = vperm.xlu1 %2958, %v1084_v31   ;;  %1287 = vperm.xlu0 %2957, %v1083_v26   ;;  %v3246_v31 = vld [vmem:[#allocation3 + $0x184] sm:$0xff]  ;;  %v3288_v26 = vld [vmem:[#allocation3 + $0x1dc] sm:$0xff] }
  0x79   :  { %6786 = vst [vmem:[#allocation20_spill] sm:$0xff] %v3246_v31  ;;  %6797 = vst [vmem:[#allocation31_spill] sm:$0xff] %v3288_v26  ;;  %v3359_v26 = vld [vmem:[#allocation3 + $0x238] ss:$52 sps:$4 sm:$0xff]  }
  0x7a   :  { %6815 = vst [vmem:[#allocation49_spill] sm:$0xff] %v3359_v26 }
  0x7c   :  { %1302 = vperm.xlu1 %2958, %v1086_v18   ;;  %1297 = vperm.xlu0 %2957, %v1085_v12   ;;  %v3253_v18 = vld [vmem:[#allocation3 + $0x194] sm:$0xff] }
  0x7d   :  { %6788 = vst [vmem:[#allocation22_spill] sm:$0xff] %v3253_v18  ;;  %v3278_v12 = vld [vmem:[#allocation3 + $0x158] sm:$0xff]  ;;  %v3294_v18 = vld [vmem:[#allocation3 + $0x1e4] sm:$0xff] }
  0x7e   :  { %6794 = vst [vmem:[#allocation28_spill] sm:$0xff] %v3278_v12  ;;  %6798 = vst [vmem:[#allocation32_spill] sm:$0xff] %v3294_v18  ;;  %v3332_v12 = vld [vmem:[#allocation3 + $0x1c8] sm:$0xff] }
  0x7f   :  { %6808 = vst [vmem:[#allocation42_spill] sm:$0xff] %v3332_v12  ;;  %v1093_v18 = vld [vmem:[#allocation6 + $0x180] sm:$0xff] }
  0x80   :  { %1312 = vperm.xlu1 %2958, %v1088_v15   ;;  %1307 = vperm.xlu0 %2957, %v1087_v1   ;;  %v1094_v15 = vld [vmem:[#allocation6 + $0x188] sm:$0xff]  ;;  %v3352_v1 = vld [vmem:[#allocation3 + $0x25c] sm:$0xff]  ;;  %v3390_v12 = vld [vmem:[#allocation3 + $0x2a4] sm:$0xff] }
  0x81   :  { %6813 = vst [vmem:[#allocation47_spill] sm:$0xff] %v3352_v1  ;;  %6822 = vst [vmem:[#allocation56_spill] sm:$0xff] %v3390_v12  ;;  %v3398_v1 = vld [vmem:[#allocation3 + $0x2b4] sm:$0xff]  ;;  %v3560_v12 = vld [vmem:[#allocation3 + $0x3fc] sm:$0xff] }
  0x82   :  { %6824 = vst [vmem:[#allocation58_spill] sm:$0xff] %v3398_v1  ;;  %v3536_v1 = vld [vmem:[#allocation3 + $0x360] sm:$0xff]  ;;  %6865 = vst [vmem:[#allocation99_spill] sm:$0xff] %v3560_v12 }
  0x83   :  { %6859 = vst [vmem:[#allocation93_spill] sm:$0xff] %v3536_v1  ;;  %v6879_v1 = vunpack.c.h.bf16 %v3089_v35  ;;  %v6884_v35 = vunpack.c.l.bf16 %v3095_v40 }
  0x84   :  { %1322 = vperm.xlu1 %2958, %v1090_v56   ;;  %1317 = vperm.xlu0 %2957, %v1089_v24   ;;  %v3342_v24 = vld [vmem:[#allocation3 + $0x244] sm:$0xff] }
  0x85   :  { %6810 = vst [vmem:[#allocation44_spill] sm:$0xff] %v3342_v24  ;;  %v3382_v56 = vld [vmem:[#allocation3 + $0x228] sm:$0xff]  ;;  %v3424_v24 = vld [vmem:[#allocation3 + $0x280] sm:$0xff] }
  0x86   :  { %6820 = vst [vmem:[#allocation54_spill] sm:$0xff] %v3382_v56  ;;  %v3422_v56 = vld [vmem:[#allocation3 + $0x278] sm:$0xff]  ;;  %6831 = vst [vmem:[#allocation65_spill] sm:$0xff] %v3424_v24 }
  0x87   :  { %6830 = vst [vmem:[#allocation64_spill] sm:$0xff] %v3422_v56  ;;  %v3461_v24 = vld [vmem:[#allocation3 + $0x334] sm:$0xff]  ;;  %v3463_v56 = vld [vmem:[#allocation3 + $0x308] ss:$52 sps:$4 sm:$0xff]  }
  0x88   :  { %1332 = vperm.xlu1 %2958, %v1092_v43   ;;  %1327 = vperm.xlu0 %2957, %v1091_v61   ;;  %v3376_v61 = vld [vmem:[#allocation3 + $0x220] sm:$0xff]  ;;  %v3432_v43 = vld [vmem:[#allocation3 + $0x290] sm:$0xff]  ;;  %6840 = vst [vmem:[#allocation74_spill] sm:$0xff] %v3461_v24  ;;  %6841 = vst [vmem:[#allocation75_spill] sm:$0xff] %v3463_v56 }
  0x89   :  { %6819 = vst [vmem:[#allocation53_spill] sm:$0xff] %v3376_v61  ;;  %6833 = vst [vmem:[#allocation67_spill] sm:$0xff] %v3432_v43  ;;  %v3480_v61 = vld [vmem:[#allocation3 + $0x2f0] sm:$0xff]  ;;  %v3534_v56 = vld [vmem:[#allocation3 + $0x358] sm:$0xff] }
  0x8a   :  { %6845 = vst [vmem:[#allocation79_spill] sm:$0xff] %v3480_v61  ;;  %v3528_v43 = vld [vmem:[#allocation3 + $0x350] sm:$0xff]  ;;  %6858 = vst [vmem:[#allocation92_spill] sm:$0xff] %v3534_v56  ;;  %v3574_v56 = vld [vmem:[#allocation3 + $0x3a8] sm:$0xff] }
  0x8b   :  { %6857 = vst [vmem:[#allocation91_spill] sm:$0xff] %v3528_v43  ;;  %v3565_v43 = vld [vmem:[#allocation3 + $0x404] sm:$0xff]  ;;  %6868 = vst [vmem:[#allocation102_spill] sm:$0xff] %v3574_v56  ;;  %v3576_v61 = vld [vmem:[#allocation3 + $0x3b0] sm:$0xff] }
  0x8c   :  { %1342 = vperm.xlu1 %2958, %v1094_v15   ;;  %1337 = vperm.xlu0 %2957, %v1093_v18   ;;  %v3406_v15 = vld [vmem:[#allocation3 + $0x2c4] sm:$0xff]  ;;  %v3408_v18 = vld [vmem:[#allocation3 + $0x2cc] sm:$0xff]  ;;  %6866 = vst [vmem:[#allocation100_spill] sm:$0xff] %v3565_v43  ;;  %6869 = vst [vmem:[#allocation103_spill] sm:$0xff] %v3576_v61  ;;  %v6876_v43 = vunpack.c.l.bf16 %v3087_v34 }
  0x8d   :  { %6826 = vst [vmem:[#allocation60_spill] sm:$0xff] %v3406_v15  ;;  %6827 = vst [vmem:[#allocation61_spill] sm:$0xff] %v3408_v18  ;;  %v3454_v18 = vld [vmem:[#allocation3 + $0x324] sm:$0xff] }
  0x8e   :  { %6838 = vst [vmem:[#allocation72_spill] sm:$0xff] %v3454_v18  ;;  %v3488_v15 = vld [vmem:[#allocation3 + $0x300] sm:$0xff]  ;;  %v3552_v18 = vld [vmem:[#allocation3 + $0x3ec] sm:$0xff] }
  0x8f   :  { %6847 = vst [vmem:[#allocation81_spill] sm:$0xff] %v3488_v15  ;;  %6863 = vst [vmem:[#allocation97_spill] sm:$0xff] %v3552_v18  ;;  %v3584_v24 = vld [vmem:[#allocation3 + $0x3c0] sm:$0xff]  ;;  %v6885_v15 = vunpack.c.h.bf16 %v3095_v40  ;;  %v6891_v40 = vunpack.c.l.bf16 %v3108_v51 }
  0x90   :  { %2764 = vperm.xlu0 %2957, %v2761_v62   ;;  %v3472_v62 = vld [vmem:[#allocation3 + $0x2e0] sm:$0xff]  ;;  %6871 = vst [vmem:[#allocation105_spill] sm:$0xff] %v3584_v24 }
  0x91   :  { %6843 = vst [vmem:[#allocation77_spill] sm:$0xff] %v3472_v62  ;;  %v3540_v62 = vld [vmem:[#allocation3 + $0x368] sm:$0xff] }
  0x92   :  { %6860 = vst [vmem:[#allocation94_spill] sm:$0xff] %v3540_v62  ;;  %v3606_v56 = vld [vmem:[#allocation3 + $0x444] sm:$0xff]  ;;  %v6877_v62 = vunpack.c.h.bf16 %v3087_v34 }
  0x93   :  { %6874 = vst [vmem:[#allocation108_spill] sm:$0xff] %v3606_v56 }
  0xab   :  { %v1108_v47 = vpop.permute.xlu1 %1107  ;;  %v1098_v24 = vpop.permute.xlu0 %1097 }
  0xac   :  { %v3616_v12 = vmul.f32 %v1108_v47, %v6876_v43  ;;  %v3620_v55 = vmul.f32 %v1108_v47, %v6877_v62  ;;  %v3624_v54 = vmul.f32 %v1108_v47, %v6878_v4  ;;  %v3629_v42 = vmul.f32 %v1108_v47, %v6879_v1 }
  0xad   :  { %v3633_v56 = vmul.f32 %v1108_v47, %v6880_v49  ;;  %v6881_v43 = vunpack.c.h.bf16 %v3091_v37  ;;  %v6882_v62 = vunpack.c.l.bf16 %v3093_v38  ;;  %v6883_v4 = vunpack.c.h.bf16 %v3093_v38 }
  0xae   :  { %v3649_v1 = vmul.f32 %v1108_v47, %v6884_v35  ;;  %v3653_v49 = vmul.f32 %v1108_v47, %v6885_v15  ;;  %v6886_v37 = vunpack.c.l.bf16 %v3097_v41  ;;  %v6888_v38 = vunpack.c.h.bf16 %v3112_v53 }
  0xaf   :  { %v3637_v34 = vmul.f32 %v1108_v47, %v6881_v43  ;;  %v3641_v50 = vmul.f32 %v1108_v47, %v6882_v62  ;;  %v3645_v61 = vmul.f32 %v1108_v47, %v6883_v4  ;;  %v3661_v62 = vmul.f32 %v1108_v47, %v6887_v48  ;;  %v1113_v10 = vpop.permute.xlu1 %1112 }
  0xb0   :  { %v3657_v43 = vmul.f32 %v1108_v47, %v6886_v37  ;;  %v1383_v4 = vmul.f32 %v1108_v47, %v6888_v38  ;;  %v1345_v18 = vmul.f32 %v1098_v24, %v6889_v44  ;;  %v6890_v35 = vunpack.c.h.bf16 %v3102_v45 }
  0xb1   :  { %v1347_v15 = vmul.f32 %v1098_v24, %v6891_v40  ;;  %v1348_v37 = vmul.f32 %v1098_v24, %v6892_v57  ;;  %v1349_v41 = vmul.f32 %v1098_v24, %v6893_v6  ;;  %v6894_v48 = vunpack.c.h.bf16 %v3110_v52 }
  0xb2   :  { %v1346_v26 = vmul.f32 %v1098_v24, %v6890_v35  ;;  %v3678_v47 = vsel %vm2655_vm0, %v1383_v4, 0.0  ;;  %v6895_v44 = vunpack.c.l.bf16 %v3118_v58  ;;  %v6896_v38 = vunpack.c.h.bf16 %v3118_v58 }
  0xb3   :  { %v1350_v31 = vmul.f32 %v1098_v24, %v6894_v48  ;;  %v6897_v40 = vunpack.c.l.bf16 %v3120_v59  ;;  %v6898_v57 = vunpack.c.h.bf16 %v3120_v59  ;;  %v6899_v6 = vunpack.c.l.bf16 %v3124_v63 }
  0xb4   :  { %v1351_v45 = vmul.f32 %v1098_v24, %v6895_v44  ;;  %v1352_v35 = vmul.f32 %v1098_v24, %v6896_v38  ;;  %v6900_v48 = vunpack.c.h.bf16 %v3124_v63  ;;  %v6901_v4 = vunpack.c.l.bf16 %v3112_v53  ;;  %v1103_v63 = vpop.permute.xlu0 %1102 }
  0xb5   :  { %v1353_v51 = vmul.f32 %v1098_v24, %v6897_v40  ;;  %v1354_v0 = vmul.f32 %v1098_v24, %v6898_v57  ;;  %v1355_v52 = vmul.f32 %v1098_v24, %v6899_v6  ;;  %v6902_v44 = vunpack.c.l.bf16 %v3128_v2 }
  0xb6   :  { %v1356_v3 = vmul.f32 %v1098_v24, %v6900_v48  ;;  %v1357_v5 = vmul.f32 %v1098_v24, %v6901_v4  ;;  %v6904_v58 = vunpack.c.h.bf16 %v3128_v2  ;;  %v6906_v59 = vunpack.c.l.bf16 %v3134_v7 }
  0xb7   :  { %v3696_v39 = vmul.f32 %v1113_v10, %v6902_v44  ;;  %v6908_v57 = vunpack.c.h.bf16 %v3134_v7  ;;  %v6910_v24 = vunpack.c.l.bf16 %v3136_v8  ;;  %v6912_v4 = vunpack.c.h.bf16 %v3136_v8 }
  0xb8   :  { %v3700_v38 = vmul.f32 %v1113_v10, %v6904_v58  ;;  %v3704_v40 = vmul.f32 %v1113_v10, %v6906_v59  ;;  %v2656_v53 = vsel %vm2655_vm0, %v1357_v5, 0.0  ;;  %v6914_v44 = vunpack.c.l.bf16 %v3142_v13 }
  0xb9   :  { %6903 = vst [vmem:[#allocation110_spill] sm:$0xff] %v3696_v39  ;;  %v3708_v6 = vmul.f32 %v1113_v10, %v6908_v57  ;;  %v3713_v48 = vmul.f32 %v1113_v10, %v6910_v24  ;;  %v3717_v2 = vmul.f32 %v1113_v10, %v6912_v4  ;;  %v6916_v59 = vunpack.c.h.bf16 %v3142_v13 }
  0xba   :  { %6905 = vst [vmem:[#allocation111_spill] sm:$0xff] %v3700_v38  ;;  %6907 = vst [vmem:[#allocation112_spill] sm:$0xff] %v3704_v40  ;;  %v3721_v58 = vmul.f32 %v1113_v10, %v6914_v44  ;;  %v6918_v57 = vunpack.c.l.bf16 %v3144_v14  ;;  %v6920_v5 = vunpack.c.h.bf16 %v3144_v14  ;;  %v6922_v8 = vunpack.c.l.bf16 %v3149_v19 }
  0xbb   :  { %6909 = vst [vmem:[#allocation113_spill] sm:$0xff] %v3708_v6  ;;  %6911 = vst [vmem:[#allocation114_spill] sm:$0xff] %v3713_v48  ;;  %v3725_v7 = vmul.f32 %v1113_v10, %v6916_v59  ;;  %v6926_v59 = vunpack.c.h.bf16 %v3158_v27  ;;  %v6928_v14 = vunpack.c.h.bf16 %v3160_v28 }
  0xbc   :  { %6913 = vst [vmem:[#allocation115_spill] sm:$0xff] %v3717_v2  ;;  %6915 = vst [vmem:[#allocation116_spill] sm:$0xff] %v3721_v58  ;;  %v3729_v6 = vmul.f32 %v1113_v10, %v6918_v57  ;;  %v3733_v24 = vmul.f32 %v1113_v10, %v6920_v5  ;;  %v3737_v4 = vmul.f32 %v1113_v10, %v6922_v8  ;;  %v6924_v2 = vunpack.c.h.bf16 %v3151_v20 }
  0xbd   :  { %6917 = vst [vmem:[#allocation117_spill] sm:$0xff] %v3725_v7  ;;  %v6925_v58 = vunpack.c.l.bf16 %v3158_v27  ;;  %v1359_v7 = vmul.f32 %v1103_v63, %v6926_v59  ;;  %v6927_v57 = vunpack.c.l.bf16 %v3160_v28  ;;  %v1361_v5 = vmul.f32 %v1103_v63, %v6928_v14 }
  0xbe   :  { %6919 = vst [vmem:[#allocation118_spill] sm:$0xff] %v3729_v6  ;;  %6921 = vst [vmem:[#allocation119_spill] sm:$0xff] %v3733_v24  ;;  %v1396_v44 = vmul.f32 %v1113_v10, %v6924_v2  ;;  %v6929_v24 = vunpack.c.l.bf16 %v3166_v33  ;;  %v6930_v8 = vunpack.c.h.bf16 %v3166_v33  ;;  %v6931_v2 = vunpack.c.l.bf16 %v3168_v36 }
  0xbf   :  { %6923 = vst [vmem:[#allocation120_spill] sm:$0xff] %v3737_v4  ;;  %v1358_v13 = vmul.f32 %v1103_v63, %v6925_v58  ;;  %v1360_v6 = vmul.f32 %v1103_v63, %v6927_v57  ;;  %v6932_v58 = vunpack.c.h.bf16 %v3149_v19  ;;  %v6934_v27 = vunpack.c.h.bf16 %v3168_v36 }
  0xc0   :  { %v1362_v48 = vmul.f32 %v1103_v63, %v6929_v24  ;;  %v1363_v4 = vmul.f32 %v1103_v63, %v6930_v8  ;;  %v1364_v40 = vmul.f32 %v1103_v63, %v6931_v2  ;;  %v6935_v57 = vunpack.c.l.bf16 %v3174_v25 }
  0xc1   :  { %v3757_v38 = vmul.f32 %v1113_v10, %v6932_v58  ;;  %v1365_v59 = vmul.f32 %v1103_v63, %v6934_v27  ;;  %v6936_v14 = vunpack.c.h.bf16 %v3174_v25  ;;  %v6937_v24 = vunpack.c.l.bf16 %v3176_v29 }
  0xc2   :  { %v1366_v28 = vmul.f32 %v1103_v63, %v6935_v57  ;;  %v6938_v8 = vunpack.c.h.bf16 %v3176_v29  ;;  %v6939_v2 = vunpack.c.l.bf16 %v3151_v20  ;;  %v1995_v10 = vadd.f32 %v1358_v13, %v1345_v18 }
  0xc3   :  { %6933 = vst [vmem:[#allocation121_spill] sm:$0xff] %v3757_v38  ;;  %v1367_v39 = vmul.f32 %v1103_v63, %v6936_v14  ;;  %v1368_v33 = vmul.f32 %v1103_v63, %v6937_v24  ;;  %v2050_v58 = vadd.f32 %v1359_v7, %v1346_v26  ;;  %v2105_v38 = vadd.f32 %v1360_v6, %v1347_v15 }
  0xc4   :  { %v1369_v17 = vmul.f32 %v1103_v63, %v6938_v8  ;;  %v1370_v19 = vmul.f32 %v1103_v63, %v6939_v2  ;;  %v2160_v36 = vadd.f32 %v1361_v5, %v1348_v37  ;;  %v2215_v27 = vadd.f32 %v1362_v48, %v1349_v41  ;;  %v1123_v63 = vpop.permute.xlu1 %1122 }
  0xc5   :  { %v3772_v22 = vsel %vm2655_vm0, %v1396_v44, 0.0  ;;  %v2270_v57 = vadd.f32 %v1363_v4, %v1350_v31  ;;  %v2325_v25 = vadd.f32 %v1364_v40, %v1351_v45  ;;  %v2380_v14 = vadd.f32 %v1365_v59, %v1352_v35 }
  0xc6   :  { %v1996_v9 = vadd.f32 %v1995_v10, %v3616_v12  ;;  %v2051_v24 = vadd.f32 %v2050_v58, %v3620_v55  ;;  %v2106_v29 = vadd.f32 %v2105_v38, %v3624_v54  ;;  %v2161_v20 = vadd.f32 %v2160_v36, %v3629_v42 }
  0xc7   :  { %v2216_v26 = vadd.f32 %v2215_v27, %v3633_v56  ;;  %v2271_v18 = vadd.f32 %v2270_v57, %v3637_v34  ;;  %v2326_v15 = vadd.f32 %v2325_v25, %v3641_v50  ;;  %v2435_v37 = vadd.f32 %v1366_v28, %v1353_v51 }
  0xc8   :  { %v2490_v41 = vadd.f32 %v1367_v39, %v1354_v0  ;;  %v2545_v31 = vadd.f32 %v1368_v33, %v1355_v52  ;;  %v2600_v45 = vadd.f32 %v1369_v17, %v1356_v3  ;;  %v2657_v35 = vsel %vm2655_vm0, %v1370_v19, 0.0 }
  0xc9   :  { %v2381_v12 = vadd.f32 %v2380_v14, %v3645_v61  ;;  %v2436_v55 = vadd.f32 %v2435_v37, %v3649_v1  ;;  %v2658_v54 = vadd.f32 %v2657_v35, %v2656_v53  ;;  %v6940_v42 = vunpack.c.l.bf16 %v3182_v46  ;;  %v6961_v37 = vld [vmem:[#allocation14_spill] sm:$0xff]  ;;  %v6964_v35 = vld [vmem:[#allocation15_spill] sm:$0xff] }
  0xca   :  { %v2491_v56 = vadd.f32 %v2490_v41, %v3653_v49  ;;  %v2546_v34 = vadd.f32 %v2545_v31, %v3657_v43  ;;  %v2601_v50 = vadd.f32 %v2600_v45, %v3661_v62  ;;  %v6941_v0 = vunpack.c.h.bf16 %v3182_v46  ;;  %v1118_v43 = vpop.permute.xlu0 %1117 }
  0xcb   :  { %v3786_v38 = vmul.f32 %v1123_v63, %v6940_v42  ;;  %v2660_v17 = vadd.f32 %v3678_v47, %v2658_v54  ;;  %v6942_v39 = vunpack.c.l.bf16 %v3184_v60  ;;  %v6943_v1 = vunpack.c.h.bf16 %v3184_v60 }
  0xcc   :  { %v3793_v3 = vmul.f32 %v1123_v63, %v6941_v0  ;;  %v6944_v49 = vunpack.c.l.bf16 %v3190_v32  ;;  %v6945_v62 = vunpack.c.h.bf16 %v3190_v32  ;;  %v6946_v40 = vunpack.c.l.bf16 %v3192_v30 }
  0xcd   :  { %v3798_v61 = vmul.f32 %v1123_v63, %v6942_v39  ;;  %v3802_v51 = vmul.f32 %v1123_v63, %v6943_v1  ;;  %v6947_v6 = vunpack.c.h.bf16 %v3192_v30  ;;  %v6948_v60 = vunpack.c.l.bf16 %v3198_v16  ;;  %v6967_v1 = vld [vmem:[#allocation16_spill] sm:$0xff] }
  0xce   :  { %v3806_v52 = vmul.f32 %v1123_v63, %v6944_v49  ;;  %v3810_v46 = vmul.f32 %v1123_v63, %v6945_v62  ;;  %v3814_v47 = vmul.f32 %v1123_v63, %v6946_v40  ;;  %v6949_v7 = vunpack.c.h.bf16 %v3198_v16  ;;  %v6955_v16 = vld [vmem:[#allocation12_spill] sm:$0xff] }
  0xcf   :  { %v3818_v53 = vmul.f32 %v1123_v63, %v6947_v6  ;;  %v3822_v48 = vmul.f32 %v1123_v63, %v6948_v60  ;;  %v6950_v32 = vunpack.c.l.bf16 %v3200_v23  ;;  %v6951_v13 = vunpack.c.h.bf16 %v3200_v23  ;;  %v6958_v23 = vld [vmem:[#allocation13_spill] sm:$0xff]  ;;  %v6970_v60 = vld [vmem:[#allocation110_spill] sm:$0xff] }
  0xd0   :  { %v3826_v4 = vmul.f32 %v1123_v63, %v6949_v7  ;;  %v6952_v30 = vunpack.c.h.bf16 %v3203_v21  ;;  %v6953_v28 = vunpack.c.l.bf16 %v3208_v11  ;;  %v6954_v8 = vunpack.c.h.bf16 %v3208_v11 }
  0xd1   :  { %v3830_v44 = vmul.f32 %v1123_v63, %v6950_v32  ;;  %v3834_v5 = vmul.f32 %v1123_v63, %v6951_v13  ;;  %v6956_v19 = vunpack.c.l.bf16 %v6955_v16  ;;  %v6957_v58 = vunpack.c.h.bf16 %v6955_v16  ;;  %v6971_v32 = vld [vmem:[#allocation111_spill] sm:$0xff]  ;;  %v6974_v16 = vld [vmem:[#allocation114_spill] sm:$0xff] }
  0xd2   :  { %v1422_v59 = vmul.f32 %v1123_v63, %v6952_v30  ;;  %v1397_v33 = vmul.f32 %v1118_v43, %v6953_v28  ;;  %v1398_v2 = vmul.f32 %v1118_v43, %v6954_v8  ;;  %v6959_v57 = vunpack.c.l.bf16 %v6958_v23  ;;  %v6972_v30 = vld [vmem:[#allocation112_spill] sm:$0xff]  ;;  %v6973_v28 = vld [vmem:[#allocation113_spill] sm:$0xff] }
  0xd3   :  { %v1399_v10 = vmul.f32 %v1118_v43, %v6956_v19  ;;  %v1400_v36 = vmul.f32 %v1118_v43, %v6957_v58  ;;  %v6960_v14 = vunpack.c.h.bf16 %v6958_v23  ;;  %v6962_v41 = vunpack.c.l.bf16 %v6961_v37  ;;  %v6975_v58 = vld [vmem:[#allocation115_spill] sm:$0xff] }
  0xd4   :  { %v3847_v27 = vsel %vm2655_vm0, %v1422_v59, 0.0  ;;  %v1401_v25 = vmul.f32 %v1118_v43, %v6959_v57  ;;  %v6963_v11 = vunpack.c.h.bf16 %v6961_v37  ;;  %v6965_v54 = vunpack.c.l.bf16 %v6964_v35  ;;  %v6976_v57 = vld [vmem:[#allocation116_spill] sm:$0xff] }
  0xd5   :  { %v1402_v63 = vmul.f32 %v1118_v43, %v6960_v14  ;;  %v1403_v31 = vmul.f32 %v1118_v43, %v6962_v41  ;;  %v6966_v0 = vunpack.c.h.bf16 %v6964_v35  ;;  %v6968_v49 = vunpack.c.l.bf16 %v6967_v1  ;;  %v6978_v35 = vld [vmem:[#allocation117_spill] sm:$0xff] }
  0xd6   :  { %v1404_v45 = vmul.f32 %v1118_v43, %v6963_v11  ;;  %v1405_v42 = vmul.f32 %v1118_v43, %v6965_v54  ;;  %v6969_v40 = vunpack.c.l.bf16 %v3203_v21  ;;  %v1997_v7 = vadd.f32 %v1996_v9, %v6970_v60 }
  0xd7   :  { %v1406_v39 = vmul.f32 %v1118_v43, %v6966_v0  ;;  %v1407_v62 = vmul.f32 %v1118_v43, %v6968_v49  ;;  %v2052_v13 = vadd.f32 %v2051_v24, %v6971_v32  ;;  %v2107_v59 = vadd.f32 %v2106_v29, %v6972_v30  ;;  %v1133_v29 = vpop.permute.xlu1 %1132 }
  0xd8   :  { %v1409_v6 = vmul.f32 %v1118_v43, %v6969_v40  ;;  %v2162_v8 = vadd.f32 %v2161_v20, %v6973_v28  ;;  %v2217_v19 = vadd.f32 %v2216_v26, %v6974_v16  ;;  %v2272_v23 = vadd.f32 %v2271_v18, %v6975_v58  ;;  %v6979_v20 = vld [vmem:[#allocation118_spill] sm:$0xff]  ;;  %v6980_v26 = vld [vmem:[#allocation119_spill] sm:$0xff]  ;;  %v6981_v18 = vld [vmem:[#allocation120_spill] sm:$0xff] }
  0xd9   :  { %v2327_v14 = vadd.f32 %v2326_v15, %v6976_v57  ;;  %v6977_v37 = vunpack.c.h.bf16 %v6967_v1  ;;  %v1998_v11 = vadd.f32 %v1997_v7, %v1397_v33  ;;  %v2053_v21 = vadd.f32 %v2052_v13, %v1398_v2  ;;  %v6982_v28 = vld [vmem:[#allocation121_spill] sm:$0xff] }
  0xda   :  { %v2382_v54 = vadd.f32 %v2381_v12, %v6978_v35  ;;  %v2108_v9 = vadd.f32 %v2107_v59, %v1399_v10  ;;  %v2163_v0 = vadd.f32 %v2162_v8, %v1400_v36  ;;  %v2218_v24 = vadd.f32 %v2217_v19, %v1401_v25  ;;  %v6983_v36 = vld [vmem:[#allocation17_spill] sm:$0xff]  ;;  %v6992_v8 = vld [vmem:[#allocation20_spill] sm:$0xff] }
  0xdb   :  { %v1408_v41 = vmul.f32 %v1118_v43, %v6977_v37  ;;  %v2273_v49 = vadd.f32 %v2272_v23, %v1402_v63  ;;  %v2328_v40 = vadd.f32 %v2327_v14, %v1403_v31  ;;  %v2437_v60 = vadd.f32 %v2436_v55, %v6979_v20  ;;  %v6995_v57 = vld [vmem:[#allocation21_spill] sm:$0xff] }
  0xdc   :  { %v2492_v32 = vadd.f32 %v2491_v56, %v6980_v26  ;;  %v2547_v30 = vadd.f32 %v2546_v34, %v6981_v18  ;;  %v2383_v15 = vadd.f32 %v2382_v54, %v1404_v45  ;;  %v2602_v1 = vadd.f32 %v2601_v50, %v6982_v28  ;;  %v6986_v34 = vld [vmem:[#allocation18_spill] sm:$0xff]  ;;  %v7001_v18 = vld [vmem:[#allocation23_spill] sm:$0xff] }
  0xdd   :  { %v2662_v43 = vadd.f32 %v3772_v22, %v2660_v17  ;;  %v2663_v33 = vsel %vm2655_vm0, %v1409_v6, 0.0  ;;  %v2438_v12 = vadd.f32 %v2437_v60, %v1405_v42  ;;  %v6984_v25 = vunpack.c.l.bf16 %v6983_v36  ;;  %v1128_v22 = vpop.permute.xlu0 %1127  ;;  %v6998_v54 = vld [vmem:[#allocation22_spill] sm:$0xff] }
  0xde   :  { %v2493_v2 = vadd.f32 %v2492_v32, %v1406_v39  ;;  %v2548_v10 = vadd.f32 %v2547_v30, %v1407_v62  ;;  %v2603_v31 = vadd.f32 %v2602_v1, %v1408_v41  ;;  %v6985_v56 = vunpack.c.h.bf16 %v6983_v36  ;;  %v6989_v39 = vld [vmem:[#allocation19_spill] sm:$0xff]  ;;  %v7003_v1 = vld [vmem:[#allocation24_spill] sm:$0xff] }
  0xdf   :  { %v3883_v63 = vmul.f32 %v1133_v29, %v6984_v25  ;;  %v2664_v55 = vadd.f32 %v2663_v33, %v2662_v43  ;;  %v6987_v45 = vunpack.c.l.bf16 %v6986_v34  ;;  %v6988_v17 = vunpack.c.h.bf16 %v6986_v34 }
  0xe0   :  { %v3887_v7 = vmul.f32 %v1133_v29, %v6985_v56  ;;  %v6990_v62 = vunpack.c.l.bf16 %v6989_v39  ;;  %v6991_v13 = vunpack.c.h.bf16 %v6989_v39  ;;  %v6993_v16 = vunpack.c.l.bf16 %v6992_v8  ;;  %v7006_v56 = vld [vmem:[#allocation25_spill] sm:$0xff] }
  0xe1   :  { %v3891_v50 = vmul.f32 %v1133_v29, %v6987_v45  ;;  %v3895_v42 = vmul.f32 %v1133_v29, %v6988_v17  ;;  %v6994_v58 = vunpack.c.h.bf16 %v6992_v8  ;;  %v6996_v14 = vunpack.c.l.bf16 %v6995_v57 }
  0xe2   :  { %v3899_v6 = vmul.f32 %v1133_v29, %v6990_v62  ;;  %v3903_v59 = vmul.f32 %v1133_v29, %v6991_v13  ;;  %v3907_v19 = vmul.f32 %v1133_v29, %v6993_v16  ;;  %v6997_v41 = vunpack.c.h.bf16 %v6995_v57  ;;  %v7009_v62 = vld [vmem:[#allocation26_spill] sm:$0xff]  ;;  %v7013_v57 = vld [vmem:[#allocation27_spill] sm:$0xff] }
  0xe3   :  { %v3911_v23 = vmul.f32 %v1133_v29, %v6994_v58  ;;  %v3915_v37 = vmul.f32 %v1133_v29, %v6996_v14  ;;  %v6999_v20 = vunpack.c.l.bf16 %v6998_v54  ;;  %v7000_v26 = vunpack.c.h.bf16 %v6998_v54 }
  0xe4   :  { %v3919_v35 = vmul.f32 %v1133_v29, %v6997_v41  ;;  %v7002_v30 = vunpack.c.h.bf16 %v7001_v18  ;;  %v7004_v43 = vunpack.c.l.bf16 %v7003_v1  ;;  %v7005_v36 = vunpack.c.h.bf16 %v7003_v1 }
  0xe5   :  { %v3923_v60 = vmul.f32 %v1133_v29, %v6999_v20  ;;  %v3927_v32 = vmul.f32 %v1133_v29, %v7000_v26  ;;  %v7007_v34 = vunpack.c.l.bf16 %v7006_v56  ;;  %v7008_v17 = vunpack.c.h.bf16 %v7006_v56  ;;  %v7016_v26 = vld [vmem:[#allocation28_spill] sm:$0xff]  ;;  %v7019_v56 = vld [vmem:[#allocation29_spill] sm:$0xff] }
  0xe6   :  { %v1448_v28 = vmul.f32 %v1133_v29, %v7002_v30  ;;  %v1423_v33 = vmul.f32 %v1128_v22, %v7004_v43  ;;  %v1424_v25 = vmul.f32 %v1128_v22, %v7005_v36  ;;  %v7010_v13 = vunpack.c.l.bf16 %v7009_v62 }
  0xe7   :  { %v1425_v45 = vmul.f32 %v1128_v22, %v7007_v34  ;;  %v1426_v39 = vmul.f32 %v1128_v22, %v7008_v17  ;;  %v7011_v16 = vunpack.c.h.bf16 %v7009_v62  ;;  %v7014_v14 = vunpack.c.l.bf16 %v7013_v57 }
  0xe8   :  { %v1427_v8 = vmul.f32 %v1128_v22, %v7010_v13  ;;  %v3944_v29 = vsel %vm2655_vm0, %v1448_v28, 0.0  ;;  %v7015_v54 = vunpack.c.h.bf16 %v7013_v57  ;;  %v7017_v30 = vunpack.c.l.bf16 %v7016_v26 }
  0xe9   :  { %v1428_v58 = vmul.f32 %v1128_v22, %v7011_v16  ;;  %7012 = vst [vmem:[#allocation12_spill] sm:$0xff] %v3944_v29  ;;  %v1429_v41 = vmul.f32 %v1128_v22, %v7014_v14  ;;  %v7018_v43 = vunpack.c.h.bf16 %v7016_v26  ;;  %v7020_v34 = vunpack.c.l.bf16 %v7019_v56 }
  0xea   :  { %v1430_v20 = vmul.f32 %v1128_v22, %v7015_v54  ;;  %v1431_v1 = vmul.f32 %v1128_v22, %v7017_v30  ;;  %v7021_v62 = vunpack.c.h.bf16 %v7019_v56  ;;  %v1999_v28 = vadd.f32 %v1998_v11, %v3786_v38 }
  0xeb   :  { %v1432_v36 = vmul.f32 %v1128_v22, %v7018_v43  ;;  %v1433_v17 = vmul.f32 %v1128_v22, %v7020_v34  ;;  %v2054_v16 = vadd.f32 %v2053_v21, %v3793_v3  ;;  %v2109_v14 = vadd.f32 %v2108_v9, %v3798_v61  ;;  %v1143_v3 = vpop.permute.xlu1 %1142 }
  0xec   :  { %v1434_v13 = vmul.f32 %v1128_v22, %v7021_v62  ;;  %v2164_v57 = vadd.f32 %v2163_v0, %v3802_v51  ;;  %v2219_v54 = vadd.f32 %v2218_v24, %v3806_v52  ;;  %v7022_v30 = vunpack.c.l.bf16 %v7001_v18 }
  0xed   :  { %v2274_v43 = vadd.f32 %v2273_v49, %v3810_v46  ;;  %v2329_v34 = vadd.f32 %v2328_v40, %v3814_v47  ;;  %v2384_v56 = vadd.f32 %v2383_v15, %v3818_v53  ;;  %v2000_v62 = vadd.f32 %v1999_v28, %v1423_v33  ;;  %v7023_v40 = vld [vmem:[#allocation30_spill] sm:$0xff] }
  0xee   :  { %v1435_v26 = vmul.f32 %v1128_v22, %v7022_v30  ;;  %v2055_v29 = vadd.f32 %v2054_v16, %v1424_v25  ;;  %v2110_v38 = vadd.f32 %v2109_v14, %v1425_v45  ;;  %v2165_v11 = vadd.f32 %v2164_v57, %v1426_v39  ;;  %v1138_v39 = vpop.permute.xlu0 %1137 }
  0xef   :  { %v2220_v21 = vadd.f32 %v2219_v54, %v1427_v8  ;;  %v2275_v61 = vadd.f32 %v2274_v43, %v1428_v58  ;;  %v2330_v9 = vadd.f32 %v2329_v34, %v1429_v41  ;;  %v2439_v51 = vadd.f32 %v2438_v12, %v3822_v48  ;;  %v7026_v12 = vld [vmem:[#allocation31_spill] sm:$0xff]  ;;  %v7032_v41 = vld [vmem:[#allocation33_spill] sm:$0xff] }
  0xf0   :  { %v2494_v52 = vadd.f32 %v2493_v2, %v3826_v4  ;;  %v2549_v0 = vadd.f32 %v2548_v10, %v3830_v44  ;;  %v2604_v46 = vadd.f32 %v2603_v31, %v3834_v5  ;;  %v2666_v47 = vadd.f32 %v3847_v27, %v2664_v55  ;;  %v7029_v31 = vld [vmem:[#allocation32_spill] sm:$0xff]  ;;  %v7038_v54 = vld [vmem:[#allocation35_spill] sm:$0xff] }
  0xf1   :  { %v2385_v24 = vadd.f32 %v2384_v56, %v1430_v20  ;;  %v2440_v53 = vadd.f32 %v2439_v51, %v1431_v1  ;;  %v2667_v49 = vsel %vm2655_vm0, %v1435_v26, 0.0  ;;  %v7024_v15 = vunpack.c.l.bf16 %v7023_v40  ;;  %v7041_v56 = vld [vmem:[#allocation36_spill] sm:$0xff] }
  0xf2   :  { %v2495_v18 = vadd.f32 %v2494_v52, %v1432_v36  ;;  %v2550_v33 = vadd.f32 %v2549_v0, %v1433_v17  ;;  %v2605_v25 = vadd.f32 %v2604_v46, %v1434_v13  ;;  %v7025_v48 = vunpack.c.h.bf16 %v7023_v40  ;;  %v7035_v13 = vld [vmem:[#allocation34_spill] sm:$0xff]  ;;  %v7043_v0 = vld [vmem:[#allocation37_spill] sm:$0xff] }
  0xf3   :  { %v3976_v22 = vmul.f32 %v1143_v3, %v7024_v15  ;;  %v2668_v44 = vadd.f32 %v2667_v49, %v2666_v47  ;;  %v7027_v5 = vunpack.c.l.bf16 %v7026_v12  ;;  %v7028_v27 = vunpack.c.h.bf16 %v7026_v12  ;;  %v7046_v15 = vld [vmem:[#allocation38_spill] sm:$0xff] }
  0xf4   :  { %v3980_v4 = vmul.f32 %v1143_v3, %v7025_v48  ;;  %v7030_v55 = vunpack.c.l.bf16 %v7029_v31  ;;  %v7031_v8 = vunpack.c.h.bf16 %v7029_v31  ;;  %v7033_v20 = vunpack.c.l.bf16 %v7032_v41 }
  0xf5   :  { %v3984_v2 = vmul.f32 %v1143_v3, %v7027_v5  ;;  %v3988_v10 = vmul.f32 %v1143_v3, %v7028_v27  ;;  %v7034_v36 = vunpack.c.h.bf16 %v7032_v41  ;;  %v7036_v28 = vunpack.c.l.bf16 %v7035_v13 }
  0xf6   :  { %v3992_v45 = vmul.f32 %v1143_v3, %v7030_v55  ;;  %v3996_v58 = vmul.f32 %v1143_v3, %v7031_v8  ;;  %v4000_v1 = vmul.f32 %v1143_v3, %v7033_v20  ;;  %v7037_v14 = vunpack.c.h.bf16 %v7035_v13  ;;  %v7049_v55 = vld [vmem:[#allocation39_spill] sm:$0xff] }
  0xf7   :  { %v4004_v17 = vmul.f32 %v1143_v3, %v7034_v36  ;;  %v4008_v16 = vmul.f32 %v1143_v3, %v7036_v28  ;;  %v7039_v30 = vunpack.c.l.bf16 %v7038_v54  ;;  %v7040_v43 = vunpack.c.h.bf16 %v7038_v54  ;;  %v7052_v36 = vld [vmem:[#allocation40_spill] sm:$0xff] }
  0xf8   :  { %v4012_v57 = vmul.f32 %v1143_v3, %v7037_v14  ;;  %v7042_v51 = vunpack.c.h.bf16 %v7041_v56  ;;  %v7044_v46 = vunpack.c.l.bf16 %v7043_v0  ;;  %v7045_v49 = vunpack.c.h.bf16 %v7043_v0 }
  0xf9   :  { %v4016_v26 = vmul.f32 %v1143_v3, %v7039_v30  ;;  %v4020_v34 = vmul.f32 %v1143_v3, %v7040_v43  ;;  %v7047_v48 = vunpack.c.l.bf16 %v7046_v15  ;;  %v7048_v5 = vunpack.c.h.bf16 %v7046_v15  ;;  %v7055_v30 = vld [vmem:[#allocation41_spill] sm:$0xff] }
  0xfa   :  { %v1474_v52 = vmul.f32 %v1143_v3, %v7042_v51  ;;  %v1449_v47 = vmul.f32 %v1138_v39, %v7044_v46  ;;  %v1450_v40 = vmul.f32 %v1138_v39, %v7045_v49  ;;  %v7050_v8 = vunpack.c.l.bf16 %v7049_v55 }
  0xfb   :  { %v1451_v12 = vmul.f32 %v1138_v39, %v7047_v48  ;;  %v1452_v27 = vmul.f32 %v1138_v39, %v7048_v5  ;;  %v7051_v3 = vunpack.c.h.bf16 %v7049_v55  ;;  %v7053_v13 = vunpack.c.l.bf16 %v7052_v36 }
  0xfc   :  { %v4033_v31 = vsel %vm2655_vm0, %v1474_v52, 0.0  ;;  %v1453_v41 = vmul.f32 %v1138_v39, %v7050_v8  ;;  %v7054_v14 = vunpack.c.h.bf16 %v7052_v36  ;;  %v7056_v43 = vunpack.c.l.bf16 %v7055_v30  ;;  %v7058_v52 = vld [vmem:[#allocation42_spill] sm:$0xff] }
  0xfd   :  { %v1454_v20 = vmul.f32 %v1138_v39, %v7051_v3  ;;  %v1455_v28 = vmul.f32 %v1138_v39, %v7053_v13  ;;  %v7057_v0 = vunpack.c.h.bf16 %v7055_v30  ;;  %v7059_v49 = vunpack.c.l.bf16 %v7058_v52 }
  0xfe   :  { %v1456_v54 = vmul.f32 %v1138_v39, %v7054_v14  ;;  %v1457_v51 = vmul.f32 %v1138_v39, %v7056_v43  ;;  %v7060_v48 = vunpack.c.l.bf16 %v7041_v56  ;;  %v2001_v55 = vadd.f32 %v2000_v62, %v3883_v63 }
  0xff   :  { %v1458_v46 = vmul.f32 %v1138_v39, %v7057_v0  ;;  %v1459_v15 = vmul.f32 %v1138_v39, %v7059_v49  ;;  %v2056_v8 = vadd.f32 %v2055_v29, %v3887_v7  ;;  %v2111_v3 = vadd.f32 %v2110_v38, %v3891_v50  ;;  %v1153_v50 = vpop.permute.xlu1 %1152 }
 0x100   :  { %v1461_v5 = vmul.f32 %v1138_v39, %v7060_v48  ;;  %v2166_v36 = vadd.f32 %v2165_v11, %v3895_v42  ;;  %v2221_v13 = vadd.f32 %v2220_v21, %v3899_v6  ;;  %v2276_v14 = vadd.f32 %v2275_v61, %v3903_v59  ;;  %v7062_v21 = vld [vmem:[#allocation12_spill] sm:$0xff] }
 0x101   :  { %v2331_v30 = vadd.f32 %v2330_v9, %v3907_v19  ;;  %v7061_v43 = vunpack.c.h.bf16 %v7058_v52  ;;  %v2002_v49 = vadd.f32 %v2001_v55, %v1449_v47  ;;  %v2057_v56 = vadd.f32 %v2056_v8, %v1450_v40  ;;  %v7063_v47 = vld [vmem:[#allocation43_spill] sm:$0xff] }
 0x102   :  { %v2386_v48 = vadd.f32 %v2385_v24, %v3911_v23  ;;  %v2112_v63 = vadd.f32 %v2111_v3, %v1451_v12  ;;  %v2167_v62 = vadd.f32 %v2166_v36, %v1452_v27  ;;  %v2222_v7 = vadd.f32 %v2221_v13, %v1453_v41  ;;  %v7069_v41 = vld [vmem:[#allocation45_spill] sm:$0xff]  ;;  %v7075_v8 = vld [vmem:[#allocation47_spill] sm:$0xff] }
 0x103   :  { %v1460_v0 = vmul.f32 %v1138_v39, %v7061_v43  ;;  %v2277_v29 = vadd.f32 %v2276_v14, %v1454_v20  ;;  %v2332_v38 = vadd.f32 %v2331_v30, %v1455_v28  ;;  %v2441_v42 = vadd.f32 %v2440_v53, %v3915_v37  ;;  %v7078_v30 = vld [vmem:[#allocation48_spill] sm:$0xff] }
 0x104   :  { %v2496_v6 = vadd.f32 %v2495_v18, %v3919_v35  ;;  %v2551_v59 = vadd.f32 %v2550_v33, %v3923_v60  ;;  %v2387_v19 = vadd.f32 %v2386_v48, %v1456_v54  ;;  %v2606_v11 = vadd.f32 %v2605_v25, %v3927_v32  ;;  %v7066_v60 = vld [vmem:[#allocation44_spill] sm:$0xff]  ;;  %v1148_v33 = vpop.permute.xlu0 %1147 }
 0x105   :  { %v2670_v61 = vadd.f32 %v7062_v21, %v2668_v44  ;;  %v2671_v9 = vsel %vm2655_vm0, %v1461_v5, 0.0  ;;  %v2442_v23 = vadd.f32 %v2441_v42, %v1457_v51  ;;  %v7064_v40 = vunpack.c.l.bf16 %v7063_v47  ;;  %v7083_v21 = vld [vmem:[#allocation50_spill] sm:$0xff] }
 0x106   :  { %v2497_v24 = vadd.f32 %v2496_v6, %v1458_v46  ;;  %v2552_v39 = vadd.f32 %v2551_v59, %v1459_v15  ;;  %v2607_v27 = vadd.f32 %v2606_v11, %v1460_v0  ;;  %v7065_v35 = vunpack.c.h.bf16 %v7063_v47  ;;  %v7072_v46 = vld [vmem:[#allocation46_spill] sm:$0xff]  ;;  %v7081_v6 = vld [vmem:[#allocation49_spill] sm:$0xff] }
 0x107   :  { %v4069_v12 = vmul.f32 %v1153_v50, %v7064_v40  ;;  %v2672_v37 = vadd.f32 %v2671_v9, %v2670_v61  ;;  %v7067_v18 = vunpack.c.l.bf16 %v7066_v60  ;;  %v7068_v25 = vunpack.c.h.bf16 %v7066_v60 }
 0x108   :  { %v4073_v53 = vmul.f32 %v1153_v50, %v7065_v35  ;;  %v7070_v20 = vunpack.c.l.bf16 %v7069_v41  ;;  %v7071_v54 = vunpack.c.h.bf16 %v7069_v41  ;;  %v7073_v52 = vunpack.c.l.bf16 %v7072_v46  ;;  %v7086_v35 = vld [vmem:[#allocation51_spill] sm:$0xff] }
 0x109   :  { %v4077_v32 = vmul.f32 %v1153_v50, %v7067_v18  ;;  %v4081_v44 = vmul.f32 %v1153_v50, %v7068_v25  ;;  %v7074_v5 = vunpack.c.h.bf16 %v7072_v46  ;;  %v7076_v3 = vunpack.c.l.bf16 %v7075_v8 }
 0x10a   :  { %v4085_v28 = vmul.f32 %v1153_v50, %v7070_v20  ;;  %v4089_v51 = vmul.f32 %v1153_v50, %v7071_v54  ;;  %v4093_v15 = vmul.f32 %v1153_v50, %v7073_v52  ;;  %v7077_v13 = vunpack.c.h.bf16 %v7075_v8  ;;  %v7089_v20 = vld [vmem:[#allocation52_spill] sm:$0xff]  ;;  %v7093_v8 = vld [vmem:[#allocation53_spill] sm:$0xff] }
 0x10b   :  { %v4097_v55 = vmul.f32 %v1153_v50, %v7074_v5  ;;  %v4101_v36 = vmul.f32 %v1153_v50, %v7076_v3  ;;  %v7079_v43 = vunpack.c.l.bf16 %v7078_v30  ;;  %v7080_v48 = vunpack.c.h.bf16 %v7078_v30 }
 0x10c   :  { %v4105_v14 = vmul.f32 %v1153_v50, %v7077_v13  ;;  %v7082_v59 = vunpack.c.h.bf16 %v7081_v6  ;;  %v7084_v61 = vunpack.c.l.bf16 %v7083_v21  ;;  %v7085_v47 = vunpack.c.h.bf16 %v7083_v21 }
 0x10d   :  { %v4109_v0 = vmul.f32 %v1153_v50, %v7079_v43  ;;  %v4113_v42 = vmul.f32 %v1153_v50, %v7080_v48  ;;  %v7087_v60 = vunpack.c.l.bf16 %v7086_v35  ;;  %v7088_v25 = vunpack.c.h.bf16 %v7086_v35  ;;  %v7096_v48 = vld [vmem:[#allocation54_spill] sm:$0xff]  ;;  %v7099_v35 = vld [vmem:[#allocation55_spill] sm:$0xff] }
 0x10e   :  { %v1500_v11 = vmul.f32 %v1153_v50, %v7082_v59  ;;  %v1475_v9 = vmul.f32 %v1148_v33, %v7084_v61  ;;  %v1476_v40 = vmul.f32 %v1148_v33, %v7085_v47  ;;  %v7090_v54 = vunpack.c.l.bf16 %v7089_v20 }
 0x10f   :  { %v1477_v18 = vmul.f32 %v1148_v33, %v7087_v60  ;;  %v1478_v41 = vmul.f32 %v1148_v33, %v7088_v25  ;;  %v7091_v52 = vunpack.c.h.bf16 %v7089_v20  ;;  %v7094_v3 = vunpack.c.l.bf16 %v7093_v8 }
 0x110   :  { %v1479_v46 = vmul.f32 %v1148_v33, %v7090_v54  ;;  %v4130_v50 = vsel %vm2655_vm0, %v1500_v11, 0.0  ;;  %v7095_v30 = vunpack.c.h.bf16 %v7093_v8  ;;  %v7097_v59 = vunpack.c.l.bf16 %v7096_v48 }
 0x111   :  { %v1480_v5 = vmul.f32 %v1148_v33, %v7091_v52  ;;  %7092 = vst [vmem:[#allocation13_spill] sm:$0xff] %v4130_v50  ;;  %v1481_v13 = vmul.f32 %v1148_v33, %v7094_v3  ;;  %v7098_v61 = vunpack.c.h.bf16 %v7096_v48  ;;  %v7100_v60 = vunpack.c.l.bf16 %v7099_v35 }
 0x112   :  { %v1482_v43 = vmul.f32 %v1148_v33, %v7095_v30  ;;  %v1483_v21 = vmul.f32 %v1148_v33, %v7097_v59  ;;  %v7101_v20 = vunpack.c.h.bf16 %v7099_v35  ;;  %v2003_v11 = vadd.f32 %v2002_v49, %v3976_v22 }
 0x113   :  { %v1484_v47 = vmul.f32 %v1148_v33, %v7098_v61  ;;  %v1485_v25 = vmul.f32 %v1148_v33, %v7100_v60  ;;  %v2058_v52 = vadd.f32 %v2057_v56, %v3980_v4  ;;  %v2113_v3 = vadd.f32 %v2112_v63, %v3984_v2  ;;  %v1163_v4 = vpop.permute.xlu1 %1162 }
 0x114   :  { %v1486_v54 = vmul.f32 %v1148_v33, %v7101_v20  ;;  %v2168_v8 = vadd.f32 %v2167_v62, %v3988_v10  ;;  %v2223_v30 = vadd.f32 %v2222_v7, %v3992_v45  ;;  %v7102_v59 = vunpack.c.l.bf16 %v7081_v6 }
 0x115   :  { %v2278_v61 = vadd.f32 %v2277_v29, %v3996_v58  ;;  %v2333_v60 = vadd.f32 %v2332_v38, %v4000_v1  ;;  %v2388_v35 = vadd.f32 %v2387_v19, %v4004_v17  ;;  %v2004_v20 = vadd.f32 %v2003_v11, %v1475_v9  ;;  %v7103_v38 = vld [vmem:[#allocation56_spill] sm:$0xff] }
 0x116   :  { %v1487_v48 = vmul.f32 %v1148_v33, %v7102_v59  ;;  %v2059_v50 = vadd.f32 %v2058_v52, %v1476_v40  ;;  %v2114_v22 = vadd.f32 %v2113_v3, %v1477_v18  ;;  %v2169_v49 = vadd.f32 %v2168_v8, %v1478_v41  ;;  %v1158_v41 = vpop.permute.xlu0 %1157 }
 0x117   :  { %v2224_v56 = vadd.f32 %v2223_v30, %v1479_v46  ;;  %v2279_v2 = vadd.f32 %v2278_v61, %v1480_v5  ;;  %v2334_v63 = vadd.f32 %v2333_v60, %v1481_v13  ;;  %v2443_v10 = vadd.f32 %v2442_v23, %v4008_v16  ;;  %v7106_v23 = vld [vmem:[#allocation57_spill] sm:$0xff]  ;;  %v7112_v13 = vld [vmem:[#allocation59_spill] sm:$0xff] }
 0x118   :  { %v2498_v45 = vadd.f32 %v2497_v24, %v4012_v57  ;;  %v2553_v62 = vadd.f32 %v2552_v39, %v4016_v26  ;;  %v2608_v58 = vadd.f32 %v2607_v27, %v4020_v34  ;;  %v2674_v1 = vadd.f32 %v4033_v31, %v2672_v37  ;;  %v7109_v27 = vld [vmem:[#allocation58_spill] sm:$0xff]  ;;  %v7118_v30 = vld [vmem:[#allocation61_spill] sm:$0xff] }
 0x119   :  { %v2389_v7 = vadd.f32 %v2388_v35, %v1482_v43  ;;  %v2444_v17 = vadd.f32 %v2443_v10, %v1483_v21  ;;  %v2675_v29 = vsel %vm2655_vm0, %v1487_v48, 0.0  ;;  %v7104_v19 = vunpack.c.l.bf16 %v7103_v38  ;;  %v7121_v35 = vld [vmem:[#allocation62_spill] sm:$0xff] }
 0x11a   :  { %v2499_v6 = vadd.f32 %v2498_v45, %v1484_v47  ;;  %v2554_v9 = vadd.f32 %v2553_v62, %v1485_v25  ;;  %v2609_v40 = vadd.f32 %v2608_v58, %v1486_v54  ;;  %v7105_v16 = vunpack.c.h.bf16 %v7103_v38  ;;  %v7115_v54 = vld [vmem:[#allocation60_spill] sm:$0xff]  ;;  %v7123_v62 = vld [vmem:[#allocation63_spill] sm:$0xff] }
 0x11b   :  { %v4162_v33 = vmul.f32 %v1163_v4, %v7104_v19  ;;  %v2676_v26 = vadd.f32 %v2675_v29, %v2674_v1  ;;  %v7107_v34 = vunpack.c.l.bf16 %v7106_v23  ;;  %v7108_v31 = vunpack.c.h.bf16 %v7106_v23  ;;  %v7126_v19 = vld [vmem:[#allocation64_spill] sm:$0xff] }
 0x11c   :  { %v4166_v57 = vmul.f32 %v1163_v4, %v7105_v16  ;;  %v7110_v37 = vunpack.c.l.bf16 %v7109_v27  ;;  %v7111_v46 = vunpack.c.h.bf16 %v7109_v27  ;;  %v7113_v43 = vunpack.c.l.bf16 %v7112_v13 }
 0x11d   :  { %v4170_v24 = vmul.f32 %v1163_v4, %v7107_v34  ;;  %v4174_v39 = vmul.f32 %v1163_v4, %v7108_v31  ;;  %v7114_v47 = vunpack.c.h.bf16 %v7112_v13  ;;  %v7116_v11 = vunpack.c.l.bf16 %v7115_v54 }
 0x11e   :  { %v4178_v18 = vmul.f32 %v1163_v4, %v7110_v37  ;;  %v4182_v5 = vmul.f32 %v1163_v4, %v7111_v46  ;;  %v4186_v21 = vmul.f32 %v1163_v4, %v7113_v43  ;;  %v7117_v3 = vunpack.c.h.bf16 %v7115_v54  ;;  %v7129_v37 = vld [vmem:[#allocation65_spill] sm:$0xff] }
 0x11f   :  { %v4190_v25 = vmul.f32 %v1163_v4, %v7114_v47  ;;  %v4194_v52 = vmul.f32 %v1163_v4, %v7116_v11  ;;  %v7119_v59 = vunpack.c.l.bf16 %v7118_v30  ;;  %v7120_v61 = vunpack.c.h.bf16 %v7118_v30  ;;  %v7132_v47 = vld [vmem:[#allocation66_spill] sm:$0xff] }
 0x120   :  { %v4198_v8 = vmul.f32 %v1163_v4, %v7117_v3  ;;  %v7122_v10 = vunpack.c.h.bf16 %v7121_v35  ;;  %v7124_v58 = vunpack.c.l.bf16 %v7123_v62  ;;  %v7125_v29 = vunpack.c.h.bf16 %v7123_v62 }
 0x121   :  { %v4202_v48 = vmul.f32 %v1163_v4, %v7119_v59  ;;  %v4206_v60 = vmul.f32 %v1163_v4, %v7120_v61  ;;  %v7127_v16 = vunpack.c.l.bf16 %v7126_v19  ;;  %v7128_v34 = vunpack.c.h.bf16 %v7126_v19  ;;  %v7135_v59 = vld [vmem:[#allocation67_spill] sm:$0xff] }
 0x122   :  { %v1526_v45 = vmul.f32 %v1163_v4, %v7122_v10  ;;  %v1501_v1 = vmul.f32 %v1158_v41, %v7124_v58  ;;  %v1502_v38 = vmul.f32 %v1158_v41, %v7125_v29  ;;  %v7130_v46 = vunpack.c.l.bf16 %v7129_v37 }
 0x123   :  { %v1503_v23 = vmul.f32 %v1158_v41, %v7127_v16  ;;  %v1504_v31 = vmul.f32 %v1158_v41, %v7128_v34  ;;  %v7131_v4 = vunpack.c.h.bf16 %v7129_v37  ;;  %v7133_v54 = vunpack.c.l.bf16 %v7132_v47 }
 0x124   :  { %v4219_v27 = vsel %vm2655_vm0, %v1526_v45, 0.0  ;;  %v1505_v13 = vmul.f32 %v1158_v41, %v7130_v46  ;;  %v7134_v3 = vunpack.c.h.bf16 %v7132_v47  ;;  %v7136_v61 = vunpack.c.l.bf16 %v7135_v59  ;;  %v7138_v45 = vld [vmem:[#allocation68_spill] sm:$0xff] }
 0x125   :  { %v1506_v43 = vmul.f32 %v1158_v41, %v7131_v4  ;;  %v1507_v11 = vmul.f32 %v1158_v41, %v7133_v54  ;;  %v7137_v62 = vunpack.c.h.bf16 %v7135_v59  ;;  %v7139_v29 = vunpack.c.l.bf16 %v7138_v45 }
 0x126   :  { %v1508_v30 = vmul.f32 %v1158_v41, %v7134_v3  ;;  %v1509_v10 = vmul.f32 %v1158_v41, %v7136_v61  ;;  %v7140_v16 = vunpack.c.l.bf16 %v7121_v35  ;;  %v2005_v37 = vadd.f32 %v2004_v20, %v4069_v12 }
 0x127   :  { %v1510_v58 = vmul.f32 %v1158_v41, %v7137_v62  ;;  %v1511_v19 = vmul.f32 %v1158_v41, %v7139_v29  ;;  %v2060_v46 = vadd.f32 %v2059_v50, %v4073_v53  ;;  %v2115_v4 = vadd.f32 %v2114_v22, %v4077_v32  ;;  %v1173_v32 = vpop.permute.xlu1 %1172 }
 0x128   :  { %v1513_v34 = vmul.f32 %v1158_v41, %v7140_v16  ;;  %v2170_v47 = vadd.f32 %v2169_v49, %v4081_v44  ;;  %v2225_v54 = vadd.f32 %v2224_v56, %v4085_v28  ;;  %v2280_v3 = vadd.f32 %v2279_v2, %v4089_v51  ;;  %v7142_v56 = vld [vmem:[#allocation13_spill] sm:$0xff] }
 0x129   :  { %v2335_v59 = vadd.f32 %v2334_v63, %v4093_v15  ;;  %v7141_v61 = vunpack.c.h.bf16 %v7138_v45  ;;  %v2006_v29 = vadd.f32 %v2005_v37, %v1501_v1  ;;  %v2061_v35 = vadd.f32 %v2060_v46, %v1502_v38  ;;  %v7143_v1 = vld [vmem:[#allocation69_spill] sm:$0xff] }
 0x12a   :  { %v2390_v16 = vadd.f32 %v2389_v7, %v4097_v55  ;;  %v2116_v12 = vadd.f32 %v2115_v4, %v1503_v23  ;;  %v2171_v20 = vadd.f32 %v2170_v47, %v1504_v31  ;;  %v2226_v53 = vadd.f32 %v2225_v54, %v1505_v13  ;;  %v7149_v13 = vld [vmem:[#allocation71_spill] sm:$0xff]  ;;  %v7155_v46 = vld [vmem:[#allocation73_spill] sm:$0xff] }
 0x12b   :  { %v1512_v62 = vmul.f32 %v1158_v41, %v7141_v61  ;;  %v2281_v50 = vadd.f32 %v2280_v3, %v1506_v43  ;;  %v2336_v22 = vadd.f32 %v2335_v59, %v1507_v11  ;;  %v2445_v44 = vadd.f32 %v2444_v17, %v4101_v36  ;;  %v7158_v59 = vld [vmem:[#allocation74_spill] sm:$0xff] }
 0x12c   :  { %v2500_v28 = vadd.f32 %v2499_v6, %v4105_v14  ;;  %v2555_v51 = vadd.f32 %v2554_v9, %v4109_v0  ;;  %v2391_v15 = vadd.f32 %v2390_v16, %v1508_v30  ;;  %v2610_v49 = vadd.f32 %v2609_v40, %v4113_v42  ;;  %v7146_v0 = vld [vmem:[#allocation70_spill] sm:$0xff]  ;;  %v1168_v9 = vpop.permute.xlu0 %1167 }
 0x12d   :  { %v2678_v2 = vadd.f32 %v7142_v56, %v2676_v26  ;;  %v2679_v63 = vsel %vm2655_vm0, %v1513_v34, 0.0  ;;  %v2446_v55 = vadd.f32 %v2445_v44, %v1509_v10  ;;  %v7144_v38 = vunpack.c.l.bf16 %v7143_v1  ;;  %v7163_v56 = vld [vmem:[#allocation76_spill] sm:$0xff] }
 0x12e   :  { %v2501_v7 = vadd.f32 %v2500_v28, %v1510_v58  ;;  %v2556_v41 = vadd.f32 %v2555_v51, %v1511_v19  ;;  %v2611_v31 = vadd.f32 %v2610_v49, %v1512_v62  ;;  %v7145_v14 = vunpack.c.h.bf16 %v7143_v1  ;;  %v7152_v58 = vld [vmem:[#allocation72_spill] sm:$0xff]  ;;  %v7161_v28 = vld [vmem:[#allocation75_spill] sm:$0xff] }
 0x12f   :  { %v4255_v23 = vmul.f32 %v1173_v32, %v7144_v38  ;;  %v2680_v36 = vadd.f32 %v2679_v63, %v2678_v2  ;;  %v7147_v6 = vunpack.c.l.bf16 %v7146_v0  ;;  %v7148_v40 = vunpack.c.h.bf16 %v7146_v0 }
 0x130   :  { %v4259_v17 = vmul.f32 %v1173_v32, %v7145_v14  ;;  %v7150_v43 = vunpack.c.l.bf16 %v7149_v13  ;;  %v7151_v30 = vunpack.c.h.bf16 %v7149_v13  ;;  %v7153_v45 = vunpack.c.l.bf16 %v7152_v58  ;;  %v7166_v14 = vld [vmem:[#allocation77_spill] sm:$0xff] }
 0x131   :  { %v4263_v42 = vmul.f32 %v1173_v32, %v7147_v6  ;;  %v4267_v26 = vmul.f32 %v1173_v32, %v7148_v40  ;;  %v7154_v34 = vunpack.c.h.bf16 %v7152_v58  ;;  %v7156_v4 = vunpack.c.l.bf16 %v7155_v46 }
 0x132   :  { %v4271_v11 = vmul.f32 %v1173_v32, %v7150_v43  ;;  %v4275_v10 = vmul.f32 %v1173_v32, %v7151_v30  ;;  %v4279_v19 = vmul.f32 %v1173_v32, %v7153_v45  ;;  %v7157_v54 = vunpack.c.h.bf16 %v7155_v46  ;;  %v7169_v43 = vld [vmem:[#allocation78_spill] sm:$0xff]  ;;  %v7173_v46 = vld [vmem:[#allocation79_spill] sm:$0xff] }
 0x133   :  { %v4283_v37 = vmul.f32 %v1173_v32, %v7154_v34  ;;  %v4287_v47 = vmul.f32 %v1173_v32, %v7156_v4  ;;  %v7159_v61 = vunpack.c.l.bf16 %v7158_v59  ;;  %v7160_v16 = vunpack.c.h.bf16 %v7158_v59 }
 0x134   :  { %v4291_v3 = vmul.f32 %v1173_v32, %v7157_v54  ;;  %v7162_v51 = vunpack.c.h.bf16 %v7161_v28  ;;  %v7164_v2 = vunpack.c.l.bf16 %v7163_v56  ;;  %v7165_v1 = vunpack.c.h.bf16 %v7163_v56 }
 0x135   :  { %v4295_v62 = vmul.f32 %v1173_v32, %v7159_v61  ;;  %v4299_v44 = vmul.f32 %v1173_v32, %v7160_v16  ;;  %v7167_v0 = vunpack.c.l.bf16 %v7166_v14  ;;  %v7168_v40 = vunpack.c.h.bf16 %v7166_v14  ;;  %v7176_v16 = vld [vmem:[#allocation80_spill] sm:$0xff]  ;;  %v7179_v14 = vld [vmem:[#allocation81_spill] sm:$0xff] }
 0x136   :  { %v1552_v49 = vmul.f32 %v1173_v32, %v7162_v51  ;;  %v1527_v63 = vmul.f32 %v1168_v9, %v7164_v2  ;;  %v1528_v38 = vmul.f32 %v1168_v9, %v7165_v1  ;;  %v7170_v30 = vunpack.c.l.bf16 %v7169_v43 }
 0x137   :  { %v1529_v6 = vmul.f32 %v1168_v9, %v7167_v0  ;;  %v1530_v13 = vmul.f32 %v1168_v9, %v7168_v40  ;;  %v7171_v45 = vunpack.c.h.bf16 %v7169_v43  ;;  %v7174_v4 = vunpack.c.l.bf16 %v7173_v46 }
 0x138   :  { %v1531_v58 = vmul.f32 %v1168_v9, %v7170_v30  ;;  %v4316_v32 = vsel %vm2655_vm0, %v1552_v49, 0.0  ;;  %v7175_v59 = vunpack.c.h.bf16 %v7173_v46  ;;  %v7177_v51 = vunpack.c.l.bf16 %v7176_v16 }
 0x139   :  { %v1532_v34 = vmul.f32 %v1168_v9, %v7171_v45  ;;  %7172 = vst [vmem:[#allocation14_spill] sm:$0xff] %v4316_v32  ;;  %v1533_v54 = vmul.f32 %v1168_v9, %v7174_v4  ;;  %v7178_v2 = vunpack.c.h.bf16 %v7176_v16  ;;  %v7180_v0 = vunpack.c.l.bf16 %v7179_v14 }
 0x13a   :  { %v1534_v61 = vmul.f32 %v1168_v9, %v7175_v59  ;;  %v1535_v56 = vmul.f32 %v1168_v9, %v7177_v51  ;;  %v7181_v43 = vunpack.c.h.bf16 %v7179_v14  ;;  %v2007_v49 = vadd.f32 %v2006_v29, %v4162_v33 }
 0x13b   :  { %v1536_v1 = vmul.f32 %v1168_v9, %v7178_v2  ;;  %v1537_v40 = vmul.f32 %v1168_v9, %v7180_v0  ;;  %v2062_v45 = vadd.f32 %v2061_v35, %v4166_v57  ;;  %v2117_v4 = vadd.f32 %v2116_v12, %v4170_v24  ;;  %v1183_v57 = vpop.permute.xlu1 %1182 }
 0x13c   :  { %v1538_v30 = vmul.f32 %v1168_v9, %v7181_v43  ;;  %v2172_v46 = vadd.f32 %v2171_v20, %v4174_v39  ;;  %v2227_v59 = vadd.f32 %v2226_v53, %v4178_v18  ;;  %v7182_v51 = vunpack.c.l.bf16 %v7161_v28 }
 0x13d   :  { %v2282_v2 = vadd.f32 %v2281_v50, %v4182_v5  ;;  %v2337_v0 = vadd.f32 %v2336_v22, %v4186_v21  ;;  %v2392_v14 = vadd.f32 %v2391_v15, %v4190_v25  ;;  %v2008_v43 = vadd.f32 %v2007_v49, %v1527_v63  ;;  %v7183_v22 = vld [vmem:[#allocation82_spill] sm:$0xff] }
 0x13e   :  { %v1539_v16 = vmul.f32 %v1168_v9, %v7182_v51  ;;  %v2063_v32 = vadd.f32 %v2062_v45, %v1528_v38  ;;  %v2118_v33 = vadd.f32 %v2117_v4, %v1529_v6  ;;  %v2173_v29 = vadd.f32 %v2172_v46, %v1530_v13  ;;  %v1178_v13 = vpop.permute.xlu0 %1177 }
 0x13f   :  { %v2228_v35 = vadd.f32 %v2227_v59, %v1531_v58  ;;  %v2283_v24 = vadd.f32 %v2282_v2, %v1532_v34  ;;  %v2338_v12 = vadd.f32 %v2337_v0, %v1533_v54  ;;  %v2447_v39 = vadd.f32 %v2446_v55, %v4194_v52  ;;  %v7186_v55 = vld [vmem:[#allocation83_spill] sm:$0xff]  ;;  %v7192_v54 = vld [vmem:[#allocation85_spill] sm:$0xff] }
 0x140   :  { %v2502_v18 = vadd.f32 %v2501_v7, %v4198_v8  ;;  %v2557_v20 = vadd.f32 %v2556_v41, %v4202_v48  ;;  %v2612_v5 = vadd.f32 %v2611_v31, %v4206_v60  ;;  %v2682_v21 = vadd.f32 %v4219_v27, %v2680_v36  ;;  %v7189_v31 = vld [vmem:[#allocation84_spill] sm:$0xff]  ;;  %v7198_v59 = vld [vmem:[#allocation87_spill] sm:$0xff] }
 0x141   :  { %v2393_v53 = vadd.f32 %v2392_v14, %v1534_v61  ;;  %v2448_v25 = vadd.f32 %v2447_v39, %v1535_v56  ;;  %v2683_v50 = vsel %vm2655_vm0, %v1539_v16, 0.0  ;;  %v7184_v15 = vunpack.c.l.bf16 %v7183_v22  ;;  %v7201_v14 = vld [vmem:[#allocation88_spill] sm:$0xff] }
 0x142   :  { %v2503_v28 = vadd.f32 %v2502_v18, %v1536_v1  ;;  %v2558_v63 = vadd.f32 %v2557_v20, %v1537_v40  ;;  %v2613_v38 = vadd.f32 %v2612_v5, %v1538_v30  ;;  %v7185_v52 = vunpack.c.h.bf16 %v7183_v22  ;;  %v7195_v30 = vld [vmem:[#allocation86_spill] sm:$0xff]  ;;  %v7203_v20 = vld [vmem:[#allocation89_spill] sm:$0xff] }
 0x143   :  { %v4348_v9 = vmul.f32 %v1183_v57, %v7184_v15  ;;  %v2684_v48 = vadd.f32 %v2683_v50, %v2682_v21  ;;  %v7187_v60 = vunpack.c.l.bf16 %v7186_v55  ;;  %v7188_v27 = vunpack.c.h.bf16 %v7186_v55  ;;  %v7206_v15 = vld [vmem:[#allocation90_spill] sm:$0xff] }
 0x144   :  { %v4352_v8 = vmul.f32 %v1183_v57, %v7185_v52  ;;  %v7190_v36 = vunpack.c.l.bf16 %v7189_v31  ;;  %v7191_v58 = vunpack.c.h.bf16 %v7189_v31  ;;  %v7193_v61 = vunpack.c.l.bf16 %v7192_v54 }
 0x145   :  { %v4356_v7 = vmul.f32 %v1183_v57, %v7187_v60  ;;  %v4360_v41 = vmul.f32 %v1183_v57, %v7188_v27  ;;  %v7194_v1 = vunpack.c.h.bf16 %v7192_v54  ;;  %v7196_v49 = vunpack.c.l.bf16 %v7195_v30 }
 0x146   :  { %v4364_v6 = vmul.f32 %v1183_v57, %v7190_v36  ;;  %v4368_v34 = vmul.f32 %v1183_v57, %v7191_v58  ;;  %v4372_v56 = vmul.f32 %v1183_v57, %v7193_v61  ;;  %v7197_v4 = vunpack.c.h.bf16 %v7195_v30  ;;  %v7209_v36 = vld [vmem:[#allocation91_spill] sm:$0xff] }
 0x147   :  { %v4376_v40 = vmul.f32 %v1183_v57, %v7194_v1  ;;  %v4380_v45 = vmul.f32 %v1183_v57, %v7196_v49  ;;  %v7199_v51 = vunpack.c.l.bf16 %v7198_v59  ;;  %v7200_v2 = vunpack.c.h.bf16 %v7198_v59  ;;  %v7212_v1 = vld [vmem:[#allocation92_spill] sm:$0xff] }
 0x148   :  { %v4384_v46 = vmul.f32 %v1183_v57, %v7197_v4  ;;  %v7202_v39 = vunpack.c.h.bf16 %v7201_v14  ;;  %v7204_v5 = vunpack.c.l.bf16 %v7203_v20  ;;  %v7205_v50 = vunpack.c.h.bf16 %v7203_v20 }
 0x149   :  { %v4388_v16 = vmul.f32 %v1183_v57, %v7199_v51  ;;  %v4392_v0 = vmul.f32 %v1183_v57, %v7200_v2  ;;  %v7207_v52 = vunpack.c.l.bf16 %v7206_v15  ;;  %v7208_v60 = vunpack.c.h.bf16 %v7206_v15  ;;  %v7215_v51 = vld [vmem:[#allocation93_spill] sm:$0xff] }
 0x14a   :  { %v1578_v18 = vmul.f32 %v1183_v57, %v7202_v39  ;;  %v1553_v21 = vmul.f32 %v1178_v13, %v7204_v5  ;;  %v1554_v22 = vmul.f32 %v1178_v13, %v7205_v50  ;;  %v7210_v58 = vunpack.c.l.bf16 %v7209_v36 }
 0x14b   :  { %v1555_v55 = vmul.f32 %v1178_v13, %v7207_v52  ;;  %v1556_v27 = vmul.f32 %v1178_v13, %v7208_v60  ;;  %v7211_v57 = vunpack.c.h.bf16 %v7209_v36  ;;  %v7213_v30 = vunpack.c.l.bf16 %v7212_v1 }
 0x14c   :  { %v4405_v31 = vsel %vm2655_vm0, %v1578_v18, 0.0  ;;  %v1557_v54 = vmul.f32 %v1178_v13, %v7210_v58  ;;  %v7214_v4 = vunpack.c.h.bf16 %v7212_v1  ;;  %v7216_v2 = vunpack.c.l.bf16 %v7215_v51  ;;  %v7218_v18 = vld [vmem:[#allocation94_spill] sm:$0xff] }
 0x14d   :  { %v1558_v61 = vmul.f32 %v1178_v13, %v7211_v57  ;;  %v1559_v49 = vmul.f32 %v1178_v13, %v7213_v30  ;;  %v7217_v20 = vunpack.c.h.bf16 %v7215_v51  ;;  %v7219_v50 = vunpack.c.l.bf16 %v7218_v18 }
 0x14e   :  { %v1560_v59 = vmul.f32 %v1178_v13, %v7214_v4  ;;  %v1561_v39 = vmul.f32 %v1178_v13, %v7216_v2  ;;  %v7220_v52 = vunpack.c.l.bf16 %v7201_v14  ;;  %v2009_v36 = vadd.f32 %v2008_v43, %v4255_v23 }
 0x14f   :  { %v1562_v5 = vmul.f32 %v1178_v13, %v7217_v20  ;;  %v1563_v15 = vmul.f32 %v1178_v13, %v7219_v50  ;;  %v2064_v58 = vadd.f32 %v2063_v32, %v4259_v17  ;;  %v2119_v57 = vadd.f32 %v2118_v33, %v4263_v42  ;;  %v1193_v42 = vpop.permute.xlu1 %1192 }
 0x150   :  { %v1565_v60 = vmul.f32 %v1178_v13, %v7220_v52  ;;  %v2174_v1 = vadd.f32 %v2173_v29, %v4267_v26  ;;  %v2229_v30 = vadd.f32 %v2228_v35, %v4271_v11  ;;  %v2284_v4 = vadd.f32 %v2283_v24, %v4275_v10  ;;  %v7222_v35 = vld [vmem:[#allocation14_spill] sm:$0xff] }
 0x151   :  { %v2339_v51 = vadd.f32 %v2338_v12, %v4279_v19  ;;  %v7221_v2 = vunpack.c.h.bf16 %v7218_v18  ;;  %v2010_v50 = vadd.f32 %v2009_v36, %v1553_v21  ;;  %v2065_v14 = vadd.f32 %v2064_v58, %v1554_v22  ;;  %v7223_v21 = vld [vmem:[#allocation95_spill] sm:$0xff] }
 0x152   :  { %v2394_v52 = vadd.f32 %v2393_v53, %v4283_v37  ;;  %v2120_v23 = vadd.f32 %v2119_v57, %v1555_v55  ;;  %v2175_v43 = vadd.f32 %v2174_v1, %v1556_v27  ;;  %v2230_v17 = vadd.f32 %v2229_v30, %v1557_v54  ;;  %v7229_v54 = vld [vmem:[#allocation97_spill] sm:$0xff]  ;;  %v7235_v58 = vld [vmem:[#allocation99_spill] sm:$0xff] }
 0x153   :  { %v1564_v20 = vmul.f32 %v1178_v13, %v7221_v2  ;;  %v2285_v32 = vadd.f32 %v2284_v4, %v1558_v61  ;;  %v2340_v33 = vadd.f32 %v2339_v51, %v1559_v49  ;;  %v2449_v26 = vadd.f32 %v2448_v25, %v4287_v47  ;;  %v7238_v51 = vld [vmem:[#allocation100_spill] sm:$0xff] }
 0x154   :  { %v2504_v11 = vadd.f32 %v2503_v28, %v4291_v3  ;;  %v2559_v10 = vadd.f32 %v2558_v63, %v4295_v62  ;;  %v2395_v19 = vadd.f32 %v2394_v52, %v1560_v59  ;;  %v2614_v29 = vadd.f32 %v2613_v38, %v4299_v44  ;;  %v7226_v62 = vld [vmem:[#allocation96_spill] sm:$0xff]  ;;  %v1188_v63 = vpop.permute.xlu0 %1187 }
 0x155   :  { %v2686_v24 = vadd.f32 %v7222_v35, %v2684_v48  ;;  %v2687_v12 = vsel %vm2655_vm0, %v1565_v60, 0.0  ;;  %v2450_v37 = vadd.f32 %v2449_v26, %v1561_v39  ;;  %v7224_v22 = vunpack.c.l.bf16 %v7223_v21  ;;  %v7243_v35 = vld [vmem:[#allocation102_spill] sm:$0xff] }
 0x156   :  { %v2505_v53 = vadd.f32 %v2504_v11, %v1562_v5  ;;  %v2560_v13 = vadd.f32 %v2559_v10, %v1563_v15  ;;  %v2615_v27 = vadd.f32 %v2614_v29, %v1564_v20  ;;  %v7225_v3 = vunpack.c.h.bf16 %v7223_v21  ;;  %v7232_v5 = vld [vmem:[#allocation98_spill] sm:$0xff]  ;;  %v7241_v11 = vld [vmem:[#allocation101_spill] sm:$0xff] }
 0x157   :  { %v4441_v55 = vmul.f32 %v1193_v42, %v7224_v22  ;;  %v2688_v47 = vadd.f32 %v2687_v12, %v2686_v24  ;;  %v7227_v28 = vunpack.c.l.bf16 %v7226_v62  ;;  %v7228_v38 = vunpack.c.h.bf16 %v7226_v62 }
 0x158   :  { %v4445_v25 = vmul.f32 %v1193_v42, %v7225_v3  ;;  %v7230_v61 = vunpack.c.l.bf16 %v7229_v54  ;;  %v7231_v59 = vunpack.c.h.bf16 %v7229_v54  ;;  %v7233_v18 = vunpack.c.l.bf16 %v7232_v5  ;;  %v7246_v3 = vld [vmem:[#allocation103_spill] sm:$0xff] }
 0x159   :  { %v4449_v44 = vmul.f32 %v1193_v42, %v7227_v28  ;;  %v4453_v48 = vmul.f32 %v1193_v42, %v7228_v38  ;;  %v7234_v60 = vunpack.c.h.bf16 %v7232_v5  ;;  %v7236_v57 = vunpack.c.l.bf16 %v7235_v58 }
 0x15a   :  { %v4457_v49 = vmul.f32 %v1193_v42, %v7230_v61  ;;  %v4461_v39 = vmul.f32 %v1193_v42, %v7231_v59  ;;  %v4465_v15 = vmul.f32 %v1193_v42, %v7233_v18  ;;  %v7237_v30 = vunpack.c.h.bf16 %v7235_v58  ;;  %v7249_v61 = vld [vmem:[#allocation104_spill] sm:$0xff]  ;;  %v7252_v58 = vld [vmem:[#allocation105_spill] sm:$0xff] }
 0x15b   :  { %v4469_v36 = vmul.f32 %v1193_v42, %v7234_v60  ;;  %v4473_v1 = vmul.f32 %v1193_v42, %v7236_v57  ;;  %v7239_v2 = vunpack.c.l.bf16 %v7238_v51  ;;  %v7240_v52 = vunpack.c.h.bf16 %v7238_v51 }
 0x15c   :  { %v4477_v4 = vmul.f32 %v1193_v42, %v7237_v30  ;;  %v7242_v10 = vunpack.c.h.bf16 %v7241_v11  ;;  %v7244_v24 = vunpack.c.l.bf16 %v7243_v35  ;;  %v7245_v21 = vunpack.c.h.bf16 %v7243_v35 }
 0x15d   :  { %v4481_v20 = vmul.f32 %v1193_v42, %v7239_v2  ;;  %v4485_v26 = vmul.f32 %v1193_v42, %v7240_v52  ;;  %v7247_v62 = vunpack.c.l.bf16 %v7246_v3  ;;  %v7248_v38 = vunpack.c.h.bf16 %v7246_v3  ;;  %v7255_v52 = vld [vmem:[#allocation106_spill] sm:$0xff]  ;;  %v7258_v3 = vld [vmem:[#allocation107_spill] sm:$0xff] }
 0x15e   :  { %v1604_v29 = vmul.f32 %v1193_v42, %v7242_v10  ;;  %v1579_v12 = vmul.f32 %v1188_v63, %v7244_v24  ;;  %v1580_v22 = vmul.f32 %v1188_v63, %v7245_v21  ;;  %v7250_v59 = vunpack.c.l.bf16 %v7249_v61 }
 0x15f   :  { %v1581_v28 = vmul.f32 %v1188_v63, %v7247_v62  ;;  %v1582_v54 = vmul.f32 %v1188_v63, %v7248_v38  ;;  %v7251_v18 = vunpack.c.h.bf16 %v7249_v61  ;;  %v7253_v57 = vunpack.c.l.bf16 %v7252_v58 }
 0x160   :  { %v1583_v5 = vmul.f32 %v1188_v63, %v7250_v59  ;;  %v4502_v42 = vsel %vm2655_vm0, %v1604_v29, 0.0  ;;  %v7254_v51 = vunpack.c.h.bf16 %v7252_v58  ;;  %v7256_v10 = vunpack.c.l.bf16 %v7255_v52 }
 0x161   :  { %v1584_v60 = vmul.f32 %v1188_v63, %v7251_v18  ;;  %v1585_v30 = vmul.f32 %v1188_v63, %v7253_v57  ;;  %v7257_v24 = vunpack.c.h.bf16 %v7255_v52  ;;  %v7259_v62 = vunpack.c.l.bf16 %v7258_v3 }
 0x162   :  { %v1586_v2 = vmul.f32 %v1188_v63, %v7254_v51  ;;  %v1587_v35 = vmul.f32 %v1188_v63, %v7256_v10  ;;  %v7260_v61 = vunpack.c.h.bf16 %v7258_v3  ;;  %v2011_v29 = vadd.f32 %v2010_v50, %v4348_v9 }
 0x163   :  { %v1588_v21 = vmul.f32 %v1188_v63, %v7257_v24  ;;  %v1589_v38 = vmul.f32 %v1188_v63, %v7259_v62  ;;  %v2066_v18 = vadd.f32 %v2065_v14, %v4352_v8  ;;  %v2121_v57 = vadd.f32 %v2120_v23, %v4356_v7 }
 0x164   :  { %v1590_v59 = vmul.f32 %v1188_v63, %v7260_v61  ;;  %v2176_v58 = vadd.f32 %v2175_v43, %v4360_v41  ;;  %v2231_v51 = vadd.f32 %v2230_v17, %v4364_v6  ;;  %v7261_v10 = vunpack.c.l.bf16 %v7241_v11  ;;  %v194_v41 = vld [vmem:[#allocation3 + $0x454] sm:$0xff]  ;;  %v195_v17 = vld [vmem:[#allocation3 + $0x45c] sm:$0xff]  ;;  %v197_v11 = vld [vmem:[#allocation3 + $0x46c] sm:$0xff] }
 0x165   :  { %v2286_v24 = vadd.f32 %v2285_v32, %v4368_v34  ;;  %v2341_v62 = vadd.f32 %v2340_v33, %v4372_v56  ;;  %v2396_v3 = vadd.f32 %v2395_v19, %v4376_v40  ;;  %v4526_v61 = vadd.f32 %v2011_v29, %v1579_v12  ;;  %v196_v32 = vld [vmem:[#allocation3 + $0x464] sm:$0xff]  ;;  %v4550_v12 = vld [vmem:[#allocation3 + $0x440] ss:$52 sps:$4 sm:$0xff]  }
 0x166   :  { %v1591_v52 = vmul.f32 %v1188_v63, %v7261_v10  ;;  %v4528_v9 = vadd.f32 %v2066_v18, %v1580_v22  ;;  %v4530_v8 = vadd.f32 %v2121_v57, %v1581_v28  ;;  %v4532_v7 = vadd.f32 %v2176_v58, %v1582_v54  ;;  %v185_v58 = vld [vmem:[#allocation3 + $0x410] sm:$0xff] }
 0x167   :  { %v4534_v50 = vadd.f32 %v2231_v51, %v1583_v5  ;;  %v4536_v6 = vadd.f32 %v2286_v24, %v1584_v60  ;;  %v4538_v14 = vadd.f32 %v2341_v62, %v1585_v30  ;;  %v2451_v34 = vadd.f32 %v2450_v37, %v4380_v45  ;;  %v7262_v60 = vld [vmem:[#allocation108_spill] sm:$0xff]  ;;  %v186_v51 = vld [vmem:[#allocation3 + $0x418] sm:$0xff] }
 0x168   :  { %v2506_v56 = vadd.f32 %v2505_v53, %v4384_v46  ;;  %v2561_v40 = vadd.f32 %v2560_v13, %v4388_v16  ;;  %v2616_v23 = vadd.f32 %v2615_v27, %v4392_v0  ;;  %v2690_v43 = vadd.f32 %v4405_v31, %v2688_v47  ;;  %v1203_v0 = vpop.permute.xlu1 %1202 }
 0x169   :  { %v4545_v33 = vadd.f32 %v2396_v3, %v1586_v2  ;;  %v4547_v19 = vadd.f32 %v2451_v34, %v1587_v35  ;;  %v2691_v63 = vsel %vm2655_vm0, %v1591_v52, 0.0  ;;  %v672_v45 = vunpack.c.l.bf16 %v194_v41  ;;  %v187_v3 = vld [vmem:[#allocation3 + $0x420] sm:$0xff] }
 0x16a   :  { %v4552_v37 = vadd.f32 %v2506_v56, %v1588_v21  ;;  %v4554_v46 = vadd.f32 %v2561_v40, %v1589_v38  ;;  %v4556_v16 = vadd.f32 %v2616_v23, %v1590_v59  ;;  %v673_v31 = vunpack.c.h.bf16 %v194_v41  ;;  %v7265_v38 = vld [vmem:[#allocation109_spill] sm:$0xff] }
 0x16b   :  { %v674_v53 = vunpack.c.l.bf16 %v195_v17  ;;  %v675_v13 = vunpack.c.h.bf16 %v195_v17  ;;  %v676_v27 = vunpack.c.l.bf16 %v196_v32  ;;  %v677_v47 = vunpack.c.h.bf16 %v196_v32  ;;  %v188_v41 = vld [vmem:[#allocation3 + $0x428] sm:$0xff]  ;;  %v190_v17 = vld [vmem:[#allocation3 + $0x438] sm:$0xff]  ;;  %v1198_v32 = vpop.permute.xlu0 %1197 }
 0x16c   :  { %v4558_v22 = vadd.f32 %v2691_v63, %v2690_v43  ;;  %v678_v28 = vunpack.c.l.bf16 %v197_v11  ;;  %v679_v54 = vunpack.c.h.bf16 %v197_v11  ;;  %v680_v5 = vunpack.c.h.bf16 %v4550_v12  ;;  %v189_v43 = vld [vmem:[#allocation3 + $0x430] sm:$0xff] }
 0x16d   :  { %v7263_v30 = vunpack.c.l.bf16 %v7262_v60  ;;  %v7264_v35 = vunpack.c.h.bf16 %v7262_v60  ;;  %v7266_v59 = vunpack.c.l.bf16 %v7265_v38  ;;  %v7267_v18 = vunpack.c.h.bf16 %v7265_v38 }
 0x16e   :  { %v4577_v10 = vmul.f32 %v1203_v0, %v672_v45  ;;  %v4579_v52 = vmul.f32 %v1203_v0, %v673_v31  ;;  %v4581_v24 = vmul.f32 %v1203_v0, %v674_v53  ;;  %v4583_v62 = vmul.f32 %v1203_v0, %v675_v13 }
 0x16f   :  { %v4563_v2 = vmul.f32 %v1203_v0, %v7263_v30  ;;  %v4567_v21 = vmul.f32 %v1203_v0, %v7264_v35  ;;  %v4571_v29 = vmul.f32 %v1203_v0, %v7266_v59  ;;  %v4575_v57 = vmul.f32 %v1203_v0, %v7267_v18 }
 0x170   :  { %7268 = vst [vmem:[#allocation15_spill] sm:$0xff] %v4583_v62  ;;  %v4585_v34 = vmul.f32 %v1203_v0, %v676_v27  ;;  %v4587_v56 = vmul.f32 %v1203_v0, %v677_v47  ;;  %v4589_v40 = vmul.f32 %v1203_v0, %v678_v28  ;;  %v1630_v23 = vmul.f32 %v1203_v0, %v680_v5 }
 0x171   :  { %v655_v63 = vunpack.c.l.bf16 %v185_v58  ;;  %v656_v11 = vunpack.c.h.bf16 %v185_v58  ;;  %v657_v45 = vunpack.c.l.bf16 %v186_v51  ;;  %v658_v31 = vunpack.c.h.bf16 %v186_v51 }
 0x172   :  { %7269 = vst [vmem:[#allocation16_spill] sm:$0xff] %v4585_v34  ;;  %7270 = vst [vmem:[#allocation110_spill] sm:$0xff] %v4587_v56  ;;  %v4591_v53 = vmul.f32 %v1203_v0, %v679_v54  ;;  %v659_v13 = vunpack.c.l.bf16 %v187_v3  ;;  %v660_v60 = vunpack.c.h.bf16 %v187_v3  ;;  %v661_v30 = vunpack.c.l.bf16 %v188_v41 }
 0x173   :  { %7271 = vst [vmem:[#allocation111_spill] sm:$0xff] %v4589_v40  ;;  %v662_v35 = vunpack.c.h.bf16 %v188_v41  ;;  %v663_v27 = vunpack.c.l.bf16 %v189_v43  ;;  %v664_v38 = vunpack.c.h.bf16 %v189_v43  ;;  %v665_v47 = vunpack.c.l.bf16 %v190_v17 }
 0x174   :  { %7272 = vst [vmem:[#allocation112_spill] sm:$0xff] %v4591_v53  ;;  %v4594_v28 = vsel %vm2655_vm0, %v1630_v23, 0.0  ;;  %v666_v5 = vunpack.c.h.bf16 %v190_v17  ;;  %v667_v59 = vunpack.c.l.bf16 %v4550_v12  ;;  %v1605_v18 = vmul.f32 %v1198_v32, %v655_v63 }
 0x175   :  { %v1606_v40 = vmul.f32 %v1198_v32, %v656_v11  ;;  %v1607_v58 = vmul.f32 %v1198_v32, %v657_v45  ;;  %v1608_v56 = vmul.f32 %v1198_v32, %v658_v31  ;;  %v1609_v51 = vmul.f32 %v1198_v32, %v659_v13 }
 0x176   :  { %v1610_v0 = vmul.f32 %v1198_v32, %v660_v60  ;;  %v1611_v54 = vmul.f32 %v1198_v32, %v661_v30  ;;  %v1612_v53 = vmul.f32 %v1198_v32, %v662_v35  ;;  %v1613_v3 = vmul.f32 %v1198_v32, %v663_v27 }
 0x177   :  { %v1614_v34 = vmul.f32 %v1198_v32, %v664_v38  ;;  %v1615_v41 = vmul.f32 %v1198_v32, %v665_v47  ;;  %v1616_v62 = vmul.f32 %v1198_v32, %v666_v5  ;;  %v2013_v43 = vadd.f32 %v4526_v61, %v4441_v55 }
 0x178   :  { %v2068_v23 = vadd.f32 %v4528_v9, %v4445_v25  ;;  %v2123_v12 = vadd.f32 %v4530_v8, %v4449_v44  ;;  %v2178_v17 = vadd.f32 %v4532_v7, %v4453_v48  ;;  %v2233_v63 = vadd.f32 %v4534_v50, %v4457_v49  ;;  %v206_v9 = vld [vmem:[#allocation3 + $0x4ac] sm:$0xff] }
 0x179   :  { %v1617_v11 = vmul.f32 %v1198_v32, %v667_v59  ;;  %v2288_v45 = vadd.f32 %v4536_v6, %v4461_v39  ;;  %v2343_v31 = vadd.f32 %v4538_v14, %v4465_v15  ;;  %v2398_v55 = vadd.f32 %v4545_v33, %v4469_v36  ;;  %v207_v14 = vld [vmem:[#allocation3 + $0x4b4] sm:$0xff]  ;;  %v208_v33 = vld [vmem:[#allocation3 + $0x4bc] sm:$0xff]  ;;  %v210_v32 = vld [vmem:[#allocation3 + $0x4cc] sm:$0xff] }
 0x17a   :  { %v4613_v25 = vadd.f32 %v2013_v43, %v1605_v18  ;;  %v4615_v61 = vadd.f32 %v2068_v23, %v1606_v40  ;;  %v4617_v44 = vadd.f32 %v2123_v12, %v1607_v58  ;;  %v4619_v48 = vadd.f32 %v2178_v17, %v1608_v56  ;;  %v201_v17 = vld [vmem:[#allocation3 + $0x488] sm:$0xff] }
 0x17b   :  { %v4621_v49 = vadd.f32 %v2233_v63, %v1609_v51  ;;  %v4623_v8 = vadd.f32 %v2288_v45, %v1610_v0  ;;  %v4625_v39 = vadd.f32 %v2343_v31, %v1611_v54  ;;  %v2453_v15 = vadd.f32 %v4547_v19, %v4473_v1  ;;  %v209_v19 = vld [vmem:[#allocation3 + $0x4c4] sm:$0xff]  ;;  %v199_v54 = vld [vmem:[#allocation3 + $0x478] sm:$0xff]  ;;  %v202_v63 = vld [vmem:[#allocation3 + $0x490] sm:$0xff] }
 0x17c   :  { %v4629_v7 = vadd.f32 %v2398_v55, %v1612_v53  ;;  %v2508_v36 = vadd.f32 %v4552_v37, %v4477_v4  ;;  %v2563_v50 = vadd.f32 %v4554_v46, %v4481_v20  ;;  %v2618_v6 = vadd.f32 %v4556_v16, %v4485_v26  ;;  %v211_v37 = vld [vmem:[#allocation3 + $0x4d4] sm:$0xff]  ;;  %v4648_v26 = vld [vmem:[#allocation3 + $0x4a8] ss:$52 sps:$4 sm:$0xff]   ;;  %v1213_v16 = vpop.permute.xlu1 %1212 }
 0x17d   :  { %v4637_v56 = vadd.f32 %v2453_v15, %v1613_v3  ;;  %v2694_v40 = vadd.f32 %v4502_v42, %v4558_v22  ;;  %v2695_v1 = vsel %vm2655_vm0, %v1617_v11, 0.0  ;;  %v694_v53 = vunpack.c.l.bf16 %v206_v9  ;;  %v200_v3 = vld [vmem:[#allocation3 + $0x480] sm:$0xff] }
 0x17e   :  { %v4642_v13 = vadd.f32 %v2508_v36, %v1614_v34  ;;  %v4644_v4 = vadd.f32 %v2563_v50, %v1615_v41  ;;  %v4646_v20 = vadd.f32 %v2618_v6, %v1616_v62  ;;  %v695_v46 = vunpack.c.h.bf16 %v206_v9  ;;  %v203_v9 = vld [vmem:[#allocation3 + $0x498] sm:$0xff]  ;;  %v204_v15 = vld [vmem:[#allocation3 + $0x4a0] sm:$0xff]  ;;  %v1208_v36 = vpop.permute.xlu0 %1207 }
 0x17f   :  { %v696_v60 = vunpack.c.l.bf16 %v207_v14  ;;  %v697_v30 = vunpack.c.h.bf16 %v207_v14  ;;  %v698_v35 = vunpack.c.l.bf16 %v208_v33  ;;  %v699_v42 = vunpack.c.h.bf16 %v208_v33 }
 0x180   :  { %v700_v22 = vunpack.c.l.bf16 %v209_v19  ;;  %v701_v27 = vunpack.c.h.bf16 %v209_v19  ;;  %v702_v38 = vunpack.c.l.bf16 %v210_v32  ;;  %v703_v47 = vunpack.c.h.bf16 %v210_v32 }
 0x181   :  { %v4650_v5 = vadd.f32 %v2695_v1, %v2694_v40  ;;  %v704_v34 = vunpack.c.l.bf16 %v211_v37  ;;  %v705_v59 = vunpack.c.h.bf16 %v211_v37  ;;  %v706_v62 = vunpack.c.h.bf16 %v4648_v26 }
 0x182   :  { %v4653_v18 = vmul.f32 %v1213_v16, %v694_v53  ;;  %v4655_v58 = vmul.f32 %v1213_v16, %v695_v46  ;;  %v4657_v51 = vmul.f32 %v1213_v16, %v696_v60  ;;  %v4659_v0 = vmul.f32 %v1213_v16, %v697_v30 }
 0x183   :  { %v4661_v41 = vmul.f32 %v1213_v16, %v698_v35  ;;  %v4663_v43 = vmul.f32 %v1213_v16, %v699_v42  ;;  %v4665_v23 = vmul.f32 %v1213_v16, %v700_v22  ;;  %v4667_v12 = vmul.f32 %v1213_v16, %v701_v27 }
 0x184   :  { %v4669_v11 = vmul.f32 %v1213_v16, %v702_v38  ;;  %v4671_v45 = vmul.f32 %v1213_v16, %v703_v47  ;;  %v4673_v31 = vmul.f32 %v1213_v16, %v704_v34  ;;  %v1656_v55 = vmul.f32 %v1213_v16, %v706_v62 }
 0x185   :  { %v681_v50 = vunpack.c.l.bf16 %v199_v54  ;;  %v682_v6 = vunpack.c.h.bf16 %v199_v54  ;;  %v683_v14 = vunpack.c.l.bf16 %v200_v3  ;;  %v684_v33 = vunpack.c.h.bf16 %v200_v3 }
 0x186   :  { %v4675_v40 = vmul.f32 %v1213_v16, %v705_v59  ;;  %v685_v1 = vunpack.c.l.bf16 %v201_v17  ;;  %v686_v19 = vunpack.c.h.bf16 %v201_v17  ;;  %v687_v32 = vunpack.c.l.bf16 %v202_v63 }
 0x187   :  { %v688_v53 = vunpack.c.h.bf16 %v202_v63  ;;  %v689_v37 = vunpack.c.l.bf16 %v203_v9  ;;  %v690_v46 = vunpack.c.h.bf16 %v203_v9  ;;  %v691_v60 = vunpack.c.l.bf16 %v204_v15 }
 0x188   :  { %v4678_v30 = vsel %vm2655_vm0, %v1656_v55, 0.0  ;;  %v692_v35 = vunpack.c.h.bf16 %v204_v15  ;;  %v693_v42 = vunpack.c.l.bf16 %v4648_v26  ;;  %v1631_v22 = vmul.f32 %v1208_v36, %v681_v50 }
 0x189   :  { %v1632_v27 = vmul.f32 %v1208_v36, %v682_v6  ;;  %v1633_v38 = vmul.f32 %v1208_v36, %v683_v14  ;;  %v1634_v47 = vmul.f32 %v1208_v36, %v684_v33  ;;  %v1635_v34 = vmul.f32 %v1208_v36, %v685_v1 }
 0x18a   :  { %v1636_v16 = vmul.f32 %v1208_v36, %v686_v19  ;;  %v1637_v59 = vmul.f32 %v1208_v36, %v687_v32  ;;  %v1638_v62 = vmul.f32 %v1208_v36, %v688_v53  ;;  %v1639_v54 = vmul.f32 %v1208_v36, %v689_v37  ;;  %v7277_v19 = vld [vmem:[#allocation112_spill] sm:$0xff]  ;;  %v221_v53 = vld [vmem:[#allocation3 + $0x51c] sm:$0xff] }
 0x18b   :  { %v1640_v3 = vmul.f32 %v1208_v36, %v690_v46  ;;  %v1641_v17 = vmul.f32 %v1208_v36, %v691_v60  ;;  %v1642_v63 = vmul.f32 %v1208_v36, %v692_v35  ;;  %v2015_v9 = vadd.f32 %v4613_v25, %v4563_v2  ;;  %v7273_v2 = vld [vmem:[#allocation15_spill] sm:$0xff]  ;;  %v223_v35 = vld [vmem:[#allocation3 + $0x52c] sm:$0xff] }
 0x18c   :  { %v2070_v55 = vadd.f32 %v4615_v61, %v4567_v21  ;;  %v2125_v26 = vadd.f32 %v4617_v44, %v4571_v29  ;;  %v2180_v15 = vadd.f32 %v4619_v48, %v4575_v57  ;;  %v2235_v50 = vadd.f32 %v4621_v49, %v4577_v10  ;;  %v220_v44 = vld [vmem:[#allocation3 + $0x514] sm:$0xff]  ;;  %v7274_v49 = vld [vmem:[#allocation16_spill] sm:$0xff] }
 0x18d   :  { %v1643_v6 = vmul.f32 %v1208_v36, %v693_v42  ;;  %v2290_v14 = vadd.f32 %v4623_v8, %v4579_v52  ;;  %v2345_v33 = vadd.f32 %v4625_v39, %v4581_v24  ;;  %v2400_v25 = vadd.f32 %v4629_v7, %v7273_v2  ;;  %v7275_v39 = vld [vmem:[#allocation110_spill] sm:$0xff]  ;;  %v7276_v36 = vld [vmem:[#allocation111_spill] sm:$0xff]  ;;  %v214_v2 = vld [vmem:[#allocation3 + $0x4e8] sm:$0xff] }
 0x18e   :  { %v4697_v21 = vadd.f32 %v2015_v9, %v1631_v22  ;;  %v4699_v61 = vadd.f32 %v2070_v55, %v1632_v27  ;;  %v4701_v29 = vadd.f32 %v2125_v26, %v1633_v38  ;;  %v4703_v57 = vadd.f32 %v2180_v15, %v1634_v47  ;;  %v222_v37 = vld [vmem:[#allocation3 + $0x524] sm:$0xff]  ;;  %v224_v42 = vld [vmem:[#allocation3 + $0x534] sm:$0xff]  ;;  %v225_v38 = vld [vmem:[#allocation3 + $0x53c] sm:$0xff] }
 0x18f   :  { %v4705_v10 = vadd.f32 %v2235_v50, %v1635_v34  ;;  %v4707_v48 = vadd.f32 %v2290_v14, %v1636_v16  ;;  %v4709_v52 = vadd.f32 %v2345_v33, %v1637_v59  ;;  %v2455_v24 = vadd.f32 %v4637_v56, %v7274_v49  ;;  %v1223_v34 = vpop.permute.xlu1 %1222  ;;  %v213_v33 = vld [vmem:[#allocation3 + $0x4e0] sm:$0xff] }
 0x190   :  { %v4713_v8 = vadd.f32 %v2400_v25, %v1638_v62  ;;  %v2510_v7 = vadd.f32 %v4642_v13, %v7275_v39  ;;  %v2565_v1 = vadd.f32 %v4644_v4, %v7276_v36  ;;  %v2620_v32 = vadd.f32 %v4646_v20, %v7277_v19  ;;  %v4732_v20 = vld [vmem:[#allocation3 + $0x510] ss:$52 sps:$4 sm:$0xff]  }
 0x191   :  { %v4721_v46 = vadd.f32 %v2455_v24, %v1639_v54  ;;  %v2698_v60 = vadd.f32 %v4594_v28, %v4650_v5  ;;  %v2699_v56 = vsel %vm2655_vm0, %v1643_v6, 0.0  ;;  %v720_v22 = vunpack.c.l.bf16 %v220_v44  ;;  %v215_v39 = vld [vmem:[#allocation3 + $0x4f0] sm:$0xff] }
 0x192   :  { %v4726_v27 = vadd.f32 %v2510_v7, %v1640_v3  ;;  %v4728_v13 = vadd.f32 %v2565_v1, %v1641_v17  ;;  %v4730_v4 = vadd.f32 %v2620_v32, %v1642_v63  ;;  %v721_v47 = vunpack.c.h.bf16 %v220_v44  ;;  %v216_v7 = vld [vmem:[#allocation3 + $0x4f8] sm:$0xff] }
 0x193   :  { %v722_v16 = vunpack.c.l.bf16 %v221_v53  ;;  %v723_v59 = vunpack.c.h.bf16 %v221_v53  ;;  %v724_v62 = vunpack.c.l.bf16 %v222_v37  ;;  %v725_v28 = vunpack.c.h.bf16 %v222_v37  ;;  %v217_v53 = vld [vmem:[#allocation3 + $0x500] sm:$0xff]  ;;  %v218_v37 = vld [vmem:[#allocation3 + $0x508] sm:$0xff] }
 0x194   :  { %v726_v5 = vunpack.c.l.bf16 %v223_v35  ;;  %v727_v54 = vunpack.c.h.bf16 %v223_v35  ;;  %v728_v9 = vunpack.c.l.bf16 %v224_v42  ;;  %v729_v55 = vunpack.c.h.bf16 %v224_v42 }
 0x195   :  { %v4734_v26 = vadd.f32 %v2699_v56, %v2698_v60  ;;  %v730_v3 = vunpack.c.l.bf16 %v225_v38  ;;  %v731_v17 = vunpack.c.h.bf16 %v225_v38  ;;  %v732_v63 = vunpack.c.h.bf16 %v4732_v20  ;;  %v1218_v60 = vpop.permute.xlu0 %1217 }
 0x196   :  { %v4737_v15 = vmul.f32 %v1223_v34, %v720_v22  ;;  %v4739_v50 = vmul.f32 %v1223_v34, %v721_v47  ;;  %v4741_v6 = vmul.f32 %v1223_v34, %v722_v16  ;;  %v4743_v14 = vmul.f32 %v1223_v34, %v723_v59 }
 0x197   :  { %v4745_v25 = vmul.f32 %v1223_v34, %v724_v62  ;;  %v4747_v44 = vmul.f32 %v1223_v34, %v725_v28  ;;  %v4749_v49 = vmul.f32 %v1223_v34, %v726_v5  ;;  %v4751_v24 = vmul.f32 %v1223_v34, %v727_v54 }
 0x198   :  { %v4753_v36 = vmul.f32 %v1223_v34, %v728_v9  ;;  %v4755_v1 = vmul.f32 %v1223_v34, %v729_v55  ;;  %v4757_v19 = vmul.f32 %v1223_v34, %v730_v3  ;;  %v1682_v32 = vmul.f32 %v1223_v34, %v732_v63 }
 0x199   :  { %7278 = vst [vmem:[#allocation113_spill] sm:$0xff] %v4751_v24  ;;  %v707_v56 = vunpack.c.l.bf16 %v213_v33  ;;  %v708_v35 = vunpack.c.h.bf16 %v213_v33  ;;  %v709_v42 = vunpack.c.l.bf16 %v214_v2  ;;  %v710_v22 = vunpack.c.h.bf16 %v214_v2 }
 0x19a   :  { %7279 = vst [vmem:[#allocation114_spill] sm:$0xff] %v4753_v36  ;;  %7280 = vst [vmem:[#allocation115_spill] sm:$0xff] %v4755_v1  ;;  %v4759_v38 = vmul.f32 %v1223_v34, %v731_v17  ;;  %v711_v47 = vunpack.c.l.bf16 %v215_v39  ;;  %v712_v16 = vunpack.c.h.bf16 %v215_v39  ;;  %v713_v59 = vunpack.c.l.bf16 %v216_v7 }
 0x19b   :  { %7281 = vst [vmem:[#allocation116_spill] sm:$0xff] %v4757_v19  ;;  %v714_v62 = vunpack.c.h.bf16 %v216_v7  ;;  %v715_v28 = vunpack.c.l.bf16 %v217_v53  ;;  %v716_v5 = vunpack.c.h.bf16 %v217_v53  ;;  %v717_v54 = vunpack.c.l.bf16 %v218_v37 }
 0x19c   :  { %7282 = vst [vmem:[#allocation117_spill] sm:$0xff] %v4759_v38  ;;  %v4762_v9 = vsel %vm2655_vm0, %v1682_v32, 0.0  ;;  %v718_v55 = vunpack.c.h.bf16 %v218_v37  ;;  %v719_v3 = vunpack.c.l.bf16 %v4732_v20  ;;  %v1657_v63 = vmul.f32 %v1218_v60, %v707_v56 }
 0x19d   :  { %v1658_v19 = vmul.f32 %v1218_v60, %v708_v35  ;;  %v1659_v33 = vmul.f32 %v1218_v60, %v709_v42  ;;  %v1660_v1 = vmul.f32 %v1218_v60, %v710_v22  ;;  %v1661_v2 = vmul.f32 %v1218_v60, %v711_v47 }
 0x19e   :  { %v1662_v34 = vmul.f32 %v1218_v60, %v712_v16  ;;  %v1663_v17 = vmul.f32 %v1218_v60, %v713_v59  ;;  %v1664_v38 = vmul.f32 %v1218_v60, %v714_v62  ;;  %v1665_v39 = vmul.f32 %v1218_v60, %v715_v28 }
 0x19f   :  { %v1666_v36 = vmul.f32 %v1218_v60, %v716_v5  ;;  %v1667_v7 = vmul.f32 %v1218_v60, %v717_v54  ;;  %v1668_v24 = vmul.f32 %v1218_v60, %v718_v55  ;;  %v2017_v53 = vadd.f32 %v4697_v21, %v4653_v18 }
 0x1a0   :  { %v2072_v32 = vadd.f32 %v4699_v61, %v4655_v58  ;;  %v2127_v20 = vadd.f32 %v4701_v29, %v4657_v51  ;;  %v2182_v37 = vadd.f32 %v4703_v57, %v4659_v0  ;;  %v2237_v56 = vadd.f32 %v4705_v10, %v4661_v41  ;;  %v234_v61 = vld [vmem:[#allocation3 + $0x57c] sm:$0xff] }
 0x1a1   :  { %v1669_v35 = vmul.f32 %v1218_v60, %v719_v3  ;;  %v2292_v42 = vadd.f32 %v4707_v48, %v4663_v43  ;;  %v2347_v22 = vadd.f32 %v4709_v52, %v4665_v23  ;;  %v2402_v18 = vadd.f32 %v4713_v8, %v4667_v12  ;;  %v235_v52 = vld [vmem:[#allocation3 + $0x584] sm:$0xff]  ;;  %v236_v8 = vld [vmem:[#allocation3 + $0x58c] sm:$0xff]  ;;  %v238_v60 = vld [vmem:[#allocation3 + $0x59c] sm:$0xff] }
 0x1a2   :  { %v4781_v58 = vadd.f32 %v2017_v53, %v1657_v63  ;;  %v4783_v21 = vadd.f32 %v2072_v32, %v1658_v19  ;;  %v4785_v51 = vadd.f32 %v2127_v20, %v1659_v33  ;;  %v4787_v0 = vadd.f32 %v2182_v37, %v1660_v1  ;;  %v229_v37 = vld [vmem:[#allocation3 + $0x558] sm:$0xff] }
 0x1a3   :  { %v4789_v41 = vadd.f32 %v2237_v56, %v1661_v2  ;;  %v4791_v29 = vadd.f32 %v2292_v42, %v1662_v34  ;;  %v4793_v43 = vadd.f32 %v2347_v22, %v1663_v17  ;;  %v2457_v23 = vadd.f32 %v4721_v46, %v4669_v11  ;;  %v237_v46 = vld [vmem:[#allocation3 + $0x594] sm:$0xff]  ;;  %v227_v17 = vld [vmem:[#allocation3 + $0x548] sm:$0xff]  ;;  %v230_v56 = vld [vmem:[#allocation3 + $0x560] sm:$0xff] }
 0x1a4   :  { %v4797_v57 = vadd.f32 %v2402_v18, %v1664_v38  ;;  %v2512_v12 = vadd.f32 %v4726_v27, %v4671_v45  ;;  %v2567_v10 = vadd.f32 %v4728_v13, %v4673_v31  ;;  %v2622_v48 = vadd.f32 %v4730_v4, %v4675_v40  ;;  %v239_v27 = vld [vmem:[#allocation3 + $0x5a4] sm:$0xff]  ;;  %v4816_v40 = vld [vmem:[#allocation3 + $0x578] ss:$52 sps:$4 sm:$0xff]   ;;  %v1233_v4 = vpop.permute.xlu1 %1232 }
 0x1a5   :  { %v4805_v1 = vadd.f32 %v2457_v23, %v1665_v39  ;;  %v2702_v19 = vadd.f32 %v4678_v30, %v4734_v26  ;;  %v2703_v11 = vsel %vm2655_vm0, %v1669_v35, 0.0  ;;  %v746_v38 = vunpack.c.l.bf16 %v234_v61  ;;  %v228_v39 = vld [vmem:[#allocation3 + $0x550] sm:$0xff] }
 0x1a6   :  { %v4810_v47 = vadd.f32 %v2512_v12, %v1666_v36  ;;  %v4812_v45 = vadd.f32 %v2567_v10, %v1667_v7  ;;  %v4814_v31 = vadd.f32 %v2622_v48, %v1668_v24  ;;  %v747_v13 = vunpack.c.h.bf16 %v234_v61  ;;  %v231_v61 = vld [vmem:[#allocation3 + $0x568] sm:$0xff]  ;;  %v232_v23 = vld [vmem:[#allocation3 + $0x570] sm:$0xff]  ;;  %v1228_v12 = vpop.permute.xlu0 %1227 }
 0x1a7   :  { %v748_v16 = vunpack.c.l.bf16 %v235_v52  ;;  %v749_v59 = vunpack.c.h.bf16 %v235_v52  ;;  %v750_v62 = vunpack.c.l.bf16 %v236_v8  ;;  %v751_v30 = vunpack.c.h.bf16 %v236_v8 }
 0x1a8   :  { %v752_v26 = vunpack.c.l.bf16 %v237_v46  ;;  %v753_v28 = vunpack.c.h.bf16 %v237_v46  ;;  %v754_v5 = vunpack.c.l.bf16 %v238_v60  ;;  %v755_v54 = vunpack.c.h.bf16 %v238_v60 }
 0x1a9   :  { %v4818_v55 = vadd.f32 %v2703_v11, %v2702_v19  ;;  %v756_v36 = vunpack.c.l.bf16 %v239_v27  ;;  %v757_v3 = vunpack.c.h.bf16 %v239_v27  ;;  %v758_v24 = vunpack.c.h.bf16 %v4816_v40 }
 0x1aa   :  { %v4821_v63 = vmul.f32 %v1233_v4, %v746_v38  ;;  %v4823_v33 = vmul.f32 %v1233_v4, %v747_v13  ;;  %v4825_v2 = vmul.f32 %v1233_v4, %v748_v16  ;;  %v4827_v34 = vmul.f32 %v1233_v4, %v749_v59 }
 0x1ab   :  { %v4829_v7 = vmul.f32 %v1233_v4, %v750_v62  ;;  %v4831_v53 = vmul.f32 %v1233_v4, %v751_v30  ;;  %v4833_v32 = vmul.f32 %v1233_v4, %v752_v26  ;;  %v4835_v20 = vmul.f32 %v1233_v4, %v753_v28 }
 0x1ac   :  { %v4837_v35 = vmul.f32 %v1233_v4, %v754_v5  ;;  %v4839_v42 = vmul.f32 %v1233_v4, %v755_v54  ;;  %v4841_v22 = vmul.f32 %v1233_v4, %v756_v36  ;;  %v1708_v18 = vmul.f32 %v1233_v4, %v758_v24 }
 0x1ad   :  { %v733_v10 = vunpack.c.l.bf16 %v227_v17  ;;  %v734_v48 = vunpack.c.h.bf16 %v227_v17  ;;  %v735_v52 = vunpack.c.l.bf16 %v228_v39  ;;  %v736_v8 = vunpack.c.h.bf16 %v228_v39 }
 0x1ae   :  { %v4843_v19 = vmul.f32 %v1233_v4, %v757_v3  ;;  %v737_v11 = vunpack.c.l.bf16 %v229_v37  ;;  %v738_v46 = vunpack.c.h.bf16 %v229_v37  ;;  %v739_v60 = vunpack.c.l.bf16 %v230_v56 }
 0x1af   :  { %v740_v38 = vunpack.c.h.bf16 %v230_v56  ;;  %v741_v27 = vunpack.c.l.bf16 %v231_v61  ;;  %v742_v13 = vunpack.c.h.bf16 %v231_v61  ;;  %v743_v16 = vunpack.c.l.bf16 %v232_v23 }
 0x1b0   :  { %v4846_v59 = vsel %vm2655_vm0, %v1708_v18, 0.0  ;;  %v744_v62 = vunpack.c.h.bf16 %v232_v23  ;;  %v745_v30 = vunpack.c.l.bf16 %v4816_v40  ;;  %v1683_v26 = vmul.f32 %v1228_v12, %v733_v10 }
 0x1b1   :  { %v1684_v28 = vmul.f32 %v1228_v12, %v734_v48  ;;  %v1685_v5 = vmul.f32 %v1228_v12, %v735_v52  ;;  %v1686_v54 = vmul.f32 %v1228_v12, %v736_v8  ;;  %v1687_v36 = vmul.f32 %v1228_v12, %v737_v11 }
 0x1b2   :  { %v1688_v4 = vmul.f32 %v1228_v12, %v738_v46  ;;  %v1689_v3 = vmul.f32 %v1228_v12, %v739_v60  ;;  %v1690_v24 = vmul.f32 %v1228_v12, %v740_v38  ;;  %v1691_v17 = vmul.f32 %v1228_v12, %v741_v27  ;;  %v7287_v46 = vld [vmem:[#allocation117_spill] sm:$0xff] }
 0x1b3   :  { %v1692_v39 = vmul.f32 %v1228_v12, %v742_v13  ;;  %v1693_v37 = vmul.f32 %v1228_v12, %v743_v16  ;;  %v1694_v56 = vmul.f32 %v1228_v12, %v744_v62  ;;  %v2019_v61 = vadd.f32 %v4781_v58, %v4737_v15  ;;  %v7283_v15 = vld [vmem:[#allocation113_spill] sm:$0xff]  ;;  %v251_v62 = vld [vmem:[#allocation3 + $0x5fc] sm:$0xff] }
 0x1b4   :  { %v2074_v18 = vadd.f32 %v4783_v21, %v4739_v50  ;;  %v2129_v40 = vadd.f32 %v4785_v51, %v4741_v6  ;;  %v2184_v23 = vadd.f32 %v4787_v0, %v4743_v14  ;;  %v2239_v10 = vadd.f32 %v4789_v41, %v4745_v25  ;;  %v248_v51 = vld [vmem:[#allocation3 + $0x5e4] sm:$0xff]  ;;  %v7284_v41 = vld [vmem:[#allocation114_spill] sm:$0xff]  ;;  %v249_v38 = vld [vmem:[#allocation3 + $0x5ec] sm:$0xff] }
 0x1b5   :  { %v1695_v48 = vmul.f32 %v1228_v12, %v745_v30  ;;  %v2294_v52 = vadd.f32 %v4791_v29, %v4747_v44  ;;  %v2349_v8 = vadd.f32 %v4793_v43, %v4749_v49  ;;  %v2404_v58 = vadd.f32 %v4797_v57, %v7283_v15  ;;  %v7285_v43 = vld [vmem:[#allocation115_spill] sm:$0xff]  ;;  %v7286_v12 = vld [vmem:[#allocation116_spill] sm:$0xff]  ;;  %v250_v27 = vld [vmem:[#allocation3 + $0x5f4] sm:$0xff] }
 0x1b6   :  { %v4865_v50 = vadd.f32 %v2019_v61, %v1683_v26  ;;  %v4867_v21 = vadd.f32 %v2074_v18, %v1684_v28  ;;  %v4869_v6 = vadd.f32 %v2129_v40, %v1685_v5  ;;  %v4871_v14 = vadd.f32 %v2184_v23, %v1686_v54  ;;  %v252_v30 = vld [vmem:[#allocation3 + $0x604] sm:$0xff]  ;;  %v253_v5 = vld [vmem:[#allocation3 + $0x60c] sm:$0xff]  ;;  %v242_v15 = vld [vmem:[#allocation3 + $0x5b8] sm:$0xff] }
 0x1b7   :  { %v4873_v25 = vadd.f32 %v2239_v10, %v1687_v36  ;;  %v4875_v0 = vadd.f32 %v2294_v52, %v1688_v4  ;;  %v4877_v44 = vadd.f32 %v2349_v8, %v1689_v3  ;;  %v2459_v49 = vadd.f32 %v4805_v1, %v7284_v41  ;;  %v1243_v36 = vpop.permute.xlu1 %1242  ;;  %v241_v8 = vld [vmem:[#allocation3 + $0x5b0] sm:$0xff] }
 0x1b8   :  { %v4881_v29 = vadd.f32 %v2404_v58, %v1690_v24  ;;  %v2514_v57 = vadd.f32 %v4810_v47, %v7285_v43  ;;  %v2569_v11 = vadd.f32 %v4812_v45, %v7286_v12  ;;  %v2624_v60 = vadd.f32 %v4814_v31, %v7287_v46  ;;  %v4900_v31 = vld [vmem:[#allocation3 + $0x5e0] ss:$52 sps:$4 sm:$0xff]  }
 0x1b9   :  { %v4889_v13 = vadd.f32 %v2459_v49, %v1691_v17  ;;  %v2706_v16 = vadd.f32 %v4762_v9, %v4818_v55  ;;  %v2707_v1 = vsel %vm2655_vm0, %v1695_v48, 0.0  ;;  %v772_v26 = vunpack.c.l.bf16 %v248_v51  ;;  %v243_v43 = vld [vmem:[#allocation3 + $0x5c0] sm:$0xff] }
 0x1ba   :  { %v4894_v28 = vadd.f32 %v2514_v57, %v1692_v39  ;;  %v4896_v47 = vadd.f32 %v2569_v11, %v1693_v37  ;;  %v4898_v45 = vadd.f32 %v2624_v60, %v1694_v56  ;;  %v773_v54 = vunpack.c.h.bf16 %v248_v51  ;;  %v244_v57 = vld [vmem:[#allocation3 + $0x5c8] sm:$0xff] }
 0x1bb   :  { %v774_v4 = vunpack.c.l.bf16 %v249_v38  ;;  %v775_v3 = vunpack.c.h.bf16 %v249_v38  ;;  %v776_v24 = vunpack.c.l.bf16 %v250_v27  ;;  %v777_v9 = vunpack.c.h.bf16 %v250_v27  ;;  %v245_v38 = vld [vmem:[#allocation3 + $0x5d0] sm:$0xff]  ;;  %v246_v27 = vld [vmem:[#allocation3 + $0x5d8] sm:$0xff] }
 0x1bc   :  { %v778_v55 = vunpack.c.l.bf16 %v251_v62  ;;  %v779_v17 = vunpack.c.h.bf16 %v251_v62  ;;  %v780_v61 = vunpack.c.l.bf16 %v252_v30  ;;  %v781_v18 = vunpack.c.h.bf16 %v252_v30 }
 0x1bd   :  { %v4902_v40 = vadd.f32 %v2707_v1, %v2706_v16  ;;  %v782_v39 = vunpack.c.l.bf16 %v253_v5  ;;  %v783_v37 = vunpack.c.h.bf16 %v253_v5  ;;  %v784_v56 = vunpack.c.h.bf16 %v4900_v31  ;;  %v1238_v16 = vpop.permute.xlu0 %1237 }
 0x1be   :  { %v4905_v23 = vmul.f32 %v1243_v36, %v772_v26  ;;  %v4907_v10 = vmul.f32 %v1243_v36, %v773_v54  ;;  %v4909_v48 = vmul.f32 %v1243_v36, %v774_v4  ;;  %v4911_v52 = vmul.f32 %v1243_v36, %v775_v3 }
 0x1bf   :  { %v4913_v58 = vmul.f32 %v1243_v36, %v776_v24  ;;  %v4915_v51 = vmul.f32 %v1243_v36, %v777_v9  ;;  %v4917_v41 = vmul.f32 %v1243_v36, %v778_v55  ;;  %v4919_v49 = vmul.f32 %v1243_v36, %v779_v17 }
 0x1c0   :  { %v4921_v12 = vmul.f32 %v1243_v36, %v780_v61  ;;  %v4923_v11 = vmul.f32 %v1243_v36, %v781_v18  ;;  %v4925_v46 = vmul.f32 %v1243_v36, %v782_v39  ;;  %v1734_v60 = vmul.f32 %v1243_v36, %v784_v56 }
 0x1c1   :  { %7288 = vst [vmem:[#allocation118_spill] sm:$0xff] %v4919_v49  ;;  %v759_v1 = vunpack.c.l.bf16 %v241_v8  ;;  %v760_v62 = vunpack.c.h.bf16 %v241_v8  ;;  %v761_v30 = vunpack.c.l.bf16 %v242_v15  ;;  %v762_v26 = vunpack.c.h.bf16 %v242_v15 }
 0x1c2   :  { %7289 = vst [vmem:[#allocation119_spill] sm:$0xff] %v4921_v12  ;;  %7290 = vst [vmem:[#allocation120_spill] sm:$0xff] %v4923_v11  ;;  %v4927_v5 = vmul.f32 %v1243_v36, %v783_v37  ;;  %v763_v54 = vunpack.c.l.bf16 %v243_v43  ;;  %v764_v4 = vunpack.c.h.bf16 %v243_v43  ;;  %v765_v3 = vunpack.c.l.bf16 %v244_v57 }
 0x1c3   :  { %7291 = vst [vmem:[#allocation121_spill] sm:$0xff] %v4925_v46  ;;  %v766_v24 = vunpack.c.h.bf16 %v244_v57  ;;  %v767_v9 = vunpack.c.l.bf16 %v245_v38  ;;  %v768_v55 = vunpack.c.h.bf16 %v245_v38  ;;  %v769_v17 = vunpack.c.l.bf16 %v246_v27 }
 0x1c4   :  { %7292 = vst [vmem:[#allocation17_spill] sm:$0xff] %v4927_v5  ;;  %v4930_v61 = vsel %vm2655_vm0, %v1734_v60, 0.0  ;;  %v770_v18 = vunpack.c.h.bf16 %v246_v27  ;;  %v771_v39 = vunpack.c.l.bf16 %v4900_v31  ;;  %v1709_v56 = vmul.f32 %v1238_v16, %v759_v1 }
 0x1c5   :  { %v1710_v46 = vmul.f32 %v1238_v16, %v760_v62  ;;  %v1711_v8 = vmul.f32 %v1238_v16, %v761_v30  ;;  %v1712_v11 = vmul.f32 %v1238_v16, %v762_v26  ;;  %v1713_v15 = vmul.f32 %v1238_v16, %v763_v54 }
 0x1c6   :  { %v1714_v36 = vmul.f32 %v1238_v16, %v764_v4  ;;  %v1715_v37 = vmul.f32 %v1238_v16, %v765_v3  ;;  %v1716_v5 = vmul.f32 %v1238_v16, %v766_v24  ;;  %v1717_v43 = vmul.f32 %v1238_v16, %v767_v9 }
 0x1c7   :  { %v1718_v12 = vmul.f32 %v1238_v16, %v768_v55  ;;  %v1719_v57 = vmul.f32 %v1238_v16, %v769_v17  ;;  %v1720_v49 = vmul.f32 %v1238_v16, %v770_v18  ;;  %v2021_v38 = vadd.f32 %v4865_v50, %v4821_v63 }
 0x1c8   :  { %v2076_v60 = vadd.f32 %v4867_v21, %v4823_v33  ;;  %v2131_v31 = vadd.f32 %v4869_v6, %v4825_v2  ;;  %v2186_v27 = vadd.f32 %v4871_v14, %v4827_v34  ;;  %v2241_v1 = vadd.f32 %v4873_v25, %v4829_v7  ;;  %v262_v21 = vld [vmem:[#allocation3 + $0x64c] sm:$0xff] }
 0x1c9   :  { %v1721_v62 = vmul.f32 %v1238_v16, %v771_v39  ;;  %v2296_v30 = vadd.f32 %v4875_v0, %v4831_v53  ;;  %v2351_v26 = vadd.f32 %v4877_v44, %v4833_v32  ;;  %v2406_v63 = vadd.f32 %v4881_v29, %v4835_v20  ;;  %v263_v44 = vld [vmem:[#allocation3 + $0x654] sm:$0xff]  ;;  %v264_v29 = vld [vmem:[#allocation3 + $0x65c] sm:$0xff]  ;;  %v266_v16 = vld [vmem:[#allocation3 + $0x66c] sm:$0xff] }
 0x1ca   :  { %v4949_v33 = vadd.f32 %v2021_v38, %v1709_v56  ;;  %v4951_v50 = vadd.f32 %v2076_v60, %v1710_v46  ;;  %v4953_v2 = vadd.f32 %v2131_v31, %v1711_v8  ;;  %v4955_v34 = vadd.f32 %v2186_v27, %v1712_v11  ;;  %v257_v27 = vld [vmem:[#allocation3 + $0x628] sm:$0xff] }
 0x1cb   :  { %v4957_v7 = vadd.f32 %v2241_v1, %v1713_v15  ;;  %v4959_v6 = vadd.f32 %v2296_v30, %v1714_v36  ;;  %v4961_v53 = vadd.f32 %v2351_v26, %v1715_v37  ;;  %v2461_v32 = vadd.f32 %v4889_v13, %v4837_v35  ;;  %v265_v13 = vld [vmem:[#allocation3 + $0x664] sm:$0xff]  ;;  %v255_v37 = vld [vmem:[#allocation3 + $0x618] sm:$0xff]  ;;  %v258_v1 = vld [vmem:[#allocation3 + $0x630] sm:$0xff] }
 0x1cc   :  { %v4965_v14 = vadd.f32 %v2406_v63, %v1716_v5  ;;  %v2516_v20 = vadd.f32 %v4894_v28, %v4839_v42  ;;  %v2571_v25 = vadd.f32 %v4896_v47, %v4841_v22  ;;  %v2626_v0 = vadd.f32 %v4898_v45, %v4843_v19  ;;  %v267_v28 = vld [vmem:[#allocation3 + $0x674] sm:$0xff]  ;;  %v4984_v19 = vld [vmem:[#allocation3 + $0x648] ss:$52 sps:$4 sm:$0xff]   ;;  %v1253_v45 = vpop.permute.xlu1 %1252 }
 0x1cd   :  { %v4973_v11 = vadd.f32 %v2461_v32, %v1717_v43  ;;  %v2710_v46 = vadd.f32 %v4846_v59, %v4902_v40  ;;  %v2711_v35 = vsel %vm2655_vm0, %v1721_v62, 0.0  ;;  %v798_v5 = vunpack.c.l.bf16 %v262_v21  ;;  %v256_v43 = vld [vmem:[#allocation3 + $0x620] sm:$0xff] }
 0x1ce   :  { %v4978_v54 = vadd.f32 %v2516_v20, %v1718_v12  ;;  %v4980_v42 = vadd.f32 %v2571_v25, %v1719_v57  ;;  %v4982_v22 = vadd.f32 %v2626_v0, %v1720_v49  ;;  %v799_v47 = vunpack.c.h.bf16 %v262_v21  ;;  %v259_v21 = vld [vmem:[#allocation3 + $0x638] sm:$0xff]  ;;  %v260_v32 = vld [vmem:[#allocation3 + $0x640] sm:$0xff]  ;;  %v1248_v20 = vpop.permute.xlu0 %1247 }
 0x1cf   :  { %v800_v4 = vunpack.c.l.bf16 %v263_v44  ;;  %v801_v3 = vunpack.c.h.bf16 %v263_v44  ;;  %v802_v24 = vunpack.c.l.bf16 %v264_v29  ;;  %v803_v59 = vunpack.c.h.bf16 %v264_v29 }
 0x1d0   :  { %v804_v40 = vunpack.c.l.bf16 %v265_v13  ;;  %v805_v9 = vunpack.c.h.bf16 %v265_v13  ;;  %v806_v55 = vunpack.c.l.bf16 %v266_v16  ;;  %v807_v17 = vunpack.c.h.bf16 %v266_v16 }
 0x1d1   :  { %v4986_v18 = vadd.f32 %v2711_v35, %v2710_v46  ;;  %v808_v12 = vunpack.c.l.bf16 %v267_v28  ;;  %v809_v39 = vunpack.c.h.bf16 %v267_v28  ;;  %v810_v49 = vunpack.c.h.bf16 %v4984_v19 }
 0x1d2   :  { %v4989_v56 = vmul.f32 %v1253_v45, %v798_v5  ;;  %v4991_v8 = vmul.f32 %v1253_v45, %v799_v47  ;;  %v4993_v15 = vmul.f32 %v1253_v45, %v800_v4  ;;  %v4995_v36 = vmul.f32 %v1253_v45, %v801_v3 }
 0x1d3   :  { %v4997_v57 = vmul.f32 %v1253_v45, %v802_v24  ;;  %v4999_v38 = vmul.f32 %v1253_v45, %v803_v59  ;;  %v5001_v60 = vmul.f32 %v1253_v45, %v804_v40  ;;  %v5003_v31 = vmul.f32 %v1253_v45, %v805_v9 }
 0x1d4   :  { %v5005_v62 = vmul.f32 %v1253_v45, %v806_v55  ;;  %v5007_v30 = vmul.f32 %v1253_v45, %v807_v17  ;;  %v5009_v26 = vmul.f32 %v1253_v45, %v808_v12  ;;  %v1760_v63 = vmul.f32 %v1253_v45, %v810_v49 }
 0x1d5   :  { %v785_v25 = vunpack.c.l.bf16 %v255_v37  ;;  %v786_v0 = vunpack.c.h.bf16 %v255_v37  ;;  %v787_v44 = vunpack.c.l.bf16 %v256_v43  ;;  %v788_v29 = vunpack.c.h.bf16 %v256_v43 }
 0x1d6   :  { %v5011_v46 = vmul.f32 %v1253_v45, %v809_v39  ;;  %v789_v35 = vunpack.c.l.bf16 %v257_v27  ;;  %v790_v13 = vunpack.c.h.bf16 %v257_v27  ;;  %v791_v16 = vunpack.c.l.bf16 %v258_v1 }
 0x1d7   :  { %v792_v5 = vunpack.c.h.bf16 %v258_v1  ;;  %v793_v28 = vunpack.c.l.bf16 %v259_v21  ;;  %v794_v47 = vunpack.c.h.bf16 %v259_v21  ;;  %v795_v4 = vunpack.c.l.bf16 %v260_v32 }
 0x1d8   :  { %v5014_v3 = vsel %vm2655_vm0, %v1760_v63, 0.0  ;;  %v796_v24 = vunpack.c.h.bf16 %v260_v32  ;;  %v797_v59 = vunpack.c.l.bf16 %v4984_v19  ;;  %v1735_v40 = vmul.f32 %v1248_v20, %v785_v25 }
 0x1d9   :  { %v1736_v9 = vmul.f32 %v1248_v20, %v786_v0  ;;  %v1737_v55 = vmul.f32 %v1248_v20, %v787_v44  ;;  %v1738_v17 = vmul.f32 %v1248_v20, %v788_v29  ;;  %v1739_v12 = vmul.f32 %v1248_v20, %v789_v35 }
 0x1da   :  { %v1740_v45 = vmul.f32 %v1248_v20, %v790_v13  ;;  %v1741_v39 = vmul.f32 %v1248_v20, %v791_v16  ;;  %v1742_v49 = vmul.f32 %v1248_v20, %v792_v5  ;;  %v1743_v37 = vmul.f32 %v1248_v20, %v793_v28  ;;  %v7297_v13 = vld [vmem:[#allocation17_spill] sm:$0xff]  ;;  %v277_v5 = vld [vmem:[#allocation3 + $0x6bc] sm:$0xff]  ;;  %v278_v28 = vld [vmem:[#allocation3 + $0x6c4] sm:$0xff] }
 0x1db   :  { %v1744_v43 = vmul.f32 %v1248_v20, %v794_v47  ;;  %v1745_v27 = vmul.f32 %v1248_v20, %v795_v4  ;;  %v1746_v1 = vmul.f32 %v1248_v20, %v796_v24  ;;  %v2023_v21 = vadd.f32 %v4949_v33, %v4905_v23  ;;  %v7293_v23 = vld [vmem:[#allocation118_spill] sm:$0xff]  ;;  %v279_v24 = vld [vmem:[#allocation3 + $0x6cc] sm:$0xff] }
 0x1dc   :  { %v2078_v63 = vadd.f32 %v4951_v50, %v4907_v10  ;;  %v2133_v19 = vadd.f32 %v4953_v2, %v4909_v48  ;;  %v2188_v32 = vadd.f32 %v4955_v34, %v4911_v52  ;;  %v2243_v25 = vadd.f32 %v4957_v7, %v4913_v58  ;;  %v276_v2 = vld [vmem:[#allocation3 + $0x6b4] sm:$0xff]  ;;  %v7294_v7 = vld [vmem:[#allocation119_spill] sm:$0xff] }
 0x1dd   :  { %v1747_v0 = vmul.f32 %v1248_v20, %v797_v59  ;;  %v2298_v44 = vadd.f32 %v4959_v6, %v4915_v51  ;;  %v2353_v29 = vadd.f32 %v4961_v53, %v4917_v41  ;;  %v2408_v33 = vadd.f32 %v4965_v14, %v7293_v23  ;;  %v7295_v53 = vld [vmem:[#allocation120_spill] sm:$0xff]  ;;  %v7296_v20 = vld [vmem:[#allocation121_spill] sm:$0xff] }
 0x1de   :  { %v5033_v10 = vadd.f32 %v2023_v21, %v1735_v40  ;;  %v5035_v50 = vadd.f32 %v2078_v63, %v1736_v9  ;;  %v5037_v48 = vadd.f32 %v2133_v19, %v1737_v55  ;;  %v5039_v52 = vadd.f32 %v2188_v32, %v1738_v17  ;;  %v280_v59 = vld [vmem:[#allocation3 + $0x6d4] sm:$0xff]  ;;  %v281_v55 = vld [vmem:[#allocation3 + $0x6dc] sm:$0xff]  ;;  %v270_v23 = vld [vmem:[#allocation3 + $0x688] sm:$0xff] }
 0x1df   :  { %v5041_v58 = vadd.f32 %v2243_v25, %v1739_v12  ;;  %v5043_v34 = vadd.f32 %v2298_v44, %v1740_v45  ;;  %v5045_v51 = vadd.f32 %v2353_v29, %v1741_v39  ;;  %v2463_v41 = vadd.f32 %v4973_v11, %v7294_v7  ;;  %v1263_v12 = vpop.permute.xlu1 %1262  ;;  %v269_v29 = vld [vmem:[#allocation3 + $0x680] sm:$0xff] }
 0x1e0   :  { %v5049_v6 = vadd.f32 %v2408_v33, %v1742_v49  ;;  %v2518_v14 = vadd.f32 %v4978_v54, %v7295_v53  ;;  %v2573_v35 = vadd.f32 %v4980_v42, %v7296_v20  ;;  %v2628_v16 = vadd.f32 %v4982_v22, %v7297_v13  ;;  %v5068_v22 = vld [vmem:[#allocation3 + $0x6b0] ss:$52 sps:$4 sm:$0xff]  }
 0x1e1   :  { %v5057_v47 = vadd.f32 %v2463_v41, %v1743_v37  ;;  %v2714_v4 = vadd.f32 %v4930_v61, %v4986_v18  ;;  %v2715_v11 = vsel %vm2655_vm0, %v1747_v0, 0.0  ;;  %v824_v40 = vunpack.c.l.bf16 %v276_v2  ;;  %v271_v53 = vld [vmem:[#allocation3 + $0x690] sm:$0xff] }
 0x1e2   :  { %v5062_v9 = vadd.f32 %v2518_v14, %v1744_v43  ;;  %v5064_v54 = vadd.f32 %v2573_v35, %v1745_v27  ;;  %v5066_v42 = vadd.f32 %v2628_v16, %v1746_v1  ;;  %v825_v17 = vunpack.c.h.bf16 %v276_v2  ;;  %v272_v14 = vld [vmem:[#allocation3 + $0x698] sm:$0xff] }
 0x1e3   :  { %v826_v45 = vunpack.c.l.bf16 %v277_v5  ;;  %v827_v39 = vunpack.c.h.bf16 %v277_v5  ;;  %v828_v49 = vunpack.c.l.bf16 %v278_v28  ;;  %v829_v61 = vunpack.c.h.bf16 %v278_v28  ;;  %v273_v5 = vld [vmem:[#allocation3 + $0x6a0] sm:$0xff]  ;;  %v274_v28 = vld [vmem:[#allocation3 + $0x6a8] sm:$0xff] }
 0x1e4   :  { %v830_v18 = vunpack.c.l.bf16 %v279_v24  ;;  %v831_v37 = vunpack.c.h.bf16 %v279_v24  ;;  %v832_v21 = vunpack.c.l.bf16 %v280_v59  ;;  %v833_v63 = vunpack.c.h.bf16 %v280_v59 }
 0x1e5   :  { %v5070_v19 = vadd.f32 %v2715_v11, %v2714_v4  ;;  %v834_v43 = vunpack.c.l.bf16 %v281_v55  ;;  %v835_v27 = vunpack.c.h.bf16 %v281_v55  ;;  %v836_v1 = vunpack.c.h.bf16 %v5068_v22  ;;  %v1258_v4 = vpop.permute.xlu0 %1257 }
 0x1e6   :  { %v5073_v32 = vmul.f32 %v1263_v12, %v824_v40  ;;  %v5075_v25 = vmul.f32 %v1263_v12, %v825_v17  ;;  %v5077_v0 = vmul.f32 %v1263_v12, %v826_v45  ;;  %v5079_v44 = vmul.f32 %v1263_v12, %v827_v39 }
 0x1e7   :  { %v5081_v33 = vmul.f32 %v1263_v12, %v828_v49  ;;  %v5083_v2 = vmul.f32 %v1263_v12, %v829_v61  ;;  %v5085_v7 = vmul.f32 %v1263_v12, %v830_v18  ;;  %v5087_v41 = vmul.f32 %v1263_v12, %v831_v37 }
 0x1e8   :  { %v5089_v20 = vmul.f32 %v1263_v12, %v832_v21  ;;  %v5091_v35 = vmul.f32 %v1263_v12, %v833_v63  ;;  %v5093_v13 = vmul.f32 %v1263_v12, %v834_v43  ;;  %v1786_v16 = vmul.f32 %v1263_v12, %v836_v1 }
 0x1e9   :  { %7298 = vst [vmem:[#allocation18_spill] sm:$0xff] %v5087_v41  ;;  %v811_v11 = vunpack.c.l.bf16 %v269_v29  ;;  %v812_v24 = vunpack.c.h.bf16 %v269_v29  ;;  %v813_v59 = vunpack.c.l.bf16 %v270_v23  ;;  %v814_v40 = vunpack.c.h.bf16 %v270_v23 }
 0x1ea   :  { %7299 = vst [vmem:[#allocation19_spill] sm:$0xff] %v5089_v20  ;;  %7300 = vst [vmem:[#allocation20_spill] sm:$0xff] %v5091_v35  ;;  %v5095_v55 = vmul.f32 %v1263_v12, %v835_v27  ;;  %v815_v17 = vunpack.c.l.bf16 %v271_v53  ;;  %v816_v45 = vunpack.c.h.bf16 %v271_v53  ;;  %v817_v39 = vunpack.c.l.bf16 %v272_v14 }
 0x1eb   :  { %7301 = vst [vmem:[#allocation21_spill] sm:$0xff] %v5093_v13  ;;  %v818_v49 = vunpack.c.h.bf16 %v272_v14  ;;  %v819_v61 = vunpack.c.l.bf16 %v273_v5  ;;  %v820_v18 = vunpack.c.h.bf16 %v273_v5  ;;  %v821_v37 = vunpack.c.l.bf16 %v274_v28 }
 0x1ec   :  { %7302 = vst [vmem:[#allocation22_spill] sm:$0xff] %v5095_v55  ;;  %v5098_v21 = vsel %vm2655_vm0, %v1786_v16, 0.0  ;;  %v822_v63 = vunpack.c.h.bf16 %v274_v28  ;;  %v823_v43 = vunpack.c.l.bf16 %v5068_v22  ;;  %v1761_v1 = vmul.f32 %v1258_v4, %v811_v11 }
 0x1ed   :  { %v1762_v13 = vmul.f32 %v1258_v4, %v812_v24  ;;  %v1763_v29 = vmul.f32 %v1258_v4, %v813_v59  ;;  %v1764_v35 = vmul.f32 %v1258_v4, %v814_v40  ;;  %v1765_v23 = vmul.f32 %v1258_v4, %v815_v17 }
 0x1ee   :  { %v1766_v12 = vmul.f32 %v1258_v4, %v816_v45  ;;  %v1767_v27 = vmul.f32 %v1258_v4, %v817_v39  ;;  %v1768_v55 = vmul.f32 %v1258_v4, %v818_v49  ;;  %v1769_v53 = vmul.f32 %v1258_v4, %v819_v61 }
 0x1ef   :  { %v1770_v20 = vmul.f32 %v1258_v4, %v820_v18  ;;  %v1771_v14 = vmul.f32 %v1258_v4, %v821_v37  ;;  %v1772_v41 = vmul.f32 %v1258_v4, %v822_v63  ;;  %v2025_v5 = vadd.f32 %v5033_v10, %v4989_v56 }
 0x1f0   :  { %v2080_v16 = vadd.f32 %v5035_v50, %v4991_v8  ;;  %v2135_v22 = vadd.f32 %v5037_v48, %v4993_v15  ;;  %v2190_v28 = vadd.f32 %v5039_v52, %v4995_v36  ;;  %v2245_v11 = vadd.f32 %v5041_v58, %v4997_v57  ;;  %v290_v50 = vld [vmem:[#allocation3 + $0x71c] sm:$0xff] }
 0x1f1   :  { %v1773_v24 = vmul.f32 %v1258_v4, %v823_v43  ;;  %v2300_v59 = vadd.f32 %v5043_v34, %v4999_v38  ;;  %v2355_v40 = vadd.f32 %v5045_v51, %v5001_v60  ;;  %v2410_v56 = vadd.f32 %v5049_v6, %v5003_v31  ;;  %v291_v51 = vld [vmem:[#allocation3 + $0x724] sm:$0xff]  ;;  %v292_v6 = vld [vmem:[#allocation3 + $0x72c] sm:$0xff]  ;;  %v294_v4 = vld [vmem:[#allocation3 + $0x73c] sm:$0xff] }
 0x1f2   :  { %v5117_v8 = vadd.f32 %v2025_v5, %v1761_v1  ;;  %v5119_v10 = vadd.f32 %v2080_v16, %v1762_v13  ;;  %v5121_v15 = vadd.f32 %v2135_v22, %v1763_v29  ;;  %v5123_v36 = vadd.f32 %v2190_v28, %v1764_v35  ;;  %v285_v28 = vld [vmem:[#allocation3 + $0x6f8] sm:$0xff] }
 0x1f3   :  { %v5125_v57 = vadd.f32 %v2245_v11, %v1765_v23  ;;  %v5127_v48 = vadd.f32 %v2300_v59, %v1766_v12  ;;  %v5129_v38 = vadd.f32 %v2355_v40, %v1767_v27  ;;  %v2465_v60 = vadd.f32 %v5057_v47, %v5005_v62  ;;  %v293_v47 = vld [vmem:[#allocation3 + $0x734] sm:$0xff]  ;;  %v283_v27 = vld [vmem:[#allocation3 + $0x6e8] sm:$0xff]  ;;  %v286_v11 = vld [vmem:[#allocation3 + $0x700] sm:$0xff] }
 0x1f4   :  { %v5133_v52 = vadd.f32 %v2410_v56, %v1768_v55  ;;  %v2520_v31 = vadd.f32 %v5062_v9, %v5007_v30  ;;  %v2575_v58 = vadd.f32 %v5064_v54, %v5009_v26  ;;  %v2630_v34 = vadd.f32 %v5066_v42, %v5011_v46  ;;  %v295_v9 = vld [vmem:[#allocation3 + $0x744] sm:$0xff]  ;;  %v5152_v46 = vld [vmem:[#allocation3 + $0x718] ss:$52 sps:$4 sm:$0xff]   ;;  %v1273_v42 = vpop.permute.xlu1 %1272 }
 0x1f5   :  { %v5141_v35 = vadd.f32 %v2465_v60, %v1769_v53  ;;  %v2718_v13 = vadd.f32 %v5014_v3, %v5070_v19  ;;  %v2719_v62 = vsel %vm2655_vm0, %v1773_v24, 0.0  ;;  %v850_v55 = vunpack.c.l.bf16 %v290_v50  ;;  %v284_v53 = vld [vmem:[#allocation3 + $0x6f0] sm:$0xff] }
 0x1f6   :  { %v5146_v17 = vadd.f32 %v2520_v31, %v1770_v20  ;;  %v5148_v30 = vadd.f32 %v2575_v58, %v1771_v14  ;;  %v5150_v26 = vadd.f32 %v2630_v34, %v1772_v41  ;;  %v851_v54 = vunpack.c.h.bf16 %v290_v50  ;;  %v287_v50 = vld [vmem:[#allocation3 + $0x708] sm:$0xff]  ;;  %v288_v60 = vld [vmem:[#allocation3 + $0x710] sm:$0xff]  ;;  %v1268_v31 = vpop.permute.xlu0 %1267 }
 0x1f7   :  { %v852_v45 = vunpack.c.l.bf16 %v291_v51  ;;  %v853_v39 = vunpack.c.h.bf16 %v291_v51  ;;  %v854_v49 = vunpack.c.l.bf16 %v292_v6  ;;  %v855_v3 = vunpack.c.h.bf16 %v292_v6 }
 0x1f8   :  { %v856_v19 = vunpack.c.l.bf16 %v293_v47  ;;  %v857_v61 = vunpack.c.h.bf16 %v293_v47  ;;  %v858_v18 = vunpack.c.l.bf16 %v294_v4  ;;  %v859_v37 = vunpack.c.h.bf16 %v294_v4 }
 0x1f9   :  { %v5154_v63 = vadd.f32 %v2719_v62, %v2718_v13  ;;  %v860_v20 = vunpack.c.l.bf16 %v295_v9  ;;  %v861_v43 = vunpack.c.h.bf16 %v295_v9  ;;  %v862_v41 = vunpack.c.h.bf16 %v5152_v46 }
 0x1fa   :  { %v5157_v1 = vmul.f32 %v1273_v42, %v850_v55  ;;  %v5159_v29 = vmul.f32 %v1273_v42, %v851_v54  ;;  %v5161_v23 = vmul.f32 %v1273_v42, %v852_v45  ;;  %v5163_v12 = vmul.f32 %v1273_v42, %v853_v39 }
 0x1fb   :  { %v5165_v14 = vmul.f32 %v1273_v42, %v854_v49  ;;  %v5167_v5 = vmul.f32 %v1273_v42, %v855_v3  ;;  %v5169_v16 = vmul.f32 %v1273_v42, %v856_v19  ;;  %v5171_v22 = vmul.f32 %v1273_v42, %v857_v61 }
 0x1fc   :  { %v5173_v24 = vmul.f32 %v1273_v42, %v858_v18  ;;  %v5175_v59 = vmul.f32 %v1273_v42, %v859_v37  ;;  %v5177_v40 = vmul.f32 %v1273_v42, %v860_v20  ;;  %v1812_v56 = vmul.f32 %v1273_v42, %v862_v41 }
 0x1fd   :  { %v837_v58 = vunpack.c.l.bf16 %v283_v27  ;;  %v838_v34 = vunpack.c.h.bf16 %v283_v27  ;;  %v839_v51 = vunpack.c.l.bf16 %v284_v53  ;;  %v840_v6 = vunpack.c.h.bf16 %v284_v53 }
 0x1fe   :  { %v5179_v13 = vmul.f32 %v1273_v42, %v861_v43  ;;  %v841_v62 = vunpack.c.l.bf16 %v285_v28  ;;  %v842_v47 = vunpack.c.h.bf16 %v285_v28  ;;  %v843_v4 = vunpack.c.l.bf16 %v286_v11 }
 0x1ff   :  { %v844_v55 = vunpack.c.h.bf16 %v286_v11  ;;  %v845_v9 = vunpack.c.l.bf16 %v287_v50  ;;  %v846_v54 = vunpack.c.h.bf16 %v287_v50  ;;  %v847_v45 = vunpack.c.l.bf16 %v288_v60 }
 0x200   :  { %v5182_v39 = vsel %vm2655_vm0, %v1812_v56, 0.0  ;;  %v848_v49 = vunpack.c.h.bf16 %v288_v60  ;;  %v849_v3 = vunpack.c.l.bf16 %v5152_v46  ;;  %v1787_v19 = vmul.f32 %v1268_v31, %v837_v58 }
 0x201   :  { %7303 = vst [vmem:[#allocation23_spill] sm:$0xff] %v5182_v39  ;;  %v1788_v61 = vmul.f32 %v1268_v31, %v838_v34  ;;  %v1789_v18 = vmul.f32 %v1268_v31, %v839_v51  ;;  %v1790_v37 = vmul.f32 %v1268_v31, %v840_v6  ;;  %v1791_v20 = vmul.f32 %v1268_v31, %v841_v62  ;;  %v7307_v62 = vld [vmem:[#allocation21_spill] sm:$0xff] }
 0x202   :  { %v1792_v42 = vmul.f32 %v1268_v31, %v842_v47  ;;  %v1793_v43 = vmul.f32 %v1268_v31, %v843_v4  ;;  %v1794_v41 = vmul.f32 %v1268_v31, %v844_v55  ;;  %v1795_v27 = vmul.f32 %v1268_v31, %v845_v9  ;;  %v7308_v4 = vld [vmem:[#allocation22_spill] sm:$0xff]  ;;  %v305_v9 = vld [vmem:[#allocation3 + $0x78c] sm:$0xff] }
 0x203   :  { %v1796_v53 = vmul.f32 %v1268_v31, %v846_v54  ;;  %v1797_v28 = vmul.f32 %v1268_v31, %v847_v45  ;;  %v1798_v11 = vmul.f32 %v1268_v31, %v848_v49  ;;  %v2027_v50 = vadd.f32 %v5117_v8, %v5073_v32  ;;  %v7304_v32 = vld [vmem:[#allocation18_spill] sm:$0xff] }
 0x204   :  { %v2082_v56 = vadd.f32 %v5119_v10, %v5075_v25  ;;  %v2137_v46 = vadd.f32 %v5121_v15, %v5077_v0  ;;  %v2192_v60 = vadd.f32 %v5123_v36, %v5079_v44  ;;  %v2247_v58 = vadd.f32 %v5125_v57, %v5081_v33  ;;  %v304_v15 = vld [vmem:[#allocation3 + $0x784] sm:$0xff]  ;;  %v306_v54 = vld [vmem:[#allocation3 + $0x794] sm:$0xff] }
 0x205   :  { %v1799_v34 = vmul.f32 %v1268_v31, %v849_v3  ;;  %v2302_v51 = vadd.f32 %v5127_v48, %v5083_v2  ;;  %v2357_v6 = vadd.f32 %v5129_v38, %v5085_v7  ;;  %v2412_v8 = vadd.f32 %v5133_v52, %v7304_v32  ;;  %v7305_v57 = vld [vmem:[#allocation19_spill] sm:$0xff]  ;;  %v5217_v48 = vpop.permute.xlu0 %1277  ;;  %v7306_v52 = vld [vmem:[#allocation20_spill] sm:$0xff] }
 0x206   :  { %v5201_v25 = vadd.f32 %v2027_v50, %v1787_v19  ;;  %v5203_v10 = vadd.f32 %v2082_v56, %v1788_v61  ;;  %v5205_v0 = vadd.f32 %v2137_v46, %v1789_v18  ;;  %v5207_v44 = vadd.f32 %v2192_v60, %v1790_v37  ;;  %v307_v3 = vld [vmem:[#allocation3 + $0x79c] sm:$0xff]  ;;  %v308_v19 = vld [vmem:[#allocation3 + $0x7a4] sm:$0xff]  ;;  %v309_v37 = vld [vmem:[#allocation3 + $0x7ac] sm:$0xff] }
 0x207   :  { %v5209_v33 = vadd.f32 %v2247_v58, %v1791_v20  ;;  %v5211_v36 = vadd.f32 %v2302_v51, %v1792_v42  ;;  %v5213_v2 = vadd.f32 %v2357_v6, %v1793_v43  ;;  %v2467_v7 = vadd.f32 %v5141_v35, %v7305_v57  ;;  %v1283_v42 = vpop.permute.xlu1 %1282 }
 0x208   :  { %v5219_v38 = vadd.f32 %v2412_v8, %v1794_v41  ;;  %v2522_v31 = vadd.f32 %v5146_v17, %v7306_v52  ;;  %v2577_v47 = vadd.f32 %v5148_v30, %v7307_v62  ;;  %v2632_v55 = vadd.f32 %v5150_v26, %v7308_v4  ;;  %v310_v26 = vld [vmem:[#allocation3 + $0x780] ss:$52 sps:$4 sm:$0xff]  }
 0x209   :  { %v5227_v45 = vadd.f32 %v2467_v7, %v1795_v27  ;;  %v2722_v35 = vadd.f32 %v5098_v21, %v5154_v63  ;;  %v2723_v49 = vsel %vm2655_vm0, %v1799_v34, 0.0  ;;  %v876_v61 = vunpack.c.l.bf16 %v304_v15  ;;  %v5240_v34 = vpop.permute.xlu0 %1287  ;;  %v297_v8 = vld [vmem:[#allocation3 + $0x750] sm:$0xff]  ;;  %v299_v62 = vld [vmem:[#allocation3 + $0x760] sm:$0xff] }
 0x20a   :  { %v5232_v18 = vadd.f32 %v2522_v31, %v1796_v53  ;;  %v5234_v17 = vadd.f32 %v2577_v47, %v1797_v28  ;;  %v5236_v30 = vadd.f32 %v2632_v55, %v1798_v11  ;;  %v877_v20 = vunpack.c.h.bf16 %v304_v15  ;;  %v298_v15 = vld [vmem:[#allocation3 + $0x758] sm:$0xff]  ;;  %v300_v47 = vld [vmem:[#allocation3 + $0x768] sm:$0xff] }
 0x20b   :  { %v878_v43 = vunpack.c.l.bf16 %v305_v9  ;;  %v879_v41 = vunpack.c.h.bf16 %v305_v9  ;;  %v880_v27 = vunpack.c.l.bf16 %v306_v54  ;;  %v881_v50 = vunpack.c.h.bf16 %v306_v54 }
 0x20c   :  { %v882_v21 = vunpack.c.l.bf16 %v307_v3  ;;  %v883_v63 = vunpack.c.h.bf16 %v307_v3  ;;  %v884_v56 = vunpack.c.l.bf16 %v308_v19  ;;  %v885_v46 = vunpack.c.h.bf16 %v308_v19 }
 0x20d   :  { %v5238_v60 = vadd.f32 %v2723_v49, %v2722_v35  ;;  %v886_v53 = vunpack.c.l.bf16 %v309_v37  ;;  %v887_v58 = vunpack.c.h.bf16 %v309_v37  ;;  %v888_v28 = vunpack.c.h.bf16 %v310_v26  ;;  %v301_v35 = vld [vmem:[#allocation3 + $0x770] sm:$0xff]  ;;  %v302_v49 = vld [vmem:[#allocation3 + $0x778] sm:$0xff] }
 0x20e   :  { %v5242_v11 = vmul.f32 %v1283_v42, %v876_v61  ;;  %v5244_v51 = vmul.f32 %v1283_v42, %v877_v20  ;;  %v5246_v6 = vmul.f32 %v1283_v42, %v878_v43  ;;  %v5248_v32 = vmul.f32 %v1283_v42, %v879_v41 }
 0x20f   :  { %7309 = vst [vmem:[#allocation24_spill] sm:$0xff] %v5238_v60  ;;  %v5250_v57 = vmul.f32 %v1283_v42, %v880_v27  ;;  %v5252_v7 = vmul.f32 %v1283_v42, %v881_v50  ;;  %v5254_v52 = vmul.f32 %v1283_v42, %v882_v21  ;;  %v5256_v31 = vmul.f32 %v1283_v42, %v883_v63 }
 0x210   :  { %7310 = vst [vmem:[#allocation25_spill] sm:$0xff] %v5242_v11  ;;  %7311 = vst [vmem:[#allocation26_spill] sm:$0xff] %v5244_v51  ;;  %v5258_v4 = vmul.f32 %v1283_v42, %v884_v56  ;;  %v5260_v55 = vmul.f32 %v1283_v42, %v885_v46  ;;  %v5262_v9 = vmul.f32 %v1283_v42, %v886_v53  ;;  %v863_v3 = vunpack.c.l.bf16 %v297_v8  ;;  %v5268_v46 = vpop.permute.xlu0 %1297  ;;  %v5672_v51 = vld [vmem:[#allocation3 + $0xa1c] sm:$0xff] }
 0x211   :  { %7312 = vst [vmem:[#allocation27_spill] sm:$0xff] %v5246_v6  ;;  %7313 = vst [vmem:[#allocation28_spill] sm:$0xff] %v5248_v32  ;;  %v5264_v54 = vmul.f32 %v1283_v42, %v887_v58  ;;  %v864_v19 = vunpack.c.h.bf16 %v297_v8  ;;  %v865_v61 = vunpack.c.l.bf16 %v298_v15  ;;  %v866_v37 = vunpack.c.h.bf16 %v298_v15  ;;  %v5656_v32 = vld [vmem:[#allocation3 + $0x9fc] sm:$0xff]  ;;  %v5664_v6 = vld [vmem:[#allocation3 + $0xa0c] sm:$0xff] }
 0x212   :  { %7314 = vst [vmem:[#allocation29_spill] sm:$0xff] %v5250_v57  ;;  %7315 = vst [vmem:[#allocation30_spill] sm:$0xff] %v5252_v7  ;;  %v867_v20 = vunpack.c.l.bf16 %v299_v62  ;;  %v868_v43 = vunpack.c.h.bf16 %v299_v62  ;;  %v869_v41 = vunpack.c.l.bf16 %v300_v47  ;;  %v870_v27 = vunpack.c.h.bf16 %v300_v47  ;;  %v5574_v7 = vld [vmem:[#allocation3 + $0x958] sm:$0xff]  ;;  %v5648_v57 = vld [vmem:[#allocation3 + $0x9f0] ss:$52 sps:$4 sm:$0xff]  }
 0x213   :  { %7316 = vst [vmem:[#allocation31_spill] sm:$0xff] %v5254_v52  ;;  %7317 = vst [vmem:[#allocation32_spill] sm:$0xff] %v5256_v31  ;;  %v5266_v50 = vmul.f32 %v1283_v42, %v888_v28  ;;  %v871_v21 = vunpack.c.l.bf16 %v301_v35  ;;  %v872_v63 = vunpack.c.h.bf16 %v301_v35  ;;  %v873_v56 = vunpack.c.l.bf16 %v302_v49  ;;  %v5558_v31 = vld [vmem:[#allocation3 + $0x934] sm:$0xff]  ;;  %v5566_v52 = vld [vmem:[#allocation3 + $0x944] sm:$0xff] }
 0x214   :  { %v874_v53 = vunpack.c.h.bf16 %v302_v49  ;;  %v875_v58 = vunpack.c.l.bf16 %v310_v26  ;;  %v1813_v39 = vmul.f32 %v5217_v48, %v863_v3  ;;  %v1814_v60 = vmul.f32 %v5217_v48, %v864_v19  ;;  %7376 = vst [vmem:[#allocation89_spill] sm:$0xff] %v5648_v57 }
 0x215   :  { %7318 = vst [vmem:[#allocation33_spill] sm:$0xff] %v5266_v50  ;;  %v1815_v8 = vmul.f32 %v5217_v48, %v865_v61  ;;  %v1816_v15 = vmul.f32 %v5217_v48, %v866_v37  ;;  %v1817_v62 = vmul.f32 %v5217_v48, %v867_v20  ;;  %v1818_v42 = vmul.f32 %v5217_v48, %v868_v43 }
 0x216   :  { %v1819_v28 = vmul.f32 %v5217_v48, %v869_v41  ;;  %v1820_v47 = vmul.f32 %v5217_v48, %v870_v27  ;;  %v1821_v35 = vmul.f32 %v5217_v48, %v871_v21  ;;  %v1822_v26 = vmul.f32 %v5217_v48, %v872_v63  ;;  %v322_v63 = vld [vmem:[#allocation3 + $0x80c] sm:$0xff] }
 0x217   :  { %v1823_v49 = vmul.f32 %v5217_v48, %v873_v56  ;;  %v1825_v3 = vmul.f32 %v5217_v48, %v875_v58  ;;  %v2029_v19 = vadd.f32 %v5201_v25, %v5157_v1  ;;  %v2084_v61 = vadd.f32 %v5203_v10, %v5159_v29 }
 0x218   :  { %v2139_v37 = vadd.f32 %v5205_v0, %v5161_v23  ;;  %v2194_v20 = vadd.f32 %v5207_v44, %v5163_v12  ;;  %v2249_v43 = vadd.f32 %v5209_v33, %v5165_v14  ;;  %v2304_v41 = vadd.f32 %v5211_v36, %v5167_v5  ;;  %v5301_v23 = vpop.permute.xlu0 %1307  ;;  %v318_v5 = vld [vmem:[#allocation3 + $0x7ec] sm:$0xff]  ;;  %v319_v0 = vld [vmem:[#allocation3 + $0x7f4] sm:$0xff]  ;;  %v320_v33 = vld [vmem:[#allocation3 + $0x7fc] sm:$0xff] }
 0x219   :  { %v1824_v27 = vmul.f32 %v5217_v48, %v874_v53  ;;  %v5295_v21 = vadd.f32 %v2029_v19, %v1813_v39  ;;  %v2359_v1 = vadd.f32 %v5213_v2, %v5169_v16  ;;  %v2414_v29 = vadd.f32 %v5219_v38, %v5171_v22  ;;  %v311_v19 = vld [vmem:[#allocation3 + $0x7b8] sm:$0xff] }
 0x21a   :  { %v5303_v25 = vadd.f32 %v2084_v61, %v1814_v60  ;;  %v5305_v12 = vadd.f32 %v2139_v37, %v1815_v8  ;;  %v5307_v14 = vadd.f32 %v2194_v20, %v1816_v15  ;;  %v5309_v10 = vadd.f32 %v2249_v43, %v1817_v62  ;;  %v321_v60 = vld [vmem:[#allocation3 + $0x804] sm:$0xff]  ;;  %v5330_v8 = vpop.permute.xlu1 %1292 }
 0x21b   :  { %7319 = vst [vmem:[#allocation34_spill] sm:$0xff] %v5295_v21  ;;  %v5311_v39 = vadd.f32 %v2304_v41, %v1818_v42  ;;  %v5313_v44 = vadd.f32 %v2359_v1, %v1819_v28  ;;  %v2469_v16 = vadd.f32 %v5227_v45, %v5173_v24  ;;  %v2524_v22 = vadd.f32 %v5232_v18, %v5175_v59  ;;  %v323_v24 = vld [vmem:[#allocation3 + $0x814] sm:$0xff]  ;;  %v312_v20 = vld [vmem:[#allocation3 + $0x7c0] sm:$0xff]  ;;  %v313_v43 = vld [vmem:[#allocation3 + $0x7c8] sm:$0xff] }
 0x21c   :  { %7320 = vst [vmem:[#allocation35_spill] sm:$0xff] %v5303_v25  ;;  %7321 = vst [vmem:[#allocation36_spill] sm:$0xff] %v5305_v12  ;;  %v5319_v36 = vadd.f32 %v2414_v29, %v1820_v47  ;;  %v2579_v2 = vadd.f32 %v5234_v17, %v5177_v40  ;;  %v2634_v48 = vadd.f32 %v5236_v30, %v5179_v13  ;;  %v5326_v38 = vsel %vm2655_vm0, %v1825_v3, 0.0  ;;  %v5332_v42 = vpop.permute.xlu0 %1317  ;;  %v5598_v12 = vld [vmem:[#allocation3 + $0x988] ss:$52 sps:$4 sm:$0xff]   ;;  %v5606_v25 = vld [vmem:[#allocation3 + $0x994] sm:$0xff] }
 0x21d   :  { %7322 = vst [vmem:[#allocation37_spill] sm:$0xff] %v5307_v14  ;;  %7323 = vst [vmem:[#allocation38_spill] sm:$0xff] %v5309_v10  ;;  %v5328_v56 = vadd.f32 %v2469_v16, %v1821_v35  ;;  %v902_v45 = vunpack.c.l.bf16 %v318_v5  ;;  %v903_v53 = vunpack.c.h.bf16 %v318_v5  ;;  %v904_v59 = vunpack.c.l.bf16 %v319_v0  ;;  %v314_v5 = vld [vmem:[#allocation3 + $0x7d0] sm:$0xff]  ;;  %v5582_v10 = vld [vmem:[#allocation3 + $0x968] sm:$0xff] }
 0x21e   :  { %7324 = vst [vmem:[#allocation39_spill] sm:$0xff] %v5311_v39  ;;  %7325 = vst [vmem:[#allocation40_spill] sm:$0xff] %v5313_v44  ;;  %v2525_v18 = vadd.f32 %v2524_v22, %v1822_v26  ;;  %v2580_v58 = vadd.f32 %v2579_v2, %v1823_v49  ;;  %v905_v15 = vunpack.c.h.bf16 %v319_v0  ;;  %v906_v40 = vunpack.c.l.bf16 %v320_v33  ;;  %v315_v0 = vld [vmem:[#allocation3 + $0x7d8] sm:$0xff]  ;;  %v316_v2 = vld [vmem:[#allocation3 + $0x7e0] sm:$0xff] }
 0x21f   :  { %7326 = vst [vmem:[#allocation41_spill] sm:$0xff] %v5319_v36  ;;  %7327 = vst [vmem:[#allocation42_spill] sm:$0xff] %v5326_v38  ;;  %v907_v17 = vunpack.c.h.bf16 %v320_v33  ;;  %v908_v62 = vunpack.c.l.bf16 %v321_v60  ;;  %v909_v13 = vunpack.c.h.bf16 %v321_v60  ;;  %v910_v30 = vunpack.c.l.bf16 %v322_v63  ;;  %v5367_v60 = vld [vmem:[#allocation3 + $0x7e8] ss:$52 sps:$4 sm:$0xff]   ;;  %v5616_v36 = vld [vmem:[#allocation3 + $0x9ac] sm:$0xff] }
 0x220   :  { %v2635_v28 = vadd.f32 %v2634_v48, %v1824_v27  ;;  %v911_v47 = vunpack.c.h.bf16 %v322_v63  ;;  %v912_v35 = vunpack.c.l.bf16 %v323_v24  ;;  %v913_v3 = vunpack.c.h.bf16 %v323_v24  ;;  %7361 = vst [vmem:[#allocation74_spill] sm:$0xff] %v5582_v10  ;;  %v5590_v14 = vld [vmem:[#allocation3 + $0x978] sm:$0xff]  ;;  %7365 = vst [vmem:[#allocation78_spill] sm:$0xff] %v5598_v12  ;;  %v5614_v21 = vld [vmem:[#allocation3 + $0x9a4] sm:$0xff] }
 0x221   :  { %v5335_v61 = vmul.f32 %v5330_v8, %v902_v45  ;;  %v5338_v26 = vmul.f32 %v5330_v8, %v903_v53  ;;  %v5341_v49 = vmul.f32 %v5330_v8, %v904_v59  ;;  %v5344_v37 = vmul.f32 %v5330_v8, %v905_v15  ;;  %7363 = vst [vmem:[#allocation76_spill] sm:$0xff] %v5590_v14  ;;  %v5624_v44 = vld [vmem:[#allocation3 + $0x9c0] sm:$0xff]  ;;  %v5632_v39 = vld [vmem:[#allocation3 + $0x9d0] sm:$0xff] }
 0x222   :  { %v5347_v41 = vmul.f32 %v5330_v8, %v906_v40  ;;  %v5350_v27 = vmul.f32 %v5330_v8, %v907_v17  ;;  %v5353_v1 = vmul.f32 %v5330_v8, %v908_v62  ;;  %v5356_v29 = vmul.f32 %v5330_v8, %v909_v13  ;;  %v5369_v62 = vpop.permute.xlu0 %1327  ;;  %7367 = vst [vmem:[#allocation80_spill] sm:$0xff] %v5606_v25  ;;  %v5654_v25 = vld [vmem:[#allocation3 + $0x9f4] sm:$0xff] }
 0x223   :  { %7328 = vst [vmem:[#allocation12_spill] sm:$0xff] %v5335_v61  ;;  %7329 = vst [vmem:[#allocation43_spill] sm:$0xff] %v5338_v26  ;;  %v5359_v16 = vmul.f32 %v5330_v8, %v910_v30  ;;  %v5362_v22 = vmul.f32 %v5330_v8, %v911_v47  ;;  %v5365_v33 = vmul.f32 %v5330_v8, %v912_v35  ;;  %v889_v48 = vunpack.c.l.bf16 %v311_v19  ;;  %v5518_v26 = vld [vmem:[#allocation3 + $0x8e4] sm:$0xff]  ;;  %v5670_v12 = vld [vmem:[#allocation3 + $0xa14] sm:$0xff] }
 0x224   :  { %7330 = vst [vmem:[#allocation44_spill] sm:$0xff] %v5341_v49  ;;  %7331 = vst [vmem:[#allocation45_spill] sm:$0xff] %v5344_v37  ;;  %v890_v63 = vunpack.c.h.bf16 %v311_v19  ;;  %v891_v24 = vunpack.c.l.bf16 %v312_v20  ;;  %v892_v45 = vunpack.c.h.bf16 %v312_v20  ;;  %v893_v53 = vunpack.c.l.bf16 %v313_v43  ;;  %v5510_v37 = vld [vmem:[#allocation3 + $0x8d4] sm:$0xff]  ;;  %v5534_v61 = vld [vmem:[#allocation3 + $0x908] sm:$0xff] }
 0x225   :  { %7332 = vst [vmem:[#allocation46_spill] sm:$0xff] %v5347_v41  ;;  %7333 = vst [vmem:[#allocation47_spill] sm:$0xff] %v5350_v27  ;;  %v894_v59 = vunpack.c.h.bf16 %v313_v43  ;;  %v895_v15 = vunpack.c.l.bf16 %v314_v5  ;;  %v896_v40 = vunpack.c.h.bf16 %v314_v5  ;;  %v897_v17 = vunpack.c.l.bf16 %v315_v0  ;;  %v5502_v27 = vld [vmem:[#allocation3 + $0x8c4] sm:$0xff]  ;;  %v5568_v41 = vld [vmem:[#allocation3 + $0x94c] sm:$0xff] }
 0x226   :  { %7334 = vst [vmem:[#allocation48_spill] sm:$0xff] %v5353_v1  ;;  %7335 = vst [vmem:[#allocation49_spill] sm:$0xff] %v5356_v29  ;;  %v5372_v13 = vmul.f32 %v5330_v8, %v913_v3  ;;  %v898_v30 = vunpack.c.h.bf16 %v315_v0  ;;  %v899_v47 = vunpack.c.l.bf16 %v316_v2  ;;  %v900_v35 = vunpack.c.h.bf16 %v316_v2  ;;  %v329_v2 = vld [vmem:[#allocation3 + $0x840] sm:$0xff]  ;;  %v5408_v1 = vpop.permute.xlu0 %1337 }
 0x227   :  { %7336 = vst [vmem:[#allocation50_spill] sm:$0xff] %v5359_v16  ;;  %7337 = vst [vmem:[#allocation51_spill] sm:$0xff] %v5362_v22  ;;  %v901_v38 = vunpack.c.l.bf16 %v5367_v60  ;;  %v5376_v50 = vmul.f32 %v5240_v34, %v889_v48  ;;  %v5379_v19 = vmul.f32 %v5240_v34, %v890_v63  ;;  %v5382_v20 = vmul.f32 %v5240_v34, %v891_v24  ;;  %v330_v48 = vld [vmem:[#allocation3 + $0x848] sm:$0xff]  ;;  %v5576_v49 = vld [vmem:[#allocation3 + $0x960] sm:$0xff] }
 0x228   :  { %7338 = vst [vmem:[#allocation52_spill] sm:$0xff] %v5365_v33  ;;  %7339 = vst [vmem:[#allocation53_spill] sm:$0xff] %v5372_v13  ;;  %v5385_v43 = vmul.f32 %v5240_v34, %v892_v45  ;;  %v5388_v3 = vmul.f32 %v5240_v34, %v893_v53  ;;  %v5391_v5 = vmul.f32 %v5240_v34, %v894_v59  ;;  %v923_v16 = vunpack.c.l.bf16 %v329_v2 }
 0x229   :  { %7340 = vst [vmem:[#allocation54_spill] sm:$0xff] %v5376_v50  ;;  %7341 = vst [vmem:[#allocation55_spill] sm:$0xff] %v5379_v19  ;;  %v5394_v0 = vmul.f32 %v5240_v34, %v895_v15  ;;  %v5397_v63 = vmul.f32 %v5240_v34, %v896_v40  ;;  %v1847_v24 = vmul.f32 %v5240_v34, %v897_v17  ;;  %v924_v40 = vunpack.c.h.bf16 %v329_v2  ;;  %v5443_v2 = vld [vmem:[#allocation3 + $0x854] sm:$0xff]  ;;  %v5550_v19 = vld [vmem:[#allocation3 + $0x924] sm:$0xff] }
 0x22a   :  { %7342 = vst [vmem:[#allocation56_spill] sm:$0xff] %v5382_v20  ;;  %7343 = vst [vmem:[#allocation57_spill] sm:$0xff] %v5385_v43  ;;  %v1848_v13 = vmul.f32 %v5240_v34, %v898_v30  ;;  %v1849_v45 = vmul.f32 %v5240_v34, %v899_v47  ;;  %v1850_v53 = vmul.f32 %v5240_v34, %v900_v35  ;;  %v925_v29 = vunpack.c.l.bf16 %v330_v48  ;;  %v5542_v43 = vld [vmem:[#allocation3 + $0x918] sm:$0xff]  ;;  %v5640_v50 = vld [vmem:[#allocation3 + $0x9e0] sm:$0xff] }
 0x22b   :  { %7344 = vst [vmem:[#allocation58_spill] sm:$0xff] %v5388_v3  ;;  %7345 = vst [vmem:[#allocation59_spill] sm:$0xff] %v5391_v5  ;;  %v2471_v59 = vadd.f32 %v5328_v56, %v5258_v4  ;;  %v2526_v33 = vadd.f32 %v2525_v18, %v5260_v55  ;;  %v2581_v15 = vadd.f32 %v2580_v58, %v5262_v9  ;;  %v926_v35 = vunpack.c.h.bf16 %v330_v48  ;;  %v5417_v4 = vld [vmem:[#allocation3 + $0x820] sm:$0xff]  ;;  %v5429_v18 = vld [vmem:[#allocation3 + $0x828] sm:$0xff] }
 0x22c   :  { %7346 = vst [vmem:[#allocation60_spill] sm:$0xff] %v5394_v0  ;;  %7347 = vst [vmem:[#allocation61_spill] sm:$0xff] %v5397_v63  ;;  %v2636_v22 = vadd.f32 %v2635_v28, %v5264_v54  ;;  %v5411_v17 = vmul.f32 %v5240_v34, %v901_v38  ;;  %v5424_v54 = vmul.f32 %v5268_v46, %v923_v16  ;;  %v5431_v34 = vld [vmem:[#allocation3 + $0x830] sm:$0xff]  ;;  %v6740_v28 = vlaneseq  ;;  %v5526_v0 = vld [vmem:[#allocation3 + $0x8f8] sm:$0xff] }
 0x22d   :  { %7348 = vst [vmem:[#allocation62_spill] sm:$0xff] %v5408_v1  ;;  %v5413_v30 = vadd.f32 %v2471_v59, %v1847_v24  ;;  %v5415_v47 = vadd.f32 %v2526_v33, %v1848_v13  ;;  %v5419_v55 = vadd.f32 %v2581_v15, %v1849_v45  ;;  %v5427_v56 = vmul.f32 %v5268_v46, %v924_v40  ;;  %v5439_v33 = vld [vmem:[#allocation3 + $0x838] sm:$0xff]  ;;  %v5441_v16 = vld [vmem:[#allocation3 + $0x850] ss:$52 sps:$4 sm:$0xff]   ;;  %v5486_v40 = vld [vmem:[#allocation3 + $0x8a8] sm:$0xff] }
 0x22e   :  { %7349 = vst [vmem:[#allocation63_spill] sm:$0xff] %v5411_v17  ;;  %v5421_v9 = vadd.f32 %v2636_v22, %v1850_v53  ;;  %7354 = vst [vmem:[#allocation68_spill] sm:$0xff] %v5424_v54  ;;  %v5434_v38 = vmul.f32 %v5268_v46, %v925_v29  ;;  %v5437_v58 = vmul.f32 %v5268_v46, %v926_v35  ;;  %v3038_v22 = vmov 1966171168   ;;  %v5449_v53 = vld [vmem:[#allocation3 + $0x85c] sm:$0xff]  ;;  %v5451_v59 = vld [vmem:[#allocation3 + $0x864] sm:$0xff] }
 0x22f   :  { %7350 = vst [vmem:[#allocation64_spill] sm:$0xff] %v5413_v30  ;;  %7351 = vst [vmem:[#allocation65_spill] sm:$0xff] %v5415_v47  ;;  %v2841_v13 = vunpack.c.l.s4 %v3038_v22  ;;  %v2768_v29 = vshrl.u32 %v6740_v28, 7  ;;  %v5463_v17 = vld [vmem:[#allocation3 + $0x87c] sm:$0xff]  ;;  %v5470_v54 = vld [vmem:[#allocation3 + $0x888] sm:$0xff]  ;;  %v7379_v10 = vunpack.c.l.bf16 %v5417_v4  ;;  %v7381_v11 = vunpack.c.l.bf16 %v5429_v18 }
 0x230   :  { %7352 = vst [vmem:[#allocation66_spill] sm:$0xff] %v5419_v55  ;;  %7353 = vst [vmem:[#allocation67_spill] sm:$0xff] %v5421_v9  ;;  %v5472_v24 = vld [vmem:[#allocation3 + $0x890] sm:$0xff]  ;;  %v5479_v47 = vld [vmem:[#allocation3 + $0x898] sm:$0xff]  ;;  %v7386_v14 = vunpack.c.l.bf16 %v5439_v33 }
 0x231   :  { %7355 = vst [vmem:[#allocation13_spill] sm:$0xff] %v5427_v56  ;;  %7356 = vst [vmem:[#allocation69_spill] sm:$0xff] %v5434_v38  ;;  %v2842_v22 = vunpack.c.0.s8 %v2841_v13  ;;  %v5456_v38 = vld [vmem:[#allocation3 + $0x86c] sm:$0xff]  ;;  %v2769_v48 = vsub.s32 0, %v2768_v29  ;;  %v5461_v56 = vld [vmem:[#allocation3 + $0x874] sm:$0xff] }
 0x232   :  { %7357 = vst [vmem:[#allocation70_spill] sm:$0xff] %v5437_v58  ;;  %v2765_v58 = vpop.permute.xlu0 %2764  ;;  %v5481_v15 = vld [vmem:[#allocation3 + $0x8a0] sm:$0xff]  ;;  %v5494_v45 = vld [vmem:[#allocation3 + $0x8b8] ss:$52 sps:$4 sm:$0xff]   ;;  %v5536_v9 = vld [vmem:[#allocation3 + $0x910] sm:$0xff] }
 0x233   :  { %v5468_v35 = vsub.s32 %v2842_v22, %v2768_v29  ;;  %v5477_v55 = vrot.slane %v2765_v58, %v2769_v48  ;;  %v5504_v28 = vld [vmem:[#allocation3 + $0x8cc] sm:$0xff]  ;;  %v5512_v29 = vld [vmem:[#allocation3 + $0x8dc] sm:$0xff]  ;;  %7360 = vst [vmem:[#allocation73_spill] sm:$0xff] %v5576_v49  ;;  %7369 = vst [vmem:[#allocation82_spill] sm:$0xff] %v5614_v21 }
 0x234   :  { %v5520_v58 = vld [vmem:[#allocation3 + $0x8f0] sm:$0xff]  ;;  %v5528_v13 = vld [vmem:[#allocation3 + $0x900] sm:$0xff]  ;;  %7370 = vst [vmem:[#allocation83_spill] sm:$0xff] %v5616_v36  ;;  %v5630_v49 = vld [vmem:[#allocation3 + $0x9c8] sm:$0xff]  ;;  %v5699_v36 = vmul.f32 %v5268_v46, %v7379_v10 }
 0x235   :  { %7358 = vst [vmem:[#allocation71_spill] sm:$0xff] %v5468_v35  ;;  %7359 = vst [vmem:[#allocation72_spill] sm:$0xff] %v5477_v55  ;;  %v5488_v35 = vld [vmem:[#allocation3 + $0x8b0] sm:$0xff]  ;;  %v5496_v55 = vld [vmem:[#allocation3 + $0x8bc] sm:$0xff] }
 0x236   :  { %v5544_v22 = vld [vmem:[#allocation3 + $0x920] ss:$52 sps:$4 sm:$0xff]   ;;  %v5552_v48 = vld [vmem:[#allocation3 + $0x92c] sm:$0xff]  ;;  %7372 = vst [vmem:[#allocation85_spill] sm:$0xff] %v5630_v49  ;;  %7373 = vst [vmem:[#allocation86_spill] sm:$0xff] %v5632_v39  ;;  %v7390_v39 = vunpack.c.l.bf16 %v5441_v16 }
 0x237   :  { %v5560_v30 = vld [vmem:[#allocation3 + $0x93c] sm:$0xff]  ;;  %v5584_v63 = vld [vmem:[#allocation3 + $0x970] sm:$0xff]  ;;  %7375 = vst [vmem:[#allocation88_spill] sm:$0xff] %v5640_v50  ;;  %v5662_v21 = vld [vmem:[#allocation3 + $0xa04] sm:$0xff]  ;;  %v1303_v50 = vpop.permute.xlu1 %1302 }
 0x238   :  { %7362 = vst [vmem:[#allocation75_spill] sm:$0xff] %v5584_v63  ;;  %v5592_v5 = vld [vmem:[#allocation3 + $0x980] sm:$0xff]  ;;  %v5600_v3 = vld [vmem:[#allocation3 + $0x98c] sm:$0xff]  ;;  %v5622_v1 = vld [vmem:[#allocation3 + $0x9b4] sm:$0xff] }
 0x239   :  { %7364 = vst [vmem:[#allocation77_spill] sm:$0xff] %v5592_v5  ;;  %7366 = vst [vmem:[#allocation79_spill] sm:$0xff] %v5600_v3  ;;  %v5608_v20 = vld [vmem:[#allocation3 + $0x99c] sm:$0xff]  ;;  %v5646_v5 = vld [vmem:[#allocation3 + $0x9e8] sm:$0xff]  ;;  %v7380_v3 = vunpack.c.h.bf16 %v5417_v4  ;;  %v7384_v4 = vunpack.c.h.bf16 %v5431_v34 }
 0x23a   :  { %7368 = vst [vmem:[#allocation81_spill] sm:$0xff] %v5608_v20  ;;  %7371 = vst [vmem:[#allocation84_spill] sm:$0xff] %v5622_v1  ;;  %v5638_v63 = vld [vmem:[#allocation3 + $0x9d8] sm:$0xff]  ;;  %v7377_v1 = vunpack.c.h.bf16 %v5367_v60  ;;  %v5709_v20 = vmul.f32 %v5268_v46, %v7381_v11  ;;  %v7382_v60 = vunpack.c.h.bf16 %v5429_v18  ;;  %v5729_v11 = vmul.f32 %v5268_v46, %v7386_v14 }
 0x23b   :  { %7374 = vst [vmem:[#allocation87_spill] sm:$0xff] %v5638_v63  ;;  %v5704_v49 = vmul.f32 %v5268_v46, %v7380_v3  ;;  %v5724_v3 = vmul.f32 %v5268_v46, %v7384_v4  ;;  %v7388_v18 = vunpack.c.h.bf16 %v5439_v33  ;;  %v7393_v4 = vunpack.c.h.bf16 %v5443_v2 }
 0x23c   :  { %v5694_v63 = vmul.f32 %v5330_v8, %v7377_v1  ;;  %v5714_v8 = vmul.f32 %v5268_v46, %v7382_v60  ;;  %v7383_v1 = vunpack.c.l.bf16 %v5431_v34  ;;  %7387 = vst [vmem:[#allocation92_spill] sm:$0xff] %v5729_v11  ;;  %v7392_v34 = vunpack.c.l.bf16 %v5443_v2 }
 0x23d   :  { %7385 = vst [vmem:[#allocation91_spill] sm:$0xff] %v5724_v3  ;;  %v5734_v60 = vmul.f32 %v5268_v46, %v7388_v18  ;;  %v5747_v3 = vmul.f32 %v1303_v50, %v7393_v4  ;;  %v7394_v14 = vunpack.c.l.bf16 %v5449_v53  ;;  %v7395_v33 = vunpack.c.h.bf16 %v5449_v53 }
 0x23e   :  { %7378 = vst [vmem:[#allocation90_spill] sm:$0xff] %v5694_v63  ;;  %v5719_v10 = vmul.f32 %v5268_v46, %v7383_v1  ;;  %v5739_v1 = vmul.f32 %v5268_v46, %v7390_v39  ;;  %v5743_v63 = vmul.f32 %v1303_v50, %v7392_v34  ;;  %v7398_v39 = vunpack.c.h.bf16 %v5451_v59 }
 0x23f   :  { %7389 = vst [vmem:[#allocation93_spill] sm:$0xff] %v5734_v60  ;;  %v5751_v11 = vmul.f32 %v1303_v50, %v7394_v14  ;;  %v5755_v18 = vmul.f32 %v1303_v50, %v7395_v33  ;;  %v7397_v60 = vunpack.c.l.bf16 %v5451_v59  ;;  %v7400_v2 = vunpack.c.l.bf16 %v5456_v38 }
 0x240   :  { %7391 = vst [vmem:[#allocation94_spill] sm:$0xff] %v5739_v1  ;;  %v5763_v34 = vmul.f32 %v1303_v50, %v7398_v39  ;;  %v7401_v1 = vunpack.c.h.bf16 %v5456_v38  ;;  %v7403_v53 = vunpack.c.l.bf16 %v5461_v56  ;;  %v7407_v59 = vunpack.c.l.bf16 %v5463_v17 }
 0x241   :  { %7396 = vst [vmem:[#allocation14_spill] sm:$0xff] %v5755_v18  ;;  %v5759_v46 = vmul.f32 %v1303_v50, %v7397_v60  ;;  %v5767_v4 = vmul.f32 %v1303_v50, %v7400_v2  ;;  %v7405_v18 = vunpack.c.h.bf16 %v5461_v56  ;;  %v7411_v38 = vunpack.c.h.bf16 %v5441_v16 }
 0x242   :  { %7399 = vst [vmem:[#allocation95_spill] sm:$0xff] %v5763_v34  ;;  %v5771_v14 = vmul.f32 %v1303_v50, %v7401_v1  ;;  %v5775_v33 = vmul.f32 %v1303_v50, %v7403_v53  ;;  %v5783_v39 = vmul.f32 %v1303_v50, %v7407_v59  ;;  %v7409_v34 = vunpack.c.h.bf16 %v5463_v17 }
 0x243   :  { %v5779_v60 = vmul.f32 %v1303_v50, %v7405_v18  ;;  %v5791_v1 = vmul.f32 %v1303_v50, %v7411_v38  ;;  %v7413_v53 = vunpack.c.l.bf16 %v5470_v54  ;;  %v7414_v56 = vunpack.c.h.bf16 %v5470_v54 }
 0x244   :  { %7402 = vst [vmem:[#allocation96_spill] sm:$0xff] %v5771_v14  ;;  %7404 = vst [vmem:[#allocation97_spill] sm:$0xff] %v5775_v33  ;;  %v5787_v2 = vmul.f32 %v1303_v50, %v7409_v34  ;;  %v1313_v14 = vpop.permute.xlu1 %1312  ;;  %v7415_v59 = vunpack.c.l.bf16 %v5472_v24  ;;  %v7416_v16 = vunpack.c.h.bf16 %v5472_v24  ;;  %v7417_v34 = vunpack.c.l.bf16 %v5479_v47 }
 0x245   :  { %7406 = vst [vmem:[#allocation98_spill] sm:$0xff] %v5779_v60  ;;  %7408 = vst [vmem:[#allocation99_spill] sm:$0xff] %v5783_v39  ;;  %v5796_v33 = vmul.f32 %v5301_v23, %v7413_v53  ;;  %v5801_v18 = vmul.f32 %v5301_v23, %v7414_v56  ;;  %v7418_v54 = vunpack.c.h.bf16 %v5479_v47  ;;  %v7419_v56 = vunpack.c.l.bf16 %v5481_v15 }
 0x246   :  { %7410 = vst [vmem:[#allocation100_spill] sm:$0xff] %v5787_v2  ;;  %7412 = vst [vmem:[#allocation101_spill] sm:$0xff] %v5791_v1  ;;  %v5806_v17 = vmul.f32 %v5301_v23, %v7415_v59  ;;  %v5811_v50 = vmul.f32 %v5301_v23, %v7416_v16  ;;  %v5816_v38 = vmul.f32 %v5301_v23, %v7417_v34  ;;  %v7420_v24 = vunpack.c.h.bf16 %v5481_v15 }
 0x247   :  { %v5821_v53 = vmul.f32 %v5301_v23, %v7418_v54  ;;  %v5826_v59 = vmul.f32 %v5301_v23, %v7419_v56  ;;  %v7421_v2 = vunpack.c.l.bf16 %v5486_v40  ;;  %v7423_v47 = vunpack.c.h.bf16 %v5486_v40 }
 0x248   :  { %v5831_v16 = vmul.f32 %v5301_v23, %v7420_v24  ;;  %v7425_v39 = vunpack.c.l.bf16 %v5488_v35  ;;  %v7427_v15 = vunpack.c.h.bf16 %v5488_v35  ;;  %v7429_v60 = vunpack.c.l.bf16 %v5494_v45 }
 0x249   :  { %v5836_v34 = vmul.f32 %v5301_v23, %v7421_v2  ;;  %v5841_v54 = vmul.f32 %v5301_v23, %v7423_v47  ;;  %v7431_v40 = vunpack.c.l.bf16 %v5496_v55  ;;  %v7432_v47 = vunpack.c.h.bf16 %v5496_v55 }
 0x24a   :  { %v5846_v56 = vmul.f32 %v5301_v23, %v7425_v39  ;;  %v5851_v24 = vmul.f32 %v5301_v23, %v7427_v15  ;;  %v5856_v2 = vmul.f32 %v5301_v23, %v7429_v60  ;;  %v7433_v39 = vunpack.c.l.bf16 %v5502_v27 }
 0x24b   :  { %7422 = vst [vmem:[#allocation102_spill] sm:$0xff] %v5836_v34  ;;  %7424 = vst [vmem:[#allocation103_spill] sm:$0xff] %v5841_v54  ;;  %v5860_v34 = vmul.f32 %v1313_v14, %v7431_v40  ;;  %v5864_v54 = vmul.f32 %v1313_v14, %v7432_v47  ;;  %v7434_v35 = vunpack.c.h.bf16 %v5502_v27  ;;  %v7436_v60 = vunpack.c.h.bf16 %v5504_v28 }
 0x24c   :  { %7426 = vst [vmem:[#allocation104_spill] sm:$0xff] %v5846_v56  ;;  %7428 = vst [vmem:[#allocation105_spill] sm:$0xff] %v5851_v24  ;;  %v5868_v56 = vmul.f32 %v1313_v14, %v7433_v39  ;;  %v7435_v24 = vunpack.c.l.bf16 %v5504_v28  ;;  %v7438_v55 = vunpack.c.l.bf16 %v5510_v37  ;;  %v7441_v27 = vunpack.c.l.bf16 %v5512_v29 }
 0x24d   :  { %7430 = vst [vmem:[#allocation106_spill] sm:$0xff] %v5856_v2  ;;  %v5872_v15 = vmul.f32 %v1313_v14, %v7434_v35  ;;  %v5880_v40 = vmul.f32 %v1313_v14, %v7436_v60  ;;  %v7440_v2 = vunpack.c.h.bf16 %v5510_v37  ;;  %v7443_v1 = vunpack.c.h.bf16 %v5512_v29 }
 0x24e   :  { %v5876_v23 = vmul.f32 %v1313_v14, %v7435_v24  ;;  %v5884_v47 = vmul.f32 %v1313_v14, %v7438_v55  ;;  %v5892_v35 = vmul.f32 %v1313_v14, %v7441_v27  ;;  %v7445_v28 = vunpack.c.l.bf16 %v5518_v26 }
 0x24f   :  { %7437 = vst [vmem:[#allocation107_spill] sm:$0xff] %v5880_v40  ;;  %v5888_v39 = vmul.f32 %v1313_v14, %v7440_v2  ;;  %v5896_v24 = vmul.f32 %v1313_v14, %v7443_v1  ;;  %v1323_v40 = vpop.permute.xlu1 %1322  ;;  %v7447_v55 = vunpack.c.h.bf16 %v5518_v26  ;;  %v7449_v37 = vunpack.c.h.bf16 %v5494_v45 }
 0x250   :  { %7439 = vst [vmem:[#allocation108_spill] sm:$0xff] %v5884_v47  ;;  %7442 = vst [vmem:[#allocation109_spill] sm:$0xff] %v5892_v35  ;;  %v5900_v60 = vmul.f32 %v1313_v14, %v7445_v28  ;;  %v7451_v27 = vunpack.c.l.bf16 %v5520_v58  ;;  %v7452_v29 = vunpack.c.h.bf16 %v5520_v58  ;;  %v7453_v28 = vunpack.c.l.bf16 %v5526_v0 }
 0x251   :  { %7444 = vst [vmem:[#allocation15_spill] sm:$0xff] %v5896_v24  ;;  %v5904_v47 = vmul.f32 %v1313_v14, %v7447_v55  ;;  %v5908_v2 = vmul.f32 %v1313_v14, %v7449_v37  ;;  %v7454_v55 = vunpack.c.h.bf16 %v5526_v0  ;;  %v7455_v14 = vunpack.c.l.bf16 %v5528_v13 }
 0x252   :  { %7446 = vst [vmem:[#allocation16_spill] sm:$0xff] %v5900_v60  ;;  %v5913_v35 = vmul.f32 %v5332_v42, %v7451_v27  ;;  %v5918_v1 = vmul.f32 %v5332_v42, %v7452_v29  ;;  %v5923_v26 = vmul.f32 %v5332_v42, %v7453_v28  ;;  %v7456_v58 = vunpack.c.h.bf16 %v5528_v13 }
 0x253   :  { %7448 = vst [vmem:[#allocation110_spill] sm:$0xff] %v5904_v47  ;;  %7450 = vst [vmem:[#allocation111_spill] sm:$0xff] %v5908_v2  ;;  %v5928_v45 = vmul.f32 %v5332_v42, %v7454_v55  ;;  %v5933_v37 = vmul.f32 %v5332_v42, %v7455_v14  ;;  %v7457_v29 = vunpack.c.l.bf16 %v5534_v61  ;;  %v7458_v0 = vunpack.c.h.bf16 %v5534_v61 }
 0x254   :  { %v5938_v27 = vmul.f32 %v5332_v42, %v7456_v58  ;;  %v7459_v47 = vunpack.c.l.bf16 %v5536_v9  ;;  %v7461_v13 = vunpack.c.h.bf16 %v5536_v9  ;;  %v7463_v60 = vunpack.c.l.bf16 %v5542_v43 }
 0x255   :  { %v5943_v28 = vmul.f32 %v5332_v42, %v7457_v29  ;;  %v5948_v55 = vmul.f32 %v5332_v42, %v7458_v0  ;;  %v7465_v61 = vunpack.c.h.bf16 %v5542_v43  ;;  %v7467_v24 = vunpack.c.l.bf16 %v5544_v22 }
 0x256   :  { %v5953_v14 = vmul.f32 %v5332_v42, %v7459_v47  ;;  %v5958_v58 = vmul.f32 %v5332_v42, %v7461_v13  ;;  %v5963_v29 = vmul.f32 %v5332_v42, %v7463_v60  ;;  %v7469_v9 = vunpack.c.l.bf16 %v5550_v19 }
 0x257   :  { %v5968_v0 = vmul.f32 %v5332_v42, %v7465_v61  ;;  %v5973_v47 = vmul.f32 %v5332_v42, %v7467_v24  ;;  %v7470_v13 = vunpack.c.h.bf16 %v5550_v19  ;;  %v7471_v60 = vunpack.c.l.bf16 %v5552_v48 }
 0x258   :  { %7460 = vst [vmem:[#allocation112_spill] sm:$0xff] %v5953_v14  ;;  %7462 = vst [vmem:[#allocation113_spill] sm:$0xff] %v5958_v58  ;;  %v5977_v14 = vmul.f32 %v1323_v40, %v7469_v9  ;;  %v7472_v43 = vunpack.c.h.bf16 %v5552_v48  ;;  %v7476_v24 = vunpack.c.h.bf16 %v5558_v31  ;;  %v7478_v19 = vunpack.c.l.bf16 %v5560_v30 }
 0x259   :  { %7464 = vst [vmem:[#allocation114_spill] sm:$0xff] %v5963_v29  ;;  %7466 = vst [vmem:[#allocation115_spill] sm:$0xff] %v5968_v0  ;;  %v5981_v58 = vmul.f32 %v1323_v40, %v7470_v13  ;;  %v5985_v29 = vmul.f32 %v1323_v40, %v7471_v60  ;;  %v7474_v0 = vunpack.c.l.bf16 %v5558_v31  ;;  %v7482_v48 = vunpack.c.l.bf16 %v5566_v52 }
 0x25a   :  { %7468 = vst [vmem:[#allocation116_spill] sm:$0xff] %v5973_v47  ;;  %v5989_v61 = vmul.f32 %v1323_v40, %v7472_v43  ;;  %v5997_v9 = vmul.f32 %v1323_v40, %v7476_v24  ;;  %v6001_v13 = vmul.f32 %v1323_v40, %v7478_v19  ;;  %v7480_v47 = vunpack.c.h.bf16 %v5560_v30 }
 0x25b   :  { %v5993_v42 = vmul.f32 %v1323_v40, %v7474_v0  ;;  %v6009_v43 = vmul.f32 %v1323_v40, %v7482_v48  ;;  %v7484_v2 = vunpack.c.h.bf16 %v5566_v52  ;;  %v7486_v31 = vunpack.c.l.bf16 %v5568_v41 }
 0x25c   :  { %7473 = vst [vmem:[#allocation117_spill] sm:$0xff] %v5989_v61  ;;  %7477 = vst [vmem:[#allocation119_spill] sm:$0xff] %v5997_v9  ;;  %v6005_v60 = vmul.f32 %v1323_v40, %v7480_v47  ;;  %v7488_v9 = vunpack.c.h.bf16 %v5568_v41  ;;  %v7490_v30 = vunpack.c.h.bf16 %v5544_v22  ;;  %v7492_v48 = vunpack.c.l.bf16 %v5574_v7  ;;  %v7638_v61 = vld [vmem:[#allocation44_spill] sm:$0xff] }
 0x25d   :  { %7475 = vst [vmem:[#allocation118_spill] sm:$0xff] %v5993_v42  ;;  %7479 = vst [vmem:[#allocation120_spill] sm:$0xff] %v6001_v13  ;;  %v6013_v0 = vmul.f32 %v1323_v40, %v7484_v2  ;;  %v6017_v24 = vmul.f32 %v1323_v40, %v7486_v31  ;;  %v7494_v52 = vunpack.c.h.bf16 %v5574_v7  ;;  %v7496_v31 = vld [vmem:[#allocation73_spill] sm:$0xff] }
 0x25e   :  { %7481 = vst [vmem:[#allocation121_spill] sm:$0xff] %v6005_v60  ;;  %7483 = vst [vmem:[#allocation17_spill] sm:$0xff] %v6009_v43  ;;  %v6021_v19 = vmul.f32 %v1323_v40, %v7488_v9  ;;  %v6025_v47 = vmul.f32 %v1323_v40, %v7490_v30  ;;  %v1333_v60 = vpop.permute.xlu1 %1332  ;;  %v6030_v43 = vmul.f32 %v5369_v62, %v7492_v48  ;;  %v7499_v22 = vunpack.c.h.bf16 %v7496_v31  ;;  %v7501_v9 = vld [vmem:[#allocation74_spill] sm:$0xff] }
 0x25f   :  { %7485 = vst [vmem:[#allocation18_spill] sm:$0xff] %v6013_v0  ;;  %7487 = vst [vmem:[#allocation19_spill] sm:$0xff] %v6017_v24  ;;  %v6035_v2 = vmul.f32 %v5369_v62, %v7494_v52  ;;  %v7497_v24 = vunpack.c.l.bf16 %v7496_v31  ;;  %v7502_v30 = vunpack.c.l.bf16 %v7501_v9  ;;  %v7504_v7 = vunpack.c.h.bf16 %v7501_v9 }
 0x260   :  { %7489 = vst [vmem:[#allocation20_spill] sm:$0xff] %v6021_v19  ;;  %7491 = vst [vmem:[#allocation21_spill] sm:$0xff] %v6025_v47  ;;  %v6045_v40 = vmul.f32 %v5369_v62, %v7499_v22  ;;  %v7506_v19 = vld [vmem:[#allocation75_spill] sm:$0xff]  ;;  %v7511_v47 = vld [vmem:[#allocation76_spill] sm:$0xff] }
 0x261   :  { %7493 = vst [vmem:[#allocation22_spill] sm:$0xff] %v6030_v43  ;;  %7495 = vst [vmem:[#allocation122_spill] sm:$0xff] %v6035_v2  ;;  %v6040_v41 = vmul.f32 %v5369_v62, %v7497_v24  ;;  %v6050_v48 = vmul.f32 %v5369_v62, %v7502_v30  ;;  %v6055_v52 = vmul.f32 %v5369_v62, %v7504_v7  ;;  %v7507_v0 = vunpack.c.l.bf16 %v7506_v19  ;;  %v7635_v43 = vld [vmem:[#allocation60_spill] sm:$0xff] }
 0x262   :  { %7500 = vst [vmem:[#allocation123_spill] sm:$0xff] %v6045_v40  ;;  %v7509_v31 = vunpack.c.h.bf16 %v7506_v19  ;;  %v7512_v40 = vunpack.c.l.bf16 %v7511_v47  ;;  %v7514_v9 = vunpack.c.h.bf16 %v7511_v47 }
 0x263   :  { %7498 = vst [vmem:[#allocation73_spill] sm:$0xff] %v6040_v41  ;;  %7503 = vst [vmem:[#allocation74_spill] sm:$0xff] %v6050_v48  ;;  %v6060_v24 = vmul.f32 %v5369_v62, %v7507_v0 }
 0x264   :  { %7505 = vst [vmem:[#allocation124_spill] sm:$0xff] %v6055_v52  ;;  %v6065_v22 = vmul.f32 %v5369_v62, %v7509_v31  ;;  %v6070_v30 = vmul.f32 %v5369_v62, %v7512_v40  ;;  %v6075_v7 = vmul.f32 %v5369_v62, %v7514_v9  ;;  %v7516_v52 = vld [vmem:[#allocation77_spill] sm:$0xff] }
 0x265   :  { %7508 = vst [vmem:[#allocation75_spill] sm:$0xff] %v6060_v24  ;;  %v7517_v48 = vunpack.c.l.bf16 %v7516_v52  ;;  %v7519_v19 = vunpack.c.h.bf16 %v7516_v52 }
 0x266   :  { %7510 = vst [vmem:[#allocation125_spill] sm:$0xff] %v6065_v22  ;;  %7513 = vst [vmem:[#allocation76_spill] sm:$0xff] %v6070_v30  ;;  %v7521_v22 = vld [vmem:[#allocation78_spill] sm:$0xff]  ;;  %v7524_v30 = vld [vmem:[#allocation79_spill] sm:$0xff] }
 0x267   :  { %7515 = vst [vmem:[#allocation126_spill] sm:$0xff] %v6075_v7  ;;  %v6080_v0 = vmul.f32 %v5369_v62, %v7517_v48  ;;  %v6085_v31 = vmul.f32 %v5369_v62, %v7519_v19  ;;  %v7522_v24 = vunpack.c.l.bf16 %v7521_v22  ;;  %v7525_v47 = vunpack.c.l.bf16 %v7524_v30  ;;  %v7529_v48 = vld [vmem:[#allocation80_spill] sm:$0xff] }
 0x268   :  { %v7527_v9 = vunpack.c.h.bf16 %v7524_v30  ;;  %v7532_v52 = vunpack.c.h.bf16 %v7529_v48 }
 0x269   :  { %7518 = vst [vmem:[#allocation77_spill] sm:$0xff] %v6080_v0  ;;  %7520 = vst [vmem:[#allocation127_spill] sm:$0xff] %v6085_v31  ;;  %v6090_v40 = vmul.f32 %v5369_v62, %v7522_v24  ;;  %v6094_v41 = vmul.f32 %v1333_v60, %v7525_v47  ;;  %v7530_v0 = vunpack.c.l.bf16 %v7529_v48  ;;  %v7534_v31 = vld [vmem:[#allocation81_spill] sm:$0xff] }
 0x26a   :  { %v6098_v7 = vmul.f32 %v1333_v60, %v7527_v9  ;;  %v6106_v19 = vmul.f32 %v1333_v60, %v7532_v52  ;;  %v7535_v13 = vunpack.c.l.bf16 %v7534_v31  ;;  %v7537_v24 = vunpack.c.h.bf16 %v7534_v31 }
 0x26b   :  { %7523 = vst [vmem:[#allocation78_spill] sm:$0xff] %v6090_v40  ;;  %7526 = vst [vmem:[#allocation79_spill] sm:$0xff] %v6094_v41  ;;  %v6102_v2 = vmul.f32 %v1333_v60, %v7530_v0  ;;  %v7539_v40 = vld [vmem:[#allocation82_spill] sm:$0xff] }
 0x26c   :  { %7528 = vst [vmem:[#allocation128_spill] sm:$0xff] %v6098_v7  ;;  %7533 = vst [vmem:[#allocation129_spill] sm:$0xff] %v6106_v19  ;;  %v6110_v62 = vmul.f32 %v1333_v60, %v7535_v13  ;;  %v6114_v47 = vmul.f32 %v1333_v60, %v7537_v24  ;;  %v7540_v30 = vunpack.c.l.bf16 %v7539_v40  ;;  %v7542_v7 = vunpack.c.h.bf16 %v7539_v40 }
 0x26d   :  { %7531 = vst [vmem:[#allocation80_spill] sm:$0xff] %v6102_v2  ;;  %v7544_v2 = vld [vmem:[#allocation83_spill] sm:$0xff] }
 0x26e   :  { %7536 = vst [vmem:[#allocation81_spill] sm:$0xff] %v6110_v62  ;;  %7538 = vst [vmem:[#allocation130_spill] sm:$0xff] %v6114_v47  ;;  %v6118_v9 = vmul.f32 %v1333_v60, %v7540_v30  ;;  %v6122_v0 = vmul.f32 %v1333_v60, %v7542_v7  ;;  %v7545_v48 = vunpack.c.l.bf16 %v7544_v2  ;;  %v7547_v19 = vunpack.c.h.bf16 %v7544_v2  ;;  %v7549_v62 = vld [vmem:[#allocation84_spill] sm:$0xff]  ;;  %v6136_v47 = vpop.permute.xlu1 %1342 }
 0x26f   :  { %v7550_v31 = vunpack.c.l.bf16 %v7549_v62  ;;  %7552 = vst [vmem:[#allocation133_spill] sm:$0xff] %v6136_v47  ;;  %v7553_v30 = vunpack.c.h.bf16 %v7549_v62  ;;  %v7555_v7 = vunpack.c.h.bf16 %v7521_v22  ;;  %v7567_v22 = vld [vmem:[#allocation86_spill] sm:$0xff] }
 0x270   :  { %7541 = vst [vmem:[#allocation82_spill] sm:$0xff] %v6118_v9  ;;  %7543 = vst [vmem:[#allocation131_spill] sm:$0xff] %v6122_v0  ;;  %v6126_v52 = vmul.f32 %v1333_v60, %v7545_v48  ;;  %v6130_v13 = vmul.f32 %v1333_v60, %v7547_v19  ;;  %v7557_v48 = vunpack.c.l.bf16 %v5624_v44  ;;  %v7560_v19 = vunpack.c.h.bf16 %v5624_v44 }
 0x271   :  { %v6134_v24 = vmul.f32 %v1333_v60, %v7550_v31  ;;  %v6140_v9 = vmul.f32 %v1333_v60, %v7553_v30  ;;  %v6144_v40 = vmul.f32 %v1333_v60, %v7555_v7  ;;  %v7568_v7 = vunpack.c.l.bf16 %v7567_v22 }
 0x272   :  { %7546 = vst [vmem:[#allocation83_spill] sm:$0xff] %v6126_v52  ;;  %7548 = vst [vmem:[#allocation132_spill] sm:$0xff] %v6130_v13  ;;  %v7558_v52 = vld [vmem:[#allocation62_spill] sm:$0xff]  ;;  %v7570_v44 = vunpack.c.h.bf16 %v7567_v22 }
 0x273   :  { %7551 = vst [vmem:[#allocation84_spill] sm:$0xff] %v6134_v24  ;;  %7554 = vst [vmem:[#allocation134_spill] sm:$0xff] %v6140_v9  ;;  %v6149_v2 = vmul.f32 %v7558_v52, %v7557_v48  ;;  %v6154_v31 = vmul.f32 %v7558_v52, %v7560_v19  ;;  %v7562_v24 = vld [vmem:[#allocation85_spill] sm:$0xff]  ;;  %v6169_v48 = vmul.f32 %v7558_v52, %v7568_v7  ;;  %v7572_v9 = vld [vmem:[#allocation87_spill] sm:$0xff] }
 0x274   :  { %7556 = vst [vmem:[#allocation135_spill] sm:$0xff] %v6144_v40  ;;  %v7563_v13 = vunpack.c.l.bf16 %v7562_v24  ;;  %v7565_v30 = vunpack.c.h.bf16 %v7562_v24  ;;  %v6174_v19 = vmul.f32 %v7558_v52, %v7570_v44  ;;  %v7573_v40 = vunpack.c.l.bf16 %v7572_v9 }
 0x275   :  { %7559 = vst [vmem:[#allocation62_spill] sm:$0xff] %v6149_v2  ;;  %7561 = vst [vmem:[#allocation136_spill] sm:$0xff] %v6154_v31  ;;  %v7575_v24 = vunpack.c.h.bf16 %v7572_v9  ;;  %v7584_v9 = vunpack.c.h.bf16 %v5646_v5  ;;  %v7628_v31 = vld [vmem:[#allocation41_spill] sm:$0xff] }
 0x276   :  { %v6159_v62 = vmul.f32 %v7558_v52, %v7563_v13  ;;  %v6164_v60 = vmul.f32 %v7558_v52, %v7565_v30  ;;  %7569 = vst [vmem:[#allocation86_spill] sm:$0xff] %v6169_v48  ;;  %7571 = vst [vmem:[#allocation138_spill] sm:$0xff] %v6174_v19  ;;  %v6179_v13 = vmul.f32 %v7558_v52, %v7573_v40  ;;  %v7582_v19 = vunpack.c.l.bf16 %v5646_v5  ;;  %v7626_v48 = vld [vmem:[#allocation40_spill] sm:$0xff]  ;;  %v7631_v2 = vld [vmem:[#allocation57_spill] sm:$0xff] }
 0x277   :  { %v6184_v30 = vmul.f32 %v7558_v52, %v7575_v24  ;;  %v6204_v24 = vmul.f32 %v7558_v52, %v7584_v9  ;;  %v7592_v5 = vunpack.c.l.bf16 %v5656_v32 }
 0x278   :  { %7564 = vst [vmem:[#allocation85_spill] sm:$0xff] %v6159_v62  ;;  %7566 = vst [vmem:[#allocation137_spill] sm:$0xff] %v6164_v60  ;;  %v7577_v60 = vld [vmem:[#allocation88_spill] sm:$0xff]  ;;  %v6199_v40 = vmul.f32 %v7558_v52, %v7582_v19 }
 0x279   :  { %7574 = vst [vmem:[#allocation87_spill] sm:$0xff] %v6179_v13  ;;  %7576 = vst [vmem:[#allocation139_spill] sm:$0xff] %v6184_v30  ;;  %v7578_v62 = vunpack.c.l.bf16 %v7577_v60  ;;  %v7580_v22 = vunpack.c.h.bf16 %v7577_v60  ;;  %v7586_v30 = vunpack.c.l.bf16 %v5648_v57  ;;  %v7588_v60 = vunpack.c.l.bf16 %v5654_v25  ;;  %v7612_v57 = vld [vmem:[#allocation25_spill] sm:$0xff]  ;;  %v7622_v13 = vld [vmem:[#allocation54_spill] sm:$0xff] }
 0x27a   :  { %7583 = vst [vmem:[#allocation141_spill] sm:$0xff] %v6199_v40  ;;  %7585 = vst [vmem:[#allocation142_spill] sm:$0xff] %v6204_v24  ;;  %v6224_v9 = vmul.f32 %v6136_v47, %v7592_v5  ;;  %v7594_v24 = vunpack.c.h.bf16 %v5656_v32  ;;  %v7600_v40 = vunpack.c.l.bf16 %v5664_v6  ;;  %v7602_v32 = vunpack.c.h.bf16 %v5664_v6 }
 0x27b   :  { %v6189_v7 = vmul.f32 %v7558_v52, %v7578_v62  ;;  %v6194_v44 = vmul.f32 %v7558_v52, %v7580_v22  ;;  %v6209_v62 = vmul.f32 %v7558_v52, %v7586_v30  ;;  %v6214_v22 = vmul.f32 %v6136_v47, %v7588_v60 }
 0x27c   :  { %7593 = vst [vmem:[#allocation146_spill] sm:$0xff] %v6224_v9  ;;  %v6229_v52 = vmul.f32 %v6136_v47, %v7594_v24  ;;  %v7596_v30 = vunpack.c.l.bf16 %v5662_v21  ;;  %v6244_v5 = vmul.f32 %v6136_v47, %v7600_v40  ;;  %v6249_v24 = vmul.f32 %v6136_v47, %v7602_v32 }
 0x27d   :  { %7579 = vst [vmem:[#allocation88_spill] sm:$0xff] %v6189_v7  ;;  %7581 = vst [vmem:[#allocation140_spill] sm:$0xff] %v6194_v44  ;;  %v7590_v44 = vunpack.c.h.bf16 %v5654_v25  ;;  %v7598_v25 = vunpack.c.h.bf16 %v5662_v21  ;;  %v7604_v7 = vunpack.c.l.bf16 %v5670_v12  ;;  %v7606_v21 = vunpack.c.h.bf16 %v5670_v12  ;;  %v7616_v12 = vld [vmem:[#allocation27_spill] sm:$0xff] }
 0x27e   :  { %7587 = vst [vmem:[#allocation143_spill] sm:$0xff] %v6209_v62  ;;  %7589 = vst [vmem:[#allocation144_spill] sm:$0xff] %v6214_v22  ;;  %v6234_v60 = vmul.f32 %v6136_v47, %v7596_v30  ;;  %v7608_v62 = vunpack.c.l.bf16 %v5672_v51  ;;  %v7610_v6 = vunpack.c.h.bf16 %v5672_v51  ;;  %v7623_v22 = vld [vmem:[#allocation30_spill] sm:$0xff] }
 0x27f   :  { %v6219_v19 = vmul.f32 %v6136_v47, %v7590_v44  ;;  %7595 = vst [vmem:[#allocation147_spill] sm:$0xff] %v6229_v52  ;;  %v6239_v44 = vmul.f32 %v6136_v47, %v7598_v25  ;;  %7601 = vst [vmem:[#allocation150_spill] sm:$0xff] %v6244_v5  ;;  %v6254_v30 = vmul.f32 %v6136_v47, %v7604_v7  ;;  %v7614_v7 = vld [vmem:[#allocation26_spill] sm:$0xff]  ;;  %v7619_v52 = vld [vmem:[#allocation37_spill] sm:$0xff] }
 0x280   :  { %7597 = vst [vmem:[#allocation148_spill] sm:$0xff] %v6234_v60  ;;  %7603 = vst [vmem:[#allocation151_spill] sm:$0xff] %v6249_v24  ;;  %v6259_v25 = vmul.f32 %v6136_v47, %v7606_v21  ;;  %v6264_v40 = vmul.f32 %v6136_v47, %v7608_v62  ;;  %v6269_v32 = vmul.f32 %v6136_v47, %v7610_v6  ;;  %v7613_v24 = vld [vmem:[#allocation34_spill] sm:$0xff]  ;;  %v7617_v60 = vld [vmem:[#allocation36_spill] sm:$0xff] }
 0x281   :  { %7591 = vst [vmem:[#allocation145_spill] sm:$0xff] %v6219_v19  ;;  %7599 = vst [vmem:[#allocation149_spill] sm:$0xff] %v6239_v44  ;;  %v2031_v5 = vadd.f32 %v7613_v24, %v7612_v57  ;;  %v2141_v21 = vadd.f32 %v7617_v60, %v7616_v12  ;;  %v7620_v19 = vld [vmem:[#allocation29_spill] sm:$0xff]  ;;  %v7621_v62 = vld [vmem:[#allocation38_spill] sm:$0xff] }
 0x282   :  { %7605 = vst [vmem:[#allocation152_spill] sm:$0xff] %v6254_v30  ;;  %7607 = vst [vmem:[#allocation153_spill] sm:$0xff] %v6259_v25  ;;  %v7615_v30 = vld [vmem:[#allocation35_spill] sm:$0xff]  ;;  %v7618_v25 = vld [vmem:[#allocation28_spill] sm:$0xff] }
 0x283   :  { %7609 = vst [vmem:[#allocation154_spill] sm:$0xff] %v6264_v40  ;;  %7611 = vst [vmem:[#allocation155_spill] sm:$0xff] %v6269_v32  ;;  %v2086_v44 = vadd.f32 %v7615_v30, %v7614_v7  ;;  %v2196_v9 = vadd.f32 %v7619_v52, %v7618_v25  ;;  %v2251_v40 = vadd.f32 %v7621_v62, %v7620_v19  ;;  %v7624_v6 = vld [vmem:[#allocation39_spill] sm:$0xff]  ;;  %v7627_v24 = vld [vmem:[#allocation32_spill] sm:$0xff] }
 0x284   :  { %v2032_v51 = vadd.f32 %v2031_v5, %v7622_v13  ;;  %v2306_v32 = vadd.f32 %v7624_v6, %v7623_v22  ;;  %v7625_v47 = vld [vmem:[#allocation31_spill] sm:$0xff]  ;;  %v2416_v30 = vadd.f32 %v7628_v31, %v7627_v24  ;;  %v7630_v60 = vld [vmem:[#allocation56_spill] sm:$0xff]  ;;  %v7632_v25 = vld [vmem:[#allocation58_spill] sm:$0xff] }
 0x285   :  { %v2361_v57 = vadd.f32 %v7626_v48, %v7625_v47  ;;  %v7629_v7 = vld [vmem:[#allocation55_spill] sm:$0xff]  ;;  %v2142_v12 = vadd.f32 %v2141_v21, %v7630_v60  ;;  %v2197_v52 = vadd.f32 %v2196_v9, %v7631_v2  ;;  %v2252_v41 = vadd.f32 %v2251_v40, %v7632_v25  ;;  %v7633_v19 = vld [vmem:[#allocation12_spill] sm:$0xff]  ;;  %v7636_v6 = vld [vmem:[#allocation61_spill] sm:$0xff] }
 0x286   :  { %v2087_v0 = vadd.f32 %v2086_v44, %v7629_v7  ;;  %v2033_v62 = vadd.f32 %v2032_v51, %v7633_v19  ;;  %v7634_v13 = vld [vmem:[#allocation59_spill] sm:$0xff]  ;;  %v2417_v42 = vadd.f32 %v2416_v30, %v7636_v6  ;;  %v7639_v24 = vld [vmem:[#allocation45_spill] sm:$0xff]  ;;  %v7640_v7 = vld [vmem:[#allocation46_spill] sm:$0xff] }
 0x287   :  { %v2307_v5 = vadd.f32 %v2306_v32, %v7634_v13  ;;  %v2362_v22 = vadd.f32 %v2361_v57, %v7635_v43  ;;  %v7637_v47 = vld [vmem:[#allocation43_spill] sm:$0xff]  ;;  %v2143_v31 = vadd.f32 %v2142_v12, %v7638_v61  ;;  %v2198_v44 = vadd.f32 %v2197_v52, %v7639_v24  ;;  %v7642_v60 = vld [vmem:[#allocation48_spill] sm:$0xff]  ;;  %v7643_v25 = vld [vmem:[#allocation49_spill] sm:$0xff] }
 0x288   :  { %v2088_v48 = vadd.f32 %v2087_v0, %v7637_v47  ;;  %v2253_v21 = vadd.f32 %v2252_v41, %v7640_v7  ;;  %v2034_v2 = vadd.f32 %v2033_v62, %v5699_v36  ;;  %v7641_v9 = vld [vmem:[#allocation47_spill] sm:$0xff]  ;;  %v2418_v32 = vadd.f32 %v2417_v42, %v7643_v25  ;;  %v7645_v52 = vld [vmem:[#allocation92_spill] sm:$0xff]  ;;  %v7646_v19 = vld [vmem:[#allocation93_spill] sm:$0xff] }
 0x289   :  { %v2308_v40 = vadd.f32 %v2307_v5, %v7641_v9  ;;  %v2363_v51 = vadd.f32 %v2362_v22, %v7642_v60  ;;  %v2144_v57 = vadd.f32 %v2143_v31, %v5709_v20  ;;  %v2199_v0 = vadd.f32 %v2198_v44, %v5714_v8  ;;  %v7644_v12 = vld [vmem:[#allocation91_spill] sm:$0xff]  ;;  %v7647_v5 = vld [vmem:[#allocation14_spill] sm:$0xff]  ;;  %v7649_v6 = vld [vmem:[#allocation96_spill] sm:$0xff] }
 0x28a   :  { %v2089_v43 = vadd.f32 %v2088_v48, %v5704_v49  ;;  %v2254_v61 = vadd.f32 %v2253_v21, %v5719_v10  ;;  %v2035_v30 = vadd.f32 %v2034_v2, %v5743_v63  ;;  %v2419_v62 = vadd.f32 %v2418_v32, %v7646_v19  ;;  %v7648_v22 = vld [vmem:[#allocation95_spill] sm:$0xff]  ;;  %v7651_v2 = vld [vmem:[#allocation108_spill] sm:$0xff]  ;;  %v7652_v60 = vld [vmem:[#allocation117_spill] sm:$0xff] }
 0x28b   :  { %v2309_v41 = vadd.f32 %v2308_v40, %v7644_v12  ;;  %v2364_v36 = vadd.f32 %v2363_v51, %v7645_v52  ;;  %v2145_v42 = vadd.f32 %v2144_v57, %v5751_v11  ;;  %v2200_v49 = vadd.f32 %v2199_v0, %v7647_v5  ;;  %v7650_v21 = vld [vmem:[#allocation107_spill] sm:$0xff]  ;;  %v7653_v51 = vld [vmem:[#allocation118_spill] sm:$0xff]  ;;  %v7657_v57 = vld [vmem:[#allocation121_spill] sm:$0xff] }
 0x28c   :  { %v2090_v13 = vadd.f32 %v2089_v43, %v5747_v3  ;;  %v2255_v20 = vadd.f32 %v2254_v61, %v5759_v46  ;;  %v2036_v8 = vadd.f32 %v2035_v30, %v5796_v33  ;;  %v2420_v47 = vadd.f32 %v2419_v62, %v7649_v6  ;;  %v7654_v25 = vld [vmem:[#allocation22_spill] sm:$0xff]  ;;  %v7655_v32 = vld [vmem:[#allocation119_spill] sm:$0xff]  ;;  %v7656_v43 = vld [vmem:[#allocation120_spill] sm:$0xff] }
 0x28d   :  { %v2310_v10 = vadd.f32 %v2309_v41, %v7648_v22  ;;  %v2365_v63 = vadd.f32 %v2364_v36, %v5767_v4  ;;  %v2146_v31 = vadd.f32 %v2145_v42, %v5806_v17  ;;  %v2201_v3 = vadd.f32 %v2200_v49, %v5811_v50  ;;  %v7658_v0 = vld [vmem:[#allocation122_spill] sm:$0xff]  ;;  %v7659_v61 = vld [vmem:[#allocation73_spill] sm:$0xff]  ;;  %v7660_v30 = vld [vmem:[#allocation123_spill] sm:$0xff] }
 0x28e   :  { %v2091_v48 = vadd.f32 %v2090_v13, %v5801_v18  ;;  %v2256_v11 = vadd.f32 %v2255_v20, %v5816_v38  ;;  %v2037_v24 = vadd.f32 %v2036_v8, %v5860_v34  ;;  %v2421_v44 = vadd.f32 %v2420_v47, %v5831_v16  ;;  %v7661_v12 = vld [vmem:[#allocation74_spill] sm:$0xff]  ;;  %v7662_v41 = vld [vmem:[#allocation79_spill] sm:$0xff]  ;;  %v7663_v36 = vld [vmem:[#allocation124_spill] sm:$0xff] }
 0x28f   :  { %v2311_v46 = vadd.f32 %v2310_v10, %v5821_v53  ;;  %v2366_v33 = vadd.f32 %v2365_v63, %v5826_v59  ;;  %v2147_v7 = vadd.f32 %v2146_v31, %v5868_v56  ;;  %v2202_v18 = vadd.f32 %v2201_v3, %v5872_v15  ;;  %v7664_v62 = vld [vmem:[#allocation75_spill] sm:$0xff]  ;;  %v7665_v42 = vld [vmem:[#allocation125_spill] sm:$0xff]  ;;  %v7666_v49 = vld [vmem:[#allocation128_spill] sm:$0xff] }
 0x290   :  { %v2092_v4 = vadd.f32 %v2091_v48, %v5864_v54  ;;  %v2257_v17 = vadd.f32 %v2256_v11, %v5876_v23  ;;  %v2038_v50 = vadd.f32 %v2037_v24, %v5913_v35  ;;  %v2422_v53 = vadd.f32 %v2421_v44, %v5888_v39  ;;  %v7667_v8 = vld [vmem:[#allocation80_spill] sm:$0xff]  ;;  %v7668_v10 = vld [vmem:[#allocation129_spill] sm:$0xff]  ;;  %v7670_v48 = vld [vmem:[#allocation62_spill] sm:$0xff] }
 0x291   :  { %v2312_v38 = vadd.f32 %v2311_v46, %v7650_v21  ;;  %v2367_v34 = vadd.f32 %v2366_v33, %v7651_v2  ;;  %v2148_v16 = vadd.f32 %v2147_v7, %v5923_v26  ;;  %v2203_v54 = vadd.f32 %v2202_v18, %v5928_v45  ;;  %v7669_v6 = vld [vmem:[#allocation81_spill] sm:$0xff]  ;;  %v7671_v3 = vld [vmem:[#allocation130_spill] sm:$0xff]  ;;  %v7673_v33 = vld [vmem:[#allocation131_spill] sm:$0xff] }
 0x292   :  { %v2093_v59 = vadd.f32 %v2092_v4, %v5918_v1  ;;  %v2258_v56 = vadd.f32 %v2257_v17, %v5933_v37  ;;  %v2039_v15 = vadd.f32 %v2038_v50, %v5977_v14  ;;  %v2423_v9 = vadd.f32 %v2422_v53, %v5948_v55  ;;  %v7672_v24 = vld [vmem:[#allocation82_spill] sm:$0xff]  ;;  %v7674_v4 = vld [vmem:[#allocation136_spill] sm:$0xff]  ;;  %v7675_v18 = vld [vmem:[#allocation85_spill] sm:$0xff] }
 0x293   :  { %v2313_v23 = vadd.f32 %v2312_v38, %v5938_v27  ;;  %v2368_v35 = vadd.f32 %v2367_v34, %v5943_v28  ;;  %v2149_v39 = vadd.f32 %v2148_v16, %v5985_v29  ;;  %v2204_v1 = vadd.f32 %v2203_v54, %v7652_v60  ;;  %v7676_v50 = vld [vmem:[#allocation137_spill] sm:$0xff]  ;;  %v7677_v38 = vld [vmem:[#allocation86_spill] sm:$0xff]  ;;  %v7678_v34 = vld [vmem:[#allocation144_spill] sm:$0xff] }
 0x294   :  { %v2094_v40 = vadd.f32 %v2093_v59, %v5981_v58  ;;  %v2259_v26 = vadd.f32 %v2258_v56, %v7653_v51  ;;  %v2040_v45 = vadd.f32 %v2039_v15, %v7654_v25  ;;  %v2424_v27 = vadd.f32 %v2423_v9, %v7657_v57  ;;  %v7679_v59 = vld [vmem:[#allocation138_spill] sm:$0xff]  ;;  %v7680_v54 = vld [vmem:[#allocation87_spill] sm:$0xff]  ;;  %v7685_v51 = vld [vmem:[#allocation148_spill] sm:$0xff] }
 0x295   :  { %v2314_v37 = vadd.f32 %v2313_v23, %v7655_v32  ;;  %v2369_v14 = vadd.f32 %v2368_v35, %v7656_v43  ;;  %v2150_v55 = vadd.f32 %v2149_v39, %v7659_v61  ;;  %v2205_v58 = vadd.f32 %v2204_v1, %v7660_v30  ;;  %v7681_v15 = vld [vmem:[#allocation139_spill] sm:$0xff]  ;;  %v7682_v35 = vld [vmem:[#allocation145_spill] sm:$0xff] }
 0x296   :  { %v2095_v28 = vadd.f32 %v2094_v40, %v7658_v0  ;;  %v2260_v29 = vadd.f32 %v2259_v26, %v7661_v12  ;;  %v2041_v52 = vadd.f32 %v2040_v45, %v7662_v41  ;;  %v2425_v5 = vadd.f32 %v2424_v27, %v7665_v42  ;;  %v7683_v40 = vld [vmem:[#allocation146_spill] sm:$0xff]  ;;  %v7684_v60 = vld [vmem:[#allocation147_spill] sm:$0xff]  ;;  %v7686_v45 = vld [vmem:[#allocation149_spill] sm:$0xff] }
 0x297   :  { %v2315_v19 = vadd.f32 %v2314_v37, %v7663_v36  ;;  %v2370_v13 = vadd.f32 %v2369_v14, %v7664_v62  ;;  %v2151_v22 = vadd.f32 %v2150_v55, %v7667_v8  ;;  %v2206_v63 = vadd.f32 %v2205_v58, %v7668_v10  ;;  %v7687_v37 = vld [vmem:[#allocation150_spill] sm:$0xff]  ;;  %v7688_v14 = vld [vmem:[#allocation151_spill] sm:$0xff] }
 0x298   :  { %v2096_v20 = vadd.f32 %v2095_v28, %v7666_v49  ;;  %v2261_v47 = vadd.f32 %v2260_v29, %v7669_v6  ;;  %v2042_v31 = vadd.f32 %v2041_v52, %v7670_v48  ;;  %v2426_v44 = vadd.f32 %v2425_v5, %v7673_v33 }
 0x299   :  { %v2316_v11 = vadd.f32 %v2315_v19, %v7671_v3  ;;  %v2371_v46 = vadd.f32 %v2370_v13, %v7672_v24  ;;  %v2152_v17 = vadd.f32 %v2151_v22, %v7675_v18  ;;  %v2207_v21 = vadd.f32 %v2206_v63, %v7676_v50 }
 0x29a   :  { %v2097_v7 = vadd.f32 %v2096_v20, %v7674_v4  ;;  %v2262_v2 = vadd.f32 %v2261_v47, %v7677_v38  ;;  %v2043_v53 = vadd.f32 %v2042_v31, %v7678_v34  ;;  %v2427_v23 = vadd.f32 %v2426_v44, %v7681_v15 }
 0x29b   :  { %v2317_v16 = vadd.f32 %v2316_v11, %v7679_v59  ;;  %v2372_v56 = vadd.f32 %v2371_v46, %v7680_v54  ;;  %v2153_v39 = vadd.f32 %v2152_v17, %v7683_v40  ;;  %v2208_v1 = vadd.f32 %v2207_v21, %v7684_v60  ;;  %v7689_v17 = vld [vmem:[#allocation89_spill] sm:$0xff]  ;;  %v7693_v40 = vld [vmem:[#allocation64_spill] sm:$0xff]  ;;  %v7694_v60 = vld [vmem:[#allocation51_spill] sm:$0xff] }
 0x29c   :  { %v2098_v9 = vadd.f32 %v2097_v7, %v7682_v35  ;;  %v2263_v26 = vadd.f32 %v2262_v2, %v7685_v51  ;;  %v2044_v25 = vrot.slane %v2043_v53, 4  ;;  %v2428_v57 = vadd.f32 %v2427_v23, %v7688_v14  ;;  %v7691_v21 = vld [vmem:[#allocation133_spill] sm:$0xff]  ;;  %v7700_v14 = vld [vmem:[#allocation24_spill] sm:$0xff] }
 0x29d   :  { %v2318_v32 = vadd.f32 %v2317_v16, %v7686_v45  ;;  %v2373_v43 = vadd.f32 %v2372_v56, %v7687_v37  ;;  %v2154_v0 = vrot.slane %v2153_v39, 4  ;;  %v2209_v28 = vrot.slane %v2208_v1, 4  ;;  %v7699_v37 = vld [vmem:[#allocation67_spill] sm:$0xff] }
 0x29e   :  { %v2099_v27 = vrot.slane %v2098_v9, 4  ;;  %v2264_v61 = vrot.slane %v2263_v26, 4  ;;  %v2045_v55 = vadd.f32 %v2044_v25, %v2043_v53  ;;  %v2429_v12 = vrot.slane %v2428_v57, 4  ;;  %v7697_v25 = vld [vmem:[#allocation66_spill] sm:$0xff] }
 0x29f   :  { %v2319_v30 = vrot.slane %v2318_v32, 4  ;;  %v2374_v58 = vrot.slane %v2373_v43, 4  ;;  %v2155_v41 = vadd.f32 %v2154_v0, %v2153_v39  ;;  %v2210_v52 = vadd.f32 %v2209_v28, %v2208_v1  ;;  %v7695_v1 = vld [vmem:[#allocation65_spill] sm:$0xff]  ;;  %v7702_v28 = vld [vmem:[#allocation68_spill] sm:$0xff] }
 0x2a0   :  { %v2100_v29 = vadd.f32 %v2099_v27, %v2098_v9  ;;  %v2265_v36 = vadd.f32 %v2264_v61, %v2263_v26  ;;  %v2046_v19 = vrot.slane %v2045_v55, 2  ;;  %v2430_v42 = vadd.f32 %v2429_v12, %v2428_v57  ;;  %v7692_v9 = vld [vmem:[#allocation50_spill] sm:$0xff]  ;;  %v7696_v26 = vld [vmem:[#allocation52_spill] sm:$0xff]  ;;  %v7701_v57 = vld [vmem:[#allocation23_spill] sm:$0xff] }
 0x2a1   :  { %v2320_v62 = vadd.f32 %v2319_v30, %v2318_v32  ;;  %v2375_v13 = vadd.f32 %v2374_v58, %v2373_v43  ;;  %v2156_v49 = vrot.slane %v2155_v41, 2  ;;  %v2211_v20 = vrot.slane %v2210_v52, 2  ;;  %v7698_v32 = vld [vmem:[#allocation53_spill] sm:$0xff]  ;;  %v7704_v58 = vld [vmem:[#allocation63_spill] sm:$0xff] }
 0x2a2   :  { %v2101_v5 = vrot.slane %v2100_v29, 2  ;;  %v2266_v8 = vrot.slane %v2265_v36, 2  ;;  %v2047_v22 = vadd.f32 %v2046_v19, %v2045_v55  ;;  %v2431_v6 = vrot.slane %v2430_v42, 2  ;;  %v7703_v55 = vld [vmem:[#allocation33_spill] sm:$0xff]  ;;  %v7707_v19 = vld [vmem:[#allocation70_spill] sm:$0xff] }
 0x2a3   :  { %v2321_v10 = vrot.slane %v2320_v62, 2  ;;  %v2376_v63 = vrot.slane %v2375_v13, 2  ;;  %v2157_v48 = vadd.f32 %v2156_v49, %v2155_v41  ;;  %v2212_v31 = vadd.f32 %v2211_v20, %v2210_v52  ;;  %v7706_v52 = vld [vmem:[#allocation69_spill] sm:$0xff]  ;;  %v7710_v20 = vld [vmem:[#allocation90_spill] sm:$0xff] }
 0x2a4   :  { %v2102_v47 = vadd.f32 %v2101_v5, %v2100_v29  ;;  %v2267_v3 = vadd.f32 %v2266_v8, %v2265_v36  ;;  %v2048_v11 = vrot.slane %v2047_v22, 1  ;;  %v2432_v33 = vadd.f32 %v2431_v6, %v2430_v42  ;;  %v7705_v29 = vld [vmem:[#allocation13_spill] sm:$0xff] }
 0x2a5   :  { %v2322_v24 = vadd.f32 %v2321_v10, %v2320_v62  ;;  %v2377_v46 = vadd.f32 %v2376_v63, %v2375_v13  ;;  %v2158_v4 = vrot.slane %v2157_v48, 1  ;;  %v2213_v7 = vrot.slane %v2212_v31, 1  ;;  %v7708_v13 = vld [vmem:[#allocation42_spill] sm:$0xff]  ;;  %v7709_v5 = vld [vmem:[#allocation97_spill] sm:$0xff] }
 0x2a6   :  { %v2103_v44 = vrot.slane %v2102_v47, 1  ;;  %v2268_v18 = vrot.slane %v2267_v3, 1  ;;  %v7690_v50 = vunpack.c.h.bf16 %v7689_v17  ;;  %v2433_v53 = vrot.slane %v2432_v33, 1  ;;  %v7712_v63 = vld [vmem:[#allocation101_spill] sm:$0xff] }
 0x2a7   :  { %v2323_v2 = vrot.slane %v2322_v24, 1  ;;  %v2378_v34 = vrot.slane %v2377_v46, 1  ;;  %v2049_v59 = vadd.f32 %v2048_v11, %v2047_v22  ;;  %v2159_v54 = vadd.f32 %v2158_v4, %v2157_v48  ;;  %v7711_v22 = vld [vmem:[#allocation94_spill] sm:$0xff]  ;;  %v7715_v11 = vld [vmem:[#allocation100_spill] sm:$0xff] }
 0x2a8   :  { %v1994_v38 = vmul.f32 %v7691_v21, %v7690_v50  ;;  %v2104_v16 = vadd.f32 %v2103_v44, %v2102_v47  ;;  %v2214_v56 = vadd.f32 %v2213_v7, %v2212_v31  ;;  %v2269_v15 = vadd.f32 %v2268_v18, %v2267_v3  ;;  %v7713_v47 = vld [vmem:[#allocation98_spill] sm:$0xff]  ;;  %v7714_v31 = vld [vmem:[#allocation99_spill] sm:$0xff]  ;;  %v7719_v50 = vld [vmem:[#allocation116_spill] sm:$0xff] }
 0x2a9   :  { %v2324_v23 = vadd.f32 %v2323_v2, %v2322_v24  ;;  %v2379_v35 = vadd.f32 %v2378_v34, %v2377_v46  ;;  %v2473_v39 = vadd.f32 %v7693_v40, %v7692_v9  ;;  %v2528_v51 = vadd.f32 %v7695_v1, %v7694_v60  ;;  %v7717_v4 = vld [vmem:[#allocation106_spill] sm:$0xff]  ;;  %v7718_v18 = vld [vmem:[#allocation111_spill] sm:$0xff]  ;;  %v7722_v40 = vld [vmem:[#allocation105_spill] sm:$0xff] }
 0x2aa   :  { %v2583_v45 = vadd.f32 %v7697_v25, %v7696_v26  ;;  %v2638_v43 = vadd.f32 %v7699_v37, %v7698_v32  ;;  %v2726_v27 = vadd.f32 %v7701_v57, %v7700_v14  ;;  %v2434_v0 = vadd.f32 %v2433_v53, %v2432_v33  ;;  %v7716_v33 = vld [vmem:[#allocation102_spill] sm:$0xff]  ;;  %v7720_v2 = vld [vmem:[#allocation103_spill] sm:$0xff]  ;;  %v7721_v53 = vld [vmem:[#allocation104_spill] sm:$0xff] }
 0x2ab   :  { %v2474_v61 = vadd.f32 %v2473_v39, %v7702_v28  ;;  %v2729_v30 = vsel %vm2655_vm0, %v7703_v55, 0.0  ;;  %v2731_v12 = vsel %vm2655_vm0, %v7704_v58, 0.0  ;;  %v2529_v41 = vadd.f32 %v2528_v51, %v7705_v29  ;;  %v7723_v1 = vld [vmem:[#allocation109_spill] sm:$0xff]  ;;  %v7726_v37 = vld [vmem:[#allocation135_spill] sm:$0xff]  ;;  %v7730_v58 = vld [vmem:[#allocation112_spill] sm:$0xff] }
 0x2ac   :  { %v2584_v36 = vadd.f32 %v2583_v45, %v7706_v52  ;;  %v2639_v62 = vadd.f32 %v2638_v43, %v7707_v19  ;;  %v2728_v42 = vadd.f32 %v7708_v13, %v2726_v27  ;;  %v2733_v8 = vsel %vm2655_vm0, %v7710_v20, 0.0  ;;  %v7724_v26 = vld [vmem:[#allocation21_spill] sm:$0xff]  ;;  %v7725_v45 = vld [vmem:[#allocation78_spill] sm:$0xff]  ;;  %v7727_v14 = vld [vmem:[#allocation15_spill] sm:$0xff] }
 0x2ad   :  { %v2475_v49 = vadd.f32 %v2474_v61, %v7709_v5  ;;  %v2735_v10 = vsel %vm2655_vm0, %v7711_v22, 0.0  ;;  %v2737_v6 = vsel %vm2655_vm0, %v7712_v63, 0.0  ;;  %v2530_v48 = vadd.f32 %v2529_v41, %v7713_v47  ;;  %v7728_v27 = vld [vmem:[#allocation16_spill] sm:$0xff]  ;;  %v7729_v61 = vld [vmem:[#allocation110_spill] sm:$0xff]  ;;  %v7731_v29 = vld [vmem:[#allocation143_spill] sm:$0xff] }
 0x2ae   :  { %v2585_v3 = vadd.f32 %v2584_v36, %v7714_v31  ;;  %v2640_v24 = vadd.f32 %v2639_v62, %v7715_v11  ;;  %v2730_v46 = vadd.f32 %v2729_v30, %v2728_v42  ;;  %v2739_v7 = vsel %vm2655_vm0, %v7717_v4, 0.0  ;;  %v7732_v36 = vld [vmem:[#allocation72_spill] sm:$0xff]  ;;  %v7733_v62 = vld [vmem:[#allocation113_spill] sm:$0xff]  ;;  %v7734_v42 = vld [vmem:[#allocation114_spill] sm:$0xff] }
 0x2af   :  { %v2476_v44 = vadd.f32 %v2475_v49, %v7716_v33  ;;  %v2741_v17 = vsel %vm2655_vm0, %v7718_v18, 0.0  ;;  %v2743_v21 = vsel %vm2655_vm0, %v7719_v50, 0.0  ;;  %v2531_v34 = vadd.f32 %v2530_v48, %v7720_v2  ;;  %v7735_v49 = vld [vmem:[#allocation115_spill] sm:$0xff]  ;;  %v7736_v63 = vld [vmem:[#allocation17_spill] sm:$0xff] }
 0x2b0   :  { %v2586_v9 = vadd.f32 %v2585_v3, %v7721_v53  ;;  %v2641_v39 = vadd.f32 %v2640_v24, %v7722_v40  ;;  %v2732_v60 = vadd.f32 %v2731_v12, %v2730_v46  ;;  %v2745_v25 = vsel %vm2655_vm0, %v7724_v26, 0.0  ;;  %v7739_v24 = vld [vmem:[#allocation20_spill] sm:$0xff]  ;;  %v7742_v50 = vld [vmem:[#allocation77_spill] sm:$0xff]  ;;  %v7744_v40 = vld [vmem:[#allocation83_spill] sm:$0xff] }
 0x2b1   :  { %v2477_v51 = vadd.f32 %v2476_v44, %v7723_v1  ;;  %v2747_v32 = vsel %vm2655_vm0, %v7725_v45, 0.0  ;;  %v6432_v43 = vsel %vm2655_vm0, %v7726_v37, 0.0  ;;  %v2532_v57 = vadd.f32 %v2531_v34, %v7727_v14  ;;  %v7740_v44 = vld [vmem:[#allocation76_spill] sm:$0xff]  ;;  %v7743_v34 = vld [vmem:[#allocation127_spill] sm:$0xff] }
 0x2b2   :  { %v2587_v28 = vadd.f32 %v2586_v9, %v7728_v27  ;;  %v2642_v55 = vadd.f32 %v2641_v39, %v7729_v61  ;;  %v2734_v30 = vadd.f32 %v2733_v8, %v2732_v60  ;;  %v6440_v41 = vsel %vm2655_vm0, %v7731_v29, 0.0  ;;  %v7748_v45 = vld [vmem:[#allocation88_spill] sm:$0xff]  ;;  %v7751_v27 = vld [vmem:[#allocation142_spill] sm:$0xff] }
 0x2b3   :  { %v2478_v12 = vadd.f32 %v2477_v51, %v7730_v58  ;;  %v6443_v52 = vsel %vm2655_vm0, %v1994_v38, 0.0  ;;  %v2771_v19 = vadd.f32 %v7732_v36, %v2049_v59  ;;  %v2533_v13 = vadd.f32 %v2532_v57, %v7733_v62  ;;  %v7737_v38 = vld [vmem:[#allocation18_spill] sm:$0xff]  ;;  %v7738_v59 = vld [vmem:[#allocation19_spill] sm:$0xff]  ;;  %v7750_v57 = vld [vmem:[#allocation141_spill] sm:$0xff] }
 0x2b4   :  { %v2588_v5 = vadd.f32 %v2587_v28, %v7734_v42  ;;  %v2643_v20 = vadd.f32 %v2642_v55, %v7735_v49  ;;  %v2736_v22 = vadd.f32 %v2735_v10, %v2734_v30  ;;  %v2772_v47 = vadd.f32 %v7732_v36, %v2104_v16  ;;  %v7747_v51 = vld [vmem:[#allocation134_spill] sm:$0xff]  ;;  %v7752_v55 = vld [vmem:[#allocation152_spill] sm:$0xff]  ;;  %v7753_v58 = vld [vmem:[#allocation153_spill] sm:$0xff] }
 0x2b5   :  { %v2479_v8 = vadd.f32 %v2478_v12, %v7736_v63  ;;  %v6452_v48 = vadd.f32 %v7732_v36, %v2159_v54  ;;  %v6455_v31 = vadd.f32 %v7732_v36, %v2214_v56  ;;  %v2534_v3 = vadd.f32 %v2533_v13, %v7737_v38  ;;  %v7741_v54 = vld [vmem:[#allocation126_spill] sm:$0xff]  ;;  %v7755_v13 = vld [vmem:[#allocation155_spill] sm:$0xff] }
 0x2b6   :  { %v2589_v11 = vadd.f32 %v2588_v5, %v7738_v59  ;;  %v2644_v46 = vadd.f32 %v2643_v20, %v7739_v24  ;;  %v2738_v33 = vadd.f32 %v2737_v6, %v2736_v22  ;;  %v2775_v10 = vadd.f32 %v7732_v36, %v2269_v15  ;;  %v7745_v15 = vld [vmem:[#allocation132_spill] sm:$0xff]  ;;  %v7754_v29 = vld [vmem:[#allocation154_spill] sm:$0xff] }
 0x2b7   :  { %v2480_v4 = vadd.f32 %v2479_v8, %v7740_v44  ;;  %v6463_v18 = vadd.f32 %v7732_v36, %v2324_v23  ;;  %v6466_v16 = vadd.f32 %v7732_v36, %v2379_v35  ;;  %v2535_v56 = vadd.f32 %v2534_v3, %v7741_v54  ;;  %v7746_v23 = vld [vmem:[#allocation84_spill] sm:$0xff] }
 0x2b8   :  { %v2590_v2 = vadd.f32 %v2589_v11, %v7742_v50  ;;  %v2645_v53 = vadd.f32 %v2644_v46, %v7743_v34  ;;  %v2740_v9 = vadd.f32 %v2739_v7, %v2738_v33  ;;  %v2778_v6 = vadd.f32 %v7732_v36, %v2434_v0  ;;  %v7749_v7 = vld [vmem:[#allocation140_spill] sm:$0xff] }
 0x2b9   :  { %v2481_v39 = vadd.f32 %v2480_v4, %v7744_v40  ;;  %vm2784_vm1 = vcmp.gt.f32.partialorder %v2771_v19, 0.0  ;;  %vm2785_vm2 = vcmp.gt.f32.partialorder %v2772_v47, 0.0  ;;  %v2536_v60 = vadd.f32 %v2535_v56, %v7745_v15 }
 0x2ba   :  { %v2591_v1 = vadd.f32 %v2590_v2, %v7746_v23  ;;  %v2646_v35 = vadd.f32 %v2645_v53, %v7747_v51  ;;  %v2742_v26 = vadd.f32 %v2741_v17, %v2740_v9  ;;  %vm2786_vm3 = vcmp.gt.f32.partialorder %v6452_v48, 0.0 }
 0x2bb   :  { %v2482_v37 = vadd.f32 %v2481_v39, %v7748_v45  ;;  %vm2787_vm4 = vcmp.gt.f32.partialorder %v6455_v31, 0.0  ;;  %vm2788_vm5 = vcmp.gt.f32.partialorder %v2775_v10, 0.0  ;;  %v2537_v14 = vadd.f32 %v2536_v60, %v7749_v7 }
 0x2bc   :  { %v2592_v0 = vadd.f32 %v2591_v1, %v7750_v57  ;;  %v2647_v28 = vadd.f32 %v2646_v35, %v7751_v27  ;;  %v2744_v61 = vadd.f32 %v2743_v21, %v2742_v26  ;;  %vm2789_vm6 = vcmp.gt.f32.partialorder %v6463_v18, 0.0 }
 0x2bd   :  { %v2483_v30 = vadd.f32 %v2482_v37, %v7752_v55  ;;  %vm2790_vm7 = vcmp.gt.f32.partialorder %v6466_v16, 0.0  ;;  %vm2791_vm8 = vcmp.gt.f32.partialorder %v2778_v6, 0.0  ;;  %v2797_v17 = vmul.f32 0.01, %v2771_v19 }
 0x2be   :  { %v2538_v12 = vadd.f32 %v2537_v14, %v7753_v58  ;;  %v2593_v62 = vadd.f32 %v2592_v0, %v7754_v29  ;;  %v2648_v42 = vadd.f32 %v2647_v28, %v7755_v13  ;;  %v2746_v5 = vadd.f32 %v2745_v25, %v2744_v61  ;;  %v7756_v61 = vld [vmem:[#allocation71_spill] sm:$0xff] }
 0x2bf   :  { %v2484_v49 = vrot.slane %v2483_v30, 4  ;;  %v2798_v20 = vmul.f32 0.01, %v2772_v47  ;;  %v2799_v22 = vmul.f32 0.01, %v6452_v48  ;;  %v2810_v21 = vsel %vm2784_vm1, %v2771_v19, %v2797_v17 }
 0x2c0   :  { %v2539_v63 = vrot.slane %v2538_v12, 4  ;;  %v2594_v8 = vrot.slane %v2593_v62, 4  ;;  %v2649_v38 = vrot.slane %v2648_v42, 4  ;;  %v2748_v3 = vadd.f32 %v2747_v32, %v2746_v5 }
 0x2c1   :  { %v2485_v59 = vadd.f32 %v2484_v49, %v2483_v30  ;;  %v2800_v11 = vmul.f32 0.01, %v6455_v31  ;;  %v2801_v24 = vmul.f32 0.01, %v2775_v10  ;;  %v2802_v46 = vmul.f32 0.01, %v6463_v18 }
 0x2c2   :  { %v2540_v33 = vadd.f32 %v2539_v63, %v2538_v12  ;;  %v2595_v44 = vadd.f32 %v2594_v8, %v2593_v62  ;;  %v2650_v4 = vadd.f32 %v2649_v38, %v2648_v42  ;;  %v2750_v25 = vadd.f32 %v6432_v43, %v2748_v3 }
 0x2c3   :  { %v2486_v54 = vrot.slane %v2485_v59, 2  ;;  %v2803_v56 = vmul.f32 0.01, %v6466_v16  ;;  %v2804_v50 = vmul.f32 0.01, %v2778_v6  ;;  %v2811_v19 = vsel %vm2785_vm2, %v2772_v47, %v2798_v20 }
 0x2c4   :  { %v2541_v2 = vrot.slane %v2540_v33, 2  ;;  %v2596_v34 = vrot.slane %v2595_v44, 2  ;;  %v2651_v32 = vrot.slane %v2650_v4, 2  ;;  %v2752_v53 = vadd.f32 %v6440_v41, %v2750_v25 }
 0x2c5   :  { %v2487_v9 = vadd.f32 %v2486_v54, %v2485_v59  ;;  %v2812_v40 = vsel %vm2786_vm3, %v6452_v48, %v2799_v22  ;;  %v2813_v43 = vsel %vm2787_vm4, %v6455_v31, %v2800_v11  ;;  %v2814_v39 = vsel %vm2788_vm5, %v2775_v10, %v2801_v24 }
 0x2c6   :  { %v2542_v15 = vadd.f32 %v2541_v2, %v2540_v33  ;;  %v2597_v60 = vadd.f32 %v2596_v34, %v2595_v44  ;;  %v2652_v23 = vadd.f32 %v2651_v32, %v2650_v4  ;;  %v2754_v47 = vadd.f32 %v6443_v52, %v2752_v53 }
 0x2c7   :  { %v2488_v1 = vrot.slane %v2487_v9, 1  ;;  %v2815_v41 = vsel %vm2789_vm6, %v6463_v18, %v2802_v46  ;;  %v2816_v48 = vsel %vm2790_vm7, %v6466_v16, %v2803_v56  ;;  %v2817_v51 = vsel %vm2791_vm8, %v2778_v6, %v2804_v50 }
 0x2c8   :  { %v2543_v35 = vrot.slane %v2542_v15, 1  ;;  %v2598_v31 = vrot.slane %v2597_v60, 1  ;;  %v2653_v26 = vrot.slane %v2652_v23, 1  ;;  %v2755_v10 = vrot.slane %v2754_v47, 4 }
 0x2c9   :  { %v2489_v45 = vadd.f32 %v2488_v1, %v2487_v9  ;;  %v2836_v37 = vcombine.low %v2810_v21, %v2811_v19  ;;  %v2837_v7 = vcombine.low %v2812_v40, %v2813_v43  ;;  %v2838_v14 = vcombine.low %v2814_v39, %v2815_v41 }
 0x2ca   :  { %v2544_v52 = vadd.f32 %v2543_v35, %v2542_v15  ;;  %v2599_v57 = vadd.f32 %v2598_v31, %v2597_v60  ;;  %v2654_v0 = vadd.f32 %v2653_v26, %v2652_v23  ;;  %v2756_v27 = vadd.f32 %v2755_v10, %v2754_v47 }
 0x2cb   :  { %v2779_v18 = vadd.f32 %v7732_v36, %v2489_v45  ;;  %v2839_v28 = vcombine.low %v2816_v48, %v2817_v51  ;;  %v2846_v55 = vrot.slane %v2836_v37, %v7756_v61  ;;  %v2853_v16 = vrot.slane %v2837_v7, %v7756_v61 }
 0x2cc   :  { %v2757_v6 = vrot.slane %v2756_v27, 2  ;;  %v2780_v30 = vadd.f32 %v7732_v36, %v2544_v52  ;;  %v2781_v17 = vadd.f32 %v7732_v36, %v2599_v57  ;;  %v2782_v58 = vadd.f32 %v7732_v36, %v2654_v0 }
 0x2cd   :  { %vm2792_vm9 = vcmp.gt.f32.partialorder %v2779_v18, 0.0  ;;  %v2805_v12 = vmul.f32 0.01, %v2779_v18  ;;  %v2860_v29 = vrot.slane %v2838_v14, %v7756_v61  ;;  %v2867_v62 = vrot.slane %v2839_v28, %v7756_v61 }
 0x2ce   :  { %v2758_v13 = vadd.f32 %v2757_v6, %v2756_v27  ;;  %vm2793_vm10 = vcmp.gt.f32.partialorder %v2780_v30, 0.0  ;;  %vm2794_vm11 = vcmp.gt.f32.partialorder %v2781_v17, 0.0  ;;  %vm2795_vm12 = vcmp.gt.f32.partialorder %v2782_v58, 0.0 }
 0x2cf   :  { %v2806_v42 = vmul.f32 0.01, %v2780_v30  ;;  %v2807_v5 = vmul.f32 0.01, %v2781_v17  ;;  %v2808_v49 = vmul.f32 0.01, %v2782_v58  ;;  %v2818_v20 = vsel %vm2792_vm9, %v2779_v18, %v2805_v12 }
 0x2d0   :  { %v2759_v22 = vrot.slane %v2758_v13, 1  ;;  %v2868_v21 = vcombine.low %v2846_v55, %v2853_v16  ;;  %v2869_v63 = vcombine.low %v2860_v29, %v2867_v62  ;;  %v7757_v53 = vlaneseq }
 0x2d1   :  { %v2819_v8 = vsel %vm2793_vm10, %v2780_v30, %v2806_v42  ;;  %v2820_v38 = vsel %vm2794_vm11, %v2781_v17, %v2807_v5  ;;  %v2821_v3 = vsel %vm2795_vm12, %v2782_v58, %v2808_v49 }
 0x2d2   :  { %v2760_v59 = vadd.f32 %v2759_v22, %v2758_v13  ;;  %v2876_v11 = vrot.slane %v2868_v21, %v7756_v61  ;;  %v2883_v24 = vrot.slane %v2869_v63, %v7756_v61  ;;  %v2885_v46 = vcombine.low %v2818_v20, %v2819_v8 }
 0x2d3   :  { %v2886_v33 = vcombine.low %v2820_v38, %v2821_v3  ;;  %vm2929_vm14 = vcmp.lt.s32.totalorder %v7757_v53, 544 }
 0x2d4   :  { %v2783_v44 = vadd.f32 %v7732_v36, %v2760_v59  ;;  %v2884_v4 = vcombine.low %v2876_v11, %v2883_v24  ;;  %v2893_v25 = vrot.slane %v2885_v46, %v7756_v61 }
 0x2d5   :  { %v2900_v54 = vrot.slane %v2886_v33, %v7756_v61 }
 0x2d6   :  { %vm2796_vm13 = vcmp.gt.f32.partialorder %v2783_v44, 0.0  ;;  %v2809_v56 = vmul.f32 0.01, %v2783_v44  ;;  %2926 = vst [vmem:[#allocation8] sm:$0xff] %v2884_v4 }
 0x2d7   :  { %v2908_v50 = vcombine.low %v2893_v25, %v2900_v54 }
 0x2d8   :  { %v2822_v19 = vsel %vm2796_vm13, %v2783_v44, %v2809_v56 }
 0x2d9   :  { %v2907_v2 = vrot.slane %v2822_v19, %v7756_v61  ;;  %v2915_v34 = vrot.slane %v2908_v50, %v7756_v61 }
 0x2db   :  { %v2922_v32 = vrot.slane %v2907_v2, %v7756_v61 }
 0x2dd   :  { %v2923_v36 = vcombine.low %v2915_v34, %v2922_v32 }
 0x2df   :  { %2931 = vst.msk [vmem:[#allocation8 + $0x8] sm:$0x1f] %vm2929_vm14, %v2923_v36 }
 0x2e0   :  { %3014 = shalt.err (!%p3011_p6)
}
 0x2e1   :  { %s3015_s18 = scalar_lea.hbm %s6543_s3, 208 }
 0x2e2   :  { %p3016_p7 = scmp.ne.s32.totalorder %s6543_s3, %s3015_s18  ;;  %p3019_p8 = scmp.lt.u32.totalorder %s3015_s18, %s6543_s3 }
 0x2e4   :  { %p3021_p9 = pnand %p3019_p8, %p3016_p7 }
 0x2e6   :  { %3024 = shalt.err (!%p3021_p9)
}
 0x2e7   :  { %2941 = dma.vmem_to_hbm [thread:$0]  %s2939_s13, 208, %s6543_s3, [#allocation5]  }
 0x2e8   :  { %3029 = dma.done.wait [#allocation5], 208  }
 0x2e9   :  { %3030 = vsyncadd [#allocation5], 4294967088 }
 0x2ea   :  { %2945 = vsyncpa [#allocation4], 1 }
 0x2eb   :  { %2946 = vsyncpa [#allocation7], 1 }
 0x2ec   :  { %2947 = vsyncpa [#allocation5], 1 }

</bundles_post_ra>
